<compile_context>
chip_gen: v7x
topology: tpu7x:2x2x1
jax: 0.10.0
libtpu: 0.0.40
codegen_flags: <defaults>
</compile_context>

<pallas_src>
import jax
import jax.numpy as jnp
from jax import lax
from jax.experimental import pallas as pl
from jax.experimental.pallas import tpu as pltpu

LANE = 128
SUBLANE_F32 = 8
SUBLANE_BF16 = 16


# ----------------------------------------------------------------------------
# Helpers: padding / dtype / VMEM budget
# ----------------------------------------------------------------------------
def _round_up(x, m):
    return ((x + m - 1) // m) * m


def _pad2d(a, rows_p, cols_p, dtype):
    r, c = a.shape
    return jnp.pad(a, ((0, rows_p - r), (0, cols_p - c))).astype(dtype)


def _pad_wb(w, b, compute_dtype):
    """Pad a (fan_in, fan_out) weight + bias to lane multiples; bias stays f32."""
    fin, fout = w.shape
    finp, foutp = _round_up(fin, LANE), _round_up(fout, LANE)
    wp = _pad2d(w, finp, foutp, compute_dtype)
    bp = jnp.pad(b, (0, foutp - fout)).reshape(1, foutp).astype(jnp.float32)
    return wp, bp


def select_compute_dtype():
    """bf16 MXU inputs (f32 accumulation) on every TPU chip — the v5e MXU is
    bf16-native too; f32 only on non-TPU backends."""
    try:
        kind = jax.devices()[0].device_kind.lower()
    except Exception:
        return jnp.float32
    return jnp.bfloat16 if "tpu" in kind else jnp.float32


def _vmem_cap_bytes():
    try:
        kind = jax.devices()[0].device_kind.lower()
    except Exception:
        return 100 * (1 << 20)
    if ("v7" in kind) or ("7x" in kind):
        return 56 * (1 << 20)   # v7x: 64 MiB physical VMEM, leave headroom
    return 100 * (1 << 20)      # v5e/v6e: 128 MiB physical VMEM


def _vmem_limit_bytes(operands, out_bytes, extra_bytes):
    op_bytes = sum(int(a.size) * a.dtype.itemsize for a in operands)
    need = int(1.5 * (op_bytes + out_bytes + extra_bytes)) + (8 << 20)
    return int(max(32 << 20, min(need, _vmem_cap_bytes())))


# ----------------------------------------------------------------------------
# Fully fused Pallas kernel: mol branch + pro branch + combined head
# ----------------------------------------------------------------------------
def _dta_gcn_kernel(
        adj_m_ref, xm_ref, pool_m_ref,
        mw1, mb1, mw2, mb2, mw3, mb3, mwg1, mbg1, mwg2, mbg2,
        adj_p_ref, xp_ref, pool_p_ref,
        pw1, pb1, pw2, pb2, pw3, pb3, pwg1, pbg1, pwg2, pbg2,
        wf1a, wf1b, bf1, wf2, bf2, wo, bo,
        o_ref):
    f32 = jnp.float32
    cdt = adj_m_ref.dtype          # MXU input dtype (bf16 on TPU, else f32)

    def gcn_layer(adj, h, w_ref, b_ref, act):
        w = w_ref[...]
        h = h.astype(cdt)
        # Matmul-order selection: aggregate first ((A@H)@W) when Fout > Fin,
        # feature-first (A@(H@W)) otherwise — keeps the N^2 matmul narrow.
        if w.shape[1] > w.shape[0]:
            ah = jnp.dot(adj, h, preferred_element_type=f32).astype(cdt)
            y = jnp.dot(ah, w, preferred_element_type=f32)
        else:
            hw = jnp.dot(h, w, preferred_element_type=f32).astype(cdt)
            y = jnp.dot(adj, hw, preferred_element_type=f32)
        y = y + b_ref[...]                        # f32 bias, added exactly once
        # TODO(synk): on v6e/v7x the bias+ReLU epilogue could run in bf16 to
        #   halve vreg pressure; kept f32 here to stay reference-faithful.
        return jnp.maximum(y, 0.0) if act else y

    def branch(adj_ref, x_ref, pool_ref,
               w1, b1, w2, b2, w3, b3, wg1, bg1, wg2, bg2, act3):
        adj = adj_ref[...]
        h = gcn_layer(adj, x_ref[...], w1, b1, True)
        h = gcn_layer(adj, h, w2, b2, True)
        h = gcn_layer(adj, h, w3, b3, act3)       # mol: no ReLU, pro: ReLU
        # Global mean pool as a matmul with the [Bp, Np] pooling matrix.
        g = jnp.dot(pool_ref[...], h.astype(cdt), preferred_element_type=f32)
        # fc_g1 + ReLU   (dropout = identity in eval mode)
        g = jnp.dot(g.astype(cdt), wg1[...], preferred_element_type=f32)
        g = jnp.maximum(g + bg1[...], 0.0)
        # fc_g2          (dropout = identity in eval mode)
        g = jnp.dot(g.astype(cdt), wg2[...], preferred_element_type=f32)
        return g + bg2[...]

    g_mol = branch(adj_m_ref, xm_ref, pool_m_ref,
                   mw1, mb1, mw2, mb2, mw3, mb3, mwg1, mbg1, mwg2, mbg2,
                   act3=False)
    g_pro = branch(adj_p_ref, xp_ref, pool_p_ref,
                   pw1, pb1, pw2, pb2, pw3, pb3, pwg1, pbg1, pwg2, pbg2,
                   act3=True)

    # Combined head.  concat(x, xt) @ W_fc1 == x @ W_fc1[:OD] + xt @ W_fc1[OD:]
    # — split-sum avoids an in-kernel concatenate and is padding-safe.
    h = (jnp.dot(g_mol.astype(cdt), wf1a[...], preferred_element_type=f32)
         + jnp.dot(g_pro.astype(cdt), wf1b[...], preferred_element_type=f32))
    h = jnp.maximum(h + bf1[...], 0.0)            # fc1 + ReLU (dropout: identity)
    h = jnp.dot(h.astype(cdt), wf2[...], preferred_element_type=f32)
    h = jnp.maximum(h + bf2[...], 0.0)            # fc2 + ReLU (dropout: identity)
    h = jnp.dot(h.astype(cdt), wo[...], preferred_element_type=f32)
    o_ref[...] = (h + bo[...]).astype(o_ref.dtype)  # out layer (lane-dense store)


# ----------------------------------------------------------------------------
# Graph preprocessing (plain JAX) — built directly at padded shape & dtype
# ----------------------------------------------------------------------------
def gcn_norm_dense_padded(edge_index, edge_weight, num_nodes, n_pad, dtype):
    """Padded dense symmetric-normalized adjacency with self-loops:
       Ahat = D^{-1/2} (A + I) D^{-1/2},  A[dst, src] = w(src->dst).
       Padded rows/cols are all-zero, so padded nodes never contaminate
       real nodes inside the kernel."""
    src, dst = edge_index[0], edge_index[1]
    if edge_weight is None:
        edge_weight = jnp.ones(src.shape[0], dtype=jnp.float32)
    A = jnp.zeros((n_pad, n_pad), dtype=jnp.float32)
    A = A.at[dst, src].add(edge_weight)
    ids = jnp.arange(num_nodes)
    A = A.at[ids, ids].add(1.0)                  # self loops for real nodes only
    deg = A.sum(axis=1)
    dinv = jnp.where(deg > 0, lax.rsqrt(deg), 0.0)
    return (dinv[:, None] * A * dinv[None, :]).astype(dtype)


def mean_pool_matrix_padded(batch, num_graphs, b_pad, n_pad, dtype):
    """Padded P [Bp, Np]: P[b, n] = 1/|graph b| if batch[n] == b else 0."""
    n = batch.shape[0]
    batch_p = jnp.pad(batch, (0, n_pad - n), constant_values=-1)
    onehot = (batch_p[None, :] == jnp.arange(b_pad)[:, None]).astype(jnp.float32)
    counts = jnp.maximum(onehot.sum(axis=1, keepdims=True), 1.0)
    return (onehot / counts).astype(dtype)


# ----------------------------------------------------------------------------
# Model: parameter init + padded-parameter preparation + forward
# ----------------------------------------------------------------------------
def init_params(key, n_output=1, num_features_pro=33, num_features_mol=78,
                output_dim=128):
    def dense(key, fan_in, fan_out):
        k1, k2 = jax.random.split(key)
        lim = 1.0 / jnp.sqrt(fan_in)
        w = jax.random.uniform(k1, (fan_in, fan_out), jnp.float32, -lim, lim)
        b = jax.random.uniform(k2, (fan_out,), jnp.float32, -lim, lim)
        return w, b

    keys = jax.random.split(key, 13)
    p = {}
    p["mol_conv1"] = dense(keys[0], num_features_mol, num_features_mol)
    p["mol_conv2"] = dense(keys[1], num_features_mol, num_features_mol * 2)
    p["mol_conv3"] = dense(keys[2], num_features_mol * 2, num_features_mol * 4)
    p["mol_fc_g1"] = dense(keys[3], num_features_mol * 4, 1024)
    p["mol_fc_g2"] = dense(keys[4], 1024, output_dim)
    p["pro_conv1"] = dense(keys[5], num_features_pro, num_features_pro)
    p["pro_conv2"] = dense(keys[6], num_features_pro, num_features_pro * 2)
    p["pro_conv3"] = dense(keys[7], num_features_pro * 2, num_features_pro * 4)
    p["pro_fc_g1"] = dense(keys[8], num_features_pro * 4, 1024)
    p["pro_fc_g2"] = dense(keys[9], 1024, output_dim)
    p["fc1"] = dense(keys[10], 2 * output_dim, 1024)
    p["fc2"] = dense(keys[11], 1024, 512)
    p["out"] = dense(keys[12], 512, n_output)
    return p


def prepare_params(params, compute_dtype, output_dim=128, n_output=1):
    """Lane-pad and dtype-cast all weights once at load time (biases stay f32)."""
    def pp(name):
        return _pad_wb(*params[name], compute_dtype)

    mol = [pp(n) for n in ("mol_conv1", "mol_conv2", "mol_conv3",
                           "mol_fc_g1", "mol_fc_g2")]
    pro = [pp(n) for n in ("pro_conv1", "pro_conv2", "pro_conv3",
                           "pro_fc_g1", "pro_fc_g2")]

    # Split fc1 into its mol-half and pro-half so the kernel computes
    # x@W_a + xt@W_b on the independently padded branch outputs.
    w_fc1, b_fc1 = params["fc1"]
    od = output_dim
    odp = _round_up(od, LANE)
    hid_p = _round_up(w_fc1.shape[1], LANE)
    wf1a = _pad2d(w_fc1[:od], odp, hid_p, compute_dtype)
    wf1b = _pad2d(w_fc1[od:], odp, hid_p, compute_dtype)
    bf1 = jnp.pad(b_fc1, (0, hid_p - b_fc1.shape[0])).reshape(1, hid_p)
    bf1 = bf1.astype(jnp.float32)
    wf2, bf2 = pp("fc2")
    wo, bo = pp("out")

    return {
        "compute_dtype": compute_dtype,
        "output_dim": output_dim,
        "n_output": n_output,
        "mol": mol,
        "pro": pro,
        "head": [wf1a, wf1b, bf1, wf2, bf2, wo, bo],
    }


def dta_gcn_forward(prepared,
                    mol_x, mol_edge_index, mol_edge_weight, mol_batch,
                    pro_x, pro_edge_index, pro_edge_weight, pro_batch,
                    num_graphs):
    cdt = prepared["compute_dtype"]
    bsub = SUBLANE_BF16 if cdt == jnp.bfloat16 else SUBLANE_F32
    B = num_graphs
    Bp = _round_up(B, bsub)

    # --- molecule graph (edge weights NOT used, matching the torch forward) ---
    Nm = mol_x.shape[0]
    Npm = _round_up(Nm, LANE)
    adj_m = gcn_norm_dense_padded(mol_edge_index, None, Nm, Npm, cdt)
    pool_m = mean_pool_matrix_padded(mol_batch, B, Bp, Npm, cdt)
    xm = _pad2d(mol_x, Npm, _round_up(mol_x.shape[1], LANE), cdt)

    # --- protein graph (uses edge weights) ---
    Npr = pro_x.shape[0]
    Npp = _round_up(Npr, LANE)
    adj_p = gcn_norm_dense_padded(pro_edge_index, pro_edge_weight, Npr, Npp, cdt)
    pool_p = mean_pool_matrix_padded(pro_batch, B, Bp, Npp, cdt)
    xp = _pad2d(pro_x, Npp, _round_up(pro_x.shape[1], LANE), cdt)

    mol_wb = [t for wb in prepared["mol"] for t in wb]
    pro_wb = [t for wb in prepared["pro"] for t in wb]
    head = prepared["head"]
    operands = ([adj_m, xm, pool_m] + mol_wb
                + [adj_p, xp, pool_p] + pro_wb + head)

    out_cols = head[-1].shape[1]                 # padded n_output (lane-dense)
    out_bytes = Bp * out_cols * 4
    fmax_m = max(xm.shape[1], *(w.shape[1] for w, _ in prepared["mol"][:3]))
    fmax_p = max(xp.shape[1], *(w.shape[1] for w, _ in prepared["pro"][:3]))
    extra = 4 * 4 * (Npm * fmax_m + Npp * fmax_p) + 8 * 4 * Bp * 1024
    vmem_bytes = _vmem_limit_bytes(operands, out_bytes, extra)

    # Gridless call: whole arrays resident in VMEM, no double-buffering of the
    # O(N^2) adjacency, explicit VMEM budget.
    # TODO(synk): for N >~ 2-4k on v7x (64 MiB VMEM) switch to a row-parallel /
    #   k-reduction tiled adjacency grid and dual-TensorCore branch execution.
    vmem_spec = pl.BlockSpec(memory_space=pltpu.MemorySpace.VMEM)
    out = pl.pallas_call(
        _dta_gcn_kernel,
        out_shape=jax.ShapeDtypeStruct((Bp, out_cols), jnp.float32),
        in_specs=[vmem_spec] * len(operands),
        out_specs=vmem_spec,
        compiler_params=pltpu.CompilerParams(vmem_limit_bytes=vmem_bytes),
    )(*operands)
    return out[:num_graphs, :prepared["n_output"]]


# ----------------------------------------------------------------------------
# Example graph construction (deterministic, small)
# ----------------------------------------------------------------------------
def make_chain_graph(key, num_graphs, nodes_per_graph, num_features,
                     with_weights):
    n = num_graphs * nodes_per_graph
    kx, kw = jax.random.split(key)
    x = jax.random.normal(kx, (n, num_features), jnp.float32)
    src, dst = [], []
    for g in range(num_graphs):
        base = g * nodes_per_graph
        for i in range(nodes_per_graph - 1):
            # undirected chain within each graph
            src += [base + i, base + i + 1]
            dst += [base + i + 1, base + i]
    edge_index = jnp.array([src, dst], dtype=jnp.int32)
    if with_weights:
        edge_weight = jax.random.uniform(
            kw, (edge_index.shape[1],), jnp.float32, 0.1, 1.0)
    else:
        edge_weight = None
    batch = jnp.repeat(jnp.arange(num_graphs, dtype=jnp.int32), nodes_per_graph)
    return x, edge_index, edge_weight, batch


if __name__ == "__main__":
    key = jax.random.PRNGKey(0)
    k_params, k_mol, k_pro = jax.random.split(key, 3)

    NUM_GRAPHS = 2
    compute_dtype = select_compute_dtype()
    params = init_params(k_params)
    prepared = prepare_params(params, compute_dtype)

    mol_x, mol_ei, mol_ew, mol_batch = make_chain_graph(
        k_mol, NUM_GRAPHS, nodes_per_graph=6, num_features=78, with_weights=False)
    pro_x, pro_ei, pro_ew, pro_batch = make_chain_graph(
        k_pro, NUM_GRAPHS, nodes_per_graph=8, num_features=33, with_weights=True)

    fwd = jax.jit(
        lambda mx, mei, mb, px, pei, pew, pb: dta_gcn_forward(
            prepared,
            mx, mei, None, mb,
            px, pei, pew, pb,
            NUM_GRAPHS,
        )
    )
    out = fwd(mol_x, mol_ei, mol_batch, pro_x, pro_ei, pro_ew, pro_batch)
    out = jax.block_until_ready(out)
    assert out.shape == (NUM_GRAPHS, 1)
    print("KERNEL_OK")
</pallas_src>

<mosaic_0001>
module attributes {stable_mosaic.version = 11 : i64} {
  func.func private @main(%arg0: i32) attributes {dimension_semantics = [#tpu.dimension_semantics<core_parallel>], iteration_bounds = array<i64: 2>, tpu.core_type = #tpu.core_type<sc_scalar_subcore>, window_params = []} {
    return
  }
}

module attributes {stable_mosaic.version = 11 : i64} {
  func.func private @main(%arg0: i32) attributes {dimension_semantics = [#tpu.dimension_semantics<core_parallel>], iteration_bounds = array<i64: 2>, tpu.core_type = #tpu.core_type<sc_scalar_subcore>, window_params = []} {
    return
  }
}

module attributes {stable_mosaic.version = 11 : i64} {
  func.func @_dta_gcn_kernel(%arg0: memref<128x128xf32, #tpu.memory_space<vmem>>, %arg1: memref<128x128xf32, #tpu.memory_space<vmem>>, %arg2: memref<8x128xf32, #tpu.memory_space<vmem>>, %arg3: memref<128x128xf32, #tpu.memory_space<vmem>>, %arg4: memref<1x128xf32, #tpu.memory_space<vmem>>, %arg5: memref<128x256xf32, #tpu.memory_space<vmem>>, %arg6: memref<1x256xf32, #tpu.memory_space<vmem>>, %arg7: memref<256x384xf32, #tpu.memory_space<vmem>>, %arg8: memref<1x384xf32, #tpu.memory_space<vmem>>, %arg9: memref<384x1024xf32, #tpu.memory_space<vmem>>, %arg10: memref<1x1024xf32, #tpu.memory_space<vmem>>, %arg11: memref<1024x128xf32, #tpu.memory_space<vmem>>, %arg12: memref<1x128xf32, #tpu.memory_space<vmem>>, %arg13: memref<128x128xf32, #tpu.memory_space<vmem>>, %arg14: memref<128x128xf32, #tpu.memory_space<vmem>>, %arg15: memref<8x128xf32, #tpu.memory_space<vmem>>, %arg16: memref<128x128xf32, #tpu.memory_space<vmem>>, %arg17: memref<1x128xf32, #tpu.memory_space<vmem>>, %arg18: memref<128x128xf32, #tpu.memory_space<vmem>>, %arg19: memref<1x128xf32, #tpu.memory_space<vmem>>, %arg20: memref<128x256xf32, #tpu.memory_space<vmem>>, %arg21: memref<1x256xf32, #tpu.memory_space<vmem>>, %arg22: memref<256x1024xf32, #tpu.memory_space<vmem>>, %arg23: memref<1x1024xf32, #tpu.memory_space<vmem>>, %arg24: memref<1024x128xf32, #tpu.memory_space<vmem>>, %arg25: memref<1x128xf32, #tpu.memory_space<vmem>>, %arg26: memref<128x1024xf32, #tpu.memory_space<vmem>>, %arg27: memref<128x1024xf32, #tpu.memory_space<vmem>>, %arg28: memref<1x1024xf32, #tpu.memory_space<vmem>>, %arg29: memref<1024x512xf32, #tpu.memory_space<vmem>>, %arg30: memref<1x512xf32, #tpu.memory_space<vmem>>, %arg31: memref<512x128xf32, #tpu.memory_space<vmem>>, %arg32: memref<1x128xf32, #tpu.memory_space<vmem>>, %arg33: memref<8x128xf32, #tpu.memory_space<vmem>>) attributes {dimension_semantics = [], scalar_prefetch = 0 : i64, scratch_operands = 0 : i64, tpu.core_type = #tpu.core_type<tc>} {
    %c0 = arith.constant 0 : index
    %c0_0 = arith.constant 0 : index
    %0 = vector.load %arg0[%c0, %c0_0] : memref<128x128xf32, #tpu.memory_space<vmem>>, vector<128x128xf32>
    %c0_1 = arith.constant 0 : index
    %c0_2 = arith.constant 0 : index
    %1 = vector.load %arg1[%c0_1, %c0_2] : memref<128x128xf32, #tpu.memory_space<vmem>>, vector<128x128xf32>
    %c0_3 = arith.constant 0 : index
    %c0_4 = arith.constant 0 : index
    %2 = vector.load %arg3[%c0_3, %c0_4] : memref<128x128xf32, #tpu.memory_space<vmem>>, vector<128x128xf32>
    %cst = arith.constant dense<0.000000e+00> : vector<128x128xf32>
    %3 = tpu.matmul %1, %2, %cst {dimension_numbers = #tpu.dot_dimension_numbers<[1], [0], [0], [1], [0, 0, 1, 1], [], []>} : vector<128x128xf32>, vector<128x128xf32>, vector<128x128xf32> -> vector<128x128xf32>
    %cst_5 = arith.constant dense<0.000000e+00> : vector<128x128xf32>
    %4 = tpu.matmul %0, %3, %cst_5 {dimension_numbers = #tpu.dot_dimension_numbers<[1], [0], [0], [1], [0, 0, 1, 1], [], []>} : vector<128x128xf32>, vector<128x128xf32>, vector<128x128xf32> -> vector<128x128xf32>
    %c0_6 = arith.constant 0 : index
    %c0_7 = arith.constant 0 : index
    %5 = vector.load %arg4[%c0_6, %c0_7] : memref<1x128xf32, #tpu.memory_space<vmem>>, vector<1x128xf32>
    %6 = vector.broadcast %5 : vector<1x128xf32> to vector<128x128xf32>
    %7 = arith.addf %4, %6 : vector<128x128xf32>
    %cst_8 = arith.constant 0.000000e+00 : f32
    %8 = vector.broadcast %cst_8 : f32 to vector<128x128xf32>
    %9 = arith.maximumf %7, %8 : vector<128x128xf32>
    %c0_9 = arith.constant 0 : index
    %c0_10 = arith.constant 0 : index
    %10 = vector.load %arg5[%c0_9, %c0_10] : memref<128x256xf32, #tpu.memory_space<vmem>>, vector<128x256xf32>
    %cst_11 = arith.constant dense<0.000000e+00> : vector<128x128xf32>
    %11 = tpu.matmul %0, %9, %cst_11 {dimension_numbers = #tpu.dot_dimension_numbers<[1], [0], [0], [1], [0, 0, 1, 1], [], []>} : vector<128x128xf32>, vector<128x128xf32>, vector<128x128xf32> -> vector<128x128xf32>
    %cst_12 = arith.constant dense<0.000000e+00> : vector<128x256xf32>
    %12 = tpu.matmul %11, %10, %cst_12 {dimension_numbers = #tpu.dot_dimension_numbers<[1], [0], [0], [1], [0, 0, 1, 1], [], []>} : vector<128x128xf32>, vector<128x256xf32>, vector<128x256xf32> -> vector<128x256xf32>
    %c0_13 = arith.constant 0 : index
    %c0_14 = arith.constant 0 : index
    %13 = vector.load %arg6[%c0_13, %c0_14] : memref<1x256xf32, #tpu.memory_space<vmem>>, vector<1x256xf32>
    %14 = vector.broadcast %13 : vector<1x256xf32> to vector<128x256xf32>
    %15 = arith.addf %12, %14 : vector<128x256xf32>
    %cst_15 = arith.constant 0.000000e+00 : f32
    %16 = vector.broadcast %cst_15 : f32 to vector<128x256xf32>
    %17 = arith.maximumf %15, %16 : vector<128x256xf32>
    %c0_16 = arith.constant 0 : index
    %c0_17 = arith.constant 0 : index
    %18 = vector.load %arg7[%c0_16, %c0_17] : memref<256x384xf32, #tpu.memory_space<vmem>>, vector<256x384xf32>
    %cst_18 = arith.constant dense<0.000000e+00> : vector<128x256xf32>
    %19 = tpu.matmul %0, %17, %cst_18 {dimension_numbers = #tpu.dot_dimension_numbers<[1], [0], [0], [1], [0, 0, 1, 1], [], []>} : vector<128x128xf32>, vector<128x256xf32>, vector<128x256xf32> -> vector<128x256xf32>
    %cst_19 = arith.constant dense<0.000000e+00> : vector<128x384xf32>
    %20 = tpu.matmul %19, %18, %cst_19 {dimension_numbers = #tpu.dot_dimension_numbers<[1], [0], [0], [1], [0, 0, 1, 1], [], []>} : vector<128x256xf32>, vector<256x384xf32>, vector<128x384xf32> -> vector<128x384xf32>
    %c0_20 = arith.constant 0 : index
    %c0_21 = arith.constant 0 : index
    %21 = vector.load %arg8[%c0_20, %c0_21] : memref<1x384xf32, #tpu.memory_space<vmem>>, vector<1x384xf32>
    %22 = vector.broadcast %21 : vector<1x384xf32> to vector<128x384xf32>
    %23 = arith.addf %20, %22 : vector<128x384xf32>
    %c0_22 = arith.constant 0 : index
    %c0_23 = arith.constant 0 : index
    %24 = vector.load %arg2[%c0_22, %c0_23] : memref<8x128xf32, #tpu.memory_space<vmem>>, vector<8x128xf32>
    %cst_24 = arith.constant dense<0.000000e+00> : vector<8x384xf32>
    %25 = tpu.matmul %24, %23, %cst_24 {dimension_numbers = #tpu.dot_dimension_numbers<[1], [0], [0], [1], [0, 0, 1, 1], [], []>} : vector<8x128xf32>, vector<128x384xf32>, vector<8x384xf32> -> vector<8x384xf32>
    %c0_25 = arith.constant 0 : index
    %c0_26 = arith.constant 0 : index
    %26 = vector.load %arg9[%c0_25, %c0_26] : memref<384x1024xf32, #tpu.memory_space<vmem>>, vector<384x1024xf32>
    %cst_27 = arith.constant dense<0.000000e+00> : vector<8x1024xf32>
    %27 = tpu.matmul %25, %26, %cst_27 {dimension_numbers = #tpu.dot_dimension_numbers<[1], [0], [0], [1], [0, 0, 1, 1], [], []>} : vector<8x384xf32>, vector<384x1024xf32>, vector<8x1024xf32> -> vector<8x1024xf32>
    %c0_28 = arith.constant 0 : index
    %c0_29 = arith.constant 0 : index
    %28 = vector.load %arg10[%c0_28, %c0_29] : memref<1x1024xf32, #tpu.memory_space<vmem>>, vector<1x1024xf32>
    %29 = vector.broadcast %28 : vector<1x1024xf32> to vector<8x1024xf32>
    %30 = arith.addf %27, %29 : vector<8x1024xf32>
    %cst_30 = arith.constant 0.000000e+00 : f32
    %31 = vector.broadcast %cst_30 : f32 to vector<8x1024xf32>
    %32 = arith.maximumf %30, %31 : vector<8x1024xf32>
    %c0_31 = arith.constant 0 : index
    %c0_32 = arith.constant 0 : index
    %33 = vector.load %arg11[%c0_31, %c0_32] : memref<1024x128xf32, #tpu.memory_space<vmem>>, vector<1024x128xf32>
    %cst_33 = arith.constant dense<0.000000e+00> : vector<8x128xf32>
    %34 = tpu.matmul %32, %33, %cst_33 {dimension_numbers = #tpu.dot_dimension_numbers<[1], [0], [0], [1], [0, 0, 1, 1], [], []>} : vector<8x1024xf32>, vector<1024x128xf32>, vector<8x128xf32> -> vector<8x128xf32>
    %c0_34 = arith.constant 0 : index
    %c0_35 = arith.constant 0 : index
    %35 = vector.load %arg12[%c0_34, %c0_35] : memref<1x128xf32, #tpu.memory_space<vmem>>, vector<1x128xf32>
    %36 = vector.broadcast %35 : vector<1x128xf32> to vector<8x128xf32>
    %37 = arith.addf %34, %36 : vector<8x128xf32>
    %c0_36 = arith.constant 0 : index
    %c0_37 = arith.constant 0 : index
    %38 = vector.load %arg13[%c0_36, %c0_37] : memref<128x128xf32, #tpu.memory_space<vmem>>, vector<128x128xf32>
    %c0_38 = arith.constant 0 : index
    %c0_39 = arith.constant 0 : index
    %39 = vector.load %arg14[%c0_38, %c0_39] : memref<128x128xf32, #tpu.memory_space<vmem>>, vector<128x128xf32>
    %c0_40 = arith.constant 0 : index
    %c0_41 = arith.constant 0 : index
    %40 = vector.load %arg16[%c0_40, %c0_41] : memref<128x128xf32, #tpu.memory_space<vmem>>, vector<128x128xf32>
    %cst_42 = arith.constant dense<0.000000e+00> : vector<128x128xf32>
    %41 = tpu.matmul %39, %40, %cst_42 {dimension_numbers = #tpu.dot_dimension_numbers<[1], [0], [0], [1], [0, 0, 1, 1], [], []>} : vector<128x128xf32>, vector<128x128xf32>, vector<128x128xf32> -> vector<128x128xf32>
    %cst_43 = arith.constant dense<0.000000e+00> : vector<128x128xf32>
    %42 = tpu.matmul %38, %41, %cst_43 {dimension_numbers = #tpu.dot_dimension_numbers<[1], [0], [0], [1], [0, 0, 1, 1], [], []>} : vector<128x128xf32>, vector<128x128xf32>, vector<128x128xf32> -> vector<128x128xf32>
    %c0_44 = arith.constant 0 : index
    %c0_45 = arith.constant 0 : index
    %43 = vector.load %arg17[%c0_44, %c0_45] : memref<1x128xf32, #tpu.memory_space<vmem>>, vector<1x128xf32>
    %44 = vector.broadcast %43 : vector<1x128xf32> to vector<128x128xf32>
    %45 = arith.addf %42, %44 : vector<128x128xf32>
    %cst_46 = arith.constant 0.000000e+00 : f32
    %46 = vector.broadcast %cst_46 : f32 to vector<128x128xf32>
    %47 = arith.maximumf %45, %46 : vector<128x128xf32>
    %c0_47 = arith.constant 0 : index
    %c0_48 = arith.constant 0 : index
    %48 = vector.load %arg18[%c0_47, %c0_48] : memref<128x128xf32, #tpu.memory_space<vmem>>, vector<128x128xf32>
    %cst_49 = arith.constant dense<0.000000e+00> : vector<128x128xf32>
    %49 = tpu.matmul %47, %48, %cst_49 {dimension_numbers = #tpu.dot_dimension_numbers<[1], [0], [0], [1], [0, 0, 1, 1], [], []>} : vector<128x128xf32>, vector<128x128xf32>, vector<128x128xf32> -> vector<128x128xf32>
    %cst_50 = arith.constant dense<0.000000e+00> : vector<128x128xf32>
    %50 = tpu.matmul %38, %49, %cst_50 {dimension_numbers = #tpu.dot_dimension_numbers<[1], [0], [0], [1], [0, 0, 1, 1], [], []>} : vector<128x128xf32>, vector<128x128xf32>, vector<128x128xf32> -> vector<128x128xf32>
    %c0_51 = arith.constant 0 : index
    %c0_52 = arith.constant 0 : index
    %51 = vector.load %arg19[%c0_51, %c0_52] : memref<1x128xf32, #tpu.memory_space<vmem>>, vector<1x128xf32>
    %52 = vector.broadcast %51 : vector<1x128xf32> to vector<128x128xf32>
    %53 = arith.addf %50, %52 : vector<128x128xf32>
    %cst_53 = arith.constant 0.000000e+00 : f32
    %54 = vector.broadcast %cst_53 : f32 to vector<128x128xf32>
    %55 = arith.maximumf %53, %54 : vector<128x128xf32>
    %c0_54 = arith.constant 0 : index
    %c0_55 = arith.constant 0 : index
    %56 = vector.load %arg20[%c0_54, %c0_55] : memref<128x256xf32, #tpu.memory_space<vmem>>, vector<128x256xf32>
    %cst_56 = arith.constant dense<0.000000e+00> : vector<128x128xf32>
    %57 = tpu.matmul %38, %55, %cst_56 {dimension_numbers = #tpu.dot_dimension_numbers<[1], [0], [0], [1], [0, 0, 1, 1], [], []>} : vector<128x128xf32>, vector<128x128xf32>, vector<128x128xf32> -> vector<128x128xf32>
    %cst_57 = arith.constant dense<0.000000e+00> : vector<128x256xf32>
    %58 = tpu.matmul %57, %56, %cst_57 {dimension_numbers = #tpu.dot_dimension_numbers<[1], [0], [0], [1], [0, 0, 1, 1], [], []>} : vector<128x128xf32>, vector<128x256xf32>, vector<128x256xf32> -> vector<128x256xf32>
    %c0_58 = arith.constant 0 : index
    %c0_59 = arith.constant 0 : index
    %59 = vector.load %arg21[%c0_58, %c0_59] : memref<1x256xf32, #tpu.memory_space<vmem>>, vector<1x256xf32>
    %60 = vector.broadcast %59 : vector<1x256xf32> to vector<128x256xf32>
    %61 = arith.addf %58, %60 : vector<128x256xf32>
    %cst_60 = arith.constant 0.000000e+00 : f32
    %62 = vector.broadcast %cst_60 : f32 to vector<128x256xf32>
    %63 = arith.maximumf %61, %62 : vector<128x256xf32>
    %c0_61 = arith.constant 0 : index
    %c0_62 = arith.constant 0 : index
    %64 = vector.load %arg15[%c0_61, %c0_62] : memref<8x128xf32, #tpu.memory_space<vmem>>, vector<8x128xf32>
    %cst_63 = arith.constant dense<0.000000e+00> : vector<8x256xf32>
    %65 = tpu.matmul %64, %63, %cst_63 {dimension_numbers = #tpu.dot_dimension_numbers<[1], [0], [0], [1], [0, 0, 1, 1], [], []>} : vector<8x128xf32>, vector<128x256xf32>, vector<8x256xf32> -> vector<8x256xf32>
    %c0_64 = arith.constant 0 : index
    %c0_65 = arith.constant 0 : index
    %66 = vector.load %arg22[%c0_64, %c0_65] : memref<256x1024xf32, #tpu.memory_space<vmem>>, vector<256x1024xf32>
    %cst_66 = arith.constant dense<0.000000e+00> : vector<8x1024xf32>
    %67 = tpu.matmul %65, %66, %cst_66 {dimension_numbers = #tpu.dot_dimension_numbers<[1], [0], [0], [1], [0, 0, 1, 1], [], []>} : vector<8x256xf32>, vector<256x1024xf32>, vector<8x1024xf32> -> vector<8x1024xf32>
    %c0_67 = arith.constant 0 : index
    %c0_68 = arith.constant 0 : index
    %68 = vector.load %arg23[%c0_67, %c0_68] : memref<1x1024xf32, #tpu.memory_space<vmem>>, vector<1x1024xf32>
    %69 = vector.broadcast %68 : vector<1x1024xf32> to vector<8x1024xf32>
    %70 = arith.addf %67, %69 : vector<8x1024xf32>
    %cst_69 = arith.constant 0.000000e+00 : f32
    %71 = vector.broadcast %cst_69 : f32 to vector<8x1024xf32>
    %72 = arith.maximumf %70, %71 : vector<8x1024xf32>
    %c0_70 = arith.constant 0 : index
    %c0_71 = arith.constant 0 : index
    %73 = vector.load %arg24[%c0_70, %c0_71] : memref<1024x128xf32, #tpu.memory_space<vmem>>, vector<1024x128xf32>
    %cst_72 = arith.constant dense<0.000000e+00> : vector<8x128xf32>
    %74 = tpu.matmul %72, %73, %cst_72 {dimension_numbers = #tpu.dot_dimension_numbers<[1], [0], [0], [1], [0, 0, 1, 1], [], []>} : vector<8x1024xf32>, vector<1024x128xf32>, vector<8x128xf32> -> vector<8x128xf32>
    %c0_73 = arith.constant 0 : index
    %c0_74 = arith.constant 0 : index
    %75 = vector.load %arg25[%c0_73, %c0_74] : memref<1x128xf32, #tpu.memory_space<vmem>>, vector<1x128xf32>
    %76 = vector.broadcast %75 : vector<1x128xf32> to vector<8x128xf32>
    %77 = arith.addf %74, %76 : vector<8x128xf32>
    %c0_75 = arith.constant 0 : index
    %c0_76 = arith.constant 0 : index
    %78 = vector.load %arg26[%c0_75, %c0_76] : memref<128x1024xf32, #tpu.memory_space<vmem>>, vector<128x1024xf32>
    %cst_77 = arith.constant dense<0.000000e+00> : vector<8x1024xf32>
    %79 = tpu.matmul %37, %78, %cst_77 {dimension_numbers = #tpu.dot_dimension_numbers<[1], [0], [0], [1], [0, 0, 1, 1], [], []>} : vector<8x128xf32>, vector<128x1024xf32>, vector<8x1024xf32> -> vector<8x1024xf32>
    %c0_78 = arith.constant 0 : index
    %c0_79 = arith.constant 0 : index
    %80 = vector.load %arg27[%c0_78, %c0_79] : memref<128x1024xf32, #tpu.memory_space<vmem>>, vector<128x1024xf32>
    %cst_80 = arith.constant dense<0.000000e+00> : vector<8x1024xf32>
    %81 = tpu.matmul %77, %80, %cst_80 {dimension_numbers = #tpu.dot_dimension_numbers<[1], [0], [0], [1], [0, 0, 1, 1], [], []>} : vector<8x128xf32>, vector<128x1024xf32>, vector<8x1024xf32> -> vector<8x1024xf32>
    %82 = arith.addf %79, %81 : vector<8x1024xf32>
    %c0_81 = arith.constant 0 : index
    %c0_82 = arith.constant 0 : index
    %83 = vector.load %arg28[%c0_81, %c0_82] : memref<1x1024xf32, #tpu.memory_space<vmem>>, vector<1x1024xf32>
    %84 = vector.broadcast %83 : vector<1x1024xf32> to vector<8x1024xf32>
    %85 = arith.addf %82, %84 : vector<8x1024xf32>
    %cst_83 = arith.constant 0.000000e+00 : f32
    %86 = vector.broadcast %cst_83 : f32 to vector<8x1024xf32>
    %87 = arith.maximumf %85, %86 : vector<8x1024xf32>
    %c0_84 = arith.constant 0 : index
    %c0_85 = arith.constant 0 : index
    %88 = vector.load %arg29[%c0_84, %c0_85] : memref<1024x512xf32, #tpu.memory_space<vmem>>, vector<1024x512xf32>
    %cst_86 = arith.constant dense<0.000000e+00> : vector<8x512xf32>
    %89 = tpu.matmul %87, %88, %cst_86 {dimension_numbers = #tpu.dot_dimension_numbers<[1], [0], [0], [1], [0, 0, 1, 1], [], []>} : vector<8x1024xf32>, vector<1024x512xf32>, vector<8x512xf32> -> vector<8x512xf32>
    %c0_87 = arith.constant 0 : index
    %c0_88 = arith.constant 0 : index
    %90 = vector.load %arg30[%c0_87, %c0_88] : memref<1x512xf32, #tpu.memory_space<vmem>>, vector<1x512xf32>
    %91 = vector.broadcast %90 : vector<1x512xf32> to vector<8x512xf32>
    %92 = arith.addf %89, %91 : vector<8x512xf32>
    %cst_89 = arith.constant 0.000000e+00 : f32
    %93 = vector.broadcast %cst_89 : f32 to vector<8x512xf32>
    %94 = arith.maximumf %92, %93 : vector<8x512xf32>
    %c0_90 = arith.constant 0 : index
    %c0_91 = arith.constant 0 : index
    %95 = vector.load %arg31[%c0_90, %c0_91] : memref<512x128xf32, #tpu.memory_space<vmem>>, vector<512x128xf32>
    %cst_92 = arith.constant dense<0.000000e+00> : vector<8x128xf32>
    %96 = tpu.matmul %94, %95, %cst_92 {dimension_numbers = #tpu.dot_dimension_numbers<[1], [0], [0], [1], [0, 0, 1, 1], [], []>} : vector<8x512xf32>, vector<512x128xf32>, vector<8x128xf32> -> vector<8x128xf32>
    %c0_93 = arith.constant 0 : index
    %c0_94 = arith.constant 0 : index
    %97 = vector.load %arg32[%c0_93, %c0_94] : memref<1x128xf32, #tpu.memory_space<vmem>>, vector<1x128xf32>
    %98 = vector.broadcast %97 : vector<1x128xf32> to vector<8x128xf32>
    %99 = arith.addf %96, %98 : vector<8x128xf32>
    %c0_95 = arith.constant 0 : index
    %c0_96 = arith.constant 0 : index
    %100 = vector.load %arg33[%c0_95, %c0_96] : memref<8x128xf32, #tpu.memory_space<vmem>>, vector<8x128xf32>
    tpu.vector_store %arg33[%c0_95, %c0_96], %99 {strides = array<i32>} : memref<8x128xf32, #tpu.memory_space<vmem>>, vector<8x128xf32>,
    return
  }
}

</mosaic_0001>

<bundles_post_ra>
// kernel: _lambda_.1
= control target key start
LH: loop header
LB: loop body
LE: loop exit
PB: predicated region body
PF: predicated region fallthrough
CT: control target
= control target key end

     0   :  { %s11478_s6 = smov 1   ;;  %s11479_s10 = smov 2   ;;  %s14132_s0 = inlined_call_operand.smem [shape: u32[34], index: -1, kind: input, shape index: {}] }
   0x1   :  { %s11542_s5 = sld [smem:[%s14132_s0]]   ;;  %s11480_s14 = smov 3  }
   0x2   :  { %s11547_s9 = sld [smem:[%s14132_s0 + %s11478_s6]]   ;;  %s11481_s18 = smov 4  }
   0x3   :  { %s11552_s13 = sld [smem:[%s14132_s0 + %s11479_s10]]   ;;  %s11482_s22 = smov 5  }
   0x4   :  { %s11557_s17 = sld [smem:[%s14132_s0 + %s11480_s14]]   ;;  %s11483_s26 = smov 6  }
   0x5   :  { %s11562_s21 = sld [smem:[%s14132_s0 + %s11481_s18]]   ;;  %s11484_s30 = smov 7  }
   0x6   :  { %s11567_s25 = sld [smem:[%s14132_s0 + %s11482_s22]]   ;;  %s11485_s4 = smov 8  }
   0x7   :  { %14143 = sst [smem:[#allocation32_spill]] %s11542_s5  ;;  %s11486_s10 = smov 9  }
   0x8   :  { %s11572_s29 = sld [smem:[%s14132_s0 + %s11483_s26]]   ;;  %s11487_s15 = smov 10  }
   0x9   :  { %14144 = sst [smem:[#allocation33_spill]] %s11552_s13  ;;  %s11488_s20 = smov 11  }
   0xa   :  { %s11577_s3 = sld [smem:[%s14132_s0 + %s11484_s30]]   ;;  %s11489_s26 = smov 12  }
   0xb   :  { %14145 = sst [smem:[#allocation34_spill]] %s11562_s21  ;;  %s11490_s1 = smov 13  }
   0xc   :  { %s11582_s8 = sld [smem:[%s14132_s0 + %s11485_s4]]   ;;  %s11491_s7 = smov 14  }
   0xd   :  { %s11587_s14 = sld [smem:[%s14132_s0 + %s11486_s10]]   ;;  %s11493_s22 = smov 16  }
   0xe   :  { %s11592_s19 = sld [smem:[%s14132_s0 + %s11487_s15]]   ;;  %s11492_s15 = smov 15  }
   0xf   :  { %s11597_s24 = sld [smem:[%s14132_s0 + %s11488_s20]]   ;;  %s11494_s28 = smov 17  }
  0x10   :  { %s11602_s30 = sld [smem:[%s14132_s0 + %s11489_s26]]  }
  0x11   :  { %s11607_s6 = sld [smem:[%s14132_s0 + %s11490_s1]]  }
  0x12   :  { %s11612_s12 = sld [smem:[%s14132_s0 + %s11491_s7]]   ;;  %s11495_s7 = smov 18  }
  0x13   :  { %14146 = sst [smem:[#allocation35_spill]] %s11587_s14 }
  0x14   :  { %14147 = sst [smem:[#allocation36_spill]] %s11592_s19 }
  0x15   :  { %14148 = sst [smem:[#allocation37_spill]] %s11597_s24 }
  0x16   :  { %s11617_s20 = sld [smem:[%s14132_s0 + %s11492_s15]]   ;;  %s11496_s15 = smov 19  }
  0x17   :  { %14149 = sst [smem:[#allocation38_spill]] %s11607_s6 }
  0x18   :  { %14150 = sst [smem:[#allocation39_spill]] %s11612_s12 }
  0x19   :  { %s11622_s27 = sld [smem:[%s14132_s0 + %s11493_s22]]   ;;  %s11497_s22 = smov 20  }
  0x1a   :  { %s11627_s4 = sld [smem:[%s14132_s0 + %s11494_s28]]   ;;  %s11498_s28 = smov 21  }
  0x1b   :  { %s11632_s6 = sld [smem:[%s14132_s0 + %s11495_s7]]   ;;  %s11499_s7 = smov 22  }
  0x1c   :  { %14151 = sst [smem:[#allocation40_spill]] %s11617_s20 }
  0x1d   :  { %s11637_s20 = sld [smem:[%s14132_s0 + %s11496_s15]]   ;;  %s11500_s15 = smov 23  }
  0x1e   :  { %s11642_s12 = sld [smem:[%s14132_s0 + %s11497_s22]]   ;;  %s11501_s22 = smov 24  }
  0x1f   :  { %s11647_s19 = sld [smem:[%s14132_s0 + %s11498_s28]]   ;;  %s11502_s28 = smov 25  }
  0x20   :  { %s11652_s24 = sld [smem:[%s14132_s0 + %s11499_s7]]   ;;  %s11503_s7 = smov 26  }
  0x21   :  { %s11657_s13 = sld [smem:[%s14132_s0 + %s11500_s15]]   ;;  %s11504_s15 = smov 27  }
  0x22   :  { %s11662_s14 = sld [smem:[%s14132_s0 + %s11501_s22]]   ;;  %s11505_s22 = smov 28  }
  0x23   :  { %s11667_s21 = sld [smem:[%s14132_s0 + %s11502_s28]]   ;;  %s11506_s28 = smov 29  }
  0x24   :  { %s11687_s5 = sld [smem:[%s14132_s0 + %s11506_s28]]   ;;  %s11510_s28 = smov 33  }
  0x26   :  { %14152 = sst [smem:[#allocation41_spill]] %s11652_s24 }
  0x27   :  { %14153 = sst [smem:[#allocation42_spill]] %s11657_s13 }
  0x28   :  { %14154 = sst [smem:[#allocation43_spill]] %s11662_s14 }
  0x29   :  { %s11672_s24 = sld [smem:[%s14132_s0 + %s11503_s7]]   ;;  %s11507_s7 = smov 30  }
  0x2a   :  { %s11677_s13 = sld [smem:[%s14132_s0 + %s11504_s15]]   ;;  %s11508_s15 = smov 31  }
  0x2b   :  { %s11682_s14 = sld [smem:[%s14132_s0 + %s11505_s22]]   ;;  %s11509_s22 = smov 32  }
  0x2c   :  { %14158 = sst [smem:[#allocation47_spill]] %s11687_s5 }
  0x2d   :  { %s11707_s5 = sld [smem:[%s14132_s0 + %s11510_s28]]  }
  0x2f   :  { %14155 = sst [smem:[#allocation44_spill]] %s11672_s24 }
  0x30   :  { %14156 = sst [smem:[#allocation45_spill]] %s11677_s13 }
  0x31   :  { %14157 = sst [smem:[#allocation46_spill]] %s11682_s14 }
  0x32   :  { %s11692_s24 = sld [smem:[%s14132_s0 + %s11507_s7]]  }
  0x33   :  { %s11697_s13 = sld [smem:[%s14132_s0 + %s11508_s15]]  }
  0x34   :  { %s11702_s14 = sld [smem:[%s14132_s0 + %s11509_s22]]  }
  0x35   :  { %72 = vsyncpa [#allocation3], 0 }
  0x36   :  { %73 = vsyncpa [#allocation5], 0 }
  0x37   :  { %74 = vsyncpa [#allocation8], 0 }
  0x38   :  { %75 = vsyncpa [#allocation11], 0 }
  0x39   :  { %76 = vsyncpa [#allocation14], 0 }
  0x3a   :  { %77 = vsyncpa [#allocation17], 0 }
  0x3b   :  { %78 = vsyncpa [#allocation20], 0 }
  0x3c   :  { %79 = vsyncpa [#allocation23], 0  ;;  %s11511_s7 = smov [#allocation4]   ;;  %s11512_s11 = smov [#allocation7]  }
  0x3d   :  { %s108_s10 = sshll.u32 %s11511_s7, 4  ;;  %s130_s15 = sshll.u32 %s11512_s11, 4  ;;  %s109_s10 = int_to_ptr.vmem [resolvable:$true] %s108_s10  ;;  %s131_s15 = int_to_ptr.vmem [resolvable:$true] %s130_s15 }
  0x3e   :  { %s11154_s16 = scalar_lea.hbm %s11572_s29, 32 }
  0x3f   :  { %p11155_p0 = scmp.ne.s32.totalorder %s11572_s29, %s11154_s16  ;;  %p11158_p1 = scmp.lt.u32.totalorder %s11154_s16, %s11572_s29 }
  0x41   :  { %p11160_p2 = pnand %p11158_p1, %p11155_p0 }
  0x43   :  { %11163 = shalt.err (!%p11160_p2)
}
  0x44   :  { %s11164_s0 = scalar_lea.vmem %s109_s10, 32  ;;  %p11169_p4 = scmp.lt.s32.totalorder %s109_s10, %s109_s10 }
  0x45   :  { %p11165_p3 = scmp.ne.s32.totalorder %s109_s10, %s11164_s0  ;;  %p11170_p5 = scmp.lt.s32.totalorder %s11164_s0, %s11164_s0 }
  0x47   :  { %p11171_p6 = por %p11170_p5, %p11169_p4 }
  0x49   :  { %p11172_p7 = pnand %p11171_p6, %p11165_p3 }
  0x4b   :  { %11175 = shalt.err (!%p11172_p7)
}
  0x4c   :  { %111 = dma.hbm_to_vmem [thread:$0]  %s11572_s29, 32, %s109_s10, [#allocation5]  }
  0x4d   :  { %s11176_s18 = scalar_lea.hbm %s11582_s8, 48 }
  0x4e   :  { %p11177_p8 = scmp.ne.s32.totalorder %s11582_s8, %s11176_s18  ;;  %p11180_p9 = scmp.lt.u32.totalorder %s11176_s18, %s11582_s8 }
  0x50   :  { %p11182_p10 = pnand %p11180_p9, %p11177_p8 }
  0x52   :  { %11185 = shalt.err (!%p11182_p10)
}
  0x53   :  { %s11186_s22 = scalar_lea.vmem %s131_s15, 48  ;;  %s11190_s23 = scalar_lea.vmem %s131_s15, 64 }
  0x54   :  { %p11187_p11 = scmp.ne.s32.totalorder %s131_s15, %s11186_s22  ;;  %p11191_p12 = scmp.lt.s32.totalorder %s131_s15, %s131_s15 }
  0x55   :  { %p11192_p13 = scmp.lt.s32.totalorder %s11190_s23, %s11186_s22 }
  0x57   :  { %p11193_p0 = por %p11192_p13, %p11191_p12 }
  0x59   :  { %p11194_p1 = pnand %p11193_p0, %p11187_p11 }
  0x5b   :  { %11197 = shalt.err (!%p11194_p1)
}
  0x5c   :  { %133 = dma.hbm_to_vmem [thread:$0]  %s11582_s8, 48, %s131_s15, [#allocation8]  }
  0x5d   :  { %s11513_s26 = smov [#allocation10]   ;;  %s11198_s28 = scalar_lea.hbm %s11622_s27, 2048 }
  0x5e   :  { %s161_s29 = sshll.u32 %s11513_s26, 4  ;;  %p11199_p2 = scmp.ne.s32.totalorder %s11622_s27, %s11198_s28  ;;  %s162_s29 = int_to_ptr.vmem [resolvable:$true] %s161_s29 }
  0x5f   :  { %p11202_p3 = scmp.lt.u32.totalorder %s11198_s28, %s11622_s27 }
  0x61   :  { %p11204_p4 = pnand %p11202_p3, %p11199_p2 }
  0x63   :  { %11207 = shalt.err (!%p11204_p4)
}
  0x64   :  { %s11208_s1 = scalar_lea.vmem %s162_s29, 2048  ;;  %p11213_p6 = scmp.lt.s32.totalorder %s162_s29, %s162_s29 }
  0x65   :  { %p11209_p5 = scmp.ne.s32.totalorder %s162_s29, %s11208_s1  ;;  %p11214_p7 = scmp.lt.s32.totalorder %s11208_s1, %s11208_s1 }
  0x67   :  { %p11215_p8 = por %p11214_p7, %p11213_p6 }
  0x69   :  { %p11216_p9 = pnand %p11215_p8, %p11209_p5 }
  0x6b   :  { %11219 = shalt.err (!%p11216_p9)
}
  0x6c   :  { %s11514_s2 = smov 128   ;;  %s11515_s8 = smov 8  }
  0x6d   :  { %167 = dma.hbm_to_vmem [thread:$0]  %s11622_s27, 2048, %s162_s29, [#allocation11], %s11514_s2, %s11514_s2, %s11515_s8  }
  0x6e   :  { %s11516_s7 = smov [#allocation13]   ;;  %s11220_s11 = scalar_lea.hbm %s11632_s6, 2048 }
  0x6f   :  { %s183_s10 = sshll.u32 %s11516_s7, 4  ;;  %p11221_p10 = scmp.ne.s32.totalorder %s11632_s6, %s11220_s11  ;;  %s184_s10 = int_to_ptr.vmem [resolvable:$true] %s183_s10 }
  0x70   :  { %p11224_p11 = scmp.lt.u32.totalorder %s11220_s11, %s11632_s6 }
  0x72   :  { %p11226_p12 = pnand %p11224_p11, %p11221_p10 }
  0x74   :  { %11229 = shalt.err (!%p11226_p12)
}
  0x75   :  { %s11230_s15 = scalar_lea.vmem %s184_s10, 2048  ;;  %p11235_p0 = scmp.lt.s32.totalorder %s184_s10, %s184_s10 }
  0x76   :  { %p11231_p13 = scmp.ne.s32.totalorder %s184_s10, %s11230_s15  ;;  %p11236_p1 = scmp.lt.s32.totalorder %s11230_s15, %s11230_s15 }
  0x78   :  { %p11237_p2 = por %p11236_p1, %p11235_p0 }
  0x7a   :  { %p11238_p3 = pnand %p11237_p2, %p11231_p13 }
  0x7c   :  { %11241 = shalt.err (!%p11238_p3)
}
  0x7d   :  { %189 = dma.hbm_to_vmem [thread:$0]  %s11632_s6, 2048, %s184_s10, [#allocation14], %s11514_s2, %s11514_s2, %s11515_s8  }
  0x7e   :  { %s11517_s27 = smov [#allocation16]   ;;  %s11518_s0 = smov [#allocation19]  }
  0x7f   :  { %s205_s16 = sshll.u32 %s11517_s27, 4  ;;  %s234_s18 = sshll.u32 %s11518_s0, 4  ;;  %s206_s16 = int_to_ptr.vmem [resolvable:$true] %s205_s16  ;;  %s11725_s18 = int_to_ptr.vmem [resolvable:$true] %s234_s18 }
  0x80   :  { %s11242_s22 = scalar_lea.hbm %s11642_s12, 4096 }
  0x81   :  { %p11243_p4 = scmp.ne.s32.totalorder %s11642_s12, %s11242_s22  ;;  %p11246_p5 = scmp.lt.u32.totalorder %s11242_s22, %s11642_s12 }
  0x83   :  { %p11248_p6 = pnand %p11246_p5, %p11243_p4 }
  0x85   :  { %11251 = shalt.err (!%p11248_p6)
}
  0x86   :  { %s11252_s23 = scalar_lea.vmem %s206_s16, 4096  ;;  %p11257_p8 = scmp.lt.s32.totalorder %s206_s16, %s206_s16 }
  0x87   :  { %p11253_p7 = scmp.ne.s32.totalorder %s206_s16, %s11252_s23  ;;  %p11258_p9 = scmp.lt.s32.totalorder %s11252_s23, %s11252_s23 }
  0x89   :  { %p11259_p10 = por %p11258_p9, %p11257_p8 }
  0x8b   :  { %p11260_p11 = pnand %p11259_p10, %p11253_p7 }
  0x8d   :  { %11263 = shalt.err (!%p11260_p11)
}
  0x8e   :  { %s11519_s6 = smov 256   ;;  %s11520_s26 = smov 16  }
  0x8f   :  { %211 = dma.hbm_to_vmem [thread:$0]  %s11642_s12, 4096, %s206_s16, [#allocation17], %s11519_s6, %s11519_s6, %s11520_s26  }
  0x90   :  { %s11264_s29 = scalar_lea.hbm %s11667_s21, 16 }
  0x91   :  { %p11265_p12 = scmp.ne.s32.totalorder %s11667_s21, %s11264_s29  ;;  %p11268_p13 = scmp.lt.u32.totalorder %s11264_s29, %s11667_s21 }
  0x93   :  { %p11270_p0 = pnand %p11268_p13, %p11265_p12 }
  0x95   :  { %11273 = shalt.err (!%p11270_p0)
}
  0x96   :  { %s11274_s28 = scalar_lea.vmem %s11725_s18, 16  ;;  %s11278_s1 = scalar_lea.vmem %s11725_s18, 32 }
  0x97   :  { %p11275_p1 = scmp.ne.s32.totalorder %s11725_s18, %s11274_s28  ;;  %p11279_p2 = scmp.lt.s32.totalorder %s11725_s18, %s11725_s18 }
  0x98   :  { %p11280_p3 = scmp.lt.s32.totalorder %s11278_s1, %s11274_s28 }
  0x9a   :  { %p11281_p4 = por %p11280_p3, %p11279_p2 }
  0x9c   :  { %p11282_p5 = pnand %p11281_p4, %p11275_p1 }
  0x9e   :  { %11285 = shalt.err (!%p11282_p5)
}
  0x9f   :  { %237 = dma.hbm_to_vmem [thread:$0]  %s11667_s21, 16, %s11725_s18, [#allocation20]  }
  0xa0   :  { %s11521_s12 = smov [#allocation2]   ;;  %s11522_s8 = smov [#allocation6]  }
  0xa1   :  { %s95_s2 = sshll.u32 %s11521_s12, 4  ;;  %s117_s7 = sshll.u32 %s11522_s8, 4  ;;  %s96_s2 = int_to_ptr.vmem [resolvable:$true] %s95_s2  ;;  %s11744_s7 = int_to_ptr.vmem [resolvable:$true] %s117_s7 }
  0xa2   :  { %s11286_s10 = scalar_lea.hbm %s11567_s25, 4096 }
  0xa3   :  { %p11287_p6 = scmp.ne.s32.totalorder %s11567_s25, %s11286_s10  ;;  %p11290_p7 = scmp.lt.u32.totalorder %s11286_s10, %s11567_s25 }
  0xa5   :  { %p11292_p8 = pnand %p11290_p7, %p11287_p6 }
  0xa7   :  { %11295 = shalt.err (!%p11292_p8)
}
  0xa8   :  { %s11296_s11 = scalar_lea.vmem %s96_s2, 4096  ;;  %p11301_p10 = scmp.lt.s32.totalorder %s96_s2, %s96_s2 }
  0xa9   :  { %p11297_p9 = scmp.ne.s32.totalorder %s96_s2, %s11296_s11  ;;  %p11302_p11 = scmp.lt.s32.totalorder %s11296_s11, %s11296_s11 }
  0xab   :  { %p11303_p12 = por %p11302_p11, %p11301_p10 }
  0xad   :  { %p11304_p13 = pnand %p11303_p12, %p11297_p9 }
  0xaf   :  { %11307 = shalt.err (!%p11304_p13)
}
  0xb0   :  { %101 = dma.hbm_to_vmem [thread:$0]  %s11567_s25, 4096, %s96_s2, [#allocation3], %s11519_s6, %s11519_s6, %s11520_s26  }
  0xb1   :  { %s11308_s21 = scalar_lea.hbm %s11577_s3, 12288 }
  0xb2   :  { %p11309_p0 = scmp.ne.s32.totalorder %s11577_s3, %s11308_s21  ;;  %p11312_p1 = scmp.lt.u32.totalorder %s11308_s21, %s11577_s3 }
  0xb4   :  { %p11314_p2 = pnand %p11312_p1, %p11309_p0 }
  0xb6   :  { %11317 = shalt.err (!%p11314_p2)
}
  0xb7   :  { %s11318_s15 = scalar_lea.vmem %s11744_s7, 12288  ;;  %p11323_p4 = scmp.lt.s32.totalorder %s11744_s7, %s11744_s7 }
  0xb8   :  { %p11319_p3 = scmp.ne.s32.totalorder %s11744_s7, %s11318_s15  ;;  %p11324_p5 = scmp.lt.s32.totalorder %s11318_s15, %s11318_s15 }
  0xba   :  { %p11325_p6 = por %p11324_p5, %p11323_p4 }
  0xbc   :  { %p11326_p7 = pnand %p11325_p6, %p11319_p3 }
  0xbe   :  { %11329 = shalt.err (!%p11326_p7)
}
  0xbf   :  { %s11523_s27 = smov 384   ;;  %s11524_s25 = smov 24  }
  0xc0   :  { %123 = dma.hbm_to_vmem [thread:$0]  %s11577_s3, 12288, %s11744_s7, [#allocation5], %s11523_s27, %s11523_s27, %s11524_s25  }
  0xc1   :  { %s11525_s16 = smov [#allocation9]   ;;  %s11526_s18 = smov [#allocation12]  }
  0xc2   :  { %s146_s0 = sshll.u32 %s11525_s16, 4  ;;  %s174_s22 = sshll.u32 %s11526_s18, 4  ;;  %s147_s0 = int_to_ptr.vmem [resolvable:$true] %s146_s0  ;;  %s175_s22 = int_to_ptr.vmem [resolvable:$true] %s174_s22 }
  0xc3   :  { %s11330_s23 = scalar_lea.hbm %s11602_s30, 16 }
  0xc4   :  { %p11331_p8 = scmp.ne.s32.totalorder %s11602_s30, %s11330_s23  ;;  %p11334_p9 = scmp.lt.u32.totalorder %s11330_s23, %s11602_s30 }
  0xc6   :  { %p11336_p10 = pnand %p11334_p9, %p11331_p8 }
  0xc8   :  { %11339 = shalt.err (!%p11336_p10)
}
  0xc9   :  { %s11340_s6 = scalar_lea.vmem %s147_s0, 16  ;;  %s11344_s26 = scalar_lea.vmem %s147_s0, 32 }
  0xca   :  { %p11341_p11 = scmp.ne.s32.totalorder %s147_s0, %s11340_s6  ;;  %p11345_p12 = scmp.lt.s32.totalorder %s147_s0, %s147_s0 }
  0xcb   :  { %p11346_p13 = scmp.lt.s32.totalorder %s11344_s26, %s11340_s6 }
  0xcd   :  { %p11347_p0 = por %p11346_p13, %p11345_p12 }
  0xcf   :  { %p11348_p1 = pnand %p11347_p0, %p11341_p11 }
  0xd1   :  { %11351 = shalt.err (!%p11348_p1)
}
  0xd2   :  { %149 = dma.hbm_to_vmem [thread:$0]  %s11602_s30, 16, %s147_s0, [#allocation8]  }
  0xd3   :  { %s11352_s3 = scalar_lea.hbm %s11627_s4, 16 }
  0xd4   :  { %p11353_p2 = scmp.ne.s32.totalorder %s11627_s4, %s11352_s3  ;;  %p11356_p3 = scmp.lt.u32.totalorder %s11352_s3, %s11627_s4 }
  0xd6   :  { %p11358_p4 = pnand %p11356_p3, %p11353_p2 }
  0xd8   :  { %11361 = shalt.err (!%p11358_p4)
}
  0xd9   :  { %s11362_s29 = scalar_lea.vmem %s175_s22, 16  ;;  %s11366_s28 = scalar_lea.vmem %s175_s22, 32 }
  0xda   :  { %p11363_p5 = scmp.ne.s32.totalorder %s175_s22, %s11362_s29  ;;  %p11367_p6 = scmp.lt.s32.totalorder %s175_s22, %s175_s22 }
  0xdb   :  { %p11368_p7 = scmp.lt.s32.totalorder %s11366_s28, %s11362_s29 }
  0xdd   :  { %p11369_p8 = por %p11368_p7, %p11367_p6 }
  0xdf   :  { %p11370_p9 = pnand %p11369_p8, %p11363_p5 }
  0xe1   :  { %11373 = shalt.err (!%p11370_p9)
}
  0xe2   :  { %177 = dma.hbm_to_vmem [thread:$0]  %s11627_s4, 16, %s175_s22, [#allocation11]  }
  0xe3   :  { %s11527_s1 = smov [#allocation15]   ;;  %s11528_s12 = smov [#allocation18]  }
  0xe4   :  { %s196_s30 = sshll.u32 %s11527_s1, 4  ;;  %s218_s2 = sshll.u32 %s11528_s12, 4  ;;  %s197_s30 = int_to_ptr.vmem [resolvable:$true] %s196_s30  ;;  %s219_s2 = int_to_ptr.vmem [resolvable:$true] %s218_s2 }
  0xe5   :  { %s11374_s8 = scalar_lea.hbm %s11637_s20, 16 }
  0xe6   :  { %p11375_p10 = scmp.ne.s32.totalorder %s11637_s20, %s11374_s8  ;;  %p11378_p11 = scmp.lt.u32.totalorder %s11374_s8, %s11637_s20 }
  0xe8   :  { %p11380_p12 = pnand %p11378_p11, %p11375_p10 }
  0xea   :  { %11383 = shalt.err (!%p11380_p12)
}
  0xeb   :  { %s11384_s7 = scalar_lea.vmem %s197_s30, 16  ;;  %s11388_s10 = scalar_lea.vmem %s197_s30, 32 }
  0xec   :  { %p11385_p13 = scmp.ne.s32.totalorder %s197_s30, %s11384_s7  ;;  %p11389_p0 = scmp.lt.s32.totalorder %s197_s30, %s197_s30 }
  0xed   :  { %p11390_p1 = scmp.lt.s32.totalorder %s11388_s10, %s11384_s7 }
  0xef   :  { %p11391_p2 = por %p11390_p1, %p11389_p0 }
  0xf1   :  { %p11392_p3 = pnand %p11391_p2, %p11385_p13 }
  0xf3   :  { %11395 = shalt.err (!%p11392_p3)
}
  0xf4   :  { %199 = dma.hbm_to_vmem [thread:$0]  %s11637_s20, 16, %s197_s30, [#allocation14]  }
  0xf5   :  { %s11396_s4 = scalar_lea.hbm %s11647_s19, 32 }
  0xf6   :  { %p11397_p4 = scmp.ne.s32.totalorder %s11647_s19, %s11396_s4  ;;  %p11400_p5 = scmp.lt.u32.totalorder %s11396_s4, %s11647_s19 }
  0xf8   :  { %p11402_p6 = pnand %p11400_p5, %p11397_p4 }
  0xfa   :  { %11405 = shalt.err (!%p11402_p6)
}
  0xfb   :  { %s11406_s11 = scalar_lea.vmem %s219_s2, 32  ;;  %p11411_p8 = scmp.lt.s32.totalorder %s219_s2, %s219_s2 }
  0xfc   :  { %p11407_p7 = scmp.ne.s32.totalorder %s219_s2, %s11406_s11  ;;  %p11412_p9 = scmp.lt.s32.totalorder %s11406_s11, %s11406_s11 }
  0xfe   :  { %p11413_p10 = por %p11412_p9, %p11411_p8 }
 0x100   :  { %p11414_p11 = pnand %p11413_p10, %p11407_p7 }
 0x102   :  { %11417 = shalt.err (!%p11414_p11)
}
 0x103   :  { %221 = dma.hbm_to_vmem [thread:$0]  %s11647_s19, 32, %s219_s2, [#allocation17]  }
 0x104   :  { %s11529_s21 = smov [#allocation21]   ;;  %s11530_s20 = smov [#allocation22]  }
 0x105   :  { %s252_s15 = sshll.u32 %s11529_s21, 4  ;;  %s264_s27 = sshll.u32 %s11530_s20, 4  ;;  %s253_s15 = int_to_ptr.vmem [resolvable:$true] %s252_s15  ;;  %s265_s27 = int_to_ptr.vmem [resolvable:$true] %s264_s27 }
 0x106   :  { %s11418_s25 = scalar_lea.hbm %s11692_s24, 64 }
 0x107   :  { %p11419_p12 = scmp.ne.s32.totalorder %s11692_s24, %s11418_s25  ;;  %p11422_p13 = scmp.lt.u32.totalorder %s11418_s25, %s11692_s24 }
 0x109   :  { %p11424_p0 = pnand %p11422_p13, %p11419_p12 }
 0x10b   :  { %11427 = shalt.err (!%p11424_p0)
}
 0x10c   :  { %s11428_s16 = scalar_lea.vmem %s253_s15, 64  ;;  %p11433_p2 = scmp.lt.s32.totalorder %s253_s15, %s253_s15 }
 0x10d   :  { %p11429_p1 = scmp.ne.s32.totalorder %s253_s15, %s11428_s16  ;;  %p11434_p3 = scmp.lt.s32.totalorder %s11428_s16, %s11428_s16 }
 0x10f   :  { %p11435_p4 = por %p11434_p3, %p11433_p2 }
 0x111   :  { %p11436_p5 = pnand %p11435_p4, %p11429_p1 }
 0x113   :  { %11439 = shalt.err (!%p11436_p5)
}
 0x114   :  { %255 = dma.hbm_to_vmem [thread:$0]  %s11692_s24, 64, %s253_s15, [#allocation20]  }
 0x115   :  { %s11440_s19 = scalar_lea.hbm %s11702_s14, 16 }
 0x116   :  { %p11441_p6 = scmp.ne.s32.totalorder %s11702_s14, %s11440_s19  ;;  %p11444_p7 = scmp.lt.u32.totalorder %s11440_s19, %s11702_s14 }
 0x118   :  { %p11446_p8 = pnand %p11444_p7, %p11441_p6 }
 0x11a   :  { %11449 = shalt.err (!%p11446_p8)
}
 0x11b   :  { %s11450_s0 = scalar_lea.vmem %s265_s27, 16  ;;  %s11454_s18 = scalar_lea.vmem %s265_s27, 32 }
 0x11c   :  { %p11451_p9 = scmp.ne.s32.totalorder %s265_s27, %s11450_s0  ;;  %p11455_p10 = scmp.lt.s32.totalorder %s265_s27, %s265_s27 }
 0x11d   :  { %p11456_p11 = scmp.lt.s32.totalorder %s11454_s18, %s11450_s0 }
 0x11f   :  { %p11457_p12 = por %p11456_p11, %p11455_p10 }
 0x121   :  { %p11458_p13 = pnand %p11457_p12, %p11451_p9 }
 0x123   :  { %11461 = shalt.err (!%p11458_p13)
}
 0x124   :  { %267 = dma.hbm_to_vmem [thread:$0]  %s11702_s14, 16, %s265_s27, [#allocation23]  }
 0x125   :  { %11462 = dma.done.wait [#allocation3], 4096  }
 0x126   :  { %11463 = vsyncadd [#allocation3], 4294963200 }
 0x127   :  { %11464 = dma.done.wait [#allocation5], 12320  }
 0x128   :  { %11465 = vsyncadd [#allocation5], 4294954976 }
 0x129   :  { %11466 = dma.done.wait [#allocation8], 64  }
 0x12a   :  { %11467 = vsyncadd [#allocation8], 4294967232 }
 0x12b   :  { %11468 = dma.done.wait [#allocation11], 2064  }
 0x12c   :  { %11469 = vsyncadd [#allocation11], 4294965232 }
 0x12d   :  { %11470 = dma.done.wait [#allocation14], 2064  }
 0x12e   :  { %11471 = vsyncadd [#allocation14], 4294965232 }
 0x12f   :  { %11472 = dma.done.wait [#allocation17], 4128  }
 0x130   :  { %11473 = vsyncadd [#allocation17], 4294963168 }
 0x131   :  { %11474 = dma.done.wait [#allocation20], 80  }
 0x132   :  { %11475 = vsyncadd [#allocation20], 4294967216 }
 0x133   :  { %11476 = dma.done.wait [#allocation23], 16  }
 0x134   :  { %11477 = vsyncadd [#allocation23], 4294967280  ;;  %v342_v0 = vld [vmem:[%s11557_s17] sm:$0xff]  ;;  %v343_v1 = vld [vmem:[%s11557_s17 + $0x8] sm:$0xff]  ;;  %vm11533_vm0 = vmmov 0   ;;  %s14161_s14 = sld [smem:[#allocation35_spill]] }
 0x135   :  { %v344_v2 = vld [vmem:[%s11557_s17 + $0x10] sm:$0xff]  ;;  %v8778_v3 = vpack.c.bf16 %v343_v1, %v342_v0  ;;  %v345_v4 = vld [vmem:[%s11557_s17 + $0x18] sm:$0xff]  ;;  %v346_v6 = vld [vmem:[%s11557_s17 + $0x20] sm:$0xff]  ;;  %s14162_s24 = sld [smem:[#allocation33_spill]]  ;;  %s14163_s22 = sld [smem:[#allocation37_spill]] }
 0x136   :  { %v8782_v5 = vpack.c.bf16 %v345_v4, %v344_v2  ;;  %v347_v7 = vld [vmem:[%s11557_s17 + $0x28] sm:$0xff]  ;;  %v326_v9 = vld [vmem:[%s11547_s9] sm:$0xff]  ;;  %v348_v10 = vld [vmem:[%s11557_s17 + $0x30] sm:$0xff]  ;;  %s14164_s23 = sld [smem:[#allocation36_spill]]  ;;  %s14165_s6 = sld [smem:[#allocation39_spill]] }
 0x137   :  { %8779 = vmatprep.subr.bf16.mxu0 %v8778_v3  ;;  %v8786_v8 = vpack.c.bf16 %v347_v7, %v346_v6  ;;  %v349_v11 = vld [vmem:[%s11557_s17 + $0x38] sm:$0xff]  ;;  %8327 = vmatprep.mubr.f32.mxu0 %v326_v9  ;;  %v350_v13 = vld [vmem:[%s11557_s17 + $0x40] sm:$0xff]  ;;  %v351_v14 = vld [vmem:[%s11557_s17 + $0x48] sm:$0xff]  ;;  %s14166_s26 = sld [smem:[#allocation38_spill]]  ;;  %s14167_s3 = sld [smem:[#allocation41_spill]] }
 0x138   :  { %8781 = vmatpush3.bf16.msra.mxu0 %v8778_v3  ;;  %v8790_v12 = vpack.c.bf16 %v349_v11, %v348_v10  ;;  %v8794_v15 = vpack.c.bf16 %v351_v14, %v350_v13  ;;  %v352_v16 = vld [vmem:[%s11557_s17 + $0x50] sm:$0xff]  ;;  %v353_v17 = vld [vmem:[%s11557_s17 + $0x58] sm:$0xff]  ;;  %v354_v19 = vld [vmem:[%s11557_s17 + $0x60] sm:$0xff]  ;;  %s14168_s29 = sld [smem:[#allocation40_spill]]  ;;  %s14169_s28 = sld [smem:[#allocation43_spill]] }
 0x139   :  { %8783 = vmatprep.subr.bf16.mxu0 %v8782_v5  ;;  %v8798_v18 = vpack.c.bf16 %v353_v17, %v352_v16  ;;  %v355_v20 = vld [vmem:[%s11557_s17 + $0x68] sm:$0xff]  ;;  %v356_v22 = vld [vmem:[%s11557_s17 + $0x70] sm:$0xff]  ;;  %v357_v23 = vld [vmem:[%s11557_s17 + $0x78] sm:$0xff]  ;;  %s14159_s17 = sld [smem:[#allocation32_spill]]  ;;  %s14170_s1 = sld [smem:[#allocation42_spill]] }
 0x13a   :  { %v8802_v21 = vpack.c.bf16 %v355_v20, %v354_v19  ;;  %v8806_v24 = vpack.c.bf16 %v357_v23, %v356_v22  ;;  %v327_v25 = vld [vmem:[%s11547_s9 + $0x8] sm:$0xff]  ;;  %v328_v26 = vld [vmem:[%s11547_s9 + $0x10] sm:$0xff]  ;;  %v329_v27 = vld [vmem:[%s11547_s9 + $0x18] sm:$0xff]  ;;  %s14171_s30 = sld [smem:[#allocation45_spill]]  ;;  %s14172_s12 = sld [smem:[#allocation44_spill]] }
 0x13b   :  { %v330_v28 = vld [vmem:[%s11547_s9 + $0x20] sm:$0xff]  ;;  %v331_v29 = vld [vmem:[%s11547_s9 + $0x28] sm:$0xff]  ;;  %v332_v30 = vld [vmem:[%s11547_s9 + $0x30] sm:$0xff]  ;;  %s14173_s2 = sld [smem:[#allocation47_spill]]  ;;  %s14174_s8 = sld [smem:[#allocation46_spill]] }
 0x13c   :  { %8785 = vmatpush3.bf16.msra.mxu0 %v8782_v5  ;;  %v333_v31 = vld [vmem:[%s11547_s9 + $0x38] sm:$0xff]  ;;  %v334_v32 = vld [vmem:[%s11547_s9 + $0x40] sm:$0xff]  ;;  %v335_v33 = vld [vmem:[%s11547_s9 + $0x48] sm:$0xff] }
 0x13d   :  { %8787 = vmatprep.subr.bf16.mxu0 %v8786_v8  ;;  %v336_v34 = vld [vmem:[%s11547_s9 + $0x50] sm:$0xff]  ;;  %v337_v35 = vld [vmem:[%s11547_s9 + $0x58] sm:$0xff]  ;;  %v338_v36 = vld [vmem:[%s11547_s9 + $0x60] sm:$0xff] }
 0x13e   :  { %v339_v37 = vld [vmem:[%s11547_s9 + $0x68] sm:$0xff]  ;;  %v340_v38 = vld [vmem:[%s11547_s9 + $0x70] sm:$0xff]  ;;  %v341_v39 = vld [vmem:[%s11547_s9 + $0x78] sm:$0xff]  ;;  %s14160_s9 = sld [smem:[#allocation34_spill]] }
 0x13f   :  { %v310_v40 = vld [vmem:[%s14159_s17] sm:$0xff]  ;;  %v11820_v1 = vld [vmem:[%s14159_s17 + $0x8] sm:$0xff]  ;;  %v11823_v2 = vld [vmem:[%s14159_s17 + $0x10] sm:$0xff] }
 0x140   :  { %8789 = vmatpush3.bf16.msra.mxu0 %v8786_v8  ;;  %8383 = vmatprep.mubr.f32.mxu1 %v310_v40  ;;  %v11828_v3 = vld [vmem:[%s14159_s17 + $0x18] sm:$0xff]  ;;  %v11831_v4 = vld [vmem:[%s14159_s17 + $0x20] sm:$0xff]  ;;  %v11836_v5 = vld [vmem:[%s14159_s17 + $0x28] sm:$0xff] }
 0x141   :  { %8791 = vmatprep.subr.bf16.mxu0 %v8790_v12  ;;  %v11839_v6 = vld [vmem:[%s14159_s17 + $0x30] sm:$0xff]  ;;  %v11844_v7 = vld [vmem:[%s14159_s17 + $0x38] sm:$0xff]  ;;  %v11847_v8 = vld [vmem:[%s14159_s17 + $0x40] sm:$0xff] }
 0x142   :  { %v11852_v9 = vld [vmem:[%s14159_s17 + $0x48] sm:$0xff]  ;;  %v11855_v10 = vld [vmem:[%s14159_s17 + $0x50] sm:$0xff]  ;;  %v11860_v11 = vld [vmem:[%s14159_s17 + $0x58] sm:$0xff] }
 0x143   :  { %v11868_v13 = vld [vmem:[%s14159_s17 + $0x68] sm:$0xff]  ;;  %v11871_v14 = vld [vmem:[%s14159_s17 + $0x70] sm:$0xff]  ;;  %v674_v17 = vld [vmem:[#allocation2 + $0x18] sm:$0xff] }
 0x144   :  { %8793 = vmatpush3.bf16.msra.mxu0 %v8790_v12  ;;  %v11863_v12 = vld [vmem:[%s14159_s17 + $0x60] sm:$0xff]  ;;  %v672_v16 = vld [vmem:[#allocation2 + $0x8] sm:$0xff]  ;;  %v673_v20 = vld [vmem:[#allocation2 + $0x10] sm:$0xff] }
 0x145   :  { %8795 = vmatprep.subr.bf16.mxu0 %v8794_v15  ;;  %v8874_v19 = vpack.c.bf16 %v674_v17, %v672_v16  ;;  %v678_v22 = vld [vmem:[#allocation2 + $0x38] sm:$0xff] }
 0x148   :  { %8797 = vmatpush3.bf16.msra.mxu0 %v8794_v15  ;;  %v11876_v15 = vld [vmem:[%s14159_s17 + $0x78] sm:$0xff] }
 0x149   :  { %8799 = vmatprep.subr.bf16.mxu0 %v8798_v18 }
 0x14c   :  { %8801 = vmatpush3.bf16.msra.mxu0 %v8798_v18  ;;  %v671_v18 = vld [vmem:[#allocation2] sm:$0xff] }
 0x14d   :  { %8803 = vmatprep.subr.bf16.mxu0 %v8802_v21  ;;  %v8876_v23 = vpack.c.bf16 %v673_v20, %v671_v18 }
 0x150   :  { %8805 = vmatpush3.bf16.msra.mxu0 %v8802_v21  ;;  %v676_v21 = vld [vmem:[#allocation2 + $0x28] sm:$0xff] }
 0x151   :  { %8807 = vmatprep.subr.bf16.mxu0 %v8806_v24 }
 0x154   :  { %8809 = vmatpush3.bf16.msra.mxu0 %v8806_v24  ;;  %v8878_v24 = vpack.c.bf16 %v678_v22, %v676_v21 }
 0x157   :  { %8328 = vmatmul.mubr.f32.vlgmr.msra.gmra.mrb[0].mxu0 %v327_v25  ;;  %v675_v25 = vld [vmem:[#allocation2 + $0x20] sm:$0xff] }
 0x158   :  { %8330 = vmatprep.mubr.f32.mxu0 %v328_v26  ;;  %v677_v26 = vld [vmem:[#allocation2 + $0x30] sm:$0xff] }
 0x15b   :  { %8331 = vmatmul.mubr.f32.gmra.mrb[2].mxu0 %v329_v27  ;;  %v680_v27 = vld [vmem:[#allocation2 + $0x48] sm:$0xff] }
 0x15c   :  { %8333 = vmatprep.mubr.f32.mxu0 %v330_v28  ;;  %v682_v28 = vld [vmem:[#allocation2 + $0x58] sm:$0xff] }
 0x15f   :  { %8334 = vmatmul.mubr.f32.gmra.mrb[4].mxu0 %v331_v29  ;;  %v8880_v29 = vpack.c.bf16 %v677_v26, %v675_v25 }
 0x160   :  { %8336 = vmatprep.mubr.f32.mxu0 %v332_v30  ;;  %v8882_v30 = vpack.c.bf16 %v682_v28, %v680_v27 }
 0x163   :  { %8337 = vmatmul.mubr.f32.gmra.mrb[6].mxu0 %v333_v31  ;;  %v679_v31 = vld [vmem:[#allocation2 + $0x40] sm:$0xff] }
 0x164   :  { %8339 = vmatprep.mubr.f32.mxu0 %v334_v32  ;;  %v681_v32 = vld [vmem:[#allocation2 + $0x50] sm:$0xff] }
 0x167   :  { %8340 = vmatmul.mubr.f32.gmra.mrb[8].mxu0 %v335_v33  ;;  %v684_v33 = vld [vmem:[#allocation2 + $0x68] sm:$0xff] }
 0x168   :  { %8342 = vmatprep.mubr.f32.mxu0 %v336_v34  ;;  %v686_v34 = vld [vmem:[#allocation2 + $0x78] sm:$0xff] }
 0x16b   :  { %8343 = vmatmul.mubr.f32.gmra.mrb[10].mxu0 %v337_v35  ;;  %v8884_v35 = vpack.c.bf16 %v681_v32, %v679_v31 }
 0x16c   :  { %8345 = vmatprep.mubr.f32.mxu0 %v338_v36  ;;  %v8886_v36 = vpack.c.bf16 %v686_v34, %v684_v33 }
 0x16f   :  { %8346 = vmatmul.mubr.f32.gmra.mrb[12].mxu0 %v339_v37  ;;  %v683_v37 = vld [vmem:[#allocation2 + $0x60] sm:$0xff] }
 0x170   :  { %8348 = vmatprep.mubr.f32.mxu0 %v340_v38  ;;  %v685_v38 = vld [vmem:[#allocation2 + $0x70] sm:$0xff] }
 0x173   :  { %8349 = vmatmul.mubr.f32.gmra.mrb[14].mxu0 %v341_v39  ;;  %v688_v39 = vld [vmem:[#allocation2 + $0x88] sm:$0xff] }
 0x174   :  { %8439 = vmatprep.mubr.f32.mxu0 %v310_v40  ;;  %v690_v40 = vld [vmem:[#allocation2 + $0x98] sm:$0xff] }
 0x22a   :  { %v8329_v41 = vpop.f32.mrb[0].mxu0 }
 0x22b   :  { %v424_v42 = vpop.f32.mrb[1].mxu0 }
 0x22c   :  { %v8810_v43 = vpack.c.bf16 %v8329_v41, %v424_v42  ;;  %v8888_v41 = vpack.c.bf16 %v685_v38, %v683_v37  ;;  %v8890_v42 = vpack.c.bf16 %v690_v40, %v688_v39 }
 0x22e   :  { %v8332_v44 = vpop.f32.mrb[2].mxu0  ;;  %8811 = vmatprep.subr.bf16.mxu1 %v8810_v43 }
 0x22f   :  { %v434_v45 = vpop.f32.mrb[3].mxu0  ;;  %8813 = vmatpush3.bf16.msra.mxu1 %v8810_v43  ;;  %v687_v43 = vld [vmem:[#allocation2 + $0x80] sm:$0xff] }
 0x230   :  { %v8814_v46 = vpack.c.bf16 %v8332_v44, %v434_v45  ;;  %v689_v44 = vld [vmem:[#allocation2 + $0x90] sm:$0xff]  ;;  %v692_v45 = vld [vmem:[#allocation2 + $0xa8] sm:$0xff] }
 0x232   :  { %v8335_v47 = vpop.f32.mrb[4].mxu0  ;;  %8815 = vmatprep.subr.bf16.mxu1 %v8814_v46 }
 0x233   :  { %v444_v48 = vpop.f32.mrb[5].mxu0  ;;  %8817 = vmatpush3.bf16.msra.mxu1 %v8814_v46  ;;  %v694_v46 = vld [vmem:[#allocation2 + $0xb8] sm:$0xff] }
 0x234   :  { %v8818_v49 = vpack.c.bf16 %v8335_v47, %v444_v48  ;;  %v8892_v47 = vpack.c.bf16 %v689_v44, %v687_v43  ;;  %v8894_v48 = vpack.c.bf16 %v694_v46, %v692_v45 }
 0x236   :  { %v8338_v50 = vpop.f32.mrb[6].mxu0  ;;  %8819 = vmatprep.subr.bf16.mxu1 %v8818_v49 }
 0x237   :  { %v454_v51 = vpop.f32.mrb[7].mxu0  ;;  %8821 = vmatpush3.bf16.msra.mxu1 %v8818_v49  ;;  %v691_v49 = vld [vmem:[#allocation2 + $0xa0] sm:$0xff] }
 0x238   :  { %v8822_v52 = vpack.c.bf16 %v8338_v50, %v454_v51  ;;  %v693_v50 = vld [vmem:[#allocation2 + $0xb0] sm:$0xff]  ;;  %v696_v51 = vld [vmem:[#allocation2 + $0xc8] sm:$0xff] }
 0x23a   :  { %v8341_v53 = vpop.f32.mrb[8].mxu0  ;;  %8823 = vmatprep.subr.bf16.mxu1 %v8822_v52 }
 0x23b   :  { %v464_v54 = vpop.f32.mrb[9].mxu0  ;;  %8825 = vmatpush3.bf16.msra.mxu1 %v8822_v52  ;;  %v698_v52 = vld [vmem:[#allocation2 + $0xd8] sm:$0xff] }
 0x23c   :  { %v8826_v55 = vpack.c.bf16 %v8341_v53, %v464_v54  ;;  %v8896_v53 = vpack.c.bf16 %v693_v50, %v691_v49  ;;  %v8898_v54 = vpack.c.bf16 %v698_v52, %v696_v51 }
 0x23e   :  { %v8344_v56 = vpop.f32.mrb[10].mxu0  ;;  %8827 = vmatprep.subr.bf16.mxu1 %v8826_v55 }
 0x23f   :  { %v474_v57 = vpop.f32.mrb[11].mxu0  ;;  %8829 = vmatpush3.bf16.msra.mxu1 %v8826_v55  ;;  %v695_v55 = vld [vmem:[#allocation2 + $0xc0] sm:$0xff] }
 0x240   :  { %v8830_v58 = vpack.c.bf16 %v8344_v56, %v474_v57  ;;  %v697_v56 = vld [vmem:[#allocation2 + $0xd0] sm:$0xff]  ;;  %v700_v57 = vld [vmem:[#allocation2 + $0xe8] sm:$0xff] }
 0x242   :  { %v8347_v59 = vpop.f32.mrb[12].mxu0  ;;  %8831 = vmatprep.subr.bf16.mxu1 %v8830_v58 }
 0x243   :  { %v484_v60 = vpop.f32.mrb[13].mxu0  ;;  %8833 = vmatpush3.bf16.msra.mxu1 %v8830_v58  ;;  %v702_v58 = vld [vmem:[#allocation2 + $0xf8] sm:$0xff] }
 0x244   :  { %v8834_v61 = vpack.c.bf16 %v8347_v59, %v484_v60  ;;  %v8900_v59 = vpack.c.bf16 %v697_v56, %v695_v55  ;;  %v8902_v60 = vpack.c.bf16 %v702_v58, %v700_v57 }
 0x246   :  { %v8350_v62 = vpop.f32.mrb[14].mxu0  ;;  %8835 = vmatprep.subr.bf16.mxu1 %v8834_v61 }
 0x247   :  { %v494_v63 = vpop.f32.mrb[15].mxu0  ;;  %8837 = vmatpush3.bf16.msra.mxu1 %v8834_v61  ;;  %v699_v61 = vld [vmem:[#allocation2 + $0xe0] sm:$0xff] }
 0x248   :  { %v8838_v0 = vpack.c.bf16 %v8350_v62, %v494_v63  ;;  %v701_v62 = vld [vmem:[#allocation2 + $0xf0] sm:$0xff] }
 0x249   :  { %v8904_v63 = vpack.c.bf16 %v701_v62, %v699_v61 }
 0x24a   :  { %8839 = vmatprep.subr.bf16.mxu1 %v8838_v0 }
 0x24b   :  { %8841 = vmatpush3.bf16.msra.mxu1 %v8838_v0  ;;  %v11880_v0 = vld [vmem:[%s14160_s9] ss:$0 sm:$0xff] }
 0x24c   :  { %8875 = vmatprep.subr.bf16.mxu1 %v8874_v19 }
 0x24e   :  { %8384 = vmatmul.mubr.f32.vlgmr.msra.gmra.mrb[0].mxu1 %v11820_v1 }
 0x24f   :  { %8386 = vmatprep.mubr.f32.mxu1 %v11823_v2  ;;  %8877 = vmatpush1.bf16.msra.mxu1 %v8876_v23 }
 0x250   :  { %8879 = vmatprep.subr.bf16.mxu1 %v8878_v24 }
 0x252   :  { %8387 = vmatmul.mubr.f32.gmra.mrb[2].mxu1 %v11828_v3 }
 0x253   :  { %8389 = vmatprep.mubr.f32.mxu1 %v11831_v4  ;;  %8881 = vmatpush1.bf16.msra.mxu1 %v8880_v29 }
 0x254   :  { %8883 = vmatprep.subr.bf16.mxu1 %v8882_v30 }
 0x256   :  { %8390 = vmatmul.mubr.f32.gmra.mrb[4].mxu1 %v11836_v5 }
 0x257   :  { %8392 = vmatprep.mubr.f32.mxu1 %v11839_v6  ;;  %8885 = vmatpush1.bf16.msra.mxu1 %v8884_v35 }
 0x258   :  { %8887 = vmatprep.subr.bf16.mxu1 %v8886_v36 }
 0x25a   :  { %8393 = vmatmul.mubr.f32.gmra.mrb[6].mxu1 %v11844_v7 }
 0x25b   :  { %8395 = vmatprep.mubr.f32.mxu1 %v11847_v8  ;;  %8889 = vmatpush1.bf16.msra.mxu1 %v8888_v41 }
 0x25c   :  { %8891 = vmatprep.subr.bf16.mxu1 %v8890_v42 }
 0x25e   :  { %8396 = vmatmul.mubr.f32.gmra.mrb[8].mxu1 %v11852_v9 }
 0x25f   :  { %8398 = vmatprep.mubr.f32.mxu1 %v11855_v10  ;;  %8893 = vmatpush1.bf16.msra.mxu1 %v8892_v47 }
 0x260   :  { %8895 = vmatprep.subr.bf16.mxu1 %v8894_v48 }
 0x262   :  { %8399 = vmatmul.mubr.f32.gmra.mrb[10].mxu1 %v11860_v11 }
 0x263   :  { %8401 = vmatprep.mubr.f32.mxu1 %v11863_v12  ;;  %8897 = vmatpush1.bf16.msra.mxu1 %v8896_v53 }
 0x264   :  { %8899 = vmatprep.subr.bf16.mxu1 %v8898_v54 }
 0x266   :  { %8402 = vmatmul.mubr.f32.gmra.mrb[12].mxu1 %v11868_v13 }
 0x267   :  { %8404 = vmatprep.mubr.f32.mxu1 %v11871_v14  ;;  %8901 = vmatpush1.bf16.msra.mxu1 %v8900_v59 }
 0x268   :  { %8903 = vmatprep.subr.bf16.mxu1 %v8902_v60 }
 0x26a   :  { %8405 = vmatmul.mubr.f32.gmra.mrb[14].mxu1 %v11876_v15 }
 0x26b   :  { %8905 = vmatpush1.bf16.msra.mxu1 %v8904_v63 }
 0x321   :  { %v8385_v16 = vpop.f32.mrb[0].mxu1 }
 0x322   :  { %v582_v17 = vadd.f32 %v8385_v16, %v11880_v0  ;;  %v576_v18 = vpop.f32.mrb[1].mxu1 }
 0x323   :  { %v577_v19 = vadd.f32 %v11880_v0, %v576_v18 }
 0x324   :  { %v656_v20 = vmax.f32 %v582_v17, 0.0 }
 0x325   :  { %v655_v21 = vmax.f32 %v577_v19, 0.0  ;;  %v8388_v22 = vpop.f32.mrb[2].mxu1 }
 0x326   :  { %v592_v23 = vadd.f32 %v8388_v22, %v11880_v0  ;;  %v586_v24 = vpop.f32.mrb[3].mxu1 }
 0x327   :  { %v8842_v25 = vpack.c.bf16 %v656_v20, %v655_v21  ;;  %v587_v26 = vadd.f32 %v11880_v0, %v586_v24 }
 0x328   :  { %v658_v27 = vmax.f32 %v592_v23, 0.0 }
 0x329   :  { %v657_v28 = vmax.f32 %v587_v26, 0.0  ;;  %v8391_v29 = vpop.f32.mrb[4].mxu1  ;;  %8843 = vmatprep.subr.bf16.mxu0 %v8842_v25 }
 0x32a   :  { %v602_v30 = vadd.f32 %v8391_v29, %v11880_v0  ;;  %v596_v31 = vpop.f32.mrb[5].mxu1  ;;  %8845 = vmatpush3.bf16.msra.mxu0 %v8842_v25  ;;  %v850_v25 = vlaneseq }
 0x32b   :  { %v8846_v32 = vpack.c.bf16 %v658_v27, %v657_v28  ;;  %v597_v33 = vadd.f32 %v11880_v0, %v596_v31  ;;  %v848_v28 = vld [vmem:[#allocation4] sm:$0x3] }
 0x32c   :  { %v660_v34 = vmax.f32 %v602_v30, 0.0  ;;  %v11930_v26 = vshrl.u32 %v850_v25, 7  ;;  %v1077_v25 = vld [vmem:[#allocation6 + $0xc0] sm:$0xff] }
 0x32d   :  { %v659_v35 = vmax.f32 %v597_v33, 0.0  ;;  %v8394_v36 = vpop.f32.mrb[6].mxu1  ;;  %8847 = vmatprep.subr.bf16.mxu0 %v8846_v32 }
 0x32e   :  { %v612_v37 = vadd.f32 %v8394_v36, %v11880_v0  ;;  %v606_v38 = vpop.f32.mrb[7].mxu1  ;;  %8849 = vmatpush3.bf16.msra.mxu0 %v8846_v32  ;;  %v11933_v27 = vsub.s32 0, %v11930_v26  ;;  %v11936_v29 = vsub.s32 1, %v11930_v26 }
 0x32f   :  { %v8850_v39 = vpack.c.bf16 %v660_v34, %v659_v35  ;;  %v607_v40 = vadd.f32 %v11880_v0, %v606_v38  ;;  %v1057_v38 = vld [vmem:[#allocation6 + $0x20] sm:$0xff] }
 0x330   :  { %v662_v41 = vmax.f32 %v612_v37, 0.0  ;;  %v11939_v30 = vrot.slane %v848_v28, %v11933_v27  ;;  %v11942_v32 = vrot.slane %v848_v28, %v11936_v29  ;;  %v1054_v37 = vld [vmem:[#allocation6 + $0x8] sm:$0xff]  ;;  %v1080_v28 = vld [vmem:[#allocation6 + $0xd8] sm:$0xff] }
 0x331   :  { %v661_v42 = vmax.f32 %v607_v40, 0.0  ;;  %v8397_v43 = vpop.f32.mrb[8].mxu1  ;;  %8851 = vmatprep.subr.bf16.mxu0 %v8850_v39 }
 0x332   :  { %v622_v44 = vadd.f32 %v8397_v43, %v11880_v0  ;;  %v616_v45 = vpop.f32.mrb[9].mxu1  ;;  %8853 = vmatpush3.bf16.msra.mxu0 %v8850_v39  ;;  %v1053_v39 = vld [vmem:[#allocation6] sm:$0xff]  ;;  %v1056_v43 = vld [vmem:[#allocation6 + $0x18] sm:$0xff] }
 0x333   :  { %v8854_v46 = vpack.c.bf16 %v662_v41, %v661_v42  ;;  %v617_v47 = vadd.f32 %v11880_v0, %v616_v45  ;;  %v8938_v42 = vpack.c.bf16 %v1057_v38, %v1054_v37  ;;  %v1063_v45 = vld [vmem:[#allocation6 + $0x50] sm:$0xff]  ;;  %v8956_v38 = vpack.c.bf16 %v1080_v28, %v1077_v25 }
 0x334   :  { %v664_v48 = vmax.f32 %v622_v44, 0.0  ;;  %v1060_v44 = vld [vmem:[#allocation6 + $0x38] sm:$0xff] }
 0x335   :  { %v663_v49 = vmax.f32 %v617_v47, 0.0  ;;  %v8400_v50 = vpop.f32.mrb[10].mxu1  ;;  %8855 = vmatprep.subr.bf16.mxu0 %v8854_v46  ;;  %v8940_v47 = vpack.c.bf16 %v1056_v43, %v1053_v39  ;;  %8939 = vmatprep.subr.bf16.mxu1 %v8938_v42  ;;  %v1083_v42 = vld [vmem:[#allocation6 + $0xf0] sm:$0xff]  ;;  %v1086_v43 = vld [vmem:[#allocation6 + $0x108] sm:$0xff] }
 0x336   :  { %v632_v51 = vadd.f32 %v8400_v50, %v11880_v0  ;;  %v626_v52 = vpop.f32.mrb[11].mxu1  ;;  %8857 = vmatpush3.bf16.msra.mxu0 %v8854_v46  ;;  %v1062_v50 = vld [vmem:[#allocation6 + $0x48] sm:$0xff] }
 0x337   :  { %v8858_v53 = vpack.c.bf16 %v664_v48, %v663_v49  ;;  %v627_v54 = vadd.f32 %v11880_v0, %v626_v52  ;;  %v8942_v48 = vpack.c.bf16 %v1063_v45, %v1060_v44  ;;  %v1059_v49 = vld [vmem:[#allocation6 + $0x30] sm:$0xff]  ;;  %v1090_v45 = vld [vmem:[#allocation6 + $0x128] sm:$0xff] }
 0x338   :  { %v666_v55 = vmax.f32 %v632_v51, 0.0  ;;  %v1066_v51 = vld [vmem:[#allocation6 + $0x68] sm:$0xff] }
 0x339   :  { %v665_v56 = vmax.f32 %v627_v54, 0.0  ;;  %v8403_v57 = vpop.f32.mrb[12].mxu1  ;;  %8859 = vmatprep.subr.bf16.mxu0 %v8858_v53  ;;  %v1069_v54 = vld [vmem:[#allocation6 + $0x80] sm:$0xff] }
 0x33a   :  { %v642_v58 = vadd.f32 %v8403_v57, %v11880_v0  ;;  %v636_v59 = vpop.f32.mrb[13].mxu1  ;;  %8861 = vmatpush3.bf16.msra.mxu0 %v8858_v53 }
 0x33b   :  { %v8862_v60 = vpack.c.bf16 %v666_v55, %v665_v56  ;;  %v637_v61 = vadd.f32 %v11880_v0, %v636_v59 }
 0x33c   :  { %v668_v62 = vmax.f32 %v642_v58, 0.0  ;;  %v8944_v58 = vpack.c.bf16 %v1062_v50, %v1059_v49 }
 0x33d   :  { %v667_v63 = vmax.f32 %v637_v61, 0.0  ;;  %v8406_v16 = vpop.f32.mrb[14].mxu1  ;;  %8863 = vmatprep.subr.bf16.mxu0 %v8862_v60  ;;  %v8946_v61 = vpack.c.bf16 %v1069_v54, %v1066_v51 }
 0x33e   :  { %v652_v17 = vadd.f32 %v8406_v16, %v11880_v0  ;;  %v646_v18 = vpop.f32.mrb[15].mxu1  ;;  %8865 = vmatpush3.bf16.msra.mxu0 %v8862_v60 }
 0x33f   :  { %v8866_v19 = vpack.c.bf16 %v668_v62, %v667_v63  ;;  %v647_v20 = vadd.f32 %v11880_v0, %v646_v18  ;;  %v1065_v62 = vld [vmem:[#allocation6 + $0x60] sm:$0xff]  ;;  %v1068_v63 = vld [vmem:[#allocation6 + $0x78] sm:$0xff]  ;;  %v1075_v18 = vld [vmem:[#allocation6 + $0xb0] sm:$0xff] }
 0x340   :  { %v670_v21 = vmax.f32 %v652_v17, 0.0  ;;  %v1072_v17 = vld [vmem:[#allocation6 + $0x98] sm:$0xff] }
 0x341   :  { %v669_v22 = vmax.f32 %v647_v20, 0.0  ;;  %8867 = vmatprep.subr.bf16.mxu0 %v8866_v19 }
 0x342   :  { %8869 = vmatpush3.bf16.msra.mxu0 %v8866_v19 }
 0x343   :  { %v8870_v23 = vpack.c.bf16 %v670_v21, %v669_v22  ;;  %v8948_v22 = vpack.c.bf16 %v1068_v63, %v1065_v62 }
 0x345   :  { %8871 = vmatprep.subr.bf16.mxu0 %v8870_v23 }
 0x346   :  { %8873 = vmatpush3.bf16.msra.mxu0 %v8870_v23 }
 0x349   :  { %8440 = vmatmul.mubr.f32.vlgmr.msra.gmra.mrb[16].mxu0 %v11820_v1  ;;  %v11531_v1 = vmov 0.0  }
 0x34a   :  { %8442 = vmatprep.mubr.f32.mxu0 %v11823_v2  ;;  %924 = vmatprep.mubr.f32.mxu1 %v11531_v1 }
 0x34d   :  { %8443 = vmatmul.mubr.f32.gmra.mrb[18].mxu0 %v11828_v3 }
 0x34e   :  { %8445 = vmatprep.mubr.f32.mxu0 %v11831_v4 }
 0x351   :  { %8446 = vmatmul.mubr.f32.gmra.mrb[20].mxu0 %v11836_v5 }
 0x352   :  { %8448 = vmatprep.mubr.f32.mxu0 %v11839_v6 }
 0x355   :  { %8449 = vmatmul.mubr.f32.gmra.mrb[22].mxu0 %v11844_v7 }
 0x356   :  { %8451 = vmatprep.mubr.f32.mxu0 %v11847_v8 }
 0x359   :  { %8452 = vmatmul.mubr.f32.gmra.mrb[24].mxu0 %v11852_v9 }
 0x35a   :  { %8454 = vmatprep.mubr.f32.mxu0 %v11855_v10 }
 0x35d   :  { %8455 = vmatmul.mubr.f32.gmra.mrb[26].mxu0 %v11860_v11 }
 0x35e   :  { %8457 = vmatprep.mubr.f32.mxu0 %v11863_v12 }
 0x361   :  { %8458 = vmatmul.mubr.f32.gmra.mrb[28].mxu0 %v11868_v13 }
 0x362   :  { %8460 = vmatprep.mubr.f32.mxu0 %v11871_v14 }
 0x365   :  { %8461 = vmatmul.mubr.f32.gmra.mrb[30].mxu0 %v11876_v15 }
 0x366   :  { %1213 = vmatprep.mubr.f32.mxu0 %v11531_v1 }
 0x41c   :  { %v8441_v2 = vpop.f32.mrb[16].mxu0 }
 0x41d   :  { %v769_v3 = vpop.f32.mrb[17].mxu0 }
 0x41e   :  { %925 = vmatmul.mubr.f32.vlgmr.msra.gmra.mrb[16].mxu1 %v769_v3  ;;  %v8950_v3 = vpack.c.bf16 %v1075_v18, %v1072_v17 }
 0x41f   :  { %930 = vmatprep.mubr.f32.mxu1 %v11531_v1  ;;  %8941 = vmatpush1.bf16.msra.mxu1 %v8940_v47 }
 0x420   :  { %v8444_v4 = vpop.f32.mrb[18].mxu0  ;;  %8943 = vmatprep.subr.bf16.mxu1 %v8942_v48 }
 0x421   :  { %v779_v5 = vpop.f32.mrb[19].mxu0 }
 0x422   :  { %931 = vmatmul.mubr.f32.gmra.mrb[18].mxu1 %v8441_v2 }
 0x423   :  { %936 = vmatprep.mubr.f32.mxu1 %v11531_v1  ;;  %8945 = vmatpush1.bf16.msra.mxu1 %v8944_v58 }
 0x424   :  { %v8447_v6 = vpop.f32.mrb[20].mxu0  ;;  %8947 = vmatprep.subr.bf16.mxu1 %v8946_v61 }
 0x425   :  { %v789_v7 = vpop.f32.mrb[21].mxu0 }
 0x426   :  { %937 = vmatmul.mubr.f32.gmra.mrb[20].mxu1 %v779_v5  ;;  %v1074_v5 = vld [vmem:[#allocation6 + $0xa8] sm:$0xff] }
 0x427   :  { %942 = vmatprep.mubr.f32.mxu1 %v11531_v1  ;;  %8949 = vmatpush1.bf16.msra.mxu1 %v8948_v22 }
 0x428   :  { %v8450_v8 = vpop.f32.mrb[22].mxu0  ;;  %8951 = vmatprep.subr.bf16.mxu1 %v8950_v3 }
 0x429   :  { %v799_v9 = vpop.f32.mrb[23].mxu0 }
 0x42a   :  { %943 = vmatmul.mubr.f32.gmra.mrb[22].mxu1 %v8444_v4  ;;  %v1071_v4 = vld [vmem:[#allocation6 + $0x90] sm:$0xff] }
 0x42b   :  { %948 = vmatprep.mubr.f32.mxu1 %v11531_v1 }
 0x42c   :  { %v8453_v10 = vpop.f32.mrb[24].mxu0 }
 0x42d   :  { %v809_v11 = vpop.f32.mrb[25].mxu0 }
 0x42e   :  { %949 = vmatmul.mubr.f32.gmra.mrb[24].mxu1 %v789_v7  ;;  %v1078_v7 = vld [vmem:[#allocation6 + $0xc8] sm:$0xff] }
 0x42f   :  { %954 = vmatprep.mubr.f32.mxu1 %v11531_v1 }
 0x430   :  { %v8456_v12 = vpop.f32.mrb[26].mxu0 }
 0x431   :  { %v819_v13 = vpop.f32.mrb[27].mxu0 }
 0x432   :  { %955 = vmatmul.mubr.f32.gmra.mrb[26].mxu1 %v8447_v6 }
 0x433   :  { %960 = vmatprep.mubr.f32.mxu1 %v11531_v1 }
 0x434   :  { %v8459_v14 = vpop.f32.mrb[28].mxu0 }
 0x435   :  { %v829_v15 = vpop.f32.mrb[29].mxu0 }
 0x436   :  { %961 = vmatmul.mubr.f32.gmra.mrb[28].mxu1 %v799_v9 }
 0x437   :  { %966 = vmatprep.mubr.f32.mxu1 %v11531_v1 }
 0x438   :  { %v8462_v0 = vpop.f32.mrb[30].mxu0 }
 0x439   :  { %v839_v24 = vpop.f32.mrb[31].mxu0 }
 0x43a   :  { %967 = vmatmul.mubr.f32.gmra.mrb[30].mxu1 %v8450_v8  ;;  %v1081_v8 = vld [vmem:[#allocation6 + $0xe0] sm:$0xff] }
 0x43b   :  { %972 = vmatprep.mubr.f32.mxu1 %v11531_v1 }
 0x43e   :  { %973 = vmatmul.mubr.f32.gmra.mrb[32].mxu1 %v809_v11 }
 0x43f   :  { %978 = vmatprep.mubr.f32.mxu1 %v11531_v1 }
 0x442   :  { %979 = vmatmul.mubr.f32.gmra.mrb[34].mxu1 %v8453_v10 }
 0x443   :  { %984 = vmatprep.mubr.f32.mxu1 %v11531_v1 }
 0x446   :  { %985 = vmatmul.mubr.f32.gmra.mrb[36].mxu1 %v819_v13 }
 0x447   :  { %990 = vmatprep.mubr.f32.mxu1 %v11531_v1 }
 0x44a   :  { %991 = vmatmul.mubr.f32.gmra.mrb[38].mxu1 %v8456_v12 }
 0x44b   :  { %996 = vmatprep.mubr.f32.mxu1 %v11531_v1 }
 0x44e   :  { %997 = vmatmul.mubr.f32.gmra.mrb[40].mxu1 %v829_v15 }
 0x44f   :  { %1002 = vmatprep.mubr.f32.mxu1 %v11531_v1 }
 0x452   :  { %1003 = vmatmul.mubr.f32.gmra.mrb[42].mxu1 %v8459_v14  ;;  %v8952_v14 = vpack.c.bf16 %v1074_v5, %v1071_v4 }
 0x453   :  { %1008 = vmatprep.mubr.f32.mxu1 %v11531_v1 }
 0x454   :  { %8953 = vmatpush1.bf16.msra.mxu1 %v8952_v14 }
 0x456   :  { %1009 = vmatmul.mubr.f32.gmra.mrb[44].mxu1 %v839_v24  ;;  %v8954_v24 = vpack.c.bf16 %v1081_v8, %v1078_v7 }
 0x457   :  { %1014 = vmatprep.mubr.f32.mxu1 %v11531_v1 }
 0x458   :  { %8955 = vmatprep.subr.bf16.mxu1 %v8954_v24 }
 0x459   :  { %8957 = vmatpush1.bf16.msra.mxu1 %v8956_v38 }
 0x45a   :  { %1015 = vmatmul.mubr.f32.gmra.mrb[46].mxu1 %v8462_v0 }
 0x4f1   :  { %v926_v31 = vpop.f32.mrb[16].mxu1 }
 0x4f2   :  { %v928_v33 = vpop.f32.mrb[17].mxu1  ;;  %v927_v34 = vadd.f32 %v926_v31, %v11939_v30 }
 0x4f3   :  { %v929_v35 = vadd.f32 %v928_v33, %v11942_v32  ;;  %v1084_v33 = vld [vmem:[#allocation6 + $0xf8] sm:$0xff] }
 0x4f4   :  { %v1021_v52 = vmax.f32 %v927_v34, 0.0  ;;  %v1087_v34 = vld [vmem:[#allocation6 + $0x110] sm:$0xff] }
 0x4f5   :  { %v932_v36 = vpop.f32.mrb[18].mxu1  ;;  %v1022_v55 = vmax.f32 %v929_v35, 0.0 }
 0x4f6   :  { %v933_v40 = vadd.f32 %v932_v36, %v11939_v30  ;;  %v934_v41 = vpop.f32.mrb[19].mxu1 }
 0x4f7   :  { %v935_v46 = vadd.f32 %v934_v41, %v11942_v32  ;;  %v8958_v41 = vpack.c.bf16 %v1087_v34, %v1084_v33 }
 0x4f8   :  { %v1023_v53 = vmax.f32 %v933_v40, 0.0 }
 0x4f9   :  { %v1024_v56 = vmax.f32 %v935_v46, 0.0  ;;  %v938_v57 = vpop.f32.mrb[20].mxu1  ;;  %v1093_v46 = vld [vmem:[#allocation6 + $0x140] sm:$0xff]  ;;  %8959 = vmatprep.subr.bf16.mxu1 %v8958_v41 }
 0x4fa   :  { %v8908_v59 = vpack.c.bf16 %v1023_v53, %v1021_v52  ;;  %v940_v60 = vpop.f32.mrb[21].mxu1  ;;  %v939_v19 = vadd.f32 %v938_v57, %v11939_v30  ;;  %v8960_v52 = vpack.c.bf16 %v1086_v43, %v1083_v42  ;;  %v1092_v57 = vld [vmem:[#allocation6 + $0x138] sm:$0xff] }
 0x4fb   :  { %v8906_v16 = vpack.c.bf16 %v1024_v56, %v1022_v55  ;;  %v941_v20 = vadd.f32 %v940_v60, %v11942_v32  ;;  %v8962_v55 = vpack.c.bf16 %v1093_v46, %v1090_v45  ;;  %v1089_v56 = vld [vmem:[#allocation6 + $0x120] sm:$0xff]  ;;  %v1099_v60 = vld [vmem:[#allocation6 + $0x170] sm:$0xff] }
 0x4fc   :  { %v1025_v9 = vmax.f32 %v939_v19, 0.0  ;;  %8961 = vmatpush1.bf16.msra.mxu1 %v8960_v52 }
 0x4fd   :  { %v944_v21 = vpop.f32.mrb[22].mxu1  ;;  %8907 = vmatprep.subr.bf16.mxu0 %v8906_v16  ;;  %v1026_v11 = vmax.f32 %v941_v20, 0.0  ;;  %v8964_v16 = vpack.c.bf16 %v1092_v57, %v1089_v56  ;;  %8963 = vmatprep.subr.bf16.mxu1 %v8962_v55  ;;  %v1095_v20 = vld [vmem:[#allocation6 + $0x150] sm:$0xff] }
 0x4fe   :  { %v945_v23 = vadd.f32 %v944_v21, %v11939_v30  ;;  %v946_v2 = vpop.f32.mrb[23].mxu1  ;;  %8909 = vmatpush1.bf16.msra.mxu0 %v8908_v59  ;;  %v1096_v59 = vld [vmem:[#allocation6 + $0x158] sm:$0xff]  ;;  %v1098_v21 = vld [vmem:[#allocation6 + $0x168] sm:$0xff] }
 0x4ff   :  { %v947_v6 = vadd.f32 %v946_v2, %v11942_v32  ;;  %v8966_v19 = vpack.c.bf16 %v1099_v60, %v1096_v59  ;;  %v1105_v2 = vld [vmem:[#allocation6 + $0x1a0] sm:$0xff]  ;;  %v8968_v8 = vpack.c.bf16 %v1098_v21, %v1095_v20 }
 0x500   :  { %v1027_v10 = vmax.f32 %v945_v23, 0.0  ;;  %v1102_v23 = vld [vmem:[#allocation6 + $0x188] sm:$0xff]  ;;  %8965 = vmatpush1.bf16.msra.mxu1 %v8964_v16 }
 0x501   :  { %v1028_v12 = vmax.f32 %v947_v6, 0.0  ;;  %v950_v13 = vpop.f32.mrb[24].mxu1  ;;  %8967 = vmatprep.subr.bf16.mxu1 %v8966_v19 }
 0x502   :  { %v8912_v15 = vpack.c.bf16 %v1027_v10, %v1025_v9  ;;  %v952_v0 = vpop.f32.mrb[25].mxu1  ;;  %v951_v35 = vadd.f32 %v950_v13, %v11939_v30  ;;  %v1104_v13 = vld [vmem:[#allocation6 + $0x198] sm:$0xff] }
 0x503   :  { %v8910_v31 = vpack.c.bf16 %v1028_v12, %v1026_v11  ;;  %v953_v36 = vadd.f32 %v952_v0, %v11942_v32  ;;  %v8970_v11 = vpack.c.bf16 %v1105_v2, %v1102_v23  ;;  %v1101_v12 = vld [vmem:[#allocation6 + $0x180] sm:$0xff]  ;;  %v1111_v0 = vld [vmem:[#allocation6 + $0x1d0] sm:$0xff] }
 0x504   :  { %v1029_v47 = vmax.f32 %v951_v35, 0.0  ;;  %8969 = vmatpush1.bf16.msra.mxu1 %v8968_v8 }
 0x505   :  { %v956_v37 = vpop.f32.mrb[26].mxu1  ;;  %8911 = vmatprep.subr.bf16.mxu0 %v8910_v31  ;;  %v1030_v49 = vmax.f32 %v953_v36, 0.0  ;;  %v8972_v31 = vpack.c.bf16 %v1104_v13, %v1101_v12  ;;  %8971 = vmatprep.subr.bf16.mxu1 %v8970_v11  ;;  %v1107_v36 = vld [vmem:[#allocation6 + $0x1b0] sm:$0xff] }
 0x506   :  { %v957_v39 = vadd.f32 %v956_v37, %v11939_v30  ;;  %v958_v40 = vpop.f32.mrb[27].mxu1  ;;  %8913 = vmatpush1.bf16.msra.mxu0 %v8912_v15  ;;  %v1108_v15 = vld [vmem:[#allocation6 + $0x1b8] sm:$0xff]  ;;  %v1110_v37 = vld [vmem:[#allocation6 + $0x1c8] sm:$0xff] }
 0x507   :  { %v959_v44 = vadd.f32 %v958_v40, %v11942_v32  ;;  %v8974_v35 = vpack.c.bf16 %v1111_v0, %v1108_v15  ;;  %v1117_v40 = vld [vmem:[#allocation6 + $0x200] sm:$0xff]  ;;  %v8976_v46 = vpack.c.bf16 %v1110_v37, %v1107_v36 }
 0x508   :  { %v1031_v48 = vmax.f32 %v957_v39, 0.0  ;;  %v1114_v39 = vld [vmem:[#allocation6 + $0x1e8] sm:$0xff]  ;;  %8973 = vmatpush1.bf16.msra.mxu1 %v8972_v31 }
 0x509   :  { %v1032_v50 = vmax.f32 %v959_v44, 0.0  ;;  %v962_v51 = vpop.f32.mrb[28].mxu1  ;;  %8975 = vmatprep.subr.bf16.mxu1 %v8974_v35 }
 0x50a   :  { %v8916_v53 = vpack.c.bf16 %v1031_v48, %v1029_v47  ;;  %v964_v54 = vpop.f32.mrb[29].mxu1  ;;  %v963_v61 = vadd.f32 %v962_v51, %v11939_v30  ;;  %v1116_v51 = vld [vmem:[#allocation6 + $0x1f8] sm:$0xff] }
 0x50b   :  { %v8914_v58 = vpack.c.bf16 %v1032_v50, %v1030_v49  ;;  %v965_v62 = vadd.f32 %v964_v54, %v11942_v32  ;;  %v8978_v49 = vpack.c.bf16 %v1117_v40, %v1114_v39  ;;  %v1113_v50 = vld [vmem:[#allocation6 + $0x1e0] sm:$0xff]  ;;  %v1123_v54 = vld [vmem:[#allocation6 + $0x230] sm:$0xff] }
 0x50c   :  { %v1033_v3 = vmax.f32 %v963_v61, 0.0  ;;  %8977 = vmatpush1.bf16.msra.mxu1 %v8976_v46 }
 0x50d   :  { %v968_v63 = vpop.f32.mrb[30].mxu1  ;;  %8915 = vmatprep.subr.bf16.mxu0 %v8914_v58  ;;  %v1034_v5 = vmax.f32 %v965_v62, 0.0  ;;  %v8980_v58 = vpack.c.bf16 %v1116_v51, %v1113_v50  ;;  %8979 = vmatprep.subr.bf16.mxu1 %v8978_v49  ;;  %v1119_v62 = vld [vmem:[#allocation6 + $0x210] sm:$0xff] }
 0x50e   :  { %v969_v17 = vadd.f32 %v968_v63, %v11939_v30  ;;  %v970_v18 = vpop.f32.mrb[31].mxu1  ;;  %8917 = vmatpush1.bf16.msra.mxu0 %v8916_v53  ;;  %v1120_v53 = vld [vmem:[#allocation6 + $0x218] sm:$0xff]  ;;  %v1122_v63 = vld [vmem:[#allocation6 + $0x228] sm:$0xff] }
 0x50f   :  { %v971_v22 = vadd.f32 %v970_v18, %v11942_v32  ;;  %v8982_v61 = vpack.c.bf16 %v1123_v54, %v1120_v53  ;;  %v1129_v18 = vld [vmem:[#allocation6 + $0x260] sm:$0xff]  ;;  %v8984_v2 = vpack.c.bf16 %v1122_v63, %v1119_v62 }
 0x510   :  { %v1035_v4 = vmax.f32 %v969_v17, 0.0  ;;  %v1126_v17 = vld [vmem:[#allocation6 + $0x248] sm:$0xff]  ;;  %8981 = vmatpush1.bf16.msra.mxu1 %v8980_v58 }
 0x511   :  { %v1036_v6 = vmax.f32 %v971_v22, 0.0  ;;  %v974_v7 = vpop.f32.mrb[32].mxu1  ;;  %8983 = vmatprep.subr.bf16.mxu1 %v8982_v61 }
 0x512   :  { %v8920_v9 = vpack.c.bf16 %v1035_v4, %v1033_v3  ;;  %v976_v10 = vpop.f32.mrb[33].mxu1  ;;  %v975_v24 = vadd.f32 %v974_v7, %v11939_v30  ;;  %v1128_v7 = vld [vmem:[#allocation6 + $0x258] sm:$0xff] }
 0x513   :  { %v8918_v14 = vpack.c.bf16 %v1036_v6, %v1034_v5  ;;  %v977_v25 = vadd.f32 %v976_v10, %v11942_v32  ;;  %v8986_v5 = vpack.c.bf16 %v1129_v18, %v1126_v17  ;;  %v1125_v6 = vld [vmem:[#allocation6 + $0x240] sm:$0xff]  ;;  %v1135_v10 = vld [vmem:[#allocation6 + $0x290] sm:$0xff] }
 0x514   :  { %v1037_v41 = vmax.f32 %v975_v24, 0.0  ;;  %8985 = vmatpush1.bf16.msra.mxu1 %v8984_v2  ;;  %v1055_v18 = vld [vmem:[#allocation6 + $0x10] sm:$0xff] }
 0x515   :  { %v980_v28 = vpop.f32.mrb[34].mxu1  ;;  %8919 = vmatprep.subr.bf16.mxu0 %v8918_v14  ;;  %v1038_v43 = vmax.f32 %v977_v25, 0.0  ;;  %v8988_v14 = vpack.c.bf16 %v1128_v7, %v1125_v6  ;;  %8987 = vmatprep.subr.bf16.mxu1 %v8986_v5  ;;  %v1131_v25 = vld [vmem:[#allocation6 + $0x270] sm:$0xff] }
 0x516   :  { %v981_v33 = vadd.f32 %v980_v28, %v11939_v30  ;;  %v982_v34 = vpop.f32.mrb[35].mxu1  ;;  %8921 = vmatpush1.bf16.msra.mxu0 %v8920_v9  ;;  %v1132_v9 = vld [vmem:[#allocation6 + $0x278] sm:$0xff]  ;;  %v1134_v28 = vld [vmem:[#allocation6 + $0x288] sm:$0xff]  ;;  %v1115_v2 = vld [vmem:[#allocation6 + $0x1f0] sm:$0xff] }
 0x517   :  { %v983_v38 = vadd.f32 %v982_v34, %v11942_v32  ;;  %v8990_v24 = vpack.c.bf16 %v1135_v10, %v1132_v9  ;;  %v1141_v34 = vld [vmem:[#allocation6 + $0x2c0] sm:$0xff]  ;;  %v8992_v40 = vpack.c.bf16 %v1134_v28, %v1131_v25  ;;  %v1067_v7 = vld [vmem:[#allocation6 + $0x70] sm:$0xff]  ;;  %v1124_v10 = vld [vmem:[#allocation6 + $0x238] sm:$0xff] }
 0x518   :  { %v1039_v42 = vmax.f32 %v981_v33, 0.0  ;;  %v1138_v33 = vld [vmem:[#allocation6 + $0x2a8] sm:$0xff]  ;;  %8989 = vmatpush1.bf16.msra.mxu1 %v8988_v14  ;;  %v1121_v9 = vld [vmem:[#allocation6 + $0x220] sm:$0xff] }
 0x519   :  { %v1040_v44 = vmax.f32 %v983_v38, 0.0  ;;  %v986_v45 = vpop.f32.mrb[36].mxu1  ;;  %8991 = vmatprep.subr.bf16.mxu1 %v8990_v24  ;;  %v1073_v14 = vld [vmem:[#allocation6 + $0xa0] sm:$0xff]  ;;  %v1130_v24 = vld [vmem:[#allocation6 + $0x268] sm:$0xff] }
 0x51a   :  { %v8924_v47 = vpack.c.bf16 %v1039_v42, %v1037_v41  ;;  %v988_v48 = vpop.f32.mrb[37].mxu1  ;;  %v987_v55 = vadd.f32 %v986_v45, %v11939_v30  ;;  %v1140_v45 = vld [vmem:[#allocation6 + $0x2b8] sm:$0xff]  ;;  %v11140_v25 = vld [vmem:[%s14159_s17 + $0x10] sm:$0xff] }
 0x51b   :  { %v8922_v52 = vpack.c.bf16 %v1040_v44, %v1038_v43  ;;  %v989_v56 = vadd.f32 %v988_v48, %v11942_v32  ;;  %v8994_v43 = vpack.c.bf16 %v1141_v34, %v1138_v33  ;;  %v1137_v44 = vld [vmem:[#allocation6 + $0x2a0] sm:$0xff]  ;;  %v1147_v48 = vld [vmem:[#allocation6 + $0x2f0] sm:$0xff]  ;;  %v1082_v34 = vld [vmem:[#allocation6 + $0xe8] sm:$0xff] }
 0x51c   :  { %v1041_v19 = vmax.f32 %v987_v55, 0.0  ;;  %8993 = vmatpush1.bf16.msra.mxu1 %v8992_v40  ;;  %v1079_v33 = vld [vmem:[#allocation6 + $0xd0] sm:$0xff]  ;;  %v1085_v40 = vld [vmem:[#allocation6 + $0x100] sm:$0xff] }
 0x51d   :  { %v992_v57 = vpop.f32.mrb[38].mxu1  ;;  %8923 = vmatprep.subr.bf16.mxu0 %v8922_v52  ;;  %v1042_v21 = vmax.f32 %v989_v56, 0.0  ;;  %v8996_v52 = vpack.c.bf16 %v1140_v45, %v1137_v44  ;;  %8995 = vmatprep.subr.bf16.mxu1 %v8994_v43  ;;  %v1142_v43 = vld [vmem:[#allocation6 + $0x2c8] sm:$0xff]  ;;  %v11142_v44 = vld [vmem:[%s14159_s17 + $0x20] sm:$0xff] }
 0x51e   :  { %v993_v59 = vadd.f32 %v992_v57, %v11939_v30  ;;  %v994_v60 = vpop.f32.mrb[39].mxu1  ;;  %8925 = vmatpush1.bf16.msra.mxu0 %v8924_v47  ;;  %v1144_v47 = vld [vmem:[#allocation6 + $0x2d8] sm:$0xff] }
 0x51f   :  { %v995_v16 = vadd.f32 %v994_v60, %v11942_v32  ;;  %v8998_v55 = vpack.c.bf16 %v1147_v48, %v1144_v47  ;;  %v1106_v60 = vld [vmem:[#allocation6 + $0x1a8] sm:$0xff]  ;;  %v1091_v47 = vld [vmem:[#allocation6 + $0x130] sm:$0xff] }
 0x520   :  { %v1043_v20 = vmax.f32 %v993_v59, 0.0  ;;  %v1103_v59 = vld [vmem:[#allocation6 + $0x190] sm:$0xff]  ;;  %8997 = vmatpush1.bf16.msra.mxu1 %v8996_v52  ;;  %v1094_v48 = vld [vmem:[#allocation6 + $0x148] sm:$0xff] }
 0x521   :  { %v1044_v22 = vmax.f32 %v995_v16, 0.0  ;;  %v998_v23 = vpop.f32.mrb[40].mxu1  ;;  %8999 = vmatprep.subr.bf16.mxu1 %v8998_v55  ;;  %v9002_v17 = vpack.c.bf16 %v1106_v60, %v1103_v59  ;;  %v9028_v52 = vpack.c.bf16 %v1094_v48, %v1091_v47  ;;  %v11145_v55 = vld [vmem:[%s14159_s17 + $0x38] sm:$0xff]  ;;  %v11150_v60 = vld [vmem:[%s14159_s17 + $0x60] sm:$0xff] }
 0x522   :  { %v8928_v3 = vpack.c.bf16 %v1043_v20, %v1041_v19  ;;  %v1000_v4 = vpop.f32.mrb[41].mxu1  ;;  %v999_v11 = vadd.f32 %v998_v23, %v11939_v30  ;;  %v1109_v19 = vld [vmem:[#allocation6 + $0x1c0] sm:$0xff]  ;;  %v1112_v20 = vld [vmem:[#allocation6 + $0x1d8] sm:$0xff] }
 0x523   :  { %v8926_v8 = vpack.c.bf16 %v1044_v22, %v1042_v21  ;;  %v1001_v12 = vadd.f32 %v1000_v4, %v11942_v32  ;;  %v1061_v22 = vld [vmem:[#allocation6 + $0x40] sm:$0xff]  ;;  %v1064_v23 = vld [vmem:[#allocation6 + $0x58] sm:$0xff] }
 0x524   :  { %v1045_v35 = vmax.f32 %v999_v11, 0.0  ;;  %v11138_v4 = vld [vmem:[%s14159_s17] sm:$0xff]  ;;  %v9008_v5 = vpack.c.bf16 %v1064_v23, %v1061_v22  ;;  %v11139_v11 = vld [vmem:[%s14159_s17 + $0x8] sm:$0xff]  ;;  %v11149_v59 = vld [vmem:[%s14159_s17 + $0x58] sm:$0xff] }
 0x525   :  { %v1004_v13 = vpop.f32.mrb[42].mxu1  ;;  %8927 = vmatprep.subr.bf16.mxu0 %v8926_v8  ;;  %v1046_v37 = vmax.f32 %v1001_v12, 0.0  ;;  %v1070_v8 = vld [vmem:[#allocation6 + $0x88] sm:$0xff] }
 0x526   :  { %v1005_v15 = vadd.f32 %v1004_v13, %v11939_v30  ;;  %v1006_v0 = vpop.f32.mrb[43].mxu1  ;;  %8929 = vmatpush1.bf16.msra.mxu0 %v8928_v3  ;;  %v1118_v3 = vld [vmem:[#allocation6 + $0x208] sm:$0xff]  ;;  %v9012_v12 = vpack.c.bf16 %v1070_v8, %v1067_v7  ;;  %v9014_v13 = vpack.c.bf16 %v1124_v10, %v1121_v9 }
 0x527   :  { %v1007_v31 = vadd.f32 %v1006_v0, %v11942_v32  ;;  %v9010_v6 = vpack.c.bf16 %v1118_v3, %v1115_v2  ;;  %v1127_v0 = vld [vmem:[#allocation6 + $0x250] sm:$0xff] }
 0x528   :  { %v1047_v36 = vmax.f32 %v1005_v15, 0.0  ;;  %v1076_v15 = vld [vmem:[#allocation6 + $0xb8] sm:$0xff] }
 0x529   :  { %v1048_v38 = vmax.f32 %v1007_v31, 0.0  ;;  %v1010_v39 = vpop.f32.mrb[44].mxu1  ;;  %v9016_v28 = vpack.c.bf16 %v1076_v15, %v1073_v14  ;;  %v9018_v31 = vpack.c.bf16 %v1130_v24, %v1127_v0 }
 0x52a   :  { %v8932_v41 = vpack.c.bf16 %v1047_v36, %v1045_v35  ;;  %v1012_v42 = vpop.f32.mrb[45].mxu1  ;;  %v1011_v49 = vadd.f32 %v1010_v39, %v11939_v30  ;;  %v1133_v35 = vld [vmem:[#allocation6 + $0x280] sm:$0xff]  ;;  %v1136_v36 = vld [vmem:[#allocation6 + $0x298] sm:$0xff] }
 0x52b   :  { %v8930_v46 = vpack.c.bf16 %v1048_v38, %v1046_v37  ;;  %v1013_v50 = vadd.f32 %v1012_v42, %v11942_v32  ;;  %v11141_v37 = vld [vmem:[%s14159_s17 + $0x18] sm:$0xff]  ;;  %v9020_v38 = vpack.c.bf16 %v1082_v34, %v1079_v33  ;;  %v9022_v39 = vpack.c.bf16 %v1136_v36, %v1133_v35 }
 0x52c   :  { %v1049_v57 = vmax.f32 %v1011_v49, 0.0  ;;  %v1139_v42 = vld [vmem:[#allocation6 + $0x2b0] sm:$0xff]  ;;  %v1145_v49 = vld [vmem:[#allocation6 + $0x2e0] sm:$0xff] }
 0x52d   :  { %v1016_v51 = vpop.f32.mrb[46].mxu1  ;;  %8931 = vmatprep.subr.bf16.mxu0 %v8930_v46  ;;  %v1050_v61 = vmax.f32 %v1013_v50, 0.0  ;;  %v9026_v46 = vpack.c.bf16 %v1142_v43, %v1139_v42  ;;  %v1148_v50 = vld [vmem:[#allocation6 + $0x2f8] sm:$0xff]  ;;  %v11532_v42 = vmov 0.0|0.0   ;;  %v1310_v43 = vld [vmem:[#allocation7] sm:$0x7] }
 0x52e   :  { %v1017_v53 = vadd.f32 %v1016_v51, %v11939_v30  ;;  %v1018_v54 = vpop.f32.mrb[47].mxu1  ;;  %8933 = vmatpush1.bf16.msra.mxu0 %v8932_v41  ;;  %v1058_v30 = vld [vmem:[#allocation6 + $0x28] sm:$0xff]  ;;  %v1088_v41 = vld [vmem:[#allocation6 + $0x118] sm:$0xff]  ;;  %v12014_v47 = vrot.slane %v1310_v43, %v11933_v27 }
 0x52f   :  { %v1019_v56 = vadd.f32 %v1018_v54, %v11942_v32  ;;  %v9004_v21 = vpack.c.bf16 %v1058_v30, %v1055_v18  ;;  %v9006_v32 = vpack.c.bf16 %v1112_v20, %v1109_v19  ;;  %v9024_v45 = vpack.c.bf16 %v1088_v41, %v1085_v40  ;;  %v11143_v51 = vld [vmem:[%s14159_s17 + $0x28] sm:$0xff]  ;;  %v11144_v54 = vld [vmem:[%s14159_s17 + $0x30] sm:$0xff]  ;;  %v1100_v19 = vld [vmem:[#allocation6 + $0x178] sm:$0xff] }
 0x530   :  { %v1051_v58 = vmax.f32 %v1017_v53, 0.0  ;;  %v9030_v53 = vpack.c.bf16 %v1148_v50, %v1145_v49  ;;  %v1097_v18 = vld [vmem:[#allocation6 + $0x160] sm:$0xff]  ;;  %v12017_v50 = vrot.slane %v1310_v43, %v11936_v29 }
 0x531   :  { %v1052_v62 = vmax.f32 %v1019_v56, 0.0  ;;  %v11146_v56 = vld [vmem:[%s14159_s17 + $0x40] sm:$0xff]  ;;  %v9032_v20 = vpack.c.bf16 %v1100_v19, %v1097_v18 }
 0x532   :  { %v8936_v63 = vpack.c.bf16 %v1051_v58, %v1049_v57  ;;  %v11147_v57 = vld [vmem:[%s14159_s17 + $0x48] sm:$0xff]  ;;  %v11148_v58 = vld [vmem:[%s14159_s17 + $0x50] sm:$0xff] }
 0x533   :  { %v8934_v16 = vpack.c.bf16 %v1052_v62, %v1050_v61  ;;  %v11151_v61 = vld [vmem:[%s14159_s17 + $0x68] sm:$0xff]  ;;  %v11152_v62 = vld [vmem:[%s14159_s17 + $0x70] sm:$0xff] }
 0x535   :  { %8935 = vmatprep.subr.bf16.mxu0 %v8934_v16  ;;  %v1143_v16 = vld [vmem:[#allocation6 + $0x2d0] sm:$0xff] }
 0x536   :  { %8937 = vmatpush1.bf16.msra.mxu0 %v8936_v63  ;;  %v11153_v63 = vld [vmem:[%s14159_s17 + $0x78] sm:$0xff] }
 0x537   :  { %9003 = vmatprep.subr.bf16.mxu0 %v9002_v17  ;;  %v1146_v17 = vld [vmem:[#allocation6 + $0x2e8] sm:$0xff] }
 0x538   :  { %v9000_v30 = vpack.c.bf16 %v1146_v17, %v1143_v16 }
 0x539   :  { %1214 = vmatmul.mubr.f32.vlgmr.msra.gmra.mrb[32].mxu0 %v11138_v4 }
 0x53a   :  { %1219 = vmatprep.mubr.f32.mxu0 %v11531_v1  ;;  %9005 = vmatpush3.bf16.msra.mxu0 %v9004_v21 }
 0x53b   :  { %9007 = vmatprep.subr.bf16.mxu0 %v9006_v32  ;;  %9001 = vmatpush1.bf16.msra.mxu1 %v9000_v30 }
 0x53d   :  { %1220 = vmatmul.mubr.f32.gmra.mrb[34].mxu0 %v11139_v11 }
 0x53e   :  { %1225 = vmatprep.mubr.f32.mxu0 %v11531_v1  ;;  %9009 = vmatpush3.bf16.msra.mxu0 %v9008_v5 }
 0x53f   :  { %9011 = vmatprep.subr.bf16.mxu0 %v9010_v6 }
 0x541   :  { %1226 = vmatmul.mubr.f32.gmra.mrb[36].mxu0 %v11140_v25 }
 0x542   :  { %1231 = vmatprep.mubr.f32.mxu0 %v11531_v1  ;;  %9013 = vmatpush3.bf16.msra.mxu0 %v9012_v12 }
 0x543   :  { %9015 = vmatprep.subr.bf16.mxu0 %v9014_v13 }
 0x545   :  { %1232 = vmatmul.mubr.f32.gmra.mrb[38].mxu0 %v11141_v37 }
 0x546   :  { %1237 = vmatprep.mubr.f32.mxu0 %v11531_v1  ;;  %9017 = vmatpush3.bf16.msra.mxu0 %v9016_v28 }
 0x547   :  { %9019 = vmatprep.subr.bf16.mxu0 %v9018_v31 }
 0x549   :  { %1238 = vmatmul.mubr.f32.gmra.mrb[40].mxu0 %v11142_v44 }
 0x54a   :  { %1243 = vmatprep.mubr.f32.mxu0 %v11531_v1  ;;  %9021 = vmatpush3.bf16.msra.mxu0 %v9020_v38 }
 0x54b   :  { %9023 = vmatprep.subr.bf16.mxu0 %v9022_v39 }
 0x54d   :  { %1244 = vmatmul.mubr.f32.gmra.mrb[42].mxu0 %v11143_v51 }
 0x54e   :  { %1249 = vmatprep.mubr.f32.mxu0 %v11531_v1  ;;  %9025 = vmatpush3.bf16.msra.mxu0 %v9024_v45 }
 0x54f   :  { %9027 = vmatprep.subr.bf16.mxu0 %v9026_v46  ;;  %v12011_v46 = vsub.s32 2, %v11930_v26 }
 0x551   :  { %1250 = vmatmul.mubr.f32.gmra.mrb[44].mxu0 %v11144_v54 }
 0x552   :  { %1255 = vmatprep.mubr.f32.mxu0 %v11531_v1  ;;  %9029 = vmatpush3.bf16.msra.mxu0 %v9028_v52  ;;  %v12020_v52 = vrot.slane %v1310_v43, %v12011_v46 }
 0x553   :  { %9031 = vmatprep.subr.bf16.mxu0 %v9030_v53 }
 0x555   :  { %1256 = vmatmul.mubr.f32.gmra.mrb[46].mxu0 %v11145_v55 }
 0x556   :  { %1261 = vmatprep.mubr.f32.mxu0 %v11531_v1  ;;  %9033 = vmatpush3.bf16.msra.mxu0 %v9032_v20 }
 0x557   :  { %9066 = vmatprep.subr.bf16.mxu0 %v11532_v42 }
 0x559   :  { %1262 = vmatmul.mubr.f32.gmra.mrb[48].mxu0 %v11146_v56 }
 0x55a   :  { %1267 = vmatprep.mubr.f32.mxu0 %v11531_v1 }
 0x55d   :  { %1268 = vmatmul.mubr.f32.gmra.mrb[50].mxu0 %v11147_v57 }
 0x55e   :  { %1273 = vmatprep.mubr.f32.mxu0 %v11531_v1 }
 0x561   :  { %1274 = vmatmul.mubr.f32.gmra.mrb[52].mxu0 %v11148_v58 }
 0x562   :  { %1279 = vmatprep.mubr.f32.mxu0 %v11531_v1 }
 0x565   :  { %1280 = vmatmul.mubr.f32.gmra.mrb[54].mxu0 %v11149_v59 }
 0x566   :  { %1285 = vmatprep.mubr.f32.mxu0 %v11531_v1 }
 0x569   :  { %1286 = vmatmul.mubr.f32.gmra.mrb[56].mxu0 %v11150_v60 }
 0x56a   :  { %1291 = vmatprep.mubr.f32.mxu0 %v11531_v1 }
 0x56d   :  { %1292 = vmatmul.mubr.f32.gmra.mrb[58].mxu0 %v11151_v61 }
 0x56e   :  { %1297 = vmatprep.mubr.f32.mxu0 %v11531_v1 }
 0x571   :  { %1298 = vmatmul.mubr.f32.gmra.mrb[60].mxu0 %v11152_v62 }
 0x572   :  { %1303 = vmatprep.mubr.f32.mxu0 %v11531_v1 }
 0x575   :  { %1304 = vmatmul.mubr.f32.gmra.mrb[62].mxu0 %v11153_v63 }
 0x60c   :  { %v1215_v21 = vpop.f32.mrb[32].mxu0 }
 0x60d   :  { %v1217_v32 = vpop.f32.mrb[33].mxu0 }
 0x60e   :  { %1391 = vmatprep.mubr.f32.mxu1 %v1217_v32  ;;  %1552 = vmatprep.mubr.f32.mxu0 %v1217_v32 }
 0x60f   :  { %1392 = vmatmul.mubr.f32.vlgmr.msra.gmra.mrb[48].mxu1 %v1215_v21  ;;  %1553 = vmatmul.mubr.f32.vlgmr.msra.gmra.mrb[64].mxu0 %v1215_v21 }
 0x610   :  { %v1221_v22 = vpop.f32.mrb[34].mxu0 }
 0x611   :  { %v1223_v23 = vpop.f32.mrb[35].mxu0 }
 0x612   :  { %1397 = vmatprep.mubr.f32.mxu1 %v1223_v23  ;;  %1557 = vmatprep.mubr.f32.mxu0 %v1223_v23 }
 0x613   :  { %1398 = vmatmul.mubr.f32.gmra.mrb[50].mxu1 %v1221_v22  ;;  %1558 = vmatmul.mubr.f32.gmra.mrb[66].mxu0 %v1221_v22 }
 0x614   :  { %v1227_v2 = vpop.f32.mrb[36].mxu0 }
 0x615   :  { %v1229_v3 = vpop.f32.mrb[37].mxu0 }
 0x616   :  { %1403 = vmatprep.mubr.f32.mxu1 %v1229_v3  ;;  %1562 = vmatprep.mubr.f32.mxu0 %v1229_v3 }
 0x617   :  { %1404 = vmatmul.mubr.f32.gmra.mrb[52].mxu1 %v1227_v2  ;;  %1563 = vmatmul.mubr.f32.gmra.mrb[68].mxu0 %v1227_v2 }
 0x618   :  { %v1233_v4 = vpop.f32.mrb[38].mxu0 }
 0x619   :  { %v1235_v5 = vpop.f32.mrb[39].mxu0 }
 0x61a   :  { %1409 = vmatprep.mubr.f32.mxu1 %v1235_v5  ;;  %1567 = vmatprep.mubr.f32.mxu0 %v1235_v5 }
 0x61b   :  { %1410 = vmatmul.mubr.f32.gmra.mrb[54].mxu1 %v1233_v4  ;;  %1568 = vmatmul.mubr.f32.gmra.mrb[70].mxu0 %v1233_v4 }
 0x61c   :  { %v1239_v6 = vpop.f32.mrb[40].mxu0 }
 0x61d   :  { %v1241_v7 = vpop.f32.mrb[41].mxu0 }
 0x61e   :  { %1415 = vmatprep.mubr.f32.mxu1 %v1241_v7  ;;  %1572 = vmatprep.mubr.f32.mxu0 %v1241_v7 }
 0x61f   :  { %1416 = vmatmul.mubr.f32.gmra.mrb[56].mxu1 %v1239_v6  ;;  %1573 = vmatmul.mubr.f32.gmra.mrb[72].mxu0 %v1239_v6 }
 0x620   :  { %v1245_v8 = vpop.f32.mrb[42].mxu0 }
 0x621   :  { %v1247_v9 = vpop.f32.mrb[43].mxu0 }
 0x622   :  { %1421 = vmatprep.mubr.f32.mxu1 %v1247_v9  ;;  %1577 = vmatprep.mubr.f32.mxu0 %v1247_v9 }
 0x623   :  { %1422 = vmatmul.mubr.f32.gmra.mrb[58].mxu1 %v1245_v8  ;;  %1578 = vmatmul.mubr.f32.gmra.mrb[74].mxu0 %v1245_v8 }
 0x624   :  { %v1251_v10 = vpop.f32.mrb[44].mxu0 }
 0x625   :  { %v1253_v11 = vpop.f32.mrb[45].mxu0 }
 0x626   :  { %1427 = vmatprep.mubr.f32.mxu1 %v1253_v11  ;;  %1582 = vmatprep.mubr.f32.mxu0 %v1253_v11 }
 0x627   :  { %1428 = vmatmul.mubr.f32.gmra.mrb[60].mxu1 %v1251_v10  ;;  %1583 = vmatmul.mubr.f32.gmra.mrb[76].mxu0 %v1251_v10 }
 0x628   :  { %v1257_v12 = vpop.f32.mrb[46].mxu0 }
 0x629   :  { %v1259_v13 = vpop.f32.mrb[47].mxu0 }
 0x62a   :  { %1433 = vmatprep.mubr.f32.mxu1 %v1259_v13  ;;  %1587 = vmatprep.mubr.f32.mxu0 %v1259_v13 }
 0x62b   :  { %1434 = vmatmul.mubr.f32.gmra.mrb[62].mxu1 %v1257_v12  ;;  %1588 = vmatmul.mubr.f32.gmra.mrb[78].mxu0 %v1257_v12 }
 0x62c   :  { %v1263_v14 = vpop.f32.mrb[48].mxu0 }
 0x62d   :  { %v1265_v15 = vpop.f32.mrb[49].mxu0 }
 0x62e   :  { %1439 = vmatprep.mubr.f32.mxu1 %v1265_v15  ;;  %1592 = vmatprep.mubr.f32.mxu0 %v1265_v15 }
 0x62f   :  { %1440 = vmatmul.mubr.f32.gmra.mrb[64].mxu1 %v1263_v14  ;;  %1593 = vmatmul.mubr.f32.gmra.mrb[80].mxu0 %v1263_v14 }
 0x630   :  { %v1269_v0 = vpop.f32.mrb[50].mxu0 }
 0x631   :  { %v1271_v24 = vpop.f32.mrb[51].mxu0 }
 0x632   :  { %1445 = vmatprep.mubr.f32.mxu1 %v1271_v24  ;;  %1597 = vmatprep.mubr.f32.mxu0 %v1271_v24 }
 0x633   :  { %1446 = vmatmul.mubr.f32.gmra.mrb[66].mxu1 %v1269_v0  ;;  %1598 = vmatmul.mubr.f32.gmra.mrb[82].mxu0 %v1269_v0 }
 0x634   :  { %v1275_v25 = vpop.f32.mrb[52].mxu0 }
 0x635   :  { %v1277_v28 = vpop.f32.mrb[53].mxu0 }
 0x636   :  { %1451 = vmatprep.mubr.f32.mxu1 %v1277_v28  ;;  %1602 = vmatprep.mubr.f32.mxu0 %v1277_v28 }
 0x637   :  { %1452 = vmatmul.mubr.f32.gmra.mrb[68].mxu1 %v1275_v25  ;;  %1603 = vmatmul.mubr.f32.gmra.mrb[84].mxu0 %v1275_v25 }
 0x638   :  { %v1281_v31 = vpop.f32.mrb[54].mxu0 }
 0x639   :  { %v1283_v33 = vpop.f32.mrb[55].mxu0 }
 0x63a   :  { %1457 = vmatprep.mubr.f32.mxu1 %v1283_v33  ;;  %1607 = vmatprep.mubr.f32.mxu0 %v1283_v33 }
 0x63b   :  { %1458 = vmatmul.mubr.f32.gmra.mrb[70].mxu1 %v1281_v31  ;;  %1608 = vmatmul.mubr.f32.gmra.mrb[86].mxu0 %v1281_v31 }
 0x63c   :  { %v1287_v34 = vpop.f32.mrb[56].mxu0 }
 0x63d   :  { %v1289_v35 = vpop.f32.mrb[57].mxu0 }
 0x63e   :  { %1463 = vmatprep.mubr.f32.mxu1 %v1289_v35  ;;  %1612 = vmatprep.mubr.f32.mxu0 %v1289_v35 }
 0x63f   :  { %1464 = vmatmul.mubr.f32.gmra.mrb[72].mxu1 %v1287_v34  ;;  %1613 = vmatmul.mubr.f32.gmra.mrb[88].mxu0 %v1287_v34 }
 0x640   :  { %v1293_v36 = vpop.f32.mrb[58].mxu0 }
 0x641   :  { %v1295_v37 = vpop.f32.mrb[59].mxu0 }
 0x642   :  { %1469 = vmatprep.mubr.f32.mxu1 %v1295_v37  ;;  %1617 = vmatprep.mubr.f32.mxu0 %v1295_v37 }
 0x643   :  { %1470 = vmatmul.mubr.f32.gmra.mrb[74].mxu1 %v1293_v36  ;;  %1618 = vmatmul.mubr.f32.gmra.mrb[90].mxu0 %v1293_v36 }
 0x644   :  { %v1299_v38 = vpop.f32.mrb[60].mxu0 }
 0x645   :  { %v1301_v39 = vpop.f32.mrb[61].mxu0 }
 0x646   :  { %1475 = vmatprep.mubr.f32.mxu1 %v1301_v39  ;;  %1622 = vmatprep.mubr.f32.mxu0 %v1301_v39 }
 0x647   :  { %1476 = vmatmul.mubr.f32.gmra.mrb[76].mxu1 %v1299_v38  ;;  %1623 = vmatmul.mubr.f32.gmra.mrb[92].mxu0 %v1299_v38 }
 0x648   :  { %v1305_v40 = vpop.f32.mrb[62].mxu0 }
 0x649   :  { %v1307_v41 = vpop.f32.mrb[63].mxu0 }
 0x64a   :  { %1481 = vmatprep.mubr.f32.mxu1 %v1307_v41  ;;  %1627 = vmatprep.mubr.f32.mxu0 %v1307_v41 }
 0x64b   :  { %1482 = vmatmul.mubr.f32.gmra.mrb[78].mxu1 %v1305_v40  ;;  %1628 = vmatmul.mubr.f32.gmra.mrb[94].mxu0 %v1305_v40 }
 0x64c   :  { %1698 = vmatprep.mubr.f32.mxu1 %v11531_v1  ;;  %8495 = vmatprep.mubr.msk.f32.mxu0 %vm11533_vm0, %v11531_v1 }
 0x6e2   :  { %v1393_v44 = vpop.f32.mrb[48].mxu1  ;;  %v7720_v45 = vpop.f32.mrb[64].mxu0 }
 0x6e3   :  { %v1395_v48 = vpop.f32.mrb[49].mxu1  ;;  %v7721_v49 = vpop.f32.mrb[65].mxu0  ;;  %v1394_v55 = vadd.f32 %v1393_v44, %v12014_v47 }
 0x6e4   :  { %v7722_v51 = vadd.f32 %v7721_v49, %v7720_v45  ;;  %v1396_v59 = vadd.f32 %v1395_v48, %v12017_v50 }
 0x6e6   :  { %v1399_v53 = vpop.f32.mrb[50].mxu1  ;;  %v7723_v54 = vpop.f32.mrb[66].mxu0  ;;  %v1555_v63 = vadd.f32 %v7722_v51, %v12020_v52 }
 0x6e7   :  { %v1400_v56 = vadd.f32 %v1399_v53, %v12014_v47  ;;  %v1401_v57 = vpop.f32.mrb[51].mxu1  ;;  %v7724_v58 = vpop.f32.mrb[67].mxu0 }
 0x6e8   :  { %v1402_v60 = vadd.f32 %v1401_v57, %v12017_v50  ;;  %v7725_v61 = vadd.f32 %v7724_v58, %v7723_v54 }
 0x6e9   :  { %v9036_v62 = vpack.c.bf16 %v1400_v56, %v1394_v55 }
 0x6ea   :  { %v9034_v16 = vpack.c.bf16 %v1402_v60, %v1396_v59  ;;  %v1560_v17 = vadd.f32 %v7725_v61, %v12020_v52  ;;  %v1405_v18 = vpop.f32.mrb[52].mxu1  ;;  %v7726_v30 = vpop.f32.mrb[68].mxu0 }
 0x6eb   :  { %v1407_v19 = vpop.f32.mrb[53].mxu1  ;;  %v7727_v20 = vpop.f32.mrb[69].mxu0  ;;  %v1406_v2 = vadd.f32 %v1405_v18, %v12014_v47 }
 0x6ec   :  { %v9067_v21 = vpack.c.bf16 %v1560_v17, %v1555_v63  ;;  %v7728_v32 = vadd.f32 %v7727_v20, %v7726_v30  ;;  %9035 = vmatprep.subr.bf16.mxu1 %v9034_v16  ;;  %v1408_v6 = vadd.f32 %v1407_v19, %v12017_v50 }
 0x6ed   :  { %9037 = vmatpush1.bf16.msra.mxu1 %v9036_v62 }
 0x6ee   :  { %v1411_v22 = vpop.f32.mrb[54].mxu1  ;;  %v7729_v23 = vpop.f32.mrb[70].mxu0  ;;  %9068 = vmatpush3.bf16.msra.mxu0 %v9067_v21  ;;  %v1565_v10 = vadd.f32 %v7728_v32, %v12020_v52 }
 0x6ef   :  { %v1412_v3 = vadd.f32 %v1411_v22, %v12014_v47  ;;  %v1413_v4 = vpop.f32.mrb[55].mxu1  ;;  %v7730_v5 = vpop.f32.mrb[71].mxu0  ;;  %9069 = vmatprep.subr.bf16.mxu0 %v11532_v42 }
 0x6f0   :  { %v1414_v7 = vadd.f32 %v1413_v4, %v12017_v50  ;;  %v7731_v8 = vadd.f32 %v7730_v5, %v7729_v23 }
 0x6f1   :  { %v9040_v9 = vpack.c.bf16 %v1412_v3, %v1406_v2 }
 0x6f2   :  { %v9038_v11 = vpack.c.bf16 %v1414_v7, %v1408_v6  ;;  %v1570_v12 = vadd.f32 %v7731_v8, %v12020_v52  ;;  %v1417_v13 = vpop.f32.mrb[56].mxu1  ;;  %v7732_v14 = vpop.f32.mrb[72].mxu0 }
 0x6f3   :  { %v1419_v15 = vpop.f32.mrb[57].mxu1  ;;  %v7733_v0 = vpop.f32.mrb[73].mxu0  ;;  %v1418_v33 = vadd.f32 %v1417_v13, %v12014_v47 }
 0x6f4   :  { %v9070_v24 = vpack.c.bf16 %v1570_v12, %v1565_v10  ;;  %v7734_v25 = vadd.f32 %v7733_v0, %v7732_v14  ;;  %9039 = vmatprep.subr.bf16.mxu1 %v9038_v11  ;;  %v1420_v37 = vadd.f32 %v1419_v15, %v12017_v50 }
 0x6f5   :  { %9041 = vmatpush1.bf16.msra.mxu1 %v9040_v9 }
 0x6f6   :  { %v1423_v28 = vpop.f32.mrb[58].mxu1  ;;  %v7735_v31 = vpop.f32.mrb[74].mxu0  ;;  %9071 = vmatpush3.bf16.msra.mxu0 %v9070_v24  ;;  %v1575_v41 = vadd.f32 %v7734_v25, %v12020_v52 }
 0x6f7   :  { %v1424_v34 = vadd.f32 %v1423_v28, %v12014_v47  ;;  %v1425_v35 = vpop.f32.mrb[59].mxu1  ;;  %v7736_v36 = vpop.f32.mrb[75].mxu0  ;;  %9072 = vmatprep.subr.bf16.mxu0 %v11532_v42 }
 0x6f8   :  { %v1426_v38 = vadd.f32 %v1425_v35, %v12017_v50  ;;  %v7737_v39 = vadd.f32 %v7736_v36, %v7735_v31 }
 0x6f9   :  { %v9044_v40 = vpack.c.bf16 %v1424_v34, %v1418_v33 }
 0x6fa   :  { %v9042_v43 = vpack.c.bf16 %v1426_v38, %v1420_v37  ;;  %v1580_v44 = vadd.f32 %v7737_v39, %v12020_v52  ;;  %v1429_v45 = vpop.f32.mrb[60].mxu1  ;;  %v7738_v48 = vpop.f32.mrb[76].mxu0 }
 0x6fb   :  { %v1431_v49 = vpop.f32.mrb[61].mxu1  ;;  %v7739_v51 = vpop.f32.mrb[77].mxu0  ;;  %v1430_v57 = vadd.f32 %v1429_v45, %v12014_v47 }
 0x6fc   :  { %v9073_v53 = vpack.c.bf16 %v1580_v44, %v1575_v41  ;;  %v7740_v54 = vadd.f32 %v7739_v51, %v7738_v48  ;;  %9043 = vmatprep.subr.bf16.mxu1 %v9042_v43  ;;  %v1432_v61 = vadd.f32 %v1431_v49, %v12017_v50 }
 0x6fd   :  { %9045 = vmatpush1.bf16.msra.mxu1 %v9044_v40 }
 0x6fe   :  { %v1435_v55 = vpop.f32.mrb[62].mxu1  ;;  %v7741_v56 = vpop.f32.mrb[78].mxu0  ;;  %9074 = vmatpush3.bf16.msra.mxu0 %v9073_v53  ;;  %v1585_v17 = vadd.f32 %v7740_v54, %v12020_v52 }
 0x6ff   :  { %v1436_v58 = vadd.f32 %v1435_v55, %v12014_v47  ;;  %v1437_v59 = vpop.f32.mrb[63].mxu1  ;;  %v7742_v60 = vpop.f32.mrb[79].mxu0  ;;  %9075 = vmatprep.subr.bf16.mxu0 %v11532_v42 }
 0x700   :  { %v1438_v62 = vadd.f32 %v1437_v59, %v12017_v50  ;;  %v7743_v63 = vadd.f32 %v7742_v60, %v7741_v56 }
 0x701   :  { %v9048_v16 = vpack.c.bf16 %v1436_v58, %v1430_v57 }
 0x702   :  { %v9046_v18 = vpack.c.bf16 %v1438_v62, %v1432_v61  ;;  %v1590_v30 = vadd.f32 %v7743_v63, %v12020_v52  ;;  %v1441_v19 = vpop.f32.mrb[64].mxu1  ;;  %v7744_v20 = vpop.f32.mrb[80].mxu0 }
 0x703   :  { %v1443_v21 = vpop.f32.mrb[65].mxu1  ;;  %v7745_v32 = vpop.f32.mrb[81].mxu0  ;;  %v1442_v4 = vadd.f32 %v1441_v19, %v12014_v47 }
 0x704   :  { %v9076_v22 = vpack.c.bf16 %v1590_v30, %v1585_v17  ;;  %v7746_v23 = vadd.f32 %v7745_v32, %v7744_v20  ;;  %9047 = vmatprep.subr.bf16.mxu1 %v9046_v18  ;;  %v1444_v8 = vadd.f32 %v1443_v21, %v12017_v50 }
 0x705   :  { %9049 = vmatpush1.bf16.msra.mxu1 %v9048_v16 }
 0x706   :  { %v1447_v2 = vpop.f32.mrb[66].mxu1  ;;  %v7747_v3 = vpop.f32.mrb[82].mxu0  ;;  %9077 = vmatpush3.bf16.msra.mxu0 %v9076_v22  ;;  %v1595_v12 = vadd.f32 %v7746_v23, %v12020_v52 }
 0x707   :  { %v1448_v5 = vadd.f32 %v1447_v2, %v12014_v47  ;;  %v1449_v6 = vpop.f32.mrb[67].mxu1  ;;  %v7748_v7 = vpop.f32.mrb[83].mxu0  ;;  %9078 = vmatprep.subr.bf16.mxu0 %v11532_v42 }
 0x708   :  { %v1450_v9 = vadd.f32 %v1449_v6, %v12017_v50  ;;  %v7749_v10 = vadd.f32 %v7748_v7, %v7747_v3 }
 0x709   :  { %v9052_v11 = vpack.c.bf16 %v1448_v5, %v1442_v4 }
 0x70a   :  { %v9050_v13 = vpack.c.bf16 %v1450_v9, %v1444_v8  ;;  %v1600_v14 = vadd.f32 %v7749_v10, %v12020_v52  ;;  %v1453_v15 = vpop.f32.mrb[68].mxu1  ;;  %v7750_v0 = vpop.f32.mrb[84].mxu0  ;;  %v1776_v10 = vld [vmem:[%s14161_s14 + $0x8] sm:$0xff] }
 0x70b   :  { %v1455_v24 = vpop.f32.mrb[69].mxu1  ;;  %v7751_v25 = vpop.f32.mrb[85].mxu0  ;;  %v1454_v35 = vadd.f32 %v1453_v15, %v12014_v47  ;;  %v1778_v15 = vld [vmem:[%s14161_s14 + $0x18] sm:$0xff] }
 0x70c   :  { %v9079_v28 = vpack.c.bf16 %v1600_v14, %v1595_v12  ;;  %v7752_v31 = vadd.f32 %v7751_v25, %v7750_v0  ;;  %9051 = vmatprep.subr.bf16.mxu1 %v9050_v13  ;;  %v1456_v39 = vadd.f32 %v1455_v24, %v12017_v50 }
 0x70d   :  { %9053 = vmatpush1.bf16.msra.mxu1 %v9052_v11  ;;  %v1784_v11 = vld [vmem:[%s14161_s14 + $0x48] sm:$0xff] }
 0x70e   :  { %v1459_v33 = vpop.f32.mrb[70].mxu1  ;;  %v7753_v34 = vpop.f32.mrb[86].mxu0  ;;  %9080 = vmatpush3.bf16.msra.mxu0 %v9079_v28  ;;  %v1605_v44 = vadd.f32 %v7752_v31, %v12020_v52  ;;  %v9090_v28 = vpack.c.bf16 %v1784_v11, %v1776_v10  ;;  %v1775_v31 = vld [vmem:[%s14161_s14] sm:$0xff] }
 0x70f   :  { %v1460_v36 = vadd.f32 %v1459_v33, %v12014_v47  ;;  %v1461_v37 = vpop.f32.mrb[71].mxu1  ;;  %v7754_v38 = vpop.f32.mrb[87].mxu0  ;;  %9081 = vmatprep.subr.bf16.mxu0 %v11532_v42  ;;  %v1783_v33 = vld [vmem:[%s14161_s14 + $0x40] sm:$0xff] }
 0x710   :  { %v1462_v40 = vadd.f32 %v1461_v37, %v12017_v50  ;;  %v7755_v41 = vadd.f32 %v7754_v38, %v7753_v34  ;;  %v1777_v34 = vld [vmem:[%s14161_s14 + $0x10] sm:$0xff]  ;;  %v1800_v37 = vld [vmem:[%s14161_s14 + $0xc8] sm:$0xff] }
 0x711   :  { %v9056_v43 = vpack.c.bf16 %v1460_v36, %v1454_v35  ;;  %v1792_v36 = vld [vmem:[%s14161_s14 + $0x88] sm:$0xff] }
 0x712   :  { %v9054_v45 = vpack.c.bf16 %v1462_v40, %v1456_v39  ;;  %v1610_v48 = vadd.f32 %v7755_v41, %v12020_v52  ;;  %v1465_v49 = vpop.f32.mrb[72].mxu1  ;;  %v7756_v51 = vpop.f32.mrb[88].mxu0  ;;  %v1794_v39 = vld [vmem:[%s14161_s14 + $0x98] sm:$0xff]  ;;  %v9092_v41 = vpack.c.bf16 %v1783_v33, %v1775_v31 }
 0x713   :  { %v1467_v53 = vpop.f32.mrb[73].mxu1  ;;  %v7757_v54 = vpop.f32.mrb[89].mxu0  ;;  %v1466_v59 = vadd.f32 %v1465_v49, %v12014_v47  ;;  %v1802_v40 = vld [vmem:[%s14161_s14 + $0xd8] sm:$0xff]  ;;  %v1793_v49 = vld [vmem:[%s14161_s14 + $0x90] sm:$0xff] }
 0x714   :  { %v9082_v55 = vpack.c.bf16 %v1610_v48, %v1605_v44  ;;  %v7758_v56 = vadd.f32 %v7757_v54, %v7756_v51  ;;  %9055 = vmatprep.subr.bf16.mxu1 %v9054_v45  ;;  %v1468_v63 = vadd.f32 %v1467_v53, %v12017_v50  ;;  %v9094_v44 = vpack.c.bf16 %v1800_v37, %v1792_v36  ;;  %v1791_v45 = vld [vmem:[%s14161_s14 + $0x80] sm:$0xff]  ;;  %v1801_v53 = vld [vmem:[%s14161_s14 + $0xd0] sm:$0xff]  ;;  %v1808_v54 = vld [vmem:[%s14161_s14 + $0x108] sm:$0xff] }
 0x715   :  { %9057 = vmatpush1.bf16.msra.mxu1 %v9056_v43  ;;  %v1799_v48 = vld [vmem:[%s14161_s14 + $0xc0] sm:$0xff]  ;;  %v9190_v51 = vpack.c.bf16 %v1802_v40, %v1794_v39  ;;  %v1857_v36 = vld [vmem:[%s14161_s14 + $0x290] sm:$0xff]  ;;  %v1872_v39 = vld [vmem:[%s14161_s14 + $0x308] sm:$0xff] }
 0x716   :  { %v1471_v57 = vpop.f32.mrb[74].mxu1  ;;  %v7759_v58 = vpop.f32.mrb[90].mxu0  ;;  %9083 = vmatpush3.bf16.msra.mxu0 %v9082_v55  ;;  %v1615_v30 = vadd.f32 %v7758_v56, %v12020_v52  ;;  %v1816_v55 = vld [vmem:[%s14161_s14 + $0x148] sm:$0xff]  ;;  %v1810_v56 = vld [vmem:[%s14161_s14 + $0x118] sm:$0xff] }
 0x717   :  { %v1472_v60 = vadd.f32 %v1471_v57, %v12014_v47  ;;  %v1473_v61 = vpop.f32.mrb[75].mxu1  ;;  %v7760_v62 = vpop.f32.mrb[91].mxu0  ;;  %9084 = vmatprep.subr.bf16.mxu0 %v11532_v42  ;;  %v1818_v57 = vld [vmem:[%s14161_s14 + $0x158] sm:$0xff]  ;;  %v1880_v40 = vld [vmem:[%s14161_s14 + $0x348] sm:$0xff] }
 0x718   :  { %v1474_v16 = vadd.f32 %v1473_v61, %v12017_v50  ;;  %v7761_v17 = vadd.f32 %v7760_v62, %v7759_v58  ;;  %v9096_v58 = vpack.c.bf16 %v1799_v48, %v1791_v45  ;;  %v1807_v61 = vld [vmem:[%s14161_s14 + $0x100] sm:$0xff]  ;;  %v9114_v45 = vpack.c.bf16 %v1880_v40, %v1872_v39  ;;  %v1945_v39 = vld [vmem:[%s14161_s14 + $0x550] sm:$0xff]  ;;  %v1952_v40 = vld [vmem:[%s14161_s14 + $0x588] sm:$0xff] }
 0x719   :  { %v9060_v18 = vpack.c.bf16 %v1472_v60, %v1466_v59  ;;  %v9192_v59 = vpack.c.bf16 %v1801_v53, %v1793_v49  ;;  %v9098_v60 = vpack.c.bf16 %v1816_v55, %v1808_v54  ;;  %v1815_v62 = vld [vmem:[%s14161_s14 + $0x140] sm:$0xff]  ;;  %v1881_v54 = vld [vmem:[%s14161_s14 + $0x350] sm:$0xff]  ;;  %v1888_v55 = vld [vmem:[%s14161_s14 + $0x388] sm:$0xff] }
 0x71a   :  { %v9058_v19 = vpack.c.bf16 %v1474_v16, %v1468_v63  ;;  %v1620_v20 = vadd.f32 %v7761_v17, %v12020_v52  ;;  %v1477_v21 = vpop.f32.mrb[76].mxu1  ;;  %v7762_v32 = vpop.f32.mrb[92].mxu0  ;;  %v1809_v63 = vld [vmem:[%s14161_s14 + $0x110] sm:$0xff]  ;;  %v9194_v16 = vpack.c.bf16 %v1818_v57, %v1810_v56  ;;  %v1871_v48 = vld [vmem:[%s14161_s14 + $0x300] sm:$0xff]  ;;  %v1896_v56 = vld [vmem:[%s14161_s14 + $0x3c8] sm:$0xff] }
 0x71b   :  { %v1479_v22 = vpop.f32.mrb[77].mxu1  ;;  %v7763_v23 = vpop.f32.mrb[93].mxu0  ;;  %v1478_v6 = vadd.f32 %v1477_v21, %v12014_v47  ;;  %v1817_v17 = vld [vmem:[%s14161_s14 + $0x150] sm:$0xff]  ;;  %v9100_v21 = vpack.c.bf16 %v1815_v62, %v1807_v61  ;;  %v1879_v49 = vld [vmem:[%s14161_s14 + $0x340] sm:$0xff]  ;;  %v1890_v57 = vld [vmem:[%s14161_s14 + $0x398] sm:$0xff]  ;;  %v9118_v61 = vpack.c.bf16 %v1896_v56, %v1888_v55 }
 0x71c   :  { %v9085_v2 = vpack.c.bf16 %v1620_v20, %v1615_v30  ;;  %v7764_v3 = vadd.f32 %v7763_v23, %v7762_v32  ;;  %9059 = vmatprep.subr.bf16.mxu1 %v9058_v19  ;;  %v1480_v12 = vadd.f32 %v1479_v22, %v12017_v50  ;;  %v1832_v30 = vld [vmem:[%s14161_s14 + $0x1c8] sm:$0xff]  ;;  %v1826_v19 = vld [vmem:[%s14161_s14 + $0x198] sm:$0xff]  ;;  %v9196_v32 = vpack.c.bf16 %v1817_v17, %v1809_v63  ;;  %v1823_v23 = vld [vmem:[%s14161_s14 + $0x180] sm:$0xff] }
 0x71d   :  { %9061 = vmatpush1.bf16.msra.mxu1 %v9060_v18  ;;  %v1824_v18 = vld [vmem:[%s14161_s14 + $0x188] sm:$0xff]  ;;  %v1834_v20 = vld [vmem:[%s14161_s14 + $0x1d8] sm:$0xff]  ;;  %v1887_v62 = vld [vmem:[%s14161_s14 + $0x380] sm:$0xff] }
 0x71e   :  { %v1483_v4 = vpop.f32.mrb[78].mxu1  ;;  %v7765_v5 = vpop.f32.mrb[94].mxu0  ;;  %9086 = vmatpush3.bf16.msra.mxu0 %v9085_v2  ;;  %v1625_v24 = vadd.f32 %v7764_v3, %v12020_v52  ;;  %v9102_v22 = vpack.c.bf16 %v1832_v30, %v1824_v18  ;;  %v1831_v2 = vld [vmem:[%s14161_s14 + $0x1c0] sm:$0xff]  ;;  %v1825_v3 = vld [vmem:[%s14161_s14 + $0x190] sm:$0xff]  ;;  %v1904_v30 = vld [vmem:[%s14161_s14 + $0x408] sm:$0xff] }
 0x71f   :  { %v1484_v7 = vadd.f32 %v1483_v4, %v12014_v47  ;;  %v1485_v8 = vpop.f32.mrb[79].mxu1  ;;  %v7766_v9 = vpop.f32.mrb[95].mxu0  ;;  %9087 = vmatprep.subr.bf16.mxu0 %v11532_v42  ;;  %v1786_v47 = vld [vmem:[%s14161_s14 + $0x58] sm:$0xff]  ;;  %v9198_v4 = vpack.c.bf16 %v1834_v20, %v1826_v19  ;;  %v9104_v10 = vpack.c.bf16 %v1831_v2, %v1823_v23  ;;  %v1895_v63 = vld [vmem:[%s14161_s14 + $0x3c0] sm:$0xff]  ;;  %v1897_v18 = vld [vmem:[%s14161_s14 + $0x3d0] sm:$0xff] }
 0x720   :  { %v1486_v13 = vadd.f32 %v1485_v8, %v12017_v50  ;;  %v7767_v14 = vadd.f32 %v7766_v9, %v7765_v5  ;;  %v9186_v35 = vpack.c.bf16 %v1786_v47, %v1778_v15  ;;  %v1785_v50 = vld [vmem:[%s14161_s14 + $0x50] sm:$0xff]  ;;  %v1842_v8 = vld [vmem:[%s14161_s14 + $0x218] sm:$0xff]  ;;  %v1912_v19 = vld [vmem:[%s14161_s14 + $0x448] sm:$0xff] }
 0x721   :  { %v9064_v0 = vpack.c.bf16 %v1484_v7, %v1478_v6  ;;  %v9188_v43 = vpack.c.bf16 %v1785_v50, %v1777_v34  ;;  %v1833_v5 = vld [vmem:[%s14161_s14 + $0x1d0] sm:$0xff]  ;;  %v1840_v6 = vld [vmem:[%s14161_s14 + $0x208] sm:$0xff]  ;;  %v1850_v9 = vld [vmem:[%s14161_s14 + $0x258] sm:$0xff]  ;;  %v9122_v23 = vpack.c.bf16 %v1912_v19, %v1904_v30 }
 0x722   :  { %v9062_v25 = vpack.c.bf16 %v1486_v13, %v1480_v12  ;;  %v1630_v42 = vadd.f32 %v7767_v14, %v12020_v52  ;;  %v1633_v52 = vld [vmem:[%s14162_s24] sm:$0xff]  ;;  %v1848_v7 = vld [vmem:[%s14161_s14 + $0x248] sm:$0xff]  ;;  %v9200_v11 = vpack.c.bf16 %v1833_v5, %v1825_v3  ;;  %v1841_v15 = vld [vmem:[%s14161_s14 + $0x210] sm:$0xff]  ;;  %v9202_v47 = vpack.c.bf16 %v1850_v9, %v1842_v8 }
 0x723   :  { %v9106_v12 = vpack.c.bf16 %v1848_v7, %v1840_v6  ;;  %v1839_v13 = vld [vmem:[%s14161_s14 + $0x200] sm:$0xff]  ;;  %v1906_v20 = vld [vmem:[%s14161_s14 + $0x418] sm:$0xff]  ;;  %v1913_v6 = vld [vmem:[%s14161_s14 + $0x450] sm:$0xff] }
 0x724   :  { %v9088_v38 = vpack.c.bf16 %v1630_v42, %v1625_v24  ;;  %9063 = vmatprep.subr.bf16.mxu1 %v9062_v25  ;;  %v1847_v14 = vld [vmem:[%s14161_s14 + $0x240] sm:$0xff]  ;;  %v1856_v24 = vld [vmem:[%s14161_s14 + $0x288] sm:$0xff]  ;;  %v1858_v42 = vld [vmem:[%s14161_s14 + $0x298] sm:$0xff] }
 0x725   :  { %9065 = vmatpush1.bf16.msra.mxu1 %v9064_v0  ;;  %v1849_v0 = vld [vmem:[%s14161_s14 + $0x250] sm:$0xff]  ;;  %v1864_v25 = vld [vmem:[%s14161_s14 + $0x2c8] sm:$0xff]  ;;  %v9108_v31 = vpack.c.bf16 %v1847_v14, %v1839_v13  ;;  %v1863_v50 = vld [vmem:[%s14161_s14 + $0x2c0] sm:$0xff] }
 0x726   :  { %9089 = vmatpush3.bf16.msra.mxu0 %v9088_v38  ;;  %9091 = vmatprep.subr.bf16.mxu1 %v9090_v28  ;;  %v1866_v28 = vld [vmem:[%s14161_s14 + $0x2d8] sm:$0xff]  ;;  %v9204_v33 = vpack.c.bf16 %v1849_v0, %v1841_v15  ;;  %v9110_v34 = vpack.c.bf16 %v1864_v25, %v1856_v24  ;;  %v1865_v38 = vld [vmem:[%s14161_s14 + $0x2d0] sm:$0xff]  ;;  %v1903_v2 = vld [vmem:[%s14161_s14 + $0x400] sm:$0xff] }
 0x727   :  { %9187 = vmatprep.subr.bf16.mxu0 %v9186_v35  ;;  %v1855_v35 = vld [vmem:[%s14161_s14 + $0x280] sm:$0xff]  ;;  %v9206_v37 = vpack.c.bf16 %v1866_v28, %v1858_v42  ;;  %v1920_v7 = vld [vmem:[%s14161_s14 + $0x488] sm:$0xff]  ;;  %v1922_v9 = vld [vmem:[%s14161_s14 + $0x498] sm:$0xff] }
 0x728   :  { %1699 = vmatmul.mubr.f32.vlgmr.msra.gmra.mrb[80].mxu1 %v1633_v52  ;;  %v1911_v3 = vld [vmem:[%s14161_s14 + $0x440] sm:$0xff]  ;;  %v1928_v8 = vld [vmem:[%s14161_s14 + $0x4c8] sm:$0xff]  ;;  %v1929_v24 = vld [vmem:[%s14161_s14 + $0x4d0] sm:$0xff] }
 0x729   :  { %8496 = vmatmul.mubr.f32.vlgmr.msra.gmra.mrb[96].mxu0 %v1633_v52  ;;  %9093 = vmatpush1.bf16.msra.mxu1 %v9092_v41  ;;  %v1874_v52 = vld [vmem:[%s14161_s14 + $0x318] sm:$0xff]  ;;  %v9126_v13 = vpack.c.bf16 %v1928_v8, %v1920_v7  ;;  %v1919_v14 = vld [vmem:[%s14161_s14 + $0x480] sm:$0xff]  ;;  %v1936_v25 = vld [vmem:[%s14161_s14 + $0x508] sm:$0xff] }
 0x72a   :  { %9189 = vmatpush1.bf16.msra.mxu0 %v9188_v43  ;;  %9095 = vmatprep.subr.bf16.mxu1 %v9094_v44  ;;  %v1882_v41 = vld [vmem:[%s14161_s14 + $0x358] sm:$0xff]  ;;  %v9112_v43 = vpack.c.bf16 %v1863_v50, %v1855_v35  ;;  %v9208_v44 = vpack.c.bf16 %v1865_v38, %v1857_v36  ;;  %v1927_v15 = vld [vmem:[%s14161_s14 + $0x4c0] sm:$0xff]  ;;  %v1944_v42 = vld [vmem:[%s14161_s14 + $0x548] sm:$0xff] }
 0x72b   :  { %9191 = vmatprep.subr.bf16.mxu0 %v9190_v51  ;;  %v1873_v51 = vld [vmem:[%s14161_s14 + $0x310] sm:$0xff]  ;;  %v9210_v53 = vpack.c.bf16 %v1882_v41, %v1874_v52  ;;  %v1938_v28 = vld [vmem:[%s14161_s14 + $0x518] sm:$0xff]  ;;  %v9130_v35 = vpack.c.bf16 %v1944_v42, %v1936_v25  ;;  %v1935_v50 = vld [vmem:[%s14161_s14 + $0x500] sm:$0xff] }
 0x72c   :  { %v1943_v36 = vld [vmem:[%s14161_s14 + $0x540] sm:$0xff]  ;;  %v1960_v52 = vld [vmem:[%s14161_s14 + $0x5c8] sm:$0xff]  ;;  %v1954_v41 = vld [vmem:[%s14161_s14 + $0x598] sm:$0xff] }
 0x72d   :  { %9097 = vmatpush1.bf16.msra.mxu1 %v9096_v58  ;;  %v1898_v58 = vld [vmem:[%s14161_s14 + $0x3d8] sm:$0xff]  ;;  %v1961_v55 = vld [vmem:[%s14161_s14 + $0x5d0] sm:$0xff]  ;;  %v1968_v56 = vld [vmem:[%s14161_s14 + $0x608] sm:$0xff] }
 0x72e   :  { %9193 = vmatpush1.bf16.msra.mxu0 %v9192_v59  ;;  %9099 = vmatprep.subr.bf16.mxu1 %v9098_v60  ;;  %v9116_v59 = vpack.c.bf16 %v1879_v49, %v1871_v48  ;;  %v9212_v60 = vpack.c.bf16 %v1881_v54, %v1873_v51  ;;  %v9214_v17 = vpack.c.bf16 %v1898_v58, %v1890_v57  ;;  %v1951_v49 = vld [vmem:[%s14161_s14 + $0x580] sm:$0xff]  ;;  %v1976_v57 = vld [vmem:[%s14161_s14 + $0x648] sm:$0xff]  ;;  %v1970_v58 = vld [vmem:[%s14161_s14 + $0x618] sm:$0xff] }
 0x72f   :  { %9195 = vmatprep.subr.bf16.mxu0 %v9194_v16  ;;  %v1889_v16 = vld [vmem:[%s14161_s14 + $0x390] sm:$0xff]  ;;  %v9134_v48 = vpack.c.bf16 %v1960_v52, %v1952_v40  ;;  %v1959_v51 = vld [vmem:[%s14161_s14 + $0x5c0] sm:$0xff]  ;;  %v1984_v19 = vld [vmem:[%s14161_s14 + $0x688] sm:$0xff] }
 0x730   :  { %v1977_v30 = vld [vmem:[%s14161_s14 + $0x650] sm:$0xff]  ;;  %v2000_v8 = vld [vmem:[%s14161_s14 + $0x708] sm:$0xff] }
 0x731   :  { %9101 = vmatpush1.bf16.msra.mxu1 %v9100_v21  ;;  %v1914_v21 = vld [vmem:[%s14161_s14 + $0x458] sm:$0xff]  ;;  %v1993_v7 = vld [vmem:[%s14161_s14 + $0x6d0] sm:$0xff]  ;;  %v2016_v42 = vld [vmem:[%s14161_s14 + $0x788] sm:$0xff] }
 0x732   :  { %9197 = vmatpush1.bf16.msra.mxu0 %v9196_v32  ;;  %9103 = vmatprep.subr.bf16.mxu1 %v9102_v22  ;;  %v9120_v32 = vpack.c.bf16 %v1895_v63, %v1887_v62  ;;  %v9216_v22 = vpack.c.bf16 %v1897_v18, %v1889_v16  ;;  %v9218_v5 = vpack.c.bf16 %v1914_v21, %v1906_v20  ;;  %v1967_v63 = vld [vmem:[%s14161_s14 + $0x600] sm:$0xff]  ;;  %v1992_v20 = vld [vmem:[%s14161_s14 + $0x6c8] sm:$0xff]  ;;  %v1986_v21 = vld [vmem:[%s14161_s14 + $0x698] sm:$0xff] }
 0x733   :  { %9199 = vmatprep.subr.bf16.mxu0 %v9198_v4  ;;  %v1905_v4 = vld [vmem:[%s14161_s14 + $0x410] sm:$0xff]  ;;  %v9138_v62 = vpack.c.bf16 %v1976_v57, %v1968_v56  ;;  %v1975_v16 = vld [vmem:[%s14161_s14 + $0x640] sm:$0xff]  ;;  %v2048_v57 = vld [vmem:[%s14161_s14 + $0x888] sm:$0xff] }
 0x734   :  { %v2009_v25 = vld [vmem:[%s14161_s14 + $0x750] sm:$0xff] }
 0x735   :  { %9105 = vmatpush1.bf16.msra.mxu1 %v9104_v10  ;;  %v1930_v10 = vld [vmem:[%s14161_s14 + $0x4d8] sm:$0xff]  ;;  %v2025_v40 = vld [vmem:[%s14161_s14 + $0x7d0] sm:$0xff] }
 0x736   :  { %9201 = vmatpush1.bf16.msra.mxu0 %v9200_v11  ;;  %9107 = vmatprep.subr.bf16.mxu1 %v9106_v12  ;;  %v9124_v11 = vpack.c.bf16 %v1911_v3, %v1903_v2  ;;  %v9220_v12 = vpack.c.bf16 %v1913_v6, %v1905_v4  ;;  %v9222_v0 = vpack.c.bf16 %v1930_v10, %v1922_v9  ;;  %v1983_v3 = vld [vmem:[%s14161_s14 + $0x680] sm:$0xff]  ;;  %v2008_v9 = vld [vmem:[%s14161_s14 + $0x748] sm:$0xff]  ;;  %v2002_v10 = vld [vmem:[%s14161_s14 + $0x718] sm:$0xff] }
 0x737   :  { %9203 = vmatprep.subr.bf16.mxu0 %v9202_v47  ;;  %v1921_v47 = vld [vmem:[%s14161_s14 + $0x490] sm:$0xff]  ;;  %v9142_v2 = vpack.c.bf16 %v1992_v20, %v1984_v19  ;;  %v1991_v4 = vld [vmem:[%s14161_s14 + $0x6c0] sm:$0xff] }
 0x738   :  { %v2041_v56 = vld [vmem:[%s14161_s14 + $0x850] sm:$0xff] }
 0x739   :  { %9109 = vmatpush1.bf16.msra.mxu1 %v9108_v31  ;;  %v1946_v31 = vld [vmem:[%s14161_s14 + $0x558] sm:$0xff]  ;;  %v2049_v20 = vld [vmem:[%s14161_s14 + $0x890] sm:$0xff] }
 0x73a   :  { %9205 = vmatpush1.bf16.msra.mxu0 %v9204_v33  ;;  %9111 = vmatprep.subr.bf16.mxu1 %v9110_v34  ;;  %v9128_v33 = vpack.c.bf16 %v1927_v15, %v1919_v14  ;;  %v9224_v34 = vpack.c.bf16 %v1929_v24, %v1921_v47  ;;  %v9226_v38 = vpack.c.bf16 %v1946_v31, %v1938_v28  ;;  %v1999_v15 = vld [vmem:[%s14161_s14 + $0x700] sm:$0xff]  ;;  %v2024_v28 = vld [vmem:[%s14161_s14 + $0x7c8] sm:$0xff]  ;;  %v2018_v31 = vld [vmem:[%s14161_s14 + $0x798] sm:$0xff] }
 0x73b   :  { %9207 = vmatprep.subr.bf16.mxu0 %v9206_v37  ;;  %v1937_v37 = vld [vmem:[%s14161_s14 + $0x510] sm:$0xff]  ;;  %v9146_v14 = vpack.c.bf16 %v2008_v9, %v2000_v8  ;;  %v2007_v47 = vld [vmem:[%s14161_s14 + $0x740] sm:$0xff] }
 0x73c   :  { %v2071_v8 = vld [vmem:[%s14161_s14 + $0x940] sm:$0xff] }
 0x73d   :  { %9113 = vmatpush1.bf16.msra.mxu1 %v9112_v43  ;;  %v1962_v43 = vld [vmem:[%s14161_s14 + $0x5d8] sm:$0xff] }
 0x73e   :  { %9209 = vmatpush1.bf16.msra.mxu0 %v9208_v44  ;;  %9115 = vmatprep.subr.bf16.mxu1 %v9114_v45  ;;  %v9132_v44 = vpack.c.bf16 %v1943_v36, %v1935_v50  ;;  %v9228_v45 = vpack.c.bf16 %v1945_v39, %v1937_v37  ;;  %v9230_v54 = vpack.c.bf16 %v1962_v43, %v1954_v41  ;;  %v2015_v36 = vld [vmem:[%s14161_s14 + $0x780] sm:$0xff]  ;;  %v2017_v39 = vld [vmem:[%s14161_s14 + $0x790] sm:$0xff]  ;;  %v2032_v43 = vld [vmem:[%s14161_s14 + $0x808] sm:$0xff] }
 0x73f   :  { %9211 = vmatprep.subr.bf16.mxu0 %v9210_v53  ;;  %v1953_v53 = vld [vmem:[%s14161_s14 + $0x590] sm:$0xff]  ;;  %v9150_v50 = vpack.c.bf16 %v2024_v28, %v2016_v42  ;;  %v2023_v37 = vld [vmem:[%s14161_s14 + $0x7c0] sm:$0xff]  ;;  %v9248_v41 = vpack.c.bf16 %v2025_v40, %v2017_v39 }
 0x740   :  { %v9152_v52 = vpack.c.bf16 %v2023_v37, %v2015_v36  ;;  %v2087_v42 = vld [vmem:[%s14161_s14 + $0x9c0] sm:$0xff]  ;;  %v2098_v36 = vld [vmem:[%s14161_s14 + $0xa18] sm:$0xff] }
 0x741   :  { %9117 = vmatpush1.bf16.msra.mxu1 %v9116_v59  ;;  %v1978_v59 = vld [vmem:[%s14161_s14 + $0x658] sm:$0xff]  ;;  %v2095_v40 = vld [vmem:[%s14161_s14 + $0xa00] sm:$0xff] }
 0x742   :  { %9213 = vmatpush1.bf16.msra.mxu0 %v9212_v60  ;;  %9119 = vmatprep.subr.bf16.mxu1 %v9118_v61  ;;  %v9136_v60 = vpack.c.bf16 %v1959_v51, %v1951_v49  ;;  %v9232_v61 = vpack.c.bf16 %v1961_v55, %v1953_v53  ;;  %v9234_v18 = vpack.c.bf16 %v1978_v59, %v1970_v58  ;;  %v2042_v49 = vld [vmem:[%s14161_s14 + $0x858] sm:$0xff]  ;;  %v2031_v53 = vld [vmem:[%s14161_s14 + $0x800] sm:$0xff]  ;;  %v2033_v55 = vld [vmem:[%s14161_s14 + $0x810] sm:$0xff] }
 0x743   :  { %9215 = vmatprep.subr.bf16.mxu0 %v9214_v17  ;;  %v1969_v17 = vld [vmem:[%s14161_s14 + $0x610] sm:$0xff]  ;;  %v2056_v58 = vld [vmem:[%s14161_s14 + $0x8c8] sm:$0xff]  ;;  %v2050_v59 = vld [vmem:[%s14161_s14 + $0x898] sm:$0xff] }
 0x744   :  { %v2106_v37 = vld [vmem:[%s14161_s14 + $0xa58] sm:$0xff] }
 0x745   :  { %9121 = vmatpush1.bf16.msra.mxu1 %v9120_v32  ;;  %v1994_v32 = vld [vmem:[%s14161_s14 + $0x6d8] sm:$0xff] }
 0x746   :  { %9217 = vmatpush1.bf16.msra.mxu0 %v9216_v22  ;;  %9123 = vmatprep.subr.bf16.mxu1 %v9122_v23  ;;  %v9140_v22 = vpack.c.bf16 %v1975_v16, %v1967_v63  ;;  %v9236_v23 = vpack.c.bf16 %v1977_v30, %v1969_v17  ;;  %v9238_v6 = vpack.c.bf16 %v1994_v32, %v1986_v21  ;;  %v2047_v16 = vld [vmem:[%s14161_s14 + $0x880] sm:$0xff]  ;;  %v2057_v21 = vld [vmem:[%s14161_s14 + $0x8d0] sm:$0xff]  ;;  %v2064_v32 = vld [vmem:[%s14161_s14 + $0x908] sm:$0xff] }
 0x747   :  { %9219 = vmatprep.subr.bf16.mxu0 %v9218_v5  ;;  %v1985_v5 = vld [vmem:[%s14161_s14 + $0x690] sm:$0xff]  ;;  %v9252_v63 = vpack.c.bf16 %v2041_v56, %v2033_v55  ;;  %v2055_v17 = vld [vmem:[%s14161_s14 + $0x8c0] sm:$0xff]  ;;  %v9158_v30 = vpack.c.bf16 %v2056_v58, %v2048_v57 }
 0x748   :  { %v2111_v56 = vld [vmem:[%s14161_s14 + $0xa80] sm:$0xff] }
 0x749   :  { %9125 = vmatpush1.bf16.msra.mxu1 %v9124_v11  ;;  %v2010_v11 = vld [vmem:[%s14161_s14 + $0x758] sm:$0xff]  ;;  %v2119_v57 = vld [vmem:[%s14161_s14 + $0xac0] sm:$0xff] }
 0x74a   :  { %9221 = vmatpush1.bf16.msra.mxu0 %v9220_v12  ;;  %9127 = vmatprep.subr.bf16.mxu1 %v9126_v13  ;;  %v9144_v12 = vpack.c.bf16 %v1991_v4, %v1983_v3  ;;  %v9240_v13 = vpack.c.bf16 %v1993_v7, %v1985_v5  ;;  %v9242_v24 = vpack.c.bf16 %v2010_v11, %v2002_v10  ;;  %v2074_v3 = vld [vmem:[%s14161_s14 + $0x958] sm:$0xff]  ;;  %v2063_v7 = vld [vmem:[%s14161_s14 + $0x900] sm:$0xff]  ;;  %v2065_v11 = vld [vmem:[%s14161_s14 + $0x910] sm:$0xff] }
 0x74b   :  { %9223 = vmatprep.subr.bf16.mxu0 %v9222_v0  ;;  %v2001_v0 = vld [vmem:[%s14161_s14 + $0x710] sm:$0xff]  ;;  %v9160_v5 = vpack.c.bf16 %v2055_v17, %v2047_v16  ;;  %v2136_v16 = vld [vmem:[%s14161_s14 + $0xb48] sm:$0xff]  ;;  %v2130_v17 = vld [vmem:[%s14161_s14 + $0xb18] sm:$0xff] }
 0x74d   :  { %9129 = vmatpush1.bf16.msra.mxu1 %v9128_v33  ;;  %v2026_v33 = vld [vmem:[%s14161_s14 + $0x7d8] sm:$0xff] }
 0x74e   :  { %9225 = vmatpush1.bf16.msra.mxu0 %v9224_v34  ;;  %9131 = vmatprep.subr.bf16.mxu1 %v9130_v35  ;;  %v9148_v34 = vpack.c.bf16 %v2007_v47, %v1999_v15  ;;  %v9244_v35 = vpack.c.bf16 %v2009_v25, %v2001_v0  ;;  %v2082_v15 = vld [vmem:[%s14161_s14 + $0x998] sm:$0xff]  ;;  %v9164_v0 = vpack.c.bf16 %v2071_v8, %v2063_v7  ;;  %v2079_v25 = vld [vmem:[%s14161_s14 + $0x980] sm:$0xff] }
 0x74f   :  { %9227 = vmatprep.subr.bf16.mxu0 %v9226_v38  ;;  %v9246_v38 = vpack.c.bf16 %v2026_v33, %v2018_v31  ;;  %v2090_v47 = vld [vmem:[%s14161_s14 + $0x9d8] sm:$0xff]  ;;  %v2081_v33 = vld [vmem:[%s14161_s14 + $0x990] sm:$0xff] }
 0x750   :  { %v9262_v31 = vpack.c.bf16 %v2090_v47, %v2082_v15  ;;  %v2146_v7 = vld [vmem:[%s14161_s14 + $0xb98] sm:$0xff]  ;;  %v2145_v15 = vld [vmem:[%s14161_s14 + $0xb90] sm:$0xff] }
 0x751   :  { %9133 = vmatpush1.bf16.msra.mxu1 %v9132_v44  ;;  %v2040_v44 = vld [vmem:[%s14161_s14 + $0x848] sm:$0xff]  ;;  %v2154_v8 = vld [vmem:[%s14161_s14 + $0xbd8] sm:$0xff]  ;;  %v2153_v47 = vld [vmem:[%s14161_s14 + $0xbd0] sm:$0xff] }
 0x752   :  { %9229 = vmatpush1.bf16.msra.mxu0 %v9228_v45  ;;  %9135 = vmatprep.subr.bf16.mxu1 %v9134_v48  ;;  %v2034_v45 = vld [vmem:[%s14161_s14 + $0x818] sm:$0xff]  ;;  %v9154_v48 = vpack.c.bf16 %v2040_v44, %v2032_v43  ;;  %v9266_v43 = vpack.c.bf16 %v2106_v37, %v2098_v36  ;;  %v2097_v44 = vld [vmem:[%s14161_s14 + $0xa10] sm:$0xff] }
 0x753   :  { %9231 = vmatprep.subr.bf16.mxu0 %v9230_v54  ;;  %v9250_v51 = vpack.c.bf16 %v2042_v49, %v2034_v45  ;;  %v2039_v54 = vld [vmem:[%s14161_s14 + $0x840] sm:$0xff]  ;;  %v2105_v45 = vld [vmem:[%s14161_s14 + $0xa50] sm:$0xff]  ;;  %v2120_v49 = vld [vmem:[%s14161_s14 + $0xac8] sm:$0xff] }
 0x754   :  { %v9268_v55 = vpack.c.bf16 %v2105_v45, %v2097_v44  ;;  %v1781_v36 = vld [vmem:[%s14161_s14 + $0x30] sm:$0xff]  ;;  %v1795_v44 = vld [vmem:[%s14161_s14 + $0xa0] sm:$0xff] }
 0x755   :  { %9137 = vmatpush1.bf16.msra.mxu1 %v9136_v60  ;;  %v2058_v60 = vld [vmem:[%s14161_s14 + $0x8d8] sm:$0xff]  ;;  %v1789_v37 = vld [vmem:[%s14161_s14 + $0x70] sm:$0xff]  ;;  %v1803_v45 = vld [vmem:[%s14161_s14 + $0xe0] sm:$0xff] }
 0x756   :  { %9233 = vmatpush1.bf16.msra.mxu0 %v9232_v61  ;;  %9139 = vmatprep.subr.bf16.mxu1 %v9138_v62  ;;  %v9156_v62 = vpack.c.bf16 %v2039_v54, %v2031_v53  ;;  %v9254_v19 = vpack.c.bf16 %v2058_v60, %v2050_v59  ;;  %v2122_v53 = vld [vmem:[%s14161_s14 + $0xad8] sm:$0xff]  ;;  %v2113_v60 = vld [vmem:[%s14161_s14 + $0xa90] sm:$0xff] }
 0x757   :  { %9235 = vmatprep.subr.bf16.mxu0 %v9234_v18 }
 0x759   :  { %9141 = vmatpush1.bf16.msra.mxu1 %v9140_v22 }
 0x75a   :  { %9237 = vmatpush1.bf16.msra.mxu0 %v9236_v23  ;;  %9143 = vmatprep.subr.bf16.mxu1 %v9142_v2  ;;  %v2072_v23 = vld [vmem:[%s14161_s14 + $0x948] sm:$0xff]  ;;  %v2066_v2 = vld [vmem:[%s14161_s14 + $0x918] sm:$0xff] }
 0x75b   :  { %9239 = vmatprep.subr.bf16.mxu0 %v9238_v6  ;;  %v9256_v6 = vpack.c.bf16 %v2057_v21, %v2049_v20  ;;  %v9162_v9 = vpack.c.bf16 %v2072_v23, %v2064_v32  ;;  %v9258_v10 = vpack.c.bf16 %v2074_v3, %v2066_v2  ;;  %v2127_v21 = vld [vmem:[%s14161_s14 + $0xb00] sm:$0xff]  ;;  %v2129_v3 = vld [vmem:[%s14161_s14 + $0xb10] sm:$0xff] }
 0x75c   :  { %v2135_v32 = vld [vmem:[%s14161_s14 + $0xb40] sm:$0xff] }
 0x75d   :  { %9145 = vmatpush1.bf16.msra.mxu1 %v9144_v12  ;;  %v2073_v12 = vld [vmem:[%s14161_s14 + $0x950] sm:$0xff] }
 0x75e   :  { %9241 = vmatpush1.bf16.msra.mxu0 %v9240_v13  ;;  %9147 = vmatprep.subr.bf16.mxu1 %v9146_v14  ;;  %v2080_v13 = vld [vmem:[%s14161_s14 + $0x988] sm:$0xff] }
 0x75f   :  { %9243 = vmatprep.subr.bf16.mxu0 %v9242_v24  ;;  %v2088_v14 = vld [vmem:[%s14161_s14 + $0x9c8] sm:$0xff]  ;;  %v9260_v24 = vpack.c.bf16 %v2073_v12, %v2065_v11  ;;  %v2143_v11 = vld [vmem:[%s14161_s14 + $0xb80] sm:$0xff] }
 0x760   :  { %v9166_v28 = vpack.c.bf16 %v2088_v14, %v2080_v13  ;;  %v2151_v12 = vld [vmem:[%s14161_s14 + $0xbc0] sm:$0xff]  ;;  %v9278_v14 = vpack.c.bf16 %v2154_v8, %v2146_v7  ;;  %v1837_v7 = vld [vmem:[%s14161_s14 + $0x1f0] sm:$0xff]  ;;  %v1844_v8 = vld [vmem:[%s14161_s14 + $0x228] sm:$0xff] }
 0x761   :  { %9149 = vmatpush1.bf16.msra.mxu1 %v9148_v34  ;;  %v2089_v34 = vld [vmem:[%s14161_s14 + $0x9d0] sm:$0xff] }
 0x762   :  { %9245 = vmatpush1.bf16.msra.mxu0 %v9244_v35  ;;  %9151 = vmatprep.subr.bf16.mxu1 %v9150_v50  ;;  %v2096_v35 = vld [vmem:[%s14161_s14 + $0xa08] sm:$0xff]  ;;  %v9264_v39 = vpack.c.bf16 %v2089_v34, %v2081_v33 }
 0x763   :  { %9247 = vmatprep.subr.bf16.mxu0 %v9246_v38  ;;  %v2104_v50 = vld [vmem:[%s14161_s14 + $0xa48] sm:$0xff]  ;;  %v9168_v38 = vpack.c.bf16 %v2087_v42, %v2079_v25  ;;  %v1782_v25 = vld [vmem:[%s14161_s14 + $0x38] sm:$0xff] }
 0x764   :  { %v1790_v42 = vld [vmem:[%s14161_s14 + $0x78] sm:$0xff] }
 0x765   :  { %9153 = vmatpush1.bf16.msra.mxu1 %v9152_v52  ;;  %v2103_v52 = vld [vmem:[%s14161_s14 + $0xa40] sm:$0xff]  ;;  %v9378_v34 = vpack.c.bf16 %v1790_v42, %v1782_v25  ;;  %v1853_v25 = vld [vmem:[%s14161_s14 + $0x270] sm:$0xff]  ;;  %v1860_v42 = vld [vmem:[%s14161_s14 + $0x2a8] sm:$0xff] }
 0x766   :  { %9249 = vmatpush1.bf16.msra.mxu0 %v9248_v41  ;;  %9155 = vmatprep.subr.bf16.mxu1 %v9154_v48  ;;  %v9170_v41 = vpack.c.bf16 %v2104_v50, %v2096_v35  ;;  %v2112_v48 = vld [vmem:[%s14161_s14 + $0xa88] sm:$0xff]  ;;  %v9172_v54 = vpack.c.bf16 %v2103_v52, %v2095_v40  ;;  %v1779_v35 = vld [vmem:[%s14161_s14 + $0x20] sm:$0xff]  ;;  %v1798_v40 = vld [vmem:[%s14161_s14 + $0xb8] sm:$0xff] }
 0x767   :  { %9251 = vmatprep.subr.bf16.mxu0 %v9250_v51  ;;  %v2114_v51 = vld [vmem:[%s14161_s14 + $0xa98] sm:$0xff]  ;;  %v9174_v58 = vpack.c.bf16 %v2120_v49, %v2112_v48  ;;  %v1787_v50 = vld [vmem:[%s14161_s14 + $0x60] sm:$0xff]  ;;  %v1797_v48 = vld [vmem:[%s14161_s14 + $0xb0] sm:$0xff] }
 0x768   :  { %v9270_v59 = vpack.c.bf16 %v2122_v53, %v2114_v51  ;;  %v1806_v52 = vld [vmem:[%s14161_s14 + $0xf8] sm:$0xff]  ;;  %v1805_v53 = vld [vmem:[%s14161_s14 + $0xf0] sm:$0xff] }
 0x769   :  { %v9382_v51 = vpack.c.bf16 %v1806_v52, %v1798_v40  ;;  %v1869_v40 = vld [vmem:[%s14161_s14 + $0x2f0] sm:$0xff]  ;;  %v1876_v52 = vld [vmem:[%s14161_s14 + $0x328] sm:$0xff] }
 0x7fb   :  { %v12218_v61 = vpop.f32.mrb[80].mxu1 }
 0x7fc   :  { %v12222_v18 = vpop.f32.mrb[81].mxu1  ;;  %v12227_v22 = vpop.f32.mrb[96].mxu0 }
 0x7fd   :  { %2265 = vmatprep.mubr.f32.mxu1 %v12222_v18  ;;  %2407 = vmatprep.mubr.f32.mxu0 %v12222_v18  ;;  %v8497_v4 = vpop.f32.mrb[97].mxu0 }
 0x7fe   :  { %2266 = vmatmul.mubr.f32.vlgmr.msra.gmra.mrb[82].mxu1 %v12218_v61  ;;  %2408 = vmatmul.mubr.f32.vlgmr.msra.gmra.mrb[98].mxu0 %v12218_v61  ;;  %v2137_v4 = vld [vmem:[%s14161_s14 + $0xb50] sm:$0xff] }
 0x7ff   :  { %9157 = vmatpush1.bf16.msra.mxu1 %v9156_v62  ;;  %9253 = vmatpush1.bf16.msra.mxu0 %v9252_v63  ;;  %v2121_v62 = vld [vmem:[%s14161_s14 + $0xad0] sm:$0xff]  ;;  %v2128_v63 = vld [vmem:[%s14161_s14 + $0xb08] sm:$0xff] }
 0x800   :  { %9159 = vmatprep.subr.bf16.mxu1 %v9158_v30  ;;  %9255 = vmatprep.subr.bf16.mxu0 %v9254_v19  ;;  %v2138_v30 = vld [vmem:[%s14161_s14 + $0xb58] sm:$0xff]  ;;  %v9176_v19 = vpack.c.bf16 %v2119_v57, %v2111_v56  ;;  %v9272_v20 = vpack.c.bf16 %v2121_v62, %v2113_v60  ;;  %v9178_v23 = vpack.c.bf16 %v2136_v16, %v2128_v63  ;;  %v1811_v62 = vld [vmem:[%s14161_s14 + $0x120] sm:$0xff]  ;;  %v1813_v16 = vld [vmem:[%s14161_s14 + $0x130] sm:$0xff] }
 0x801   :  { %2336 = vmatprep.mubr.f32.mxu1 %v11531_v1  ;;  %2478 = vmatprep.mubr.f32.mxu0 %v11531_v1  ;;  %v9274_v2 = vpack.c.bf16 %v2138_v30, %v2130_v17  ;;  %v1814_v56 = vld [vmem:[%s14161_s14 + $0x138] sm:$0xff]  ;;  %v1819_v63 = vld [vmem:[%s14161_s14 + $0x160] sm:$0xff]  ;;  %v1821_v30 = vld [vmem:[%s14161_s14 + $0x170] sm:$0xff] }
 0x802   :  { %v1822_v57 = vld [vmem:[%s14161_s14 + $0x178] sm:$0xff] }
 0x803   :  { %9161 = vmatpush1.bf16.msra.mxu1 %v9160_v5  ;;  %9257 = vmatpush1.bf16.msra.mxu0 %v9256_v6  ;;  %v2144_v5 = vld [vmem:[%s14161_s14 + $0xb88] sm:$0xff]  ;;  %v9386_v17 = vpack.c.bf16 %v1822_v57, %v1814_v56  ;;  %v1885_v56 = vld [vmem:[%s14161_s14 + $0x370] sm:$0xff] }
 0x804   :  { %9163 = vmatprep.subr.bf16.mxu1 %v9162_v9  ;;  %9259 = vmatprep.subr.bf16.mxu0 %v9258_v10  ;;  %v2152_v6 = vld [vmem:[%s14161_s14 + $0xbc8] sm:$0xff]  ;;  %v9180_v9 = vpack.c.bf16 %v2135_v32, %v2127_v21  ;;  %v9276_v10 = vpack.c.bf16 %v2137_v4, %v2129_v3  ;;  %v1830_v21 = vld [vmem:[%s14161_s14 + $0x1b8] sm:$0xff]  ;;  %v9292_v32 = vpack.c.bf16 %v1819_v63, %v1811_v62  ;;  %v1827_v3 = vld [vmem:[%s14161_s14 + $0x1a0] sm:$0xff] }
 0x805   :  { %v9182_v13 = vpack.c.bf16 %v2152_v6, %v2144_v5  ;;  %v1835_v4 = vld [vmem:[%s14161_s14 + $0x1e0] sm:$0xff]  ;;  %v1829_v5 = vld [vmem:[%s14161_s14 + $0x1b0] sm:$0xff]  ;;  %v1892_v57 = vld [vmem:[%s14161_s14 + $0x3a8] sm:$0xff] }
 0x807   :  { %9165 = vmatpush1.bf16.msra.mxu1 %v9164_v0  ;;  %9261 = vmatpush1.bf16.msra.mxu0 %v9260_v24  ;;  %v1780_v0 = vld [vmem:[%s14161_s14 + $0x28] sm:$0xff] }
 0x808   :  { %9167 = vmatprep.subr.bf16.mxu1 %v9166_v28  ;;  %9263 = vmatprep.subr.bf16.mxu0 %v9262_v31  ;;  %v1788_v24 = vld [vmem:[%s14161_s14 + $0x68] sm:$0xff]  ;;  %v9184_v28 = vpack.c.bf16 %v2151_v12, %v2143_v11  ;;  %v9280_v31 = vpack.c.bf16 %v2153_v47, %v2145_v15  ;;  %v1854_v11 = vld [vmem:[%s14161_s14 + $0x278] sm:$0xff]  ;;  %v9296_v12 = vpack.c.bf16 %v1835_v4, %v1827_v3  ;;  %v1843_v15 = vld [vmem:[%s14161_s14 + $0x220] sm:$0xff] }
 0x809   :  { %v9282_v33 = vpack.c.bf16 %v1788_v24, %v1780_v0  ;;  %v1851_v47 = vld [vmem:[%s14161_s14 + $0x260] sm:$0xff]  ;;  %v1845_v0 = vld [vmem:[%s14161_s14 + $0x230] sm:$0xff] }
 0x80b   :  { %9169 = vmatpush1.bf16.msra.mxu1 %v9168_v38  ;;  %9265 = vmatpush1.bf16.msra.mxu0 %v9264_v39  ;;  %v1796_v38 = vld [vmem:[%s14161_s14 + $0xa8] sm:$0xff] }
 0x80c   :  { %9171 = vmatprep.subr.bf16.mxu1 %v9170_v41  ;;  %9267 = vmatprep.subr.bf16.mxu0 %v9266_v43  ;;  %v1804_v39 = vld [vmem:[%s14161_s14 + $0xe8] sm:$0xff]  ;;  %v9284_v41 = vpack.c.bf16 %v1787_v50, %v1779_v35  ;;  %v9380_v43 = vpack.c.bf16 %v1789_v37, %v1781_v36  ;;  %v9396_v35 = vpack.c.bf16 %v1853_v25, %v1845_v0  ;;  %v1859_v36 = vld [vmem:[%s14161_s14 + $0x2a0] sm:$0xff] }
 0x80d   :  { %v9286_v49 = vpack.c.bf16 %v1804_v39, %v1796_v38  ;;  %v1867_v37 = vld [vmem:[%s14161_s14 + $0x2e0] sm:$0xff]  ;;  %v1861_v38 = vld [vmem:[%s14161_s14 + $0x2b0] sm:$0xff] }
 0x80e   :  { %v1931_v25 = vld [vmem:[%s14161_s14 + $0x4e0] sm:$0xff] }
 0x80f   :  { %9173 = vmatpush1.bf16.msra.mxu1 %v9172_v54  ;;  %9269 = vmatpush1.bf16.msra.mxu0 %v9268_v55  ;;  %v1812_v54 = vld [vmem:[%s14161_s14 + $0x128] sm:$0xff] }
 0x810   :  { %9175 = vmatprep.subr.bf16.mxu1 %v9174_v58  ;;  %9271 = vmatprep.subr.bf16.mxu0 %v9270_v59  ;;  %v1820_v55 = vld [vmem:[%s14161_s14 + $0x168] sm:$0xff]  ;;  %v9288_v58 = vpack.c.bf16 %v1803_v45, %v1795_v44  ;;  %v9384_v59 = vpack.c.bf16 %v1805_v53, %v1797_v48  ;;  %v1886_v44 = vld [vmem:[%s14161_s14 + $0x378] sm:$0xff]  ;;  %v9304_v45 = vpack.c.bf16 %v1867_v37, %v1859_v36  ;;  %v1883_v53 = vld [vmem:[%s14161_s14 + $0x360] sm:$0xff] }
 0x811   :  { %v9290_v60 = vpack.c.bf16 %v1820_v55, %v1812_v54  ;;  %v9400_v48 = vpack.c.bf16 %v1869_v40, %v1861_v38  ;;  %v1877_v54 = vld [vmem:[%s14161_s14 + $0x330] sm:$0xff]  ;;  %v1947_v40 = vld [vmem:[%s14161_s14 + $0x560] sm:$0xff] }
 0x812   :  { %v9404_v63 = vpack.c.bf16 %v1885_v56, %v1877_v54  ;;  %v1963_v56 = vld [vmem:[%s14161_s14 + $0x5e0] sm:$0xff] }
 0x813   :  { %9177 = vmatpush1.bf16.msra.mxu1 %v9176_v19  ;;  %9273 = vmatpush1.bf16.msra.mxu0 %v9272_v20  ;;  %v1828_v19 = vld [vmem:[%s14161_s14 + $0x1a8] sm:$0xff] }
 0x814   :  { %9179 = vmatprep.subr.bf16.mxu1 %v9178_v23  ;;  %9275 = vmatprep.subr.bf16.mxu0 %v9274_v2  ;;  %v1836_v20 = vld [vmem:[%s14161_s14 + $0x1e8] sm:$0xff]  ;;  %v9388_v23 = vpack.c.bf16 %v1821_v30, %v1813_v16  ;;  %v1899_v30 = vld [vmem:[%s14161_s14 + $0x3e0] sm:$0xff] }
 0x815   :  { %v9294_v2 = vpack.c.bf16 %v1836_v20, %v1828_v19  ;;  %v1893_v19 = vld [vmem:[%s14161_s14 + $0x3b0] sm:$0xff] }
 0x817   :  { %9181 = vmatpush1.bf16.msra.mxu1 %v9180_v9  ;;  %9277 = vmatpush1.bf16.msra.mxu0 %v9276_v10  ;;  %v1852_v9 = vld [vmem:[%s14161_s14 + $0x268] sm:$0xff]  ;;  %v1846_v10 = vld [vmem:[%s14161_s14 + $0x238] sm:$0xff] }
 0x818   :  { %9183 = vmatprep.subr.bf16.mxu1 %v9182_v13  ;;  %9279 = vmatprep.subr.bf16.mxu0 %v9278_v14  ;;  %v9392_v13 = vpack.c.bf16 %v1837_v7, %v1829_v5  ;;  %v9298_v14 = vpack.c.bf16 %v1852_v9, %v1844_v8  ;;  %v9394_v24 = vpack.c.bf16 %v1854_v11, %v1846_v10  ;;  %v1915_v7 = vld [vmem:[%s14161_s14 + $0x460] sm:$0xff]  ;;  %v1909_v8 = vld [vmem:[%s14161_s14 + $0x430] sm:$0xff]  ;;  %v1924_v11 = vld [vmem:[%s14161_s14 + $0x4a8] sm:$0xff] }
 0x819   :  { %v1917_v10 = vld [vmem:[%s14161_s14 + $0x470] sm:$0xff] }
 0x81b   :  { %9185 = vmatpush1.bf16.msra.mxu1 %v9184_v28  ;;  %9281 = vmatpush1.bf16.msra.mxu0 %v9280_v31  ;;  %v1868_v28 = vld [vmem:[%s14161_s14 + $0x2e8] sm:$0xff]  ;;  %v1862_v31 = vld [vmem:[%s14161_s14 + $0x2b8] sm:$0xff] }
 0x81c   :  { %9283 = vmatprep.subr.bf16.mxu1 %v9282_v33  ;;  %9379 = vmatprep.subr.bf16.mxu0 %v9378_v34  ;;  %v1870_v33 = vld [vmem:[%s14161_s14 + $0x2f8] sm:$0xff]  ;;  %v9300_v34 = vpack.c.bf16 %v1851_v47, %v1843_v15  ;;  %v9302_v50 = vpack.c.bf16 %v1868_v28, %v1860_v42  ;;  %v9412_v47 = vpack.c.bf16 %v1917_v10, %v1909_v8  ;;  %v1925_v42 = vld [vmem:[%s14161_s14 + $0x4b0] sm:$0xff]  ;;  %v1995_v10 = vld [vmem:[%s14161_s14 + $0x6e0] sm:$0xff] }
 0x81d   :  { %v9398_v39 = vpack.c.bf16 %v1870_v33, %v1862_v31  ;;  %v1933_v31 = vld [vmem:[%s14161_s14 + $0x4f0] sm:$0xff]  ;;  %v1940_v33 = vld [vmem:[%s14161_s14 + $0x528] sm:$0xff] }
 0x81e   :  { %2337 = vmatmul.mubr.f32.vlgmr.msra.gmra.mrb[82].mxu1 %v12227_v22  ;;  %2479 = vmatmul.mubr.f32.vlgmr.msra.gmra.mrb[98].mxu0 %v12227_v22  ;;  %v9416_v37 = vpack.c.bf16 %v1933_v31, %v1925_v42  ;;  %v2011_v31 = vld [vmem:[%s14161_s14 + $0x760] sm:$0xff] }
 0x81f   :  { %9285 = vmatpush1.bf16.msra.mxu1 %v9284_v41  ;;  %2549 = vmatprep.mubr.f32.mxu1 %v12222_v18  ;;  %v1884_v41 = vld [vmem:[%s14161_s14 + $0x368] sm:$0xff] }
 0x820   :  { %9381 = vmatpush1.bf16.msra.mxu0 %v9380_v43  ;;  %2691 = vmatprep.mubr.f32.mxu0 %v12222_v18  ;;  %v1838_v18 = vld [vmem:[%s14161_s14 + $0x1f8] sm:$0xff] }
 0x821   :  { %9287 = vmatprep.subr.bf16.mxu1 %v9286_v49  ;;  %9383 = vmatprep.subr.bf16.mxu0 %v9382_v51  ;;  %v9390_v6 = vpack.c.bf16 %v1838_v18, %v1830_v21  ;;  %v1878_v43 = vld [vmem:[%s14161_s14 + $0x338] sm:$0xff]  ;;  %v9306_v49 = vpack.c.bf16 %v1884_v41, %v1876_v52  ;;  %v1875_v51 = vld [vmem:[%s14161_s14 + $0x320] sm:$0xff]  ;;  %v1901_v21 = vld [vmem:[%s14161_s14 + $0x3f0] sm:$0xff] }
 0x822   :  { %v9402_v55 = vpack.c.bf16 %v1886_v44, %v1878_v43  ;;  %v9308_v62 = vpack.c.bf16 %v1883_v53, %v1875_v51  ;;  %v1908_v18 = vld [vmem:[%s14161_s14 + $0x428] sm:$0xff]  ;;  %v9408_v4 = vpack.c.bf16 %v1901_v21, %v1893_v19  ;;  %v1941_v52 = vld [vmem:[%s14161_s14 + $0x530] sm:$0xff]  ;;  %v1979_v21 = vld [vmem:[%s14161_s14 + $0x660] sm:$0xff] }
 0x823   :  { %9289 = vmatpush1.bf16.msra.mxu1 %v9288_v58  ;;  %v1900_v58 = vld [vmem:[%s14161_s14 + $0x3e8] sm:$0xff]  ;;  %v1949_v43 = vld [vmem:[%s14161_s14 + $0x570] sm:$0xff] }
 0x824   :  { %9385 = vmatpush1.bf16.msra.mxu0 %v9384_v59  ;;  %9291 = vmatprep.subr.bf16.mxu1 %v9290_v60  ;;  %v1894_v59 = vld [vmem:[%s14161_s14 + $0x3b8] sm:$0xff]  ;;  %v9310_v16 = vpack.c.bf16 %v1900_v58, %v1892_v57  ;;  %v1956_v44 = vld [vmem:[%s14161_s14 + $0x5a8] sm:$0xff]  ;;  %v9420_v53 = vpack.c.bf16 %v1949_v43, %v1941_v52  ;;  %v1957_v57 = vld [vmem:[%s14161_s14 + $0x5b0] sm:$0xff] }
 0x825   :  { %9387 = vmatprep.subr.bf16.mxu0 %v9386_v17  ;;  %v1902_v60 = vld [vmem:[%s14161_s14 + $0x3f8] sm:$0xff]  ;;  %v1891_v17 = vld [vmem:[%s14161_s14 + $0x3a0] sm:$0xff] }
 0x826   :  { %v9406_v20 = vpack.c.bf16 %v1902_v60, %v1894_v59  ;;  %v9312_v3 = vpack.c.bf16 %v1899_v30, %v1891_v17  ;;  %v1965_v59 = vld [vmem:[%s14161_s14 + $0x5f0] sm:$0xff]  ;;  %v1972_v60 = vld [vmem:[%s14161_s14 + $0x628] sm:$0xff]  ;;  %v2027_v43 = vld [vmem:[%s14161_s14 + $0x7e0] sm:$0xff] }
 0x827   :  { %9293 = vmatpush1.bf16.msra.mxu1 %v9292_v32  ;;  %v1916_v32 = vld [vmem:[%s14161_s14 + $0x468] sm:$0xff]  ;;  %v9424_v30 = vpack.c.bf16 %v1965_v59, %v1957_v57  ;;  %v2043_v59 = vld [vmem:[%s14161_s14 + $0x860] sm:$0xff] }
 0x828   :  { %9389 = vmatpush1.bf16.msra.mxu0 %v9388_v23  ;;  %9295 = vmatprep.subr.bf16.mxu1 %v9294_v2  ;;  %v1910_v23 = vld [vmem:[%s14161_s14 + $0x438] sm:$0xff]  ;;  %v9314_v5 = vpack.c.bf16 %v1916_v32, %v1908_v18  ;;  %v1973_v18 = vld [vmem:[%s14161_s14 + $0x630] sm:$0xff] }
 0x829   :  { %9391 = vmatprep.subr.bf16.mxu0 %v9390_v6  ;;  %v1918_v2 = vld [vmem:[%s14161_s14 + $0x478] sm:$0xff]  ;;  %v1907_v6 = vld [vmem:[%s14161_s14 + $0x420] sm:$0xff] }
 0x82a   :  { %v9410_v9 = vpack.c.bf16 %v1918_v2, %v1910_v23  ;;  %v9316_v15 = vpack.c.bf16 %v1915_v7, %v1907_v6  ;;  %v1981_v23 = vld [vmem:[%s14161_s14 + $0x670] sm:$0xff]  ;;  %v1988_v2 = vld [vmem:[%s14161_s14 + $0x6a8] sm:$0xff] }
 0x82b   :  { %9297 = vmatpush1.bf16.msra.mxu1 %v9296_v12  ;;  %v1932_v12 = vld [vmem:[%s14161_s14 + $0x4e8] sm:$0xff]  ;;  %v9428_v7 = vpack.c.bf16 %v1981_v23, %v1973_v18  ;;  %v2059_v23 = vld [vmem:[%s14161_s14 + $0x8e0] sm:$0xff] }
 0x82c   :  { %9393 = vmatpush1.bf16.msra.mxu0 %v9392_v13  ;;  %9299 = vmatprep.subr.bf16.mxu1 %v9298_v14  ;;  %v1926_v13 = vld [vmem:[%s14161_s14 + $0x4b8] sm:$0xff]  ;;  %v9318_v0 = vpack.c.bf16 %v1932_v12, %v1924_v11  ;;  %v1989_v11 = vld [vmem:[%s14161_s14 + $0x6b0] sm:$0xff] }
 0x82d   :  { %9395 = vmatprep.subr.bf16.mxu0 %v9394_v24  ;;  %v1934_v14 = vld [vmem:[%s14161_s14 + $0x4f8] sm:$0xff]  ;;  %v1923_v24 = vld [vmem:[%s14161_s14 + $0x4a0] sm:$0xff] }
 0x82e   :  { %v9414_v28 = vpack.c.bf16 %v1934_v14, %v1926_v13  ;;  %v9320_v36 = vpack.c.bf16 %v1931_v25, %v1923_v24  ;;  %v1997_v13 = vld [vmem:[%s14161_s14 + $0x6f0] sm:$0xff]  ;;  %v2004_v14 = vld [vmem:[%s14161_s14 + $0x728] sm:$0xff] }
 0x82f   :  { %9301 = vmatpush1.bf16.msra.mxu1 %v9300_v34  ;;  %v1948_v34 = vld [vmem:[%s14161_s14 + $0x568] sm:$0xff]  ;;  %v9432_v25 = vpack.c.bf16 %v1997_v13, %v1989_v11  ;;  %v2075_v13 = vld [vmem:[%s14161_s14 + $0x960] sm:$0xff] }
 0x830   :  { %9397 = vmatpush1.bf16.msra.mxu0 %v9396_v35  ;;  %9303 = vmatprep.subr.bf16.mxu1 %v9302_v50  ;;  %v1942_v35 = vld [vmem:[%s14161_s14 + $0x538] sm:$0xff]  ;;  %v9322_v38 = vpack.c.bf16 %v1948_v34, %v1940_v33  ;;  %v2005_v33 = vld [vmem:[%s14161_s14 + $0x730] sm:$0xff] }
 0x831   :  { %9399 = vmatprep.subr.bf16.mxu0 %v9398_v39  ;;  %v1950_v50 = vld [vmem:[%s14161_s14 + $0x578] sm:$0xff]  ;;  %v1939_v39 = vld [vmem:[%s14161_s14 + $0x520] sm:$0xff] }
 0x832   :  { %v9418_v41 = vpack.c.bf16 %v1950_v50, %v1942_v35  ;;  %v9324_v51 = vpack.c.bf16 %v1947_v40, %v1939_v39  ;;  %v2013_v35 = vld [vmem:[%s14161_s14 + $0x770] sm:$0xff]  ;;  %v2020_v50 = vld [vmem:[%s14161_s14 + $0x7a8] sm:$0xff] }
 0x833   :  { %9305 = vmatpush1.bf16.msra.mxu1 %v9304_v45  ;;  %v1964_v45 = vld [vmem:[%s14161_s14 + $0x5e8] sm:$0xff]  ;;  %v9436_v40 = vpack.c.bf16 %v2013_v35, %v2005_v33  ;;  %v2083_v33 = vld [vmem:[%s14161_s14 + $0x9a0] sm:$0xff]  ;;  %v2085_v35 = vld [vmem:[%s14161_s14 + $0x9b0] sm:$0xff] }
 0x834   :  { %9401 = vmatpush1.bf16.msra.mxu0 %v9400_v48  ;;  %9307 = vmatprep.subr.bf16.mxu1 %v9306_v49  ;;  %v1958_v48 = vld [vmem:[%s14161_s14 + $0x5b8] sm:$0xff]  ;;  %v9326_v54 = vpack.c.bf16 %v1964_v45, %v1956_v44  ;;  %v2021_v44 = vld [vmem:[%s14161_s14 + $0x7b0] sm:$0xff] }
 0x835   :  { %9403 = vmatprep.subr.bf16.mxu0 %v9402_v55  ;;  %v1966_v49 = vld [vmem:[%s14161_s14 + $0x5f8] sm:$0xff]  ;;  %v1955_v55 = vld [vmem:[%s14161_s14 + $0x5a0] sm:$0xff] }
 0x836   :  { %v9422_v58 = vpack.c.bf16 %v1966_v49, %v1958_v48  ;;  %v9328_v17 = vpack.c.bf16 %v1963_v56, %v1955_v55  ;;  %v2029_v48 = vld [vmem:[%s14161_s14 + $0x7f0] sm:$0xff]  ;;  %v2036_v49 = vld [vmem:[%s14161_s14 + $0x828] sm:$0xff] }
 0x837   :  { %9309 = vmatpush1.bf16.msra.mxu1 %v9308_v62  ;;  %v1980_v62 = vld [vmem:[%s14161_s14 + $0x668] sm:$0xff]  ;;  %v9440_v56 = vpack.c.bf16 %v2029_v48, %v2021_v44  ;;  %v2099_v44 = vld [vmem:[%s14161_s14 + $0xa20] sm:$0xff]  ;;  %v2101_v48 = vld [vmem:[%s14161_s14 + $0xa30] sm:$0xff] }
 0x838   :  { %9405 = vmatpush1.bf16.msra.mxu0 %v9404_v63  ;;  %9311 = vmatprep.subr.bf16.mxu1 %v9310_v16  ;;  %v1974_v63 = vld [vmem:[%s14161_s14 + $0x638] sm:$0xff]  ;;  %v9330_v19 = vpack.c.bf16 %v1980_v62, %v1972_v60  ;;  %v2037_v60 = vld [vmem:[%s14161_s14 + $0x830] sm:$0xff] }
 0x839   :  { %9407 = vmatprep.subr.bf16.mxu0 %v9406_v20  ;;  %v1982_v16 = vld [vmem:[%s14161_s14 + $0x678] sm:$0xff]  ;;  %v1971_v20 = vld [vmem:[%s14161_s14 + $0x620] sm:$0xff] }
 0x83a   :  { %v9426_v32 = vpack.c.bf16 %v1982_v16, %v1974_v63  ;;  %v9332_v6 = vpack.c.bf16 %v1979_v21, %v1971_v20  ;;  %v2045_v63 = vld [vmem:[%s14161_s14 + $0x870] sm:$0xff]  ;;  %v2052_v16 = vld [vmem:[%s14161_s14 + $0x8a8] sm:$0xff] }
 0x83b   :  { %9313 = vmatpush1.bf16.msra.mxu1 %v9312_v3  ;;  %v1996_v3 = vld [vmem:[%s14161_s14 + $0x6e8] sm:$0xff]  ;;  %v9444_v21 = vpack.c.bf16 %v2045_v63, %v2037_v60  ;;  %v2115_v60 = vld [vmem:[%s14161_s14 + $0xaa0] sm:$0xff]  ;;  %v2117_v63 = vld [vmem:[%s14161_s14 + $0xab0] sm:$0xff] }
 0x83c   :  { %9409 = vmatpush1.bf16.msra.mxu0 %v9408_v4  ;;  %9315 = vmatprep.subr.bf16.mxu1 %v9314_v5  ;;  %v1990_v4 = vld [vmem:[%s14161_s14 + $0x6b8] sm:$0xff]  ;;  %v9334_v8 = vpack.c.bf16 %v1996_v3, %v1988_v2  ;;  %v2053_v2 = vld [vmem:[%s14161_s14 + $0x8b0] sm:$0xff] }
 0x83d   :  { %9411 = vmatprep.subr.bf16.mxu0 %v9410_v9  ;;  %v1998_v5 = vld [vmem:[%s14161_s14 + $0x6f8] sm:$0xff]  ;;  %v1987_v9 = vld [vmem:[%s14161_s14 + $0x6a0] sm:$0xff] }
 0x83e   :  { %v9430_v12 = vpack.c.bf16 %v1998_v5, %v1990_v4  ;;  %v9336_v24 = vpack.c.bf16 %v1995_v10, %v1987_v9  ;;  %v2061_v4 = vld [vmem:[%s14161_s14 + $0x8f0] sm:$0xff]  ;;  %v2068_v5 = vld [vmem:[%s14161_s14 + $0x928] sm:$0xff] }
 0x83f   :  { %9317 = vmatpush1.bf16.msra.mxu1 %v9316_v15  ;;  %v2012_v15 = vld [vmem:[%s14161_s14 + $0x768] sm:$0xff]  ;;  %v9448_v10 = vpack.c.bf16 %v2061_v4, %v2053_v2  ;;  %v2131_v2 = vld [vmem:[%s14161_s14 + $0xb20] sm:$0xff]  ;;  %v2133_v4 = vld [vmem:[%s14161_s14 + $0xb30] sm:$0xff] }
 0x840   :  { %9413 = vmatpush1.bf16.msra.mxu0 %v9412_v47  ;;  %9319 = vmatprep.subr.bf16.mxu1 %v9318_v0  ;;  %v2006_v47 = vld [vmem:[%s14161_s14 + $0x738] sm:$0xff]  ;;  %v9338_v42 = vpack.c.bf16 %v2012_v15, %v2004_v14  ;;  %v2069_v14 = vld [vmem:[%s14161_s14 + $0x930] sm:$0xff] }
 0x841   :  { %9415 = vmatprep.subr.bf16.mxu0 %v9414_v28  ;;  %v2014_v0 = vld [vmem:[%s14161_s14 + $0x778] sm:$0xff]  ;;  %v2003_v28 = vld [vmem:[%s14161_s14 + $0x720] sm:$0xff] }
 0x842   :  { %v9434_v34 = vpack.c.bf16 %v2014_v0, %v2006_v47  ;;  %v9340_v39 = vpack.c.bf16 %v2011_v31, %v2003_v28  ;;  %v2077_v47 = vld [vmem:[%s14161_s14 + $0x970] sm:$0xff]  ;;  %v2084_v0 = vld [vmem:[%s14161_s14 + $0x9a8] sm:$0xff] }
 0x843   :  { %9321 = vmatpush1.bf16.msra.mxu1 %v9320_v36  ;;  %v2028_v36 = vld [vmem:[%s14161_s14 + $0x7e8] sm:$0xff]  ;;  %v9452_v28 = vpack.c.bf16 %v2077_v47, %v2069_v14  ;;  %v2147_v14 = vld [vmem:[%s14161_s14 + $0xba0] sm:$0xff]  ;;  %v2149_v47 = vld [vmem:[%s14161_s14 + $0xbb0] sm:$0xff] }
 0x844   :  { %9417 = vmatpush1.bf16.msra.mxu0 %v9416_v37  ;;  %9323 = vmatprep.subr.bf16.mxu1 %v9322_v38  ;;  %v2022_v37 = vld [vmem:[%s14161_s14 + $0x7b8] sm:$0xff]  ;;  %v9342_v52 = vpack.c.bf16 %v2028_v36, %v2020_v50  ;;  %v2093_v36 = vld [vmem:[%s14161_s14 + $0x9f0] sm:$0xff] }
 0x845   :  { %9419 = vmatprep.subr.bf16.mxu0 %v9418_v41  ;;  %v2030_v38 = vld [vmem:[%s14161_s14 + $0x7f8] sm:$0xff]  ;;  %v2019_v41 = vld [vmem:[%s14161_s14 + $0x7a0] sm:$0xff] }
 0x846   :  { %v9438_v45 = vpack.c.bf16 %v2030_v38, %v2022_v37  ;;  %v9344_v55 = vpack.c.bf16 %v2027_v43, %v2019_v41  ;;  %v2100_v37 = vld [vmem:[%s14161_s14 + $0xa28] sm:$0xff]  ;;  %v9456_v41 = vpack.c.bf16 %v2093_v36, %v2085_v35  ;;  %v2777_v35 = vld [vmem:[%s14163_s22] sm:$0xff] }
 0x847   :  { %9325 = vmatpush1.bf16.msra.mxu1 %v9324_v51  ;;  %v2044_v51 = vld [vmem:[%s14161_s14 + $0x868] sm:$0xff]  ;;  %v2809_v36 = vld [vmem:[%s14163_s22 + $0x100] sm:$0xff] }
 0x848   :  { %9421 = vmatpush1.bf16.msra.mxu0 %v9420_v53  ;;  %9327 = vmatprep.subr.bf16.mxu1 %v9326_v54  ;;  %v2038_v53 = vld [vmem:[%s14161_s14 + $0x838] sm:$0xff]  ;;  %v9346_v57 = vpack.c.bf16 %v2044_v51, %v2036_v49  ;;  %v2108_v38 = vld [vmem:[%s14161_s14 + $0xa68] sm:$0xff]  ;;  %v2109_v51 = vld [vmem:[%s14161_s14 + $0xa70] sm:$0xff] }
 0x849   :  { %9423 = vmatprep.subr.bf16.mxu0 %v9422_v58  ;;  %v2046_v54 = vld [vmem:[%s14161_s14 + $0x878] sm:$0xff]  ;;  %v2035_v58 = vld [vmem:[%s14161_s14 + $0x820] sm:$0xff]  ;;  %v9362_v43 = vpack.c.bf16 %v2108_v38, %v2100_v37  ;;  %v2810_v38 = vld [vmem:[%s14163_s22 + $0x108] sm:$0xff] }
 0x84a   :  { %v9442_v62 = vpack.c.bf16 %v2046_v54, %v2038_v53  ;;  %v9348_v20 = vpack.c.bf16 %v2043_v59, %v2035_v58  ;;  %v2116_v53 = vld [vmem:[%s14161_s14 + $0xaa8] sm:$0xff]  ;;  %v9460_v58 = vpack.c.bf16 %v2109_v51, %v2101_v48  ;;  %v2779_v48 = vld [vmem:[%s14163_s22 + $0x10] sm:$0xff] }
 0x84b   :  { %9329 = vmatpush1.bf16.msra.mxu1 %v9328_v17  ;;  %v2060_v17 = vld [vmem:[%s14161_s14 + $0x8e8] sm:$0xff]  ;;  %v2811_v51 = vld [vmem:[%s14163_s22 + $0x110] sm:$0xff] }
 0x84c   :  { %9425 = vmatpush1.bf16.msra.mxu0 %v9424_v30  ;;  %9331 = vmatprep.subr.bf16.mxu1 %v9330_v19  ;;  %v2054_v30 = vld [vmem:[%s14161_s14 + $0x8b8] sm:$0xff]  ;;  %v9350_v18 = vpack.c.bf16 %v2060_v17, %v2052_v16  ;;  %v2124_v54 = vld [vmem:[%s14161_s14 + $0xae8] sm:$0xff]  ;;  %v2125_v17 = vld [vmem:[%s14161_s14 + $0xaf0] sm:$0xff] }
 0x84d   :  { %9427 = vmatprep.subr.bf16.mxu0 %v9426_v32  ;;  %v2062_v19 = vld [vmem:[%s14161_s14 + $0x8f8] sm:$0xff]  ;;  %v2051_v32 = vld [vmem:[%s14161_s14 + $0x8a0] sm:$0xff]  ;;  %v9366_v59 = vpack.c.bf16 %v2124_v54, %v2116_v53 }
 0x84e   :  { %v9446_v3 = vpack.c.bf16 %v2062_v19, %v2054_v30  ;;  %v9352_v9 = vpack.c.bf16 %v2059_v23, %v2051_v32  ;;  %v2132_v30 = vld [vmem:[%s14161_s14 + $0xb28] sm:$0xff]  ;;  %v9464_v32 = vpack.c.bf16 %v2125_v17, %v2117_v63  ;;  %v2812_v54 = vld [vmem:[%s14163_s22 + $0x118] sm:$0xff]  ;;  %v2781_v63 = vld [vmem:[%s14163_s22 + $0x20] sm:$0xff] }
 0x84f   :  { %9333 = vmatpush1.bf16.msra.mxu1 %v9332_v6  ;;  %v2076_v6 = vld [vmem:[%s14161_s14 + $0x968] sm:$0xff]  ;;  %v2813_v17 = vld [vmem:[%s14163_s22 + $0x120] sm:$0xff] }
 0x850   :  { %9429 = vmatpush1.bf16.msra.mxu0 %v9428_v7  ;;  %9335 = vmatprep.subr.bf16.mxu1 %v9334_v8  ;;  %v2070_v7 = vld [vmem:[%s14161_s14 + $0x938] sm:$0xff]  ;;  %v9354_v11 = vpack.c.bf16 %v2076_v6, %v2068_v5  ;;  %v2140_v19 = vld [vmem:[%s14161_s14 + $0xb68] sm:$0xff]  ;;  %v2141_v6 = vld [vmem:[%s14161_s14 + $0xb70] sm:$0xff] }
 0x851   :  { %9431 = vmatprep.subr.bf16.mxu0 %v9430_v12  ;;  %v2078_v8 = vld [vmem:[%s14161_s14 + $0x978] sm:$0xff]  ;;  %v2067_v12 = vld [vmem:[%s14161_s14 + $0x920] sm:$0xff]  ;;  %v9370_v23 = vpack.c.bf16 %v2140_v19, %v2132_v30  ;;  %v2814_v19 = vld [vmem:[%s14163_s22 + $0x128] sm:$0xff] }
 0x852   :  { %v9450_v15 = vpack.c.bf16 %v2078_v8, %v2070_v7  ;;  %v2148_v7 = vld [vmem:[%s14161_s14 + $0xba8] sm:$0xff] }
 0x853   :  { %9337 = vmatpush1.bf16.msra.mxu1 %v9336_v24  ;;  %v2092_v24 = vld [vmem:[%s14161_s14 + $0x9e8] sm:$0xff] }
 0x854   :  { %9433 = vmatpush1.bf16.msra.mxu0 %v9432_v25  ;;  %9339 = vmatprep.subr.bf16.mxu1 %v9338_v42  ;;  %v2094_v25 = vld [vmem:[%s14161_s14 + $0x9f8] sm:$0xff]  ;;  %v9356_v42 = vpack.c.bf16 %v2075_v13, %v2067_v12  ;;  %v9358_v31 = vpack.c.bf16 %v2092_v24, %v2084_v0  ;;  %v2156_v8 = vld [vmem:[%s14161_s14 + $0xbe8] sm:$0xff]  ;;  %v9468_v12 = vpack.c.bf16 %v2141_v6, %v2133_v4  ;;  %v2157_v24 = vld [vmem:[%s14161_s14 + $0xbf0] sm:$0xff] }
 0x855   :  { %9435 = vmatprep.subr.bf16.mxu0 %v9434_v34  ;;  %v2091_v34 = vld [vmem:[%s14161_s14 + $0x9e0] sm:$0xff]  ;;  %v9374_v13 = vpack.c.bf16 %v2156_v8, %v2148_v7  ;;  %v2784_v4 = vld [vmem:[%s14163_s22 + $0x38] sm:$0xff] }
 0x856   :  { %v2816_v7 = vld [vmem:[%s14163_s22 + $0x138] sm:$0xff]  ;;  %v2801_v8 = vld [vmem:[%s14163_s22 + $0xc0] sm:$0xff] }
 0x857   :  { %9341 = vmatpush1.bf16.msra.mxu1 %v9340_v39  ;;  %v2102_v39 = vld [vmem:[%s14161_s14 + $0xa38] sm:$0xff] }
 0x858   :  { %9437 = vmatpush1.bf16.msra.mxu0 %v9436_v40  ;;  %9343 = vmatprep.subr.bf16.mxu1 %v9342_v52  ;;  %v2110_v40 = vld [vmem:[%s14161_s14 + $0xa78] sm:$0xff]  ;;  %v9360_v52 = vpack.c.bf16 %v2091_v34, %v2083_v33  ;;  %v9472_v33 = vpack.c.bf16 %v2157_v24, %v2149_v47  ;;  %v2786_v47 = vld [vmem:[%s14163_s22 + $0x48] sm:$0xff] }
 0x859   :  { %9439 = vmatprep.subr.bf16.mxu0 %v9438_v45  ;;  %v2107_v45 = vld [vmem:[%s14161_s14 + $0xa60] sm:$0xff]  ;;  %v9458_v49 = vpack.c.bf16 %v2110_v40, %v2102_v39  ;;  %v2795_v39 = vld [vmem:[%s14163_s22 + $0x90] sm:$0xff]  ;;  %v2796_v40 = vld [vmem:[%s14163_s22 + $0x98] sm:$0xff] }
 0x85b   :  { %9345 = vmatpush1.bf16.msra.mxu1 %v9344_v55  ;;  %v2118_v55 = vld [vmem:[%s14161_s14 + $0xab8] sm:$0xff] }
 0x85c   :  { %9441 = vmatpush1.bf16.msra.mxu0 %v9440_v56  ;;  %9347 = vmatprep.subr.bf16.mxu1 %v9346_v57  ;;  %v2126_v56 = vld [vmem:[%s14161_s14 + $0xaf8] sm:$0xff]  ;;  %v9364_v57 = vpack.c.bf16 %v2107_v45, %v2099_v44  ;;  %v9508_v44 = vpack.c.bf16 %v2810_v38, %v2809_v36  ;;  %v9478_v45 = vpack.c.bf16 %v2796_v40, %v2795_v39  ;;  %v2805_v40 = vld [vmem:[%s14163_s22 + $0xe0] sm:$0xff] }
 0x85d   :  { %9443 = vmatprep.subr.bf16.mxu0 %v9442_v62  ;;  %v2123_v62 = vld [vmem:[%s14161_s14 + $0xae0] sm:$0xff]  ;;  %v9462_v16 = vpack.c.bf16 %v2126_v56, %v2118_v55  ;;  %v2798_v56 = vld [vmem:[%s14163_s22 + $0xa8] sm:$0xff]  ;;  %v2788_v36 = vld [vmem:[%s14163_s22 + $0x58] sm:$0xff] }
 0x85e   :  { %2550 = vmatmul.mubr.f32.vlgmr.msra.gmra.mrb[84].mxu1 %v12218_v61  ;;  %v2797_v55 = vld [vmem:[%s14163_s22 + $0xa0] sm:$0xff]  ;;  %v2820_v39 = vld [vmem:[%s14163_s22 + $0x158] sm:$0xff] }
 0x85f   :  { %2692 = vmatmul.mubr.f32.vlgmr.msra.gmra.mrb[100].mxu0 %v12218_v61  ;;  %9349 = vmatpush1.bf16.msra.mxu1 %v9348_v20  ;;  %v2086_v61 = vld [vmem:[%s14161_s14 + $0x9b8] sm:$0xff] }
 0x860   :  { %9445 = vmatpush1.bf16.msra.mxu0 %v9444_v21  ;;  %9351 = vmatprep.subr.bf16.mxu1 %v9350_v18  ;;  %v9454_v50 = vpack.c.bf16 %v2094_v25, %v2086_v61  ;;  %v2134_v20 = vld [vmem:[%s14161_s14 + $0xb38] sm:$0xff]  ;;  %v9368_v18 = vpack.c.bf16 %v2123_v62, %v2115_v60  ;;  %v2793_v61 = vld [vmem:[%s14163_s22 + $0x80] sm:$0xff]  ;;  %v2794_v25 = vld [vmem:[%s14163_s22 + $0x88] sm:$0xff]  ;;  %v9512_v60 = vpack.c.bf16 %v2812_v54, %v2811_v51 }
 0x861   :  { %9447 = vmatprep.subr.bf16.mxu0 %v9446_v3  ;;  %2620 = vmatprep.mubr.f32.mxu1 %v11531_v1  ;;  %v2142_v21 = vld [vmem:[%s14161_s14 + $0xb78] sm:$0xff]  ;;  %v2139_v3 = vld [vmem:[%s14161_s14 + $0xb60] sm:$0xff]  ;;  %v9474_v34 = vpack.c.bf16 %v2794_v25, %v2793_v61  ;;  %v9482_v62 = vpack.c.bf16 %v2798_v56, %v2797_v55  ;;  %v2818_v61 = vld [vmem:[%s14163_s22 + $0x148] sm:$0xff] }
 0x862   :  { %2762 = vmatprep.mubr.f32.mxu0 %v11531_v1  ;;  %v9466_v5 = vpack.c.bf16 %v2142_v21, %v2134_v20  ;;  %v2799_v20 = vld [vmem:[%s14163_s22 + $0xb0] sm:$0xff]  ;;  %v2790_v51 = vld [vmem:[%s14163_s22 + $0x68] sm:$0xff] }
 0x863   :  { %9353 = vmatpush1.bf16.msra.mxu1 %v9352_v9  ;;  %v2150_v9 = vld [vmem:[%s14161_s14 + $0xbb8] sm:$0xff]  ;;  %v2831_v21 = vld [vmem:[%s14163_s22 + $0x1b0] sm:$0xff]  ;;  %v2822_v55 = vld [vmem:[%s14163_s22 + $0x168] sm:$0xff] }
 0x864   :  { %9449 = vmatpush1.bf16.msra.mxu0 %v9448_v10  ;;  %9355 = vmatprep.subr.bf16.mxu1 %v9354_v11  ;;  %v2158_v10 = vld [vmem:[%s14161_s14 + $0xbf8] sm:$0xff]  ;;  %v9372_v11 = vpack.c.bf16 %v2139_v3, %v2131_v2  ;;  %v2783_v3 = vld [vmem:[%s14163_s22 + $0x30] sm:$0xff] }
 0x865   :  { %9451 = vmatprep.subr.bf16.mxu0 %v9450_v15  ;;  %v2155_v15 = vld [vmem:[%s14161_s14 + $0xbe0] sm:$0xff]  ;;  %v9470_v0 = vpack.c.bf16 %v2158_v10, %v2150_v9  ;;  %v2802_v9 = vld [vmem:[%s14163_s22 + $0xc8] sm:$0xff]  ;;  %v2803_v25 = vld [vmem:[%s14163_s22 + $0xd0] sm:$0xff] }
 0x866   :  { %v2833_v10 = vld [vmem:[%s14163_s22 + $0x1c0] sm:$0xff]  ;;  %v2807_v56 = vld [vmem:[%s14163_s22 + $0xf0] sm:$0xff] }
 0x867   :  { %9357 = vmatpush1.bf16.msra.mxu1 %v9356_v42  ;;  %v2825_v42 = vld [vmem:[%s14163_s22 + $0x180] sm:$0xff] }
 0x868   :  { %9453 = vmatpush1.bf16.msra.mxu0 %v9452_v28  ;;  %9359 = vmatprep.subr.bf16.mxu1 %v9358_v31  ;;  %v2826_v28 = vld [vmem:[%s14163_s22 + $0x188] sm:$0xff]  ;;  %v9376_v31 = vpack.c.bf16 %v2155_v15, %v2147_v14  ;;  %v9490_v14 = vpack.c.bf16 %v2802_v9, %v2801_v8  ;;  %v2785_v15 = vld [vmem:[%s14163_s22 + $0x40] sm:$0xff] }
 0x869   :  { %9455 = vmatprep.subr.bf16.mxu0 %v9454_v50  ;;  %v2778_v50 = vld [vmem:[%s14163_s22 + $0x8] sm:$0xff]  ;;  %v9506_v37 = vpack.c.bf16 %v2826_v28, %v2825_v42  ;;  %v2804_v42 = vld [vmem:[%s14163_s22 + $0xd8] sm:$0xff]  ;;  %v2835_v28 = vld [vmem:[%s14163_s22 + $0x1d0] sm:$0xff] }
 0x86b   :  { %9361 = vmatpush1.bf16.msra.mxu1 %v9360_v52  ;;  %v2827_v52 = vld [vmem:[%s14163_s22 + $0x190] sm:$0xff] }
 0x86c   :  { %9457 = vmatpush1.bf16.msra.mxu0 %v9456_v41  ;;  %9363 = vmatprep.subr.bf16.mxu1 %v9362_v43  ;;  %v2828_v41 = vld [vmem:[%s14163_s22 + $0x198] sm:$0xff]  ;;  %v9476_v43 = vpack.c.bf16 %v2778_v50, %v2777_v35  ;;  %v9494_v35 = vpack.c.bf16 %v2804_v42, %v2803_v25  ;;  %v2787_v50 = vld [vmem:[%s14163_s22 + $0x50] sm:$0xff]  ;;  %v2874_v25 = vld [vmem:[%s14163_s22 + $0x308] sm:$0xff] }
 0x86d   :  { %9459 = vmatprep.subr.bf16.mxu0 %v9458_v49  ;;  %v2780_v49 = vld [vmem:[%s14163_s22 + $0x18] sm:$0xff]  ;;  %v9510_v53 = vpack.c.bf16 %v2828_v41, %v2827_v52  ;;  %v2806_v52 = vld [vmem:[%s14163_s22 + $0xe8] sm:$0xff]  ;;  %v2837_v41 = vld [vmem:[%s14163_s22 + $0x1e0] sm:$0xff] }
 0x86e   :  { %v2859_v42 = vld [vmem:[%s14163_s22 + $0x290] sm:$0xff] }
 0x86f   :  { %9365 = vmatpush1.bf16.msra.mxu1 %v9364_v57  ;;  %v2829_v57 = vld [vmem:[%s14163_s22 + $0x1a0] sm:$0xff] }
 0x870   :  { %9461 = vmatpush1.bf16.msra.mxu0 %v9460_v58  ;;  %9367 = vmatprep.subr.bf16.mxu1 %v9366_v59  ;;  %v2830_v58 = vld [vmem:[%s14163_s22 + $0x1a8] sm:$0xff]  ;;  %v9480_v59 = vpack.c.bf16 %v2780_v49, %v2779_v48  ;;  %v9498_v48 = vpack.c.bf16 %v2806_v52, %v2805_v40  ;;  %v2789_v49 = vld [vmem:[%s14163_s22 + $0x60] sm:$0xff]  ;;  %v2844_v40 = vld [vmem:[%s14163_s22 + $0x218] sm:$0xff] }
 0x871   :  { %9463 = vmatprep.subr.bf16.mxu0 %v9462_v16  ;;  %v2782_v16 = vld [vmem:[%s14163_s22 + $0x28] sm:$0xff]  ;;  %v9514_v30 = vpack.c.bf16 %v2830_v58, %v2829_v57  ;;  %v2808_v57 = vld [vmem:[%s14163_s22 + $0xf8] sm:$0xff]  ;;  %v2839_v58 = vld [vmem:[%s14163_s22 + $0x1f0] sm:$0xff] }
 0x873   :  { %9369 = vmatpush1.bf16.msra.mxu1 %v9368_v18  ;;  %v2832_v18 = vld [vmem:[%s14163_s22 + $0x1b8] sm:$0xff] }
 0x874   :  { %9465 = vmatpush1.bf16.msra.mxu0 %v9464_v32  ;;  %9371 = vmatprep.subr.bf16.mxu1 %v9370_v23  ;;  %v9484_v32 = vpack.c.bf16 %v2782_v16, %v2781_v63  ;;  %v9516_v23 = vpack.c.bf16 %v2814_v19, %v2813_v17  ;;  %v9518_v6 = vpack.c.bf16 %v2832_v18, %v2831_v21  ;;  %v2791_v16 = vld [vmem:[%s14163_s22 + $0x70] sm:$0xff]  ;;  %v2792_v17 = vld [vmem:[%s14163_s22 + $0x78] sm:$0xff]  ;;  %v2858_v21 = vld [vmem:[%s14163_s22 + $0x288] sm:$0xff] }
 0x875   :  { %9467 = vmatprep.subr.bf16.mxu0 %v9466_v5  ;;  %v2815_v5 = vld [vmem:[%s14163_s22 + $0x130] sm:$0xff]  ;;  %v9502_v63 = vpack.c.bf16 %v2808_v57, %v2807_v56  ;;  %v2889_v18 = vld [vmem:[%s14163_s22 + $0x380] sm:$0xff] }
 0x876   :  { %v2845_v57 = vld [vmem:[%s14163_s22 + $0x220] sm:$0xff] }
 0x877   :  { %9373 = vmatpush1.bf16.msra.mxu1 %v9372_v11  ;;  %v2834_v11 = vld [vmem:[%s14163_s22 + $0x1c8] sm:$0xff] }
 0x878   :  { %9469 = vmatpush1.bf16.msra.mxu0 %v9468_v12  ;;  %9375 = vmatprep.subr.bf16.mxu1 %v9374_v13  ;;  %v9488_v12 = vpack.c.bf16 %v2784_v4, %v2783_v3  ;;  %v9520_v13 = vpack.c.bf16 %v2816_v7, %v2815_v5  ;;  %v9522_v24 = vpack.c.bf16 %v2834_v11, %v2833_v10  ;;  %v12553_v5 = vld [vmem:[%s14164_s23] sm:$0xff] }
 0x879   :  { %9471 = vmatprep.subr.bf16.mxu0 %v9470_v0  ;;  %v2817_v0 = vld [vmem:[%s14163_s22 + $0x140] sm:$0xff]  ;;  %v2164_v7 = vrot.slane %v12553_v5, %v11933_v27  ;;  %v2172_v8 = vrot.slane %v12553_v5, %v12011_v46  ;;  %v2168_v9 = vrot.slane %v12553_v5, %v11936_v29 }
 0x87b   :  { %9377 = vmatpush1.bf16.msra.mxu1 %v9376_v31  ;;  %v2836_v31 = vld [vmem:[%s14163_s22 + $0x1d8] sm:$0xff] }
 0x87c   :  { %9473 = vmatpush1.bf16.msra.mxu0 %v9472_v33  ;;  %9475 = vmatprep.subr.bf16.mxu1 %v9474_v34  ;;  %v9492_v33 = vpack.c.bf16 %v2786_v47, %v2785_v15  ;;  %v9524_v34 = vpack.c.bf16 %v2818_v61, %v2817_v0  ;;  %v9526_v38 = vpack.c.bf16 %v2836_v31, %v2835_v28  ;;  %v2873_v61 = vld [vmem:[%s14163_s22 + $0x300] sm:$0xff] }
 0x87d   :  { %9507 = vmatprep.subr.bf16.mxu0 %v9506_v37  ;;  %v2819_v37 = vld [vmem:[%s14163_s22 + $0x150] sm:$0xff] }
 0x87e   :  { %2621 = vmatmul.mubr.f32.vlgmr.msra.gmra.mrb[84].mxu1 %v12227_v22 }
 0x87f   :  { %2763 = vmatmul.mubr.f32.vlgmr.msra.gmra.mrb[100].mxu0 %v12227_v22  ;;  %9477 = vmatpush3.bf16.msra.mxu1 %v9476_v43  ;;  %v2800_v22 = vld [vmem:[%s14163_s22 + $0xb8] sm:$0xff]  ;;  %v2838_v43 = vld [vmem:[%s14163_s22 + $0x1e8] sm:$0xff] }
 0x880   :  { %9509 = vmatpush3.bf16.msra.mxu0 %v9508_v44  ;;  %9479 = vmatprep.subr.bf16.mxu1 %v9478_v45  ;;  %v9486_v2 = vpack.c.bf16 %v2800_v22, %v2799_v20  ;;  %v9496_v44 = vpack.c.bf16 %v2788_v36, %v2787_v50  ;;  %v9528_v45 = vpack.c.bf16 %v2820_v39, %v2819_v37  ;;  %v2824_v20 = vld [vmem:[%s14163_s22 + $0x178] sm:$0xff]  ;;  %v2857_v22 = vld [vmem:[%s14163_s22 + $0x280] sm:$0xff]  ;;  %v2843_v39 = vld [vmem:[%s14163_s22 + $0x210] sm:$0xff] }
 0x881   :  { %9511 = vmatprep.subr.bf16.mxu0 %v9510_v53  ;;  %v2821_v53 = vld [vmem:[%s14163_s22 + $0x160] sm:$0xff]  ;;  %v9530_v54 = vpack.c.bf16 %v2838_v43, %v2837_v41  ;;  %v9538_v3 = vpack.c.bf16 %v2858_v21, %v2857_v22  ;;  %v2847_v21 = vld [vmem:[%s14163_s22 + $0x230] sm:$0xff] }
 0x883   :  { %9481 = vmatpush3.bf16.msra.mxu1 %v9480_v59  ;;  %v2840_v59 = vld [vmem:[%s14163_s22 + $0x1f8] sm:$0xff] }
 0x884   :  { %9513 = vmatpush3.bf16.msra.mxu0 %v9512_v60  ;;  %9483 = vmatprep.subr.bf16.mxu1 %v9482_v62  ;;  %v9500_v60 = vpack.c.bf16 %v2790_v51, %v2789_v49  ;;  %v9532_v62 = vpack.c.bf16 %v2822_v55, %v2821_v53  ;;  %v9534_v19 = vpack.c.bf16 %v2840_v59, %v2839_v58  ;;  %v2861_v49 = vld [vmem:[%s14163_s22 + $0x2a0] sm:$0xff]  ;;  %v2862_v51 = vld [vmem:[%s14163_s22 + $0x2a8] sm:$0xff] }
 0x885   :  { %9515 = vmatprep.subr.bf16.mxu0 %v9514_v30  ;;  %v2823_v30 = vld [vmem:[%s14163_s22 + $0x170] sm:$0xff]  ;;  %v2893_v53 = vld [vmem:[%s14163_s22 + $0x3a0] sm:$0xff]  ;;  %v9544_v55 = vpack.c.bf16 %v2844_v40, %v2843_v39  ;;  %v2846_v58 = vld [vmem:[%s14163_s22 + $0x228] sm:$0xff]  ;;  %v9546_v59 = vpack.c.bf16 %v2862_v51, %v2861_v49 }
 0x886   :  { %v2870_v39 = vld [vmem:[%s14163_s22 + $0x2e8] sm:$0xff]  ;;  %v2901_v40 = vld [vmem:[%s14163_s22 + $0x3e0] sm:$0xff] }
 0x887   :  { %9485 = vmatpush3.bf16.msra.mxu1 %v9484_v32  ;;  %v2890_v32 = vld [vmem:[%s14163_s22 + $0x388] sm:$0xff]  ;;  %v2885_v51 = vld [vmem:[%s14163_s22 + $0x360] sm:$0xff] }
 0x888   :  { %9517 = vmatpush3.bf16.msra.mxu0 %v9516_v23  ;;  %9487 = vmatprep.subr.bf16.mxu1 %v9486_v2  ;;  %v9504_v23 = vpack.c.bf16 %v2792_v17, %v2791_v16  ;;  %v9536_v2 = vpack.c.bf16 %v2824_v20, %v2823_v30  ;;  %v9570_v4 = vpack.c.bf16 %v2890_v32, %v2889_v18  ;;  %v2863_v16 = vld [vmem:[%s14163_s22 + $0x2b0] sm:$0xff]  ;;  %v2864_v17 = vld [vmem:[%s14163_s22 + $0x2b8] sm:$0xff] }
 0x889   :  { %9519 = vmatprep.subr.bf16.mxu0 %v9518_v6  ;;  %v12556_v6 = vsub.s32 3, %v11930_v26  ;;  %v2895_v30 = vld [vmem:[%s14163_s22 + $0x3b0] sm:$0xff]  ;;  %v9548_v20 = vpack.c.bf16 %v2846_v58, %v2845_v57  ;;  %v2848_v18 = vld [vmem:[%s14163_s22 + $0x238] sm:$0xff]  ;;  %v9550_v32 = vpack.c.bf16 %v2864_v17, %v2863_v16 }
 0x88a   :  { %v2904_v57 = vld [vmem:[%s14163_s22 + $0x3f8] sm:$0xff]  ;;  %v2887_v17 = vld [vmem:[%s14163_s22 + $0x370] sm:$0xff] }
 0x88b   :  { %9489 = vmatpush3.bf16.msra.mxu1 %v9488_v12  ;;  %v2176_v10 = vrot.slane %v12553_v5, %v12556_v6 }
 0x88c   :  { %9521 = vmatpush3.bf16.msra.mxu0 %v9520_v13  ;;  %9491 = vmatprep.subr.bf16.mxu1 %v9490_v14  ;;  %v2841_v13 = vld [vmem:[%s14163_s22 + $0x200] sm:$0xff]  ;;  %v2842_v14 = vld [vmem:[%s14163_s22 + $0x208] sm:$0xff] }
 0x88d   :  { %9523 = vmatprep.subr.bf16.mxu0 %v9522_v24  ;;  %v9540_v37 = vpack.c.bf16 %v2842_v14, %v2841_v13  ;;  %v2850_v13 = vld [vmem:[%s14163_s22 + $0x248] sm:$0xff] }
 0x88f   :  { %9493 = vmatpush3.bf16.msra.mxu1 %v9492_v33  ;;  %v2860_v33 = vld [vmem:[%s14163_s22 + $0x298] sm:$0xff] }
 0x890   :  { %9525 = vmatpush3.bf16.msra.mxu0 %v9524_v34  ;;  %9495 = vmatprep.subr.bf16.mxu1 %v9494_v35  ;;  %v2891_v34 = vld [vmem:[%s14163_s22 + $0x390] sm:$0xff]  ;;  %v2892_v35 = vld [vmem:[%s14163_s22 + $0x398] sm:$0xff]  ;;  %v9542_v43 = vpack.c.bf16 %v2860_v33, %v2859_v42 }
 0x891   :  { %9527 = vmatprep.subr.bf16.mxu0 %v9526_v38  ;;  %v9572_v38 = vpack.c.bf16 %v2874_v25, %v2873_v61  ;;  %v2868_v61 = vld [vmem:[%s14163_s22 + $0x2d8] sm:$0xff]  ;;  %v2899_v25 = vld [vmem:[%s14163_s22 + $0x3d0] sm:$0xff] }
 0x892   :  { %v2900_v42 = vld [vmem:[%s14163_s22 + $0x3d8] sm:$0xff]  ;;  %v2851_v33 = vld [vmem:[%s14163_s22 + $0x250] sm:$0xff] }
 0x893   :  { %9497 = vmatpush3.bf16.msra.mxu1 %v9496_v44  ;;  %v9574_v44 = vpack.c.bf16 %v2892_v35, %v2891_v34  ;;  %v2852_v34 = vld [vmem:[%s14163_s22 + $0x258] sm:$0xff] }
 0x894   :  { %9529 = vmatpush3.bf16.msra.mxu0 %v9528_v45  ;;  %9499 = vmatprep.subr.bf16.mxu1 %v9498_v48  ;;  %v2875_v45 = vld [vmem:[%s14163_s22 + $0x310] sm:$0xff]  ;;  %v2876_v48 = vld [vmem:[%s14163_s22 + $0x318] sm:$0xff] }
 0x895   :  { %9531 = vmatprep.subr.bf16.mxu0 %v9530_v54  ;;  %v2894_v54 = vld [vmem:[%s14163_s22 + $0x3a8] sm:$0xff]  ;;  %v9576_v56 = vpack.c.bf16 %v2876_v48, %v2875_v45 }
 0x896   :  { %v2854_v45 = vld [vmem:[%s14163_s22 + $0x268] sm:$0xff] }
 0x897   :  { %9501 = vmatpush3.bf16.msra.mxu1 %v9500_v60  ;;  %v9578_v60 = vpack.c.bf16 %v2894_v54, %v2893_v53  ;;  %v2886_v53 = vld [vmem:[%s14163_s22 + $0x368] sm:$0xff]  ;;  %v2871_v54 = vld [vmem:[%s14163_s22 + $0x2f0] sm:$0xff] }
 0x898   :  { %9533 = vmatpush3.bf16.msra.mxu0 %v9532_v62  ;;  %9503 = vmatprep.subr.bf16.mxu1 %v9502_v63  ;;  %v2877_v62 = vld [vmem:[%s14163_s22 + $0x320] sm:$0xff]  ;;  %v2878_v63 = vld [vmem:[%s14163_s22 + $0x328] sm:$0xff] }
 0x899   :  { %9535 = vmatprep.subr.bf16.mxu0 %v9534_v19  ;;  %v2896_v19 = vld [vmem:[%s14163_s22 + $0x3b8] sm:$0xff]  ;;  %v9580_v22 = vpack.c.bf16 %v2878_v63, %v2877_v62 }
 0x89a   :  { %v2856_v63 = vld [vmem:[%s14163_s22 + $0x278] sm:$0xff] }
 0x89b   :  { %9505 = vmatpush3.bf16.msra.mxu1 %v9504_v23  ;;  %v9582_v23 = vpack.c.bf16 %v2896_v19, %v2895_v30  ;;  %v2888_v30 = vld [vmem:[%s14163_s22 + $0x378] sm:$0xff]  ;;  %v3224_v19 = vld [vmem:[#allocation10] sm:$0xff] }
 0x89c   :  { %9537 = vmatpush3.bf16.msra.mxu0 %v9536_v2  ;;  %9539 = vmatprep.subr.bf16.mxu1 %v9538_v3  ;;  %v2879_v2 = vld [vmem:[%s14163_s22 + $0x330] sm:$0xff]  ;;  %v2880_v3 = vld [vmem:[%s14163_s22 + $0x338] sm:$0xff] }
 0x89d   :  { %9571 = vmatprep.subr.bf16.mxu0 %v9570_v4  ;;  %v2865_v4 = vld [vmem:[%s14163_s22 + $0x2c0] sm:$0xff] }
 0x8f1   :  { %v2338_v11 = vpop.f32.mrb[82].mxu1  ;;  %v2480_v12 = vpop.f32.mrb[98].mxu0 }
 0x8f2   :  { %v11042_v15 = vadd.f32 %v2338_v11, %v2164_v7  ;;  %v11044_v47 = vadd.f32 %v2480_v12, %v2172_v8  ;;  %v2340_v0 = vpop.f32.mrb[83].mxu1  ;;  %v2482_v24 = vpop.f32.mrb[99].mxu0  ;;  %v2866_v7 = vld [vmem:[%s14163_s22 + $0x2c8] sm:$0xff]  ;;  %v2897_v8 = vld [vmem:[%s14163_s22 + $0x3c0] sm:$0xff]  ;;  %v9584_v11 = vpack.c.bf16 %v2880_v3, %v2879_v2  ;;  %v12633_v2 = vsub.s32 5, %v11930_v26 }
 0x8f3   :  { %v11043_v28 = vadd.f32 %v2340_v0, %v2168_v9  ;;  %v11045_v31 = vadd.f32 %v2482_v24, %v2176_v10  ;;  %v2898_v9 = vld [vmem:[%s14163_s22 + $0x3c8] sm:$0xff]  ;;  %v9552_v10 = vpack.c.bf16 %v2848_v18, %v2847_v21  ;;  %v2849_v12 = vld [vmem:[%s14163_s22 + $0x240] sm:$0xff]  ;;  %v9554_v14 = vpack.c.bf16 %v2866_v7, %v2865_v4  ;;  %v2867_v24 = vld [vmem:[%s14163_s22 + $0x2d0] sm:$0xff] }
 0x8f4   :  { %v2769_v52 = vmax.f32 %v11042_v15, 0.0  ;;  %v2771_v41 = vmax.f32 %v11044_v47, 0.0  ;;  %v9586_v15 = vpack.c.bf16 %v2898_v9, %v2897_v8  ;;  %v2881_v47 = vld [vmem:[%s14163_s22 + $0x340] sm:$0xff]  ;;  %v2882_v0 = vld [vmem:[%s14163_s22 + $0x348] sm:$0xff]  ;;  %v9558_v35 = vpack.c.bf16 %v2868_v61, %v2867_v24 }
 0x8f5   :  { %v2770_v50 = vmax.f32 %v11043_v28, 0.0  ;;  %v2772_v36 = vmax.f32 %v11045_v31, 0.0  ;;  %v9556_v28 = vpack.c.bf16 %v2850_v13, %v2849_v12  ;;  %v9588_v31 = vpack.c.bf16 %v2882_v0, %v2881_v47  ;;  %v3226_v47 = vld [vmem:[#allocation10 + $0x10] sm:$0xff]  ;;  %v3227_v0 = vld [vmem:[#allocation10 + $0x18] sm:$0xff] }
 0x8f6   :  { %v9600_v21 = vpack.c.bf16 %v2888_v30, %v2887_v17  ;;  %v12636_v3 = vsub.s32 7, %v11930_v26  ;;  %v2184_v8 = vrot.slane %v12553_v5, %v12633_v2  ;;  %v3219_v17 = vld [vmem:[%s14165_s6 + $0x58] sm:$0xff]  ;;  %v3220_v30 = vld [vmem:[%s14165_s6 + $0x60] sm:$0xff] }
 0x8f7   :  { %2976 = vmatprep.mubr.f32.mxu1 %v2770_v50  ;;  %3046 = vmatprep.mubr.f32.mxu0 %v2772_v36  ;;  %v9590_v50 = vpack.c.bf16 %v2900_v42, %v2899_v25  ;;  %v2883_v36 = vld [vmem:[%s14163_s22 + $0x350] sm:$0xff] }
 0x8f8   :  { %2977 = vmatmul.mubr.f32.vlgmr.msra.gmra.mrb[86].mxu1 %v2769_v52  ;;  %3047 = vmatmul.mubr.f32.vlgmr.msra.gmra.mrb[102].mxu0 %v2771_v41  ;;  %v2902_v52 = vld [vmem:[%s14163_s22 + $0x3e8] sm:$0xff]  ;;  %v9560_v41 = vpack.c.bf16 %v2852_v34, %v2851_v33  ;;  %v2192_v9 = vrot.slane %v12553_v5, %v12636_v3  ;;  %v3229_v34 = vld [vmem:[#allocation10 + $0x28] sm:$0xff] }
 0x8f9   :  { %9541 = vmatpush3.bf16.msra.mxu1 %v9540_v37  ;;  %9573 = vmatpush3.bf16.msra.mxu0 %v9572_v38  ;;  %v2884_v37 = vld [vmem:[%s14163_s22 + $0x358] sm:$0xff]  ;;  %v2869_v38 = vld [vmem:[%s14163_s22 + $0x2e0] sm:$0xff]  ;;  %v9594_v49 = vpack.c.bf16 %v2902_v52, %v2901_v40  ;;  %v3228_v33 = vld [vmem:[#allocation10 + $0x20] sm:$0xff] }
 0x8fa   :  { %9543 = vmatprep.subr.bf16.mxu1 %v9542_v43  ;;  %9575 = vmatprep.subr.bf16.mxu0 %v9574_v44  ;;  %v9592_v43 = vpack.c.bf16 %v2884_v37, %v2883_v36  ;;  %v2853_v44 = vld [vmem:[%s14163_s22 + $0x260] sm:$0xff]  ;;  %v9562_v48 = vpack.c.bf16 %v2870_v39, %v2869_v38  ;;  %v3232_v38 = vld [vmem:[#allocation10 + $0x40] sm:$0xff]  ;;  %v3233_v39 = vld [vmem:[#allocation10 + $0x48] sm:$0xff] }
 0x8fb   :  { %v9564_v58 = vpack.c.bf16 %v2854_v45, %v2853_v44  ;;  %v3231_v36 = vld [vmem:[#allocation10 + $0x38] sm:$0xff]  ;;  %v9618_v40 = vpack.c.bf16 %v3233_v39, %v3232_v38  ;;  %v3234_v52 = vld [vmem:[#allocation10 + $0x50] sm:$0xff]  ;;  %v3236_v44 = vld [vmem:[#allocation10 + $0x60] sm:$0xff] }
 0x8fc   :  { %v3237_v45 = vld [vmem:[#allocation10 + $0x68] sm:$0xff] }
 0x8fd   :  { %9545 = vmatpush3.bf16.msra.mxu1 %v9544_v55  ;;  %9577 = vmatpush3.bf16.msra.mxu0 %v9576_v56  ;;  %v2872_v55 = vld [vmem:[%s14163_s22 + $0x2f8] sm:$0xff]  ;;  %v2903_v56 = vld [vmem:[%s14163_s22 + $0x3f0] sm:$0xff] }
 0x8fe   :  { %9547 = vmatprep.subr.bf16.mxu1 %v9546_v59  ;;  %9579 = vmatprep.subr.bf16.mxu0 %v9578_v60  ;;  %v9596_v59 = vpack.c.bf16 %v2886_v53, %v2885_v51  ;;  %v2855_v60 = vld [vmem:[%s14163_s22 + $0x270] sm:$0xff]  ;;  %v9566_v62 = vpack.c.bf16 %v2872_v55, %v2871_v54  ;;  %v9598_v16 = vpack.c.bf16 %v2904_v57, %v2903_v56  ;;  %v3239_v51 = vld [vmem:[#allocation10 + $0x78] sm:$0xff]  ;;  %v3209_v54 = vld [vmem:[%s14165_s6 + $0x8] sm:$0xff] }
 0x8ff   :  { %v3210_v55 = vld [vmem:[%s14165_s6 + $0x10] sm:$0xff]  ;;  %v3211_v56 = vld [vmem:[%s14165_s6 + $0x18] sm:$0xff]  ;;  %v3212_v57 = vld [vmem:[%s14165_s6 + $0x20] sm:$0xff] }
 0x900   :  { %v3565_v38 = vld [vmem:[#allocation13 + $0x60] sm:$0xff]  ;;  %v3566_v39 = vld [vmem:[#allocation13 + $0x68] sm:$0xff] }
 0x901   :  { %9549 = vmatpush3.bf16.msra.mxu1 %v9548_v20  ;;  %9581 = vmatpush3.bf16.msra.mxu0 %v9580_v22  ;;  %v3225_v20 = vld [vmem:[#allocation10 + $0x8] sm:$0xff]  ;;  %v9568_v22 = vpack.c.bf16 %v2856_v63, %v2855_v60  ;;  %v3215_v60 = vld [vmem:[%s14165_s6 + $0x38] sm:$0xff]  ;;  %v3217_v63 = vld [vmem:[%s14165_s6 + $0x48] sm:$0xff] }
 0x902   :  { %9551 = vmatprep.subr.bf16.mxu1 %v9550_v32  ;;  %9583 = vmatprep.subr.bf16.mxu0 %v9582_v23  ;;  %v9602_v18 = vpack.c.bf16 %v3225_v20, %v3224_v19  ;;  %v12627_v32 = vsub.s32 4, %v11930_v26  ;;  %v12630_v23 = vsub.s32 6, %v11930_v26  ;;  %v3221_v19 = vld [vmem:[%s14165_s6 + $0x68] sm:$0xff]  ;;  %v3222_v20 = vld [vmem:[%s14165_s6 + $0x70] sm:$0xff] }
 0x904   :  { %v2180_v4 = vrot.slane %v12553_v5, %v12627_v32  ;;  %v2188_v7 = vrot.slane %v12553_v5, %v12630_v23  ;;  %v3208_v5 = vld [vmem:[%s14165_s6] sm:$0xff] }
 0x905   :  { %9553 = vmatpush3.bf16.msra.mxu1 %v9552_v10  ;;  %9585 = vmatpush3.bf16.msra.mxu0 %v9584_v11 }
 0x906   :  { %9555 = vmatprep.subr.bf16.mxu1 %v9554_v14  ;;  %9587 = vmatprep.subr.bf16.mxu0 %v9586_v15 }
 0x909   :  { %9557 = vmatpush3.bf16.msra.mxu1 %v9556_v28  ;;  %9589 = vmatpush3.bf16.msra.mxu0 %v9588_v31  ;;  %v9606_v28 = vpack.c.bf16 %v3227_v0, %v3226_v47  ;;  %v3556_v0 = vld [vmem:[#allocation13 + $0x18] sm:$0xff] }
 0x90a   :  { %9559 = vmatprep.subr.bf16.mxu1 %v9558_v35  ;;  %9591 = vmatprep.subr.bf16.mxu0 %v9590_v50  ;;  %v9610_v35 = vpack.c.bf16 %v3229_v34, %v3228_v33  ;;  %v3230_v50 = vld [vmem:[#allocation10 + $0x30] sm:$0xff]  ;;  %v3561_v34 = vld [vmem:[#allocation13 + $0x40] sm:$0xff] }
 0x90b   :  { %v9614_v37 = vpack.c.bf16 %v3231_v36, %v3230_v50  ;;  %v3563_v50 = vld [vmem:[#allocation13 + $0x50] sm:$0xff]  ;;  %v3564_v36 = vld [vmem:[#allocation13 + $0x58] sm:$0xff] }
 0x90d   :  { %9561 = vmatpush3.bf16.msra.mxu1 %v9560_v41  ;;  %9593 = vmatpush3.bf16.msra.mxu0 %v9592_v43  ;;  %v3235_v41 = vld [vmem:[#allocation10 + $0x58] sm:$0xff] }
 0x90e   :  { %9563 = vmatprep.subr.bf16.mxu1 %v9562_v48  ;;  %9595 = vmatprep.subr.bf16.mxu0 %v9594_v49  ;;  %v9622_v43 = vpack.c.bf16 %v3235_v41, %v3234_v52  ;;  %v9626_v48 = vpack.c.bf16 %v3237_v45, %v3236_v44  ;;  %v3238_v49 = vld [vmem:[#allocation10 + $0x70] sm:$0xff] }
 0x90f   :  { %v9630_v53 = vpack.c.bf16 %v3239_v51, %v3238_v49 }
 0x911   :  { %9565 = vmatpush3.bf16.msra.mxu1 %v9564_v58  ;;  %9597 = vmatpush3.bf16.msra.mxu0 %v9596_v59  ;;  %v3213_v58 = vld [vmem:[%s14165_s6 + $0x28] sm:$0xff]  ;;  %v3214_v59 = vld [vmem:[%s14165_s6 + $0x30] sm:$0xff] }
 0x912   :  { %9567 = vmatprep.subr.bf16.mxu1 %v9566_v62  ;;  %9599 = vmatprep.subr.bf16.mxu0 %v9598_v16  ;;  %v3216_v62 = vld [vmem:[%s14165_s6 + $0x40] sm:$0xff]  ;;  %v3218_v16 = vld [vmem:[%s14165_s6 + $0x50] sm:$0xff] }
 0x915   :  { %9569 = vmatpush3.bf16.msra.mxu1 %v9568_v22  ;;  %9601 = vmatpush3.bf16.msra.mxu0 %v9600_v21  ;;  %v3223_v22 = vld [vmem:[%s14165_s6 + $0x78] sm:$0xff] }
 0x916   :  { %9603 = vmatprep.subr.bf16.mxu1 %v9602_v18 }
 0x951   :  { %v2622_v10 = vpop.f32.mrb[84].mxu1 }
 0x952   :  { %v11046_v11 = vadd.f32 %v2622_v10, %v2180_v4  ;;  %v2764_v12 = vpop.f32.mrb[100].mxu0  ;;  %v2624_v13 = vpop.f32.mrb[85].mxu1  ;;  %v7587_v4 = vld [vmem:[#allocation9] ss:$0 sm:$0xff] }
 0x953   :  { %v11048_v14 = vadd.f32 %v2764_v12, %v2188_v7  ;;  %v11047_v26 = vadd.f32 %v2624_v13, %v2184_v8  ;;  %v2766_v15 = vpop.f32.mrb[101].mxu0  ;;  %v12663_v13 = vld [vmem:[%s14166_s26] sm:$0xff] }
 0x954   :  { %v11049_v24 = vadd.f32 %v2766_v15, %v2192_v9  ;;  %v2773_v25 = vmax.f32 %v11046_v11, 0.0  ;;  %v3555_v15 = vld [vmem:[#allocation13 + $0x10] sm:$0xff] }
 0x955   :  { %v2774_v61 = vmax.f32 %v11047_v26, 0.0  ;;  %v2775_v31 = vmax.f32 %v11048_v14, 0.0  ;;  %v3553_v14 = vld [vmem:[#allocation13] sm:$0xff]  ;;  %v3554_v26 = vld [vmem:[#allocation13 + $0x8] sm:$0xff] }
 0x956   :  { %v2776_v42 = vmax.f32 %v11049_v24, 0.0  ;;  %v9666_v47 = vpack.c.bf16 %v3554_v26, %v3553_v14  ;;  %v9670_v24 = vpack.c.bf16 %v3556_v0, %v3555_v15  ;;  %v12672_v14 = vld [vmem:[%s14166_s26 + $0x10] sm:$0xff]  ;;  %v12677_v26 = vld [vmem:[%s14166_s26 + $0x18] sm:$0xff]  ;;  %v12680_v15 = vld [vmem:[%s14166_s26 + $0x20] sm:$0xff] }
 0x957   :  { %3116 = vmatprep.mubr.f32.mxu1 %v2774_v61  ;;  %v3557_v61 = vld [vmem:[#allocation13 + $0x20] sm:$0xff] }
 0x958   :  { %3186 = vmatprep.mubr.f32.mxu0 %v2776_v42  ;;  %3117 = vmatmul.mubr.f32.vlgmr.msra.gmra.mrb[88].mxu1 %v2773_v25  ;;  %v3558_v25 = vld [vmem:[#allocation13 + $0x28] sm:$0xff] }
 0x959   :  { %3187 = vmatmul.mubr.f32.vlgmr.msra.gmra.mrb[104].mxu0 %v2775_v31  ;;  %9605 = vmatpush3.bf16.msra.mxu1 %v9602_v18  ;;  %v9674_v42 = vpack.c.bf16 %v3558_v25, %v3557_v61  ;;  %v3560_v31 = vld [vmem:[#allocation13 + $0x38] sm:$0xff]  ;;  %v12688_v0 = vld [vmem:[%s14166_s26 + $0x30] sm:$0xff] }
 0x95a   :  { %9607 = vmatprep.subr.bf16.mxu1 %v9606_v28  ;;  %8530 = vmatprep.mubr.f32.mxu1 %v3208_v5  ;;  %v3562_v5 = vld [vmem:[#allocation13 + $0x48] sm:$0xff]  ;;  %v12696_v61 = vld [vmem:[%s14166_s26 + $0x40] sm:$0xff]  ;;  %v12701_v25 = vld [vmem:[%s14166_s26 + $0x48] sm:$0xff] }
 0x95b   :  { %8586 = vmatprep.mubr.f32.mxu0 %v12663_v13 }
 0x95d   :  { %9609 = vmatpush3.bf16.msra.mxu1 %v9606_v28  ;;  %v3559_v28 = vld [vmem:[#allocation13 + $0x30] sm:$0xff] }
 0x95e   :  { %9611 = vmatprep.subr.bf16.mxu1 %v9610_v35  ;;  %v9678_v33 = vpack.c.bf16 %v3560_v31, %v3559_v28  ;;  %v12709_v28 = vld [vmem:[%s14166_s26 + $0x58] sm:$0xff]  ;;  %v12712_v31 = vld [vmem:[%s14166_s26 + $0x60] sm:$0xff] }
 0x961   :  { %9613 = vmatpush3.bf16.msra.mxu1 %v9610_v35  ;;  %v9682_v35 = vpack.c.bf16 %v3562_v5, %v3561_v34  ;;  %v12720_v34 = vld [vmem:[%s14166_s26 + $0x70] sm:$0xff]  ;;  %v12725_v5 = vld [vmem:[%s14166_s26 + $0x78] sm:$0xff] }
 0x962   :  { %9615 = vmatprep.subr.bf16.mxu1 %v9614_v37 }
 0x965   :  { %9617 = vmatpush3.bf16.msra.mxu1 %v9614_v37  ;;  %v9686_v37 = vpack.c.bf16 %v3564_v36, %v3563_v50  ;;  %v3568_v50 = vld [vmem:[#allocation13 + $0x78] sm:$0xff] }
 0x966   :  { %9619 = vmatprep.subr.bf16.mxu1 %v9618_v40 }
 0x969   :  { %9621 = vmatpush3.bf16.msra.mxu1 %v9618_v40  ;;  %v9690_v40 = vpack.c.bf16 %v3566_v39, %v3565_v38 }
 0x96a   :  { %9623 = vmatprep.subr.bf16.mxu1 %v9622_v43 }
 0x96d   :  { %9625 = vmatpush3.bf16.msra.mxu1 %v9622_v43 }
 0x96e   :  { %9627 = vmatprep.subr.bf16.mxu1 %v9626_v48 }
 0x971   :  { %9629 = vmatpush3.bf16.msra.mxu1 %v9626_v48 }
 0x972   :  { %9631 = vmatprep.subr.bf16.mxu1 %v9630_v53 }
 0x975   :  { %9633 = vmatpush3.bf16.msra.mxu1 %v9630_v53 }
 0x976   :  { %9667 = vmatprep.subr.bf16.mxu1 %v9666_v47 }
 0x978   :  { %8531 = vmatmul.mubr.f32.vlgmr.msra.gmra.mrb[90].mxu1 %v3209_v54 }
 0x979   :  { %8533 = vmatprep.mubr.f32.mxu1 %v3210_v55  ;;  %9669 = vmatpush3.bf16.msra.mxu1 %v9666_v47  ;;  %v12685_v47 = vld [vmem:[%s14166_s26 + $0x28] sm:$0xff] }
 0x97a   :  { %9671 = vmatprep.subr.bf16.mxu1 %v9670_v24 }
 0x97c   :  { %8534 = vmatmul.mubr.f32.gmra.mrb[92].mxu1 %v3211_v56 }
 0x97d   :  { %8536 = vmatprep.mubr.f32.mxu1 %v3212_v57  ;;  %9673 = vmatpush3.bf16.msra.mxu1 %v9670_v24  ;;  %v12693_v24 = vld [vmem:[%s14166_s26 + $0x38] sm:$0xff] }
 0x97e   :  { %9675 = vmatprep.subr.bf16.mxu1 %v9674_v42 }
 0x980   :  { %8537 = vmatmul.mubr.f32.gmra.mrb[94].mxu1 %v3213_v58 }
 0x981   :  { %8539 = vmatprep.mubr.f32.mxu1 %v3214_v59  ;;  %9677 = vmatpush3.bf16.msra.mxu1 %v9674_v42  ;;  %v12704_v42 = vld [vmem:[%s14166_s26 + $0x50] sm:$0xff] }
 0x982   :  { %9679 = vmatprep.subr.bf16.mxu1 %v9678_v33 }
 0x984   :  { %8540 = vmatmul.mubr.f32.gmra.mrb[96].mxu1 %v3215_v60 }
 0x985   :  { %8542 = vmatprep.mubr.f32.mxu1 %v3216_v62  ;;  %9681 = vmatpush3.bf16.msra.mxu1 %v9678_v33  ;;  %v12717_v33 = vld [vmem:[%s14166_s26 + $0x68] sm:$0xff] }
 0x986   :  { %9683 = vmatprep.subr.bf16.mxu1 %v9682_v35 }
 0x988   :  { %8543 = vmatmul.mubr.f32.gmra.mrb[98].mxu1 %v3217_v63 }
 0x989   :  { %8545 = vmatprep.mubr.f32.mxu1 %v3218_v16  ;;  %9685 = vmatpush3.bf16.msra.mxu1 %v9682_v35  ;;  %v3567_v35 = vld [vmem:[#allocation13 + $0x70] sm:$0xff] }
 0x98a   :  { %9687 = vmatprep.subr.bf16.mxu1 %v9686_v37  ;;  %v9694_v36 = vpack.c.bf16 %v3568_v50, %v3567_v35 }
 0x98c   :  { %8546 = vmatmul.mubr.f32.gmra.mrb[100].mxu1 %v3219_v17 }
 0x98d   :  { %8548 = vmatprep.mubr.f32.mxu1 %v3220_v30  ;;  %9689 = vmatpush3.bf16.msra.mxu1 %v9686_v37  ;;  %v7588_v37 = vld [vmem:[#allocation12] ss:$0 sm:$0xff] }
 0x98e   :  { %9691 = vmatprep.subr.bf16.mxu1 %v9690_v40 }
 0x990   :  { %8549 = vmatmul.mubr.f32.gmra.mrb[102].mxu1 %v3221_v19 }
 0x991   :  { %8551 = vmatprep.mubr.f32.mxu1 %v3222_v20  ;;  %9693 = vmatpush3.bf16.msra.mxu1 %v9690_v40 }
 0x992   :  { %9695 = vmatprep.subr.bf16.mxu1 %v9694_v36 }
 0x994   :  { %8552 = vmatmul.mubr.f32.gmra.mrb[104].mxu1 %v3223_v22 }
 0x995   :  { %9697 = vmatpush3.bf16.msra.mxu1 %v9694_v36 }
 0x9cb   :  { %v7817_v21 = vpop.f32.mrb[86].mxu1  ;;  %v7852_v18 = vpop.f32.mrb[102].mxu0 }
 0x9cc   :  { %v7818_v7 = vpop.f32.mrb[87].mxu1  ;;  %v7853_v8 = vpop.f32.mrb[103].mxu0 }
 0x9cd   :  { %v7819_v9 = vadd.f32 %v7818_v7, %v7817_v21  ;;  %v7854_v10 = vadd.f32 %v7853_v8, %v7852_v18 }
 0x9cf   :  { %v2979_v11 = vadd.f32 %v7819_v9, %v7587_v4 }
 0x9d1   :  { %v3049_v12 = vadd.f32 %v7854_v10, %v2979_v11 }
 0xa2b   :  { %v7887_v52 = vpop.f32.mrb[88].mxu1 }
 0xa2c   :  { %v7922_v41 = vpop.f32.mrb[104].mxu0  ;;  %v7888_v43 = vpop.f32.mrb[89].mxu1 }
 0xa2d   :  { %v7889_v44 = vadd.f32 %v7888_v43, %v7887_v52  ;;  %v7923_v45 = vpop.f32.mrb[105].mxu0 }
 0xa2e   :  { %v7924_v48 = vadd.f32 %v7923_v45, %v7922_v41 }
 0xa2f   :  { %v3119_v49 = vadd.f32 %v7889_v44, %v3049_v12  ;;  %v12669_v12 = vld [vmem:[%s14166_s26 + $0x8] sm:$0xff] }
 0xa31   :  { %v12666_v51 = vadd.f32 %v7924_v48, %v3119_v49 }
 0xa4b   :  { %v8532_v53 = vpop.f32.mrb[90].mxu1 }
 0xa4c   :  { %v3306_v54 = vpop.f32.mrb[91].mxu1 }
 0xa4d   :  { %v9634_v55 = vpack.c.bf16 %v8532_v53, %v3306_v54 }
 0xa4f   :  { %v8535_v56 = vpop.f32.mrb[92].mxu1  ;;  %9635 = vmatprep.subr.bf16.mxu0 %v9634_v55 }
 0xa50   :  { %v3316_v57 = vpop.f32.mrb[93].mxu1  ;;  %9637 = vmatpush3.bf16.msra.mxu0 %v9634_v55 }
 0xa51   :  { %v9638_v58 = vpack.c.bf16 %v8535_v56, %v3316_v57 }
 0xa53   :  { %v8538_v59 = vpop.f32.mrb[94].mxu1  ;;  %9639 = vmatprep.subr.bf16.mxu0 %v9638_v58 }
 0xa54   :  { %v3326_v60 = vpop.f32.mrb[95].mxu1  ;;  %9641 = vmatpush3.bf16.msra.mxu0 %v9638_v58 }
 0xa55   :  { %v9642_v62 = vpack.c.bf16 %v8538_v59, %v3326_v60 }
 0xa57   :  { %v8541_v63 = vpop.f32.mrb[96].mxu1  ;;  %9643 = vmatprep.subr.bf16.mxu0 %v9642_v62 }
 0xa58   :  { %v3336_v16 = vpop.f32.mrb[97].mxu1  ;;  %9645 = vmatpush3.bf16.msra.mxu0 %v9642_v62 }
 0xa59   :  { %v9646_v17 = vpack.c.bf16 %v8541_v63, %v3336_v16 }
 0xa5b   :  { %v8544_v30 = vpop.f32.mrb[98].mxu1  ;;  %9647 = vmatprep.subr.bf16.mxu0 %v9646_v17 }
 0xa5c   :  { %v3346_v19 = vpop.f32.mrb[99].mxu1  ;;  %9649 = vmatpush3.bf16.msra.mxu0 %v9646_v17 }
 0xa5d   :  { %v9650_v20 = vpack.c.bf16 %v8544_v30, %v3346_v19 }
 0xa5f   :  { %v8547_v22 = vpop.f32.mrb[100].mxu1  ;;  %9651 = vmatprep.subr.bf16.mxu0 %v9650_v20 }
 0xa60   :  { %v3356_v21 = vpop.f32.mrb[101].mxu1  ;;  %9653 = vmatpush3.bf16.msra.mxu0 %v9650_v20 }
 0xa61   :  { %v9654_v18 = vpack.c.bf16 %v8547_v22, %v3356_v21 }
 0xa63   :  { %v8550_v4 = vpop.f32.mrb[102].mxu1  ;;  %9655 = vmatprep.subr.bf16.mxu0 %v9654_v18 }
 0xa64   :  { %v3366_v7 = vpop.f32.mrb[103].mxu1  ;;  %9657 = vmatpush3.bf16.msra.mxu0 %v9654_v18 }
 0xa65   :  { %v9658_v8 = vpack.c.bf16 %v8550_v4, %v3366_v7 }
 0xa67   :  { %v8553_v9 = vpop.f32.mrb[104].mxu1  ;;  %9659 = vmatprep.subr.bf16.mxu0 %v9658_v8 }
 0xa68   :  { %v3376_v10 = vpop.f32.mrb[105].mxu1  ;;  %9661 = vmatpush3.bf16.msra.mxu0 %v9658_v8 }
 0xa69   :  { %v9662_v11 = vpack.c.bf16 %v8553_v9, %v3376_v10 }
 0xa6b   :  { %9663 = vmatprep.subr.bf16.mxu0 %v9662_v11 }
 0xa6c   :  { %9665 = vmatpush3.bf16.msra.mxu0 %v9662_v11 }
 0xa6f   :  { %8587 = vmatmul.mubr.f32.vlgmr.msra.gmra.mrb[106].mxu0 %v12669_v12 }
 0xa70   :  { %8589 = vmatprep.mubr.f32.mxu0 %v12672_v14 }
 0xa73   :  { %8590 = vmatmul.mubr.f32.gmra.mrb[108].mxu0 %v12677_v26 }
 0xa74   :  { %8592 = vmatprep.mubr.f32.mxu0 %v12680_v15 }
 0xa77   :  { %8593 = vmatmul.mubr.f32.gmra.mrb[110].mxu0 %v12685_v47 }
 0xa78   :  { %8595 = vmatprep.mubr.f32.mxu0 %v12688_v0 }
 0xa7b   :  { %8596 = vmatmul.mubr.f32.gmra.mrb[112].mxu0 %v12693_v24 }
 0xa7c   :  { %8598 = vmatprep.mubr.f32.mxu0 %v12696_v61 }
 0xa7f   :  { %8599 = vmatmul.mubr.f32.gmra.mrb[114].mxu0 %v12701_v25 }
 0xa80   :  { %8601 = vmatprep.mubr.f32.mxu0 %v12704_v42 }
 0xa83   :  { %8602 = vmatmul.mubr.f32.gmra.mrb[116].mxu0 %v12709_v28 }
 0xa84   :  { %8604 = vmatprep.mubr.f32.mxu0 %v12712_v31 }
 0xa87   :  { %8605 = vmatmul.mubr.f32.gmra.mrb[118].mxu0 %v12717_v33 }
 0xa88   :  { %8607 = vmatprep.mubr.f32.mxu0 %v12720_v34 }
 0xa8b   :  { %8608 = vmatmul.mubr.f32.gmra.mrb[120].mxu0 %v12725_v5 }
 0xa8c   :  { %8698 = vmatprep.mubr.f32.mxu0 %v12663_v13 }
 0xb42   :  { %v8588_v38 = vpop.f32.mrb[106].mxu0 }
 0xb43   :  { %v3464_v39 = vadd.f32 %v8588_v38, %v7588_v37  ;;  %v3458_v40 = vpop.f32.mrb[107].mxu0 }
 0xb44   :  { %v3459_v52 = vadd.f32 %v7588_v37, %v3458_v40 }
 0xb45   :  { %v3538_v44 = vmax.f32 %v3464_v39, 0.0 }
 0xb46   :  { %v3537_v41 = vmax.f32 %v3459_v52, 0.0  ;;  %v8591_v43 = vpop.f32.mrb[108].mxu0 }
 0xb47   :  { %v3474_v45 = vadd.f32 %v8591_v43, %v7588_v37  ;;  %v3468_v48 = vpop.f32.mrb[109].mxu0 }
 0xb48   :  { %v3469_v49 = vadd.f32 %v7588_v37, %v3468_v48  ;;  %8642 = vmatprep.mubr.f32.mxu1 %v3537_v41 }
 0xb49   :  { %8643 = vmatmul.mubr.f32.vlgmr.msra.gmra.mrb[106].mxu1 %v3538_v44  ;;  %v3540_v55 = vmax.f32 %v3474_v45, 0.0 }
 0xb4a   :  { %v3539_v53 = vmax.f32 %v3469_v49, 0.0  ;;  %v8594_v54 = vpop.f32.mrb[110].mxu0 }
 0xb4b   :  { %v3484_v56 = vadd.f32 %v8594_v54, %v7588_v37  ;;  %v3478_v57 = vpop.f32.mrb[111].mxu0 }
 0xb4c   :  { %v3479_v58 = vadd.f32 %v7588_v37, %v3478_v57  ;;  %8645 = vmatprep.mubr.f32.mxu1 %v3539_v53 }
 0xb4d   :  { %8646 = vmatmul.mubr.f32.gmra.mrb[108].mxu1 %v3540_v55  ;;  %v3542_v62 = vmax.f32 %v3484_v56, 0.0 }
 0xb4e   :  { %v3541_v59 = vmax.f32 %v3479_v58, 0.0  ;;  %v8597_v60 = vpop.f32.mrb[112].mxu0 }
 0xb4f   :  { %v3494_v63 = vadd.f32 %v8597_v60, %v7588_v37  ;;  %v3488_v16 = vpop.f32.mrb[113].mxu0 }
 0xb50   :  { %v3489_v17 = vadd.f32 %v7588_v37, %v3488_v16  ;;  %8648 = vmatprep.mubr.f32.mxu1 %v3541_v59 }
 0xb51   :  { %8649 = vmatmul.mubr.f32.gmra.mrb[110].mxu1 %v3542_v62  ;;  %v3544_v20 = vmax.f32 %v3494_v63, 0.0 }
 0xb52   :  { %v3543_v30 = vmax.f32 %v3489_v17, 0.0  ;;  %v8600_v19 = vpop.f32.mrb[114].mxu0 }
 0xb53   :  { %v3504_v22 = vadd.f32 %v8600_v19, %v7588_v37  ;;  %v3498_v21 = vpop.f32.mrb[115].mxu0 }
 0xb54   :  { %v3499_v18 = vadd.f32 %v7588_v37, %v3498_v21  ;;  %8651 = vmatprep.mubr.f32.mxu1 %v3543_v30 }
 0xb55   :  { %8652 = vmatmul.mubr.f32.gmra.mrb[112].mxu1 %v3544_v20  ;;  %v3546_v8 = vmax.f32 %v3504_v22, 0.0 }
 0xb56   :  { %v3545_v4 = vmax.f32 %v3499_v18, 0.0  ;;  %v8603_v7 = vpop.f32.mrb[116].mxu0 }
 0xb57   :  { %v3514_v9 = vadd.f32 %v8603_v7, %v7588_v37  ;;  %v3508_v10 = vpop.f32.mrb[117].mxu0 }
 0xb58   :  { %v3509_v11 = vadd.f32 %v7588_v37, %v3508_v10  ;;  %8654 = vmatprep.mubr.f32.mxu1 %v3545_v4 }
 0xb59   :  { %8655 = vmatmul.mubr.f32.gmra.mrb[114].mxu1 %v3546_v8  ;;  %v3548_v36 = vmax.f32 %v3514_v9, 0.0 }
 0xb5a   :  { %v3547_v35 = vmax.f32 %v3509_v11, 0.0  ;;  %v8606_v50 = vpop.f32.mrb[118].mxu0  ;;  %v3883_v11 = vld [vmem:[#allocation16 + $0x8] sm:$0xff] }
 0xb5b   :  { %v3524_v38 = vadd.f32 %v8606_v50, %v7588_v37  ;;  %v3518_v39 = vpop.f32.mrb[119].mxu0  ;;  %v3882_v50 = vld [vmem:[#allocation16] sm:$0xff] }
 0xb5c   :  { %v3519_v40 = vadd.f32 %v7588_v37, %v3518_v39  ;;  %8657 = vmatprep.mubr.f32.mxu1 %v3547_v35  ;;  %v3885_v35 = vld [vmem:[#allocation16 + $0x18] sm:$0xff]  ;;  %v3887_v39 = vld [vmem:[#allocation16 + $0x28] sm:$0xff] }
 0xb5d   :  { %8658 = vmatmul.mubr.f32.gmra.mrb[116].mxu1 %v3548_v36  ;;  %v3550_v43 = vmax.f32 %v3524_v38, 0.0  ;;  %v9762_v36 = vpack.c.bf16 %v3885_v35, %v3883_v11  ;;  %v3884_v38 = vld [vmem:[#allocation16 + $0x10] sm:$0xff]  ;;  %v3906_v11 = vld [vmem:[#allocation16 + $0xc0] sm:$0xff] }
 0xb5e   :  { %v3549_v52 = vmax.f32 %v3519_v40, 0.0  ;;  %v8609_v41 = vpop.f32.mrb[120].mxu0  ;;  %v3889_v40 = vld [vmem:[#allocation16 + $0x38] sm:$0xff]  ;;  %v3908_v35 = vld [vmem:[#allocation16 + $0xd0] sm:$0xff] }
 0xb5f   :  { %v3534_v44 = vadd.f32 %v8609_v41, %v7588_v37  ;;  %v3528_v45 = vpop.f32.mrb[121].mxu0  ;;  %v9766_v41 = vpack.c.bf16 %v3889_v40, %v3887_v39  ;;  %v3910_v40 = vld [vmem:[#allocation16 + $0xe0] sm:$0xff] }
 0xb60   :  { %v3529_v48 = vadd.f32 %v7588_v37, %v3528_v45  ;;  %8660 = vmatprep.mubr.f32.mxu1 %v3549_v52  ;;  %v9764_v52 = vpack.c.bf16 %v3884_v38, %v3882_v50  ;;  %v3891_v45 = vld [vmem:[#allocation16 + $0x48] sm:$0xff]  ;;  %v9788_v38 = vpack.c.bf16 %v3908_v35, %v3906_v11 }
 0xb61   :  { %8661 = vmatmul.mubr.f32.gmra.mrb[118].mxu1 %v3550_v43  ;;  %v3552_v53 = vmax.f32 %v3534_v44, 0.0  ;;  %v3886_v43 = vld [vmem:[#allocation16 + $0x20] sm:$0xff]  ;;  %v3888_v44 = vld [vmem:[#allocation16 + $0x30] sm:$0xff]  ;;  %v3911_v50 = vld [vmem:[#allocation16 + $0xe8] sm:$0xff] }
 0xb62   :  { %v3551_v49 = vmax.f32 %v3529_v48, 0.0  ;;  %v3893_v48 = vld [vmem:[#allocation16 + $0x58] sm:$0xff] }
 0xb64   :  { %8663 = vmatprep.mubr.f32.mxu1 %v3551_v49  ;;  %v9768_v49 = vpack.c.bf16 %v3888_v44, %v3886_v43  ;;  %v12746_v43 = vld [vmem:[#allocation15] ss:$0 sm:$0xff] }
 0xb65   :  { %8664 = vmatmul.mubr.f32.gmra.mrb[120].mxu1 %v3552_v53  ;;  %v9770_v53 = vpack.c.bf16 %v3893_v48, %v3891_v45 }
 0xb66   :  { %8754 = vmatprep.mubr.f32.mxu1 %v12663_v13 }
 0xc1c   :  { %v8644_v54 = vpop.f32.mrb[106].mxu1 }
 0xc1d   :  { %v3635_v55 = vpop.f32.mrb[107].mxu1 }
 0xc1e   :  { %v9698_v56 = vpack.c.bf16 %v8644_v54, %v3635_v55  ;;  %v3890_v54 = vld [vmem:[#allocation16 + $0x40] sm:$0xff]  ;;  %v3892_v55 = vld [vmem:[#allocation16 + $0x50] sm:$0xff] }
 0xc20   :  { %v8647_v57 = vpop.f32.mrb[108].mxu1  ;;  %9699 = vmatprep.subr.bf16.mxu0 %v9698_v56 }
 0xc21   :  { %v3645_v58 = vpop.f32.mrb[109].mxu1  ;;  %9701 = vmatpush3.bf16.msra.mxu0 %v9698_v56  ;;  %v3895_v56 = vld [vmem:[#allocation16 + $0x68] sm:$0xff] }
 0xc22   :  { %v9702_v59 = vpack.c.bf16 %v8647_v57, %v3645_v58  ;;  %v3897_v57 = vld [vmem:[#allocation16 + $0x78] sm:$0xff]  ;;  %v9772_v58 = vpack.c.bf16 %v3892_v55, %v3890_v54 }
 0xc24   :  { %v8650_v60 = vpop.f32.mrb[110].mxu1  ;;  %9703 = vmatprep.subr.bf16.mxu0 %v9702_v59 }
 0xc25   :  { %v3655_v62 = vpop.f32.mrb[111].mxu1  ;;  %9705 = vmatpush3.bf16.msra.mxu0 %v9702_v59  ;;  %v9774_v59 = vpack.c.bf16 %v3897_v57, %v3895_v56 }
 0xc26   :  { %v9706_v37 = vpack.c.bf16 %v8650_v60, %v3655_v62  ;;  %v3894_v60 = vld [vmem:[#allocation16 + $0x60] sm:$0xff]  ;;  %v3896_v62 = vld [vmem:[#allocation16 + $0x70] sm:$0xff] }
 0xc28   :  { %v8653_v63 = vpop.f32.mrb[112].mxu1  ;;  %9707 = vmatprep.subr.bf16.mxu0 %v9706_v37 }
 0xc29   :  { %v3665_v16 = vpop.f32.mrb[113].mxu1  ;;  %9709 = vmatpush3.bf16.msra.mxu0 %v9706_v37  ;;  %v3899_v37 = vld [vmem:[#allocation16 + $0x88] sm:$0xff] }
 0xc2a   :  { %v9710_v17 = vpack.c.bf16 %v8653_v63, %v3665_v16  ;;  %v3901_v63 = vld [vmem:[#allocation16 + $0x98] sm:$0xff]  ;;  %v9776_v16 = vpack.c.bf16 %v3896_v62, %v3894_v60 }
 0xc2c   :  { %v8656_v30 = vpop.f32.mrb[114].mxu1  ;;  %9711 = vmatprep.subr.bf16.mxu0 %v9710_v17 }
 0xc2d   :  { %v3675_v13 = vpop.f32.mrb[115].mxu1  ;;  %9713 = vmatpush3.bf16.msra.mxu0 %v9710_v17  ;;  %v9778_v17 = vpack.c.bf16 %v3901_v63, %v3899_v37 }
 0xc2e   :  { %v9714_v19 = vpack.c.bf16 %v8656_v30, %v3675_v13  ;;  %v3898_v30 = vld [vmem:[#allocation16 + $0x80] sm:$0xff]  ;;  %v3900_v13 = vld [vmem:[#allocation16 + $0x90] sm:$0xff] }
 0xc30   :  { %v8659_v20 = vpop.f32.mrb[116].mxu1  ;;  %9715 = vmatprep.subr.bf16.mxu0 %v9714_v19 }
 0xc31   :  { %v3685_v22 = vpop.f32.mrb[117].mxu1  ;;  %9717 = vmatpush3.bf16.msra.mxu0 %v9714_v19  ;;  %v3903_v19 = vld [vmem:[#allocation16 + $0xa8] sm:$0xff] }
 0xc32   :  { %v9718_v21 = vpack.c.bf16 %v8659_v20, %v3685_v22  ;;  %v3905_v20 = vld [vmem:[#allocation16 + $0xb8] sm:$0xff]  ;;  %v9780_v22 = vpack.c.bf16 %v3900_v13, %v3898_v30 }
 0xc34   :  { %v8662_v18 = vpop.f32.mrb[118].mxu1  ;;  %9719 = vmatprep.subr.bf16.mxu0 %v9718_v21 }
 0xc35   :  { %v3695_v4 = vpop.f32.mrb[119].mxu1  ;;  %9721 = vmatpush3.bf16.msra.mxu0 %v9718_v21  ;;  %v9782_v21 = vpack.c.bf16 %v3905_v20, %v3903_v19 }
 0xc36   :  { %v9722_v7 = vpack.c.bf16 %v8662_v18, %v3695_v4  ;;  %v3902_v18 = vld [vmem:[#allocation16 + $0xa0] sm:$0xff]  ;;  %v3904_v4 = vld [vmem:[#allocation16 + $0xb0] sm:$0xff] }
 0xc38   :  { %v8665_v8 = vpop.f32.mrb[120].mxu1  ;;  %9723 = vmatprep.subr.bf16.mxu0 %v9722_v7 }
 0xc39   :  { %v3705_v9 = vpop.f32.mrb[121].mxu1  ;;  %9725 = vmatpush3.bf16.msra.mxu0 %v9722_v7  ;;  %v3907_v7 = vld [vmem:[#allocation16 + $0xc8] sm:$0xff] }
 0xc3a   :  { %v9726_v10 = vpack.c.bf16 %v8665_v8, %v3705_v9  ;;  %v3909_v8 = vld [vmem:[#allocation16 + $0xd8] sm:$0xff]  ;;  %v9784_v9 = vpack.c.bf16 %v3904_v4, %v3902_v18 }
 0xc3c   :  { %9727 = vmatprep.subr.bf16.mxu0 %v9726_v10 }
 0xc3d   :  { %9729 = vmatpush3.bf16.msra.mxu0 %v9726_v10  ;;  %v9786_v10 = vpack.c.bf16 %v3909_v8, %v3907_v7 }
 0xc3e   :  { %9763 = vmatprep.subr.bf16.mxu0 %v9762_v36  ;;  %v3913_v36 = vld [vmem:[#allocation16 + $0xf8] sm:$0xff] }
 0xc3f   :  { %v9790_v39 = vpack.c.bf16 %v3913_v36, %v3911_v50 }
 0xc40   :  { %8699 = vmatmul.mubr.f32.vlgmr.msra.gmra.mrb[122].mxu0 %v12669_v12 }
 0xc41   :  { %8701 = vmatprep.mubr.f32.mxu0 %v12672_v14  ;;  %9765 = vmatpush1.bf16.msra.mxu0 %v9764_v52  ;;  %v3912_v52 = vld [vmem:[#allocation16 + $0xf0] sm:$0xff] }
 0xc42   :  { %9767 = vmatprep.subr.bf16.mxu0 %v9766_v41  ;;  %v9792_v41 = vpack.c.bf16 %v3912_v52, %v3910_v40 }
 0xc44   :  { %8702 = vmatmul.mubr.f32.gmra.mrb[124].mxu0 %v12677_v26 }
 0xc45   :  { %8704 = vmatprep.mubr.f32.mxu0 %v12680_v15  ;;  %9769 = vmatpush1.bf16.msra.mxu0 %v9768_v49 }
 0xc46   :  { %9771 = vmatprep.subr.bf16.mxu0 %v9770_v53 }
 0xc48   :  { %8705 = vmatmul.mubr.f32.gmra.mrb[126].mxu0 %v12685_v47 }
 0xc49   :  { %8707 = vmatprep.mubr.f32.mxu0 %v12688_v0  ;;  %9773 = vmatpush1.bf16.msra.mxu0 %v9772_v58 }
 0xc4a   :  { %9775 = vmatprep.subr.bf16.mxu0 %v9774_v59 }
 0xc4c   :  { %8708 = vmatmul.mubr.f32.gmra.mrb[128].mxu0 %v12693_v24 }
 0xc4d   :  { %8710 = vmatprep.mubr.f32.mxu0 %v12696_v61  ;;  %9777 = vmatpush1.bf16.msra.mxu0 %v9776_v16 }
 0xc4e   :  { %9779 = vmatprep.subr.bf16.mxu0 %v9778_v17 }
 0xc50   :  { %8711 = vmatmul.mubr.f32.gmra.mrb[130].mxu0 %v12701_v25 }
 0xc51   :  { %8713 = vmatprep.mubr.f32.mxu0 %v12704_v42  ;;  %9781 = vmatpush1.bf16.msra.mxu0 %v9780_v22 }
 0xc52   :  { %9783 = vmatprep.subr.bf16.mxu0 %v9782_v21 }
 0xc54   :  { %8714 = vmatmul.mubr.f32.gmra.mrb[132].mxu0 %v12709_v28 }
 0xc55   :  { %8716 = vmatprep.mubr.f32.mxu0 %v12712_v31  ;;  %9785 = vmatpush1.bf16.msra.mxu0 %v9784_v9 }
 0xc56   :  { %9787 = vmatprep.subr.bf16.mxu0 %v9786_v10 }
 0xc58   :  { %8717 = vmatmul.mubr.f32.gmra.mrb[134].mxu0 %v12717_v33 }
 0xc59   :  { %8719 = vmatprep.mubr.f32.mxu0 %v12720_v34  ;;  %9789 = vmatpush1.bf16.msra.mxu0 %v9788_v38 }
 0xc5a   :  { %9791 = vmatprep.subr.bf16.mxu0 %v9790_v39 }
 0xc5c   :  { %8720 = vmatmul.mubr.f32.gmra.mrb[136].mxu0 %v12725_v5 }
 0xc5d   :  { %4135 = vmatprep.mubr.f32.mxu0 %v11531_v1  ;;  %9793 = vmatpush1.bf16.msra.mxu0 %v9792_v41 }
 0xd13   :  { %v8700_v44 = vpop.f32.mrb[122].mxu0 }
 0xd14   :  { %v3793_v45 = vadd.f32 %v8700_v44, %v12746_v43  ;;  %v3787_v48 = vpop.f32.mrb[123].mxu0 }
 0xd15   :  { %v3788_v49 = vadd.f32 %v12746_v43, %v3787_v48 }
 0xd16   :  { %v3867_v53 = vmax.f32 %v3793_v45, 0.0 }
 0xd17   :  { %v3866_v54 = vmax.f32 %v3788_v49, 0.0  ;;  %v8703_v55 = vpop.f32.mrb[124].mxu0 }
 0xd18   :  { %v3803_v56 = vadd.f32 %v8703_v55, %v12746_v43  ;;  %v3797_v57 = vpop.f32.mrb[125].mxu0 }
 0xd19   :  { %v9730_v58 = vpack.c.bf16 %v3867_v53, %v3866_v54  ;;  %v3798_v59 = vadd.f32 %v12746_v43, %v3797_v57 }
 0xd1a   :  { %v3869_v60 = vmax.f32 %v3803_v56, 0.0 }
 0xd1b   :  { %v3868_v62 = vmax.f32 %v3798_v59, 0.0  ;;  %v8706_v37 = vpop.f32.mrb[126].mxu0  ;;  %9731 = vmatprep.subr.bf16.mxu1 %v9730_v58 }
 0xd1c   :  { %v3813_v63 = vadd.f32 %v8706_v37, %v12746_v43  ;;  %v3807_v16 = vpop.f32.mrb[127].mxu0  ;;  %9733 = vmatpush3.bf16.msra.mxu1 %v9730_v58 }
 0xd1d   :  { %v9734_v17 = vpack.c.bf16 %v3869_v60, %v3868_v62  ;;  %v3808_v30 = vadd.f32 %v12746_v43, %v3807_v16 }
 0xd1e   :  { %v3871_v13 = vmax.f32 %v3813_v63, 0.0 }
 0xd1f   :  { %v3870_v19 = vmax.f32 %v3808_v30, 0.0  ;;  %v8709_v20 = vpop.f32.mrb[128].mxu0  ;;  %9735 = vmatprep.subr.bf16.mxu1 %v9734_v17 }
 0xd20   :  { %v3823_v22 = vadd.f32 %v8709_v20, %v12746_v43  ;;  %v3817_v21 = vpop.f32.mrb[129].mxu0  ;;  %9737 = vmatpush3.bf16.msra.mxu1 %v9734_v17 }
 0xd21   :  { %v9738_v18 = vpack.c.bf16 %v3871_v13, %v3870_v19  ;;  %v3818_v4 = vadd.f32 %v12746_v43, %v3817_v21  ;;  %v4337_v13 = vld [vmem:[%s14167_s3 + $0x8] sm:$0xff]  ;;  %v4344_v21 = vld [vmem:[%s14167_s3 + $0x40] sm:$0xff] }
 0xd22   :  { %v3873_v7 = vmax.f32 %v3823_v22, 0.0  ;;  %v4345_v19 = vld [vmem:[%s14167_s3 + $0x48] sm:$0xff]  ;;  %v4336_v22 = vld [vmem:[%s14167_s3] sm:$0xff] }
 0xd23   :  { %v3872_v8 = vmax.f32 %v3818_v4, 0.0  ;;  %v8712_v9 = vpop.f32.mrb[130].mxu0  ;;  %9739 = vmatprep.subr.bf16.mxu1 %v9738_v18  ;;  %v9826_v20 = vpack.c.bf16 %v4345_v19, %v4337_v13  ;;  %v4353_v4 = vld [vmem:[%s14167_s3 + $0x88] sm:$0xff] }
 0xd24   :  { %v3833_v10 = vadd.f32 %v8712_v9, %v12746_v43  ;;  %v3827_v11 = vpop.f32.mrb[131].mxu0  ;;  %9741 = vmatpush3.bf16.msra.mxu1 %v9738_v18  ;;  %v9828_v18 = vpack.c.bf16 %v4344_v21, %v4336_v22  ;;  %v4352_v9 = vld [vmem:[%s14167_s3 + $0x80] sm:$0xff]  ;;  %v4481_v13 = vld [vmem:[%s14167_s3 + $0x488] sm:$0xff] }
 0xd25   :  { %v9742_v35 = vpack.c.bf16 %v3873_v7, %v3872_v8  ;;  %v3828_v50 = vadd.f32 %v12746_v43, %v3827_v11  ;;  %9827 = vmatprep.subr.bf16.mxu0 %v9826_v20  ;;  %v4361_v7 = vld [vmem:[%s14167_s3 + $0xc8] sm:$0xff]  ;;  %v4480_v22 = vld [vmem:[%s14167_s3 + $0x480] sm:$0xff] }
 0xd26   :  { %v3875_v36 = vmax.f32 %v3833_v10, 0.0  ;;  %v9830_v8 = vpack.c.bf16 %v4361_v7, %v4353_v4  ;;  %v4360_v10 = vld [vmem:[%s14167_s3 + $0xc0] sm:$0xff]  ;;  %v4489_v19 = vld [vmem:[%s14167_s3 + $0x4c8] sm:$0xff] }
 0xd27   :  { %v3874_v38 = vmax.f32 %v3828_v50, 0.0  ;;  %v8715_v39 = vpop.f32.mrb[132].mxu0  ;;  %9743 = vmatprep.subr.bf16.mxu1 %v9742_v35  ;;  %v9832_v11 = vpack.c.bf16 %v4360_v10, %v4352_v9  ;;  %v4377_v50 = vld [vmem:[%s14167_s3 + $0x148] sm:$0xff]  ;;  %v9862_v20 = vpack.c.bf16 %v4489_v19, %v4481_v13  ;;  %v4488_v21 = vld [vmem:[%s14167_s3 + $0x4c0] sm:$0xff] }
 0xd28   :  { %v3843_v40 = vadd.f32 %v8715_v39, %v12746_v43  ;;  %v3837_v52 = vpop.f32.mrb[133].mxu0  ;;  %9745 = vmatpush3.bf16.msra.mxu1 %v9742_v35  ;;  %v4369_v35 = vld [vmem:[%s14167_s3 + $0x108] sm:$0xff]  ;;  %v4376_v39 = vld [vmem:[%s14167_s3 + $0x140] sm:$0xff] }
 0xd29   :  { %v9746_v41 = vpack.c.bf16 %v3875_v36, %v3874_v38  ;;  %v3838_v44 = vadd.f32 %v12746_v43, %v3837_v52  ;;  %v9834_v36 = vpack.c.bf16 %v4377_v50, %v4369_v35  ;;  %v4368_v38 = vld [vmem:[%s14167_s3 + $0x100] sm:$0xff]  ;;  %v4385_v52 = vld [vmem:[%s14167_s3 + $0x188] sm:$0xff] }
 0xd2a   :  { %v3877_v45 = vmax.f32 %v3843_v40, 0.0  ;;  %v9836_v40 = vpack.c.bf16 %v4376_v39, %v4368_v38  ;;  %v4497_v4 = vld [vmem:[%s14167_s3 + $0x508] sm:$0xff]  ;;  %v4496_v9 = vld [vmem:[%s14167_s3 + $0x500] sm:$0xff] }
 0xd2b   :  { %v3876_v48 = vmax.f32 %v3838_v44, 0.0  ;;  %v8718_v49 = vpop.f32.mrb[134].mxu0  ;;  %9747 = vmatprep.subr.bf16.mxu1 %v9746_v41  ;;  %v4505_v7 = vld [vmem:[%s14167_s3 + $0x548] sm:$0xff]  ;;  %v4504_v10 = vld [vmem:[%s14167_s3 + $0x540] sm:$0xff] }
 0xd2c   :  { %v3853_v53 = vadd.f32 %v8718_v49, %v12746_v43  ;;  %v3847_v54 = vpop.f32.mrb[135].mxu0  ;;  %9749 = vmatpush3.bf16.msra.mxu1 %v9746_v41  ;;  %v4393_v41 = vld [vmem:[%s14167_s3 + $0x1c8] sm:$0xff]  ;;  %v4512_v38 = vld [vmem:[%s14167_s3 + $0x580] sm:$0xff] }
 0xd2d   :  { %v9750_v55 = vpack.c.bf16 %v3877_v45, %v3876_v48  ;;  %v3848_v56 = vadd.f32 %v12746_v43, %v3847_v54  ;;  %v9838_v44 = vpack.c.bf16 %v4393_v41, %v4385_v52  ;;  %v4384_v45 = vld [vmem:[%s14167_s3 + $0x180] sm:$0xff]  ;;  %v4409_v54 = vld [vmem:[%s14167_s3 + $0x248] sm:$0xff] }
 0xd2e   :  { %v3879_v57 = vmax.f32 %v3853_v53, 0.0  ;;  %v4392_v48 = vld [vmem:[%s14167_s3 + $0x1c0] sm:$0xff]  ;;  %v4401_v53 = vld [vmem:[%s14167_s3 + $0x208] sm:$0xff] }
 0xd2f   :  { %v3878_v58 = vmax.f32 %v3848_v56, 0.0  ;;  %v8721_v59 = vpop.f32.mrb[136].mxu0  ;;  %9751 = vmatprep.subr.bf16.mxu1 %v9750_v55  ;;  %v9840_v49 = vpack.c.bf16 %v4392_v48, %v4384_v45  ;;  %v4400_v56 = vld [vmem:[%s14167_s3 + $0x200] sm:$0xff]  ;;  %v4513_v35 = vld [vmem:[%s14167_s3 + $0x588] sm:$0xff] }
 0xd30   :  { %v3863_v60 = vadd.f32 %v8721_v59, %v12746_v43  ;;  %v3857_v62 = vpop.f32.mrb[137].mxu0  ;;  %9753 = vmatpush3.bf16.msra.mxu1 %v9750_v55  ;;  %v9842_v55 = vpack.c.bf16 %v4409_v54, %v4401_v53  ;;  %v4417_v59 = vld [vmem:[%s14167_s3 + $0x288] sm:$0xff]  ;;  %v4520_v39 = vld [vmem:[%s14167_s3 + $0x5c0] sm:$0xff] }
 0xd31   :  { %v9754_v37 = vpack.c.bf16 %v3879_v57, %v3878_v58  ;;  %v3858_v63 = vadd.f32 %v12746_v43, %v3857_v62  ;;  %v4408_v57 = vld [vmem:[%s14167_s3 + $0x240] sm:$0xff]  ;;  %v4521_v50 = vld [vmem:[%s14167_s3 + $0x5c8] sm:$0xff] }
 0xd32   :  { %v3881_v16 = vmax.f32 %v3863_v60, 0.0  ;;  %v9844_v58 = vpack.c.bf16 %v4408_v57, %v4400_v56  ;;  %v4425_v60 = vld [vmem:[%s14167_s3 + $0x2c8] sm:$0xff]  ;;  %v4528_v45 = vld [vmem:[%s14167_s3 + $0x600] sm:$0xff] }
 0xd33   :  { %v3880_v17 = vmax.f32 %v3858_v63, 0.0  ;;  %9755 = vmatprep.subr.bf16.mxu1 %v9754_v37  ;;  %v9846_v62 = vpack.c.bf16 %v4425_v60, %v4417_v59  ;;  %v4424_v63 = vld [vmem:[%s14167_s3 + $0x2c0] sm:$0xff]  ;;  %v4529_v52 = vld [vmem:[%s14167_s3 + $0x608] sm:$0xff] }
 0xd34   :  { %9757 = vmatpush3.bf16.msra.mxu1 %v9754_v37  ;;  %v4416_v37 = vld [vmem:[%s14167_s3 + $0x280] sm:$0xff]  ;;  %v4537_v41 = vld [vmem:[%s14167_s3 + $0x648] sm:$0xff] }
 0xd35   :  { %v9758_v30 = vpack.c.bf16 %v3881_v16, %v3880_v17  ;;  %v9848_v16 = vpack.c.bf16 %v4424_v63, %v4416_v37  ;;  %v4433_v17 = vld [vmem:[%s14167_s3 + $0x308] sm:$0xff]  ;;  %v4536_v48 = vld [vmem:[%s14167_s3 + $0x640] sm:$0xff] }
 0xd36   :  { %v4545_v53 = vld [vmem:[%s14167_s3 + $0x688] sm:$0xff]  ;;  %v4544_v56 = vld [vmem:[%s14167_s3 + $0x680] sm:$0xff] }
 0xd37   :  { %9759 = vmatprep.subr.bf16.mxu1 %v9758_v30  ;;  %v4553_v54 = vld [vmem:[%s14167_s3 + $0x6c8] sm:$0xff]  ;;  %v4552_v57 = vld [vmem:[%s14167_s3 + $0x6c0] sm:$0xff] }
 0xd38   :  { %9761 = vmatpush3.bf16.msra.mxu1 %v9758_v30  ;;  %v4441_v30 = vld [vmem:[%s14167_s3 + $0x348] sm:$0xff]  ;;  %v9880_v59 = vpack.c.bf16 %v4552_v57, %v4544_v56  ;;  %v4560_v63 = vld [vmem:[%s14167_s3 + $0x700] sm:$0xff] }
 0xd39   :  { %v4561_v60 = vld [vmem:[%s14167_s3 + $0x708] sm:$0xff] }
 0xd3b   :  { %8755 = vmatmul.mubr.f32.vlgmr.msra.gmra.mrb[122].mxu1 %v12669_v12 }
 0xd3c   :  { %8757 = vmatprep.mubr.f32.mxu1 %v12672_v14 }
 0xd3f   :  { %8758 = vmatmul.mubr.f32.gmra.mrb[124].mxu1 %v12677_v26 }
 0xd40   :  { %8760 = vmatprep.mubr.f32.mxu1 %v12680_v15 }
 0xd43   :  { %8761 = vmatmul.mubr.f32.gmra.mrb[126].mxu1 %v12685_v47 }
 0xd44   :  { %8763 = vmatprep.mubr.f32.mxu1 %v12688_v0 }
 0xd47   :  { %8764 = vmatmul.mubr.f32.gmra.mrb[128].mxu1 %v12693_v24 }
 0xd48   :  { %8766 = vmatprep.mubr.f32.mxu1 %v12696_v61 }
 0xd4b   :  { %8767 = vmatmul.mubr.f32.gmra.mrb[130].mxu1 %v12701_v25 }
 0xd4c   :  { %8769 = vmatprep.mubr.f32.mxu1 %v12704_v42 }
 0xd4f   :  { %8770 = vmatmul.mubr.f32.gmra.mrb[132].mxu1 %v12709_v28 }
 0xd50   :  { %8772 = vmatprep.mubr.f32.mxu1 %v12712_v31 }
 0xd53   :  { %8773 = vmatmul.mubr.f32.gmra.mrb[134].mxu1 %v12717_v33 }
 0xd54   :  { %8775 = vmatprep.mubr.f32.mxu1 %v12720_v34 }
 0xd57   :  { %8776 = vmatmul.mubr.f32.gmra.mrb[136].mxu1 %v12725_v5 }
 0xd58   :  { %4329 = vmatprep.mubr.f32.mxu1 %v11531_v1 }
 0xe0e   :  { %v8756_v12 = vpop.f32.mrb[122].mxu1 }
 0xe0f   :  { %v3980_v14 = vpop.f32.mrb[123].mxu1 }
 0xe10   :  { %4136 = vmatmul.mubr.f32.vlgmr.msra.gmra.mrb[138].mxu0 %v3980_v14  ;;  %v4432_v14 = vld [vmem:[%s14167_s3 + $0x300] sm:$0xff] }
 0xe11   :  { %4141 = vmatprep.mubr.f32.mxu0 %v11531_v1  ;;  %9829 = vmatpush1.bf16.msra.mxu0 %v9828_v18  ;;  %v9864_v18 = vpack.c.bf16 %v4488_v21, %v4480_v22 }
 0xe12   :  { %v8759_v26 = vpop.f32.mrb[124].mxu1  ;;  %9831 = vmatprep.subr.bf16.mxu0 %v9830_v8  ;;  %v9866_v8 = vpack.c.bf16 %v4505_v7, %v4497_v4 }
 0xe13   :  { %v3990_v15 = vpop.f32.mrb[125].mxu1 }
 0xe14   :  { %4142 = vmatmul.mubr.f32.gmra.mrb[140].mxu0 %v8756_v12  ;;  %v9850_v12 = vpack.c.bf16 %v4441_v30, %v4433_v17 }
 0xe15   :  { %4147 = vmatprep.mubr.f32.mxu0 %v11531_v1  ;;  %9833 = vmatpush1.bf16.msra.mxu0 %v9832_v11  ;;  %v9868_v11 = vpack.c.bf16 %v4504_v10, %v4496_v9 }
 0xe16   :  { %v8762_v47 = vpop.f32.mrb[126].mxu1  ;;  %9835 = vmatprep.subr.bf16.mxu0 %v9834_v36  ;;  %v9870_v36 = vpack.c.bf16 %v4521_v50, %v4513_v35 }
 0xe17   :  { %v4000_v0 = vpop.f32.mrb[127].mxu1 }
 0xe18   :  { %4148 = vmatmul.mubr.f32.gmra.mrb[142].mxu0 %v3990_v15 }
 0xe19   :  { %4153 = vmatprep.mubr.f32.mxu0 %v11531_v1  ;;  %9837 = vmatpush1.bf16.msra.mxu0 %v9836_v40  ;;  %v9872_v40 = vpack.c.bf16 %v4520_v39, %v4512_v38 }
 0xe1a   :  { %v8765_v24 = vpop.f32.mrb[128].mxu1  ;;  %9839 = vmatprep.subr.bf16.mxu0 %v9838_v44  ;;  %v9874_v44 = vpack.c.bf16 %v4537_v41, %v4529_v52 }
 0xe1b   :  { %v4010_v61 = vpop.f32.mrb[129].mxu1 }
 0xe1c   :  { %4154 = vmatmul.mubr.f32.gmra.mrb[144].mxu0 %v8759_v26  ;;  %v4440_v26 = vld [vmem:[%s14167_s3 + $0x340] sm:$0xff] }
 0xe1d   :  { %4159 = vmatprep.mubr.f32.mxu0 %v11531_v1  ;;  %9841 = vmatpush1.bf16.msra.mxu0 %v9840_v49  ;;  %v9852_v15 = vpack.c.bf16 %v4440_v26, %v4432_v14  ;;  %v9876_v49 = vpack.c.bf16 %v4536_v48, %v4528_v45 }
 0xe1e   :  { %v8768_v25 = vpop.f32.mrb[130].mxu1  ;;  %9843 = vmatprep.subr.bf16.mxu0 %v9842_v55  ;;  %v9878_v55 = vpack.c.bf16 %v4553_v54, %v4545_v53 }
 0xe1f   :  { %v4020_v42 = vpop.f32.mrb[131].mxu1 }
 0xe20   :  { %4160 = vmatmul.mubr.f32.gmra.mrb[146].mxu0 %v4000_v0  ;;  %v4457_v0 = vld [vmem:[%s14167_s3 + $0x3c8] sm:$0xff] }
 0xe21   :  { %4165 = vmatprep.mubr.f32.mxu0 %v11531_v1  ;;  %9845 = vmatpush1.bf16.msra.mxu0 %v9844_v58  ;;  %v4059_v58 = vld [vmem:[#allocation18] sm:$0x3] }
 0xe22   :  { %v8771_v28 = vpop.f32.mrb[132].mxu1  ;;  %9847 = vmatprep.subr.bf16.mxu0 %v9846_v62  ;;  %v4569_v62 = vld [vmem:[%s14167_s3 + $0x748] sm:$0xff]  ;;  %v12856_v17 = vrot.slane %v4059_v58, %v11933_v27 }
 0xe23   :  { %v4030_v31 = vpop.f32.mrb[133].mxu1  ;;  %v9882_v37 = vpack.c.bf16 %v4569_v62, %v4561_v60 }
 0xe24   :  { %4166 = vmatmul.mubr.f32.gmra.mrb[148].mxu0 %v8762_v47  ;;  %v4449_v47 = vld [vmem:[%s14167_s3 + $0x388] sm:$0xff] }
 0xe25   :  { %4171 = vmatprep.mubr.f32.mxu0 %v11531_v1  ;;  %9849 = vmatpush1.bf16.msra.mxu0 %v9848_v16  ;;  %v4568_v16 = vld [vmem:[%s14167_s3 + $0x740] sm:$0xff] }
 0xe26   :  { %v8774_v33 = vpop.f32.mrb[134].mxu1  ;;  %9851 = vmatprep.subr.bf16.mxu0 %v9850_v12  ;;  %v12859_v12 = vrot.slane %v4059_v58, %v11936_v29  ;;  %v9884_v14 = vpack.c.bf16 %v4568_v16, %v4560_v63 }
 0xe27   :  { %v4040_v34 = vpop.f32.mrb[135].mxu1 }
 0xe28   :  { %4172 = vmatmul.mubr.f32.gmra.mrb[150].mxu0 %v4010_v61  ;;  %v4448_v61 = vld [vmem:[%s14167_s3 + $0x380] sm:$0xff] }
 0xe29   :  { %4177 = vmatprep.mubr.f32.mxu0 %v11531_v1  ;;  %9853 = vmatpush1.bf16.msra.mxu0 %v9852_v15  ;;  %v4577_v15 = vld [vmem:[%s14167_s3 + $0x788] sm:$0xff] }
 0xe2a   :  { %v8777_v5 = vpop.f32.mrb[136].mxu1 }
 0xe2b   :  { %v4050_v43 = vpop.f32.mrb[137].mxu1 }
 0xe2c   :  { %4178 = vmatmul.mubr.f32.gmra.mrb[152].mxu0 %v8765_v24  ;;  %v9854_v24 = vpack.c.bf16 %v4457_v0, %v4449_v47  ;;  %v4585_v47 = vld [vmem:[%s14167_s3 + $0x7c8] sm:$0xff] }
 0xe2d   :  { %4183 = vmatprep.mubr.f32.mxu0 %v11531_v1  ;;  %v9886_v0 = vpack.c.bf16 %v4585_v47, %v4577_v15 }
 0xe2e   :  { %9855 = vmatprep.subr.bf16.mxu0 %v9854_v24  ;;  %v4576_v24 = vld [vmem:[%s14167_s3 + $0x780] sm:$0xff] }
 0xe30   :  { %4184 = vmatmul.mubr.f32.gmra.mrb[154].mxu0 %v4020_v42 }
 0xe31   :  { %4189 = vmatprep.mubr.f32.mxu0 %v11531_v1 }
 0xe34   :  { %4190 = vmatmul.mubr.f32.gmra.mrb[156].mxu0 %v8768_v25  ;;  %v4456_v25 = vld [vmem:[%s14167_s3 + $0x3c0] sm:$0xff] }
 0xe35   :  { %4195 = vmatprep.mubr.f32.mxu0 %v11531_v1  ;;  %v9856_v42 = vpack.c.bf16 %v4456_v25, %v4448_v61  ;;  %v4584_v61 = vld [vmem:[%s14167_s3 + $0x7c0] sm:$0xff] }
 0xe37   :  { %9857 = vmatpush1.bf16.msra.mxu0 %v9856_v42 }
 0xe38   :  { %4196 = vmatmul.mubr.f32.gmra.mrb[158].mxu0 %v4030_v31  ;;  %v4473_v31 = vld [vmem:[%s14167_s3 + $0x448] sm:$0xff] }
 0xe39   :  { %4201 = vmatprep.mubr.f32.mxu0 %v11531_v1 }
 0xe3c   :  { %4202 = vmatmul.mubr.f32.gmra.mrb[160].mxu0 %v8771_v28  ;;  %v4465_v28 = vld [vmem:[%s14167_s3 + $0x408] sm:$0xff] }
 0xe3d   :  { %4207 = vmatprep.mubr.f32.mxu0 %v11531_v1 }
 0xe40   :  { %4208 = vmatmul.mubr.f32.gmra.mrb[162].mxu0 %v4040_v34  ;;  %v4464_v34 = vld [vmem:[%s14167_s3 + $0x400] sm:$0xff] }
 0xe41   :  { %4213 = vmatprep.mubr.f32.mxu0 %v11531_v1 }
 0xe44   :  { %4214 = vmatmul.mubr.f32.gmra.mrb[164].mxu0 %v8774_v33  ;;  %v9858_v33 = vpack.c.bf16 %v4473_v31, %v4465_v28  ;;  %v9888_v31 = vpack.c.bf16 %v4584_v61, %v4576_v24 }
 0xe45   :  { %4219 = vmatprep.mubr.f32.mxu0 %v11531_v1 }
 0xe46   :  { %9859 = vmatprep.subr.bf16.mxu0 %v9858_v33 }
 0xe48   :  { %4220 = vmatmul.mubr.f32.gmra.mrb[166].mxu0 %v4050_v43 }
 0xe49   :  { %4225 = vmatprep.mubr.f32.mxu0 %v11531_v1 }
 0xe4c   :  { %4226 = vmatmul.mubr.f32.gmra.mrb[168].mxu0 %v8777_v5  ;;  %v4472_v5 = vld [vmem:[%s14167_s3 + $0x440] sm:$0xff] }
 0xe4d   :  { %v9860_v43 = vpack.c.bf16 %v4472_v5, %v4464_v34 }
 0xe4f   :  { %9861 = vmatpush1.bf16.msra.mxu0 %v9860_v43 }
 0xe50   :  { %9863 = vmatprep.subr.bf16.mxu0 %v9862_v20 }
 0xe53   :  { %9865 = vmatpush1.bf16.msra.mxu0 %v9864_v18 }
 0xe54   :  { %9867 = vmatprep.subr.bf16.mxu0 %v9866_v8 }
 0xe57   :  { %9869 = vmatpush1.bf16.msra.mxu0 %v9868_v11 }
 0xe58   :  { %9871 = vmatprep.subr.bf16.mxu0 %v9870_v36 }
 0xe5b   :  { %9873 = vmatpush1.bf16.msra.mxu0 %v9872_v40 }
 0xe5c   :  { %9875 = vmatprep.subr.bf16.mxu0 %v9874_v44 }
 0xe5f   :  { %9877 = vmatpush1.bf16.msra.mxu0 %v9876_v49 }
 0xe60   :  { %9879 = vmatprep.subr.bf16.mxu0 %v9878_v55 }
 0xe63   :  { %9881 = vmatpush1.bf16.msra.mxu0 %v9880_v59 }
 0xe64   :  { %9883 = vmatprep.subr.bf16.mxu0 %v9882_v37 }
 0xe67   :  { %9885 = vmatpush1.bf16.msra.mxu0 %v9884_v14 }
 0xe68   :  { %9887 = vmatprep.subr.bf16.mxu0 %v9886_v0 }
 0xe6b   :  { %9889 = vmatpush1.bf16.msra.mxu0 %v9888_v31 }
 0xee3   :  { %v4137_v30 = vpop.f32.mrb[138].mxu0 }
 0xee4   :  { %v4139_v26 = vpop.f32.mrb[139].mxu0  ;;  %v4138_v25 = vadd.f32 %v4137_v30, %v12856_v17 }
 0xee5   :  { %v4140_v42 = vadd.f32 %v4139_v26, %v12859_v12 }
 0xee6   :  { %v4232_v43 = vmax.f32 %v4138_v25, 0.0 }
 0xee7   :  { %v4143_v28 = vpop.f32.mrb[140].mxu0  ;;  %v4233_v19 = vmax.f32 %v4140_v42, 0.0 }
 0xee8   :  { %v4144_v33 = vadd.f32 %v4143_v28, %v12856_v17  ;;  %v4145_v34 = vpop.f32.mrb[141].mxu0 }
 0xee9   :  { %v4146_v5 = vadd.f32 %v4145_v34, %v12859_v12 }
 0xeea   :  { %v4234_v13 = vmax.f32 %v4144_v33, 0.0 }
 0xeeb   :  { %v4235_v20 = vmax.f32 %v4146_v5, 0.0  ;;  %v4149_v22 = vpop.f32.mrb[142].mxu0 }
 0xeec   :  { %v9796_v21 = vpack.c.bf16 %v4234_v13, %v4232_v43  ;;  %v4151_v18 = vpop.f32.mrb[143].mxu0  ;;  %v4150_v7 = vadd.f32 %v4149_v22, %v12856_v17 }
 0xeed   :  { %v9794_v4 = vpack.c.bf16 %v4235_v20, %v4233_v19  ;;  %v4152_v8 = vadd.f32 %v4151_v18, %v12859_v12 }
 0xeee   :  { %v4236_v50 = vmax.f32 %v4150_v7, 0.0 }
 0xeef   :  { %v4155_v9 = vpop.f32.mrb[144].mxu0  ;;  %9795 = vmatprep.subr.bf16.mxu1 %v9794_v4  ;;  %v4237_v38 = vmax.f32 %v4152_v8, 0.0 }
 0xef0   :  { %v4156_v10 = vadd.f32 %v4155_v9, %v12856_v17  ;;  %v4157_v11 = vpop.f32.mrb[145].mxu0  ;;  %9797 = vmatpush1.bf16.msra.mxu1 %v9796_v21 }
 0xef1   :  { %v4158_v35 = vadd.f32 %v4157_v11, %v12859_v12 }
 0xef2   :  { %v4238_v36 = vmax.f32 %v4156_v10, 0.0 }
 0xef3   :  { %v4239_v39 = vmax.f32 %v4158_v35, 0.0  ;;  %v4161_v40 = vpop.f32.mrb[146].mxu0 }
 0xef4   :  { %v9800_v52 = vpack.c.bf16 %v4238_v36, %v4236_v50  ;;  %v4163_v41 = vpop.f32.mrb[147].mxu0  ;;  %v4162_v45 = vadd.f32 %v4161_v40, %v12856_v17 }
 0xef5   :  { %v9798_v44 = vpack.c.bf16 %v4239_v39, %v4237_v38  ;;  %v4164_v48 = vadd.f32 %v4163_v41, %v12859_v12 }
 0xef6   :  { %v4240_v56 = vmax.f32 %v4162_v45, 0.0 }
 0xef7   :  { %v4167_v49 = vpop.f32.mrb[148].mxu0  ;;  %9799 = vmatprep.subr.bf16.mxu1 %v9798_v44  ;;  %v4241_v58 = vmax.f32 %v4164_v48, 0.0 }
 0xef8   :  { %v4168_v53 = vadd.f32 %v4167_v49, %v12856_v17  ;;  %v4169_v54 = vpop.f32.mrb[149].mxu0  ;;  %9801 = vmatpush1.bf16.msra.mxu1 %v9800_v52 }
 0xef9   :  { %v4170_v55 = vadd.f32 %v4169_v54, %v12859_v12 }
 0xefa   :  { %v4242_v57 = vmax.f32 %v4168_v53, 0.0 }
 0xefb   :  { %v4243_v59 = vmax.f32 %v4170_v55, 0.0  ;;  %v4173_v60 = vpop.f32.mrb[150].mxu0 }
 0xefc   :  { %v9804_v62 = vpack.c.bf16 %v4242_v57, %v4240_v56  ;;  %v4175_v37 = vpop.f32.mrb[151].mxu0  ;;  %v4174_v16 = vadd.f32 %v4173_v60, %v12856_v17 }
 0xefd   :  { %v9802_v63 = vpack.c.bf16 %v4243_v59, %v4241_v58  ;;  %v4176_v30 = vadd.f32 %v4175_v37, %v12859_v12 }
 0xefe   :  { %v4244_v0 = vmax.f32 %v4174_v16, 0.0 }
 0xeff   :  { %v4179_v14 = vpop.f32.mrb[152].mxu0  ;;  %9803 = vmatprep.subr.bf16.mxu1 %v9802_v63  ;;  %v4245_v61 = vmax.f32 %v4176_v30, 0.0 }
 0xf00   :  { %v4180_v26 = vadd.f32 %v4179_v14, %v12856_v17  ;;  %v4181_v15 = vpop.f32.mrb[153].mxu0  ;;  %9805 = vmatpush1.bf16.msra.mxu1 %v9804_v62 }
 0xf01   :  { %v4182_v47 = vadd.f32 %v4181_v15, %v12859_v12 }
 0xf02   :  { %v4246_v24 = vmax.f32 %v4180_v26, 0.0 }
 0xf03   :  { %v4247_v25 = vmax.f32 %v4182_v47, 0.0  ;;  %v4185_v42 = vpop.f32.mrb[154].mxu0 }
 0xf04   :  { %v9808_v28 = vpack.c.bf16 %v4246_v24, %v4244_v0  ;;  %v4187_v31 = vpop.f32.mrb[155].mxu0  ;;  %v4186_v34 = vadd.f32 %v4185_v42, %v12856_v17 }
 0xf05   :  { %v9806_v33 = vpack.c.bf16 %v4247_v25, %v4245_v61  ;;  %v4188_v5 = vadd.f32 %v4187_v31, %v12859_v12  ;;  %v4339_v31 = vld [vmem:[%s14167_s3 + $0x18] sm:$0xff] }
 0xf06   :  { %v4248_v22 = vmax.f32 %v4186_v34, 0.0 }
 0xf07   :  { %v4191_v43 = vpop.f32.mrb[156].mxu0  ;;  %9807 = vmatprep.subr.bf16.mxu1 %v9806_v33  ;;  %v4249_v18 = vmax.f32 %v4188_v5, 0.0  ;;  %v4347_v33 = vld [vmem:[%s14167_s3 + $0x58] sm:$0xff] }
 0xf08   :  { %v4192_v13 = vadd.f32 %v4191_v43, %v12856_v17  ;;  %v4193_v19 = vpop.f32.mrb[157].mxu0  ;;  %9809 = vmatpush1.bf16.msra.mxu1 %v9808_v28 }
 0xf09   :  { %v4194_v20 = vadd.f32 %v4193_v19, %v12859_v12  ;;  %v9890_v19 = vpack.c.bf16 %v4347_v33, %v4339_v31 }
 0xf0a   :  { %v4250_v21 = vmax.f32 %v4192_v13, 0.0 }
 0xf0b   :  { %v4251_v4 = vmax.f32 %v4194_v20, 0.0  ;;  %v4197_v7 = vpop.f32.mrb[158].mxu0  ;;  %v4346_v20 = vld [vmem:[%s14167_s3 + $0x50] sm:$0xff] }
 0xf0c   :  { %v9812_v8 = vpack.c.bf16 %v4250_v21, %v4248_v22  ;;  %v4199_v9 = vpop.f32.mrb[159].mxu0  ;;  %v4198_v11 = vadd.f32 %v4197_v7, %v12856_v17  ;;  %v4355_v22 = vld [vmem:[%s14167_s3 + $0x98] sm:$0xff]  ;;  %v4354_v7 = vld [vmem:[%s14167_s3 + $0x90] sm:$0xff] }
 0xf0d   :  { %v9810_v10 = vpack.c.bf16 %v4251_v4, %v4249_v18  ;;  %v4200_v35 = vadd.f32 %v4199_v9, %v12859_v12  ;;  %v4363_v21 = vld [vmem:[%s14167_s3 + $0xd8] sm:$0xff] }
 0xf0e   :  { %v4252_v40 = vmax.f32 %v4198_v11, 0.0  ;;  %v9894_v4 = vpack.c.bf16 %v4363_v21, %v4355_v22  ;;  %v4371_v9 = vld [vmem:[%s14167_s3 + $0x118] sm:$0xff]  ;;  %v4490_v22 = vld [vmem:[%s14167_s3 + $0x4d0] sm:$0xff] }
 0xf0f   :  { %v4203_v50 = vpop.f32.mrb[160].mxu0  ;;  %9811 = vmatprep.subr.bf16.mxu1 %v9810_v10  ;;  %v4253_v41 = vmax.f32 %v4200_v35, 0.0  ;;  %v4379_v10 = vld [vmem:[%s14167_s3 + $0x158] sm:$0xff] }
 0xf10   :  { %v4204_v36 = vadd.f32 %v4203_v50, %v12856_v17  ;;  %v4205_v38 = vpop.f32.mrb[161].mxu0  ;;  %9813 = vmatpush1.bf16.msra.mxu1 %v9812_v8  ;;  %v4362_v8 = vld [vmem:[%s14167_s3 + $0xd0] sm:$0xff]  ;;  %v9898_v35 = vpack.c.bf16 %v4379_v10, %v4371_v9  ;;  %v4499_v21 = vld [vmem:[%s14167_s3 + $0x518] sm:$0xff] }
 0xf11   :  { %v4206_v39 = vadd.f32 %v4205_v38, %v12859_v12  ;;  %v9896_v11 = vpack.c.bf16 %v4362_v8, %v4354_v7  ;;  %v4370_v50 = vld [vmem:[%s14167_s3 + $0x110] sm:$0xff]  ;;  %v4387_v38 = vld [vmem:[%s14167_s3 + $0x198] sm:$0xff] }
 0xf12   :  { %v4254_v52 = vmax.f32 %v4204_v36, 0.0  ;;  %v4378_v36 = vld [vmem:[%s14167_s3 + $0x150] sm:$0xff]  ;;  %v4515_v9 = vld [vmem:[%s14167_s3 + $0x598] sm:$0xff] }
 0xf13   :  { %v4255_v44 = vmax.f32 %v4206_v39, 0.0  ;;  %v4209_v45 = vpop.f32.mrb[162].mxu0  ;;  %v4395_v39 = vld [vmem:[%s14167_s3 + $0x1d8] sm:$0xff]  ;;  %v4498_v7 = vld [vmem:[%s14167_s3 + $0x510] sm:$0xff] }
 0xf14   :  { %v9816_v48 = vpack.c.bf16 %v4254_v52, %v4252_v40  ;;  %v4211_v49 = vpop.f32.mrb[163].mxu0  ;;  %v4210_v54 = vadd.f32 %v4209_v45, %v12856_v17  ;;  %v9900_v40 = vpack.c.bf16 %v4378_v36, %v4370_v50  ;;  %v9902_v52 = vpack.c.bf16 %v4395_v39, %v4387_v38  ;;  %v4403_v45 = vld [vmem:[%s14167_s3 + $0x218] sm:$0xff]  ;;  %v4506_v8 = vld [vmem:[%s14167_s3 + $0x550] sm:$0xff] }
 0xf15   :  { %v9814_v53 = vpack.c.bf16 %v4255_v44, %v4253_v41  ;;  %v4212_v55 = vadd.f32 %v4211_v49, %v12859_v12  ;;  %v4386_v41 = vld [vmem:[%s14167_s3 + $0x190] sm:$0xff]  ;;  %v4523_v10 = vld [vmem:[%s14167_s3 + $0x5d8] sm:$0xff] }
 0xf16   :  { %v4256_v60 = vmax.f32 %v4210_v54, 0.0  ;;  %v4394_v44 = vld [vmem:[%s14167_s3 + $0x1d0] sm:$0xff]  ;;  %v4531_v38 = vld [vmem:[%s14167_s3 + $0x618] sm:$0xff] }
 0xf17   :  { %v4215_v56 = vpop.f32.mrb[164].mxu0  ;;  %9815 = vmatprep.subr.bf16.mxu1 %v9814_v53  ;;  %v4257_v37 = vmax.f32 %v4212_v55, 0.0  ;;  %v9904_v49 = vpack.c.bf16 %v4394_v44, %v4386_v41  ;;  %v4402_v54 = vld [vmem:[%s14167_s3 + $0x210] sm:$0xff]  ;;  %v4539_v39 = vld [vmem:[%s14167_s3 + $0x658] sm:$0xff] }
 0xf18   :  { %v4216_v57 = vadd.f32 %v4215_v56, %v12856_v17  ;;  %v4217_v58 = vpop.f32.mrb[165].mxu0  ;;  %9817 = vmatpush1.bf16.msra.mxu1 %v9816_v48  ;;  %v4411_v48 = vld [vmem:[%s14167_s3 + $0x258] sm:$0xff]  ;;  %v4410_v55 = vld [vmem:[%s14167_s3 + $0x250] sm:$0xff] }
 0xf19   :  { %v4218_v59 = vadd.f32 %v4217_v58, %v12859_v12  ;;  %v9906_v53 = vpack.c.bf16 %v4411_v48, %v4403_v45  ;;  %v4419_v56 = vld [vmem:[%s14167_s3 + $0x298] sm:$0xff]  ;;  %v9908_v58 = vpack.c.bf16 %v4410_v55, %v4402_v54  ;;  %v4514_v50 = vld [vmem:[%s14167_s3 + $0x590] sm:$0xff] }
 0xf1a   :  { %v4258_v62 = vmax.f32 %v4216_v57, 0.0  ;;  %v4427_v57 = vld [vmem:[%s14167_s3 + $0x2d8] sm:$0xff]  ;;  %v4522_v36 = vld [vmem:[%s14167_s3 + $0x5d0] sm:$0xff] }
 0xf1b   :  { %v4259_v63 = vmax.f32 %v4218_v59, 0.0  ;;  %v4221_v16 = vpop.f32.mrb[166].mxu0  ;;  %v9910_v59 = vpack.c.bf16 %v4427_v57, %v4419_v56  ;;  %v4530_v41 = vld [vmem:[%s14167_s3 + $0x610] sm:$0xff]  ;;  %v4547_v45 = vld [vmem:[%s14167_s3 + $0x698] sm:$0xff] }
 0xf1c   :  { %v9820_v30 = vpack.c.bf16 %v4258_v62, %v4256_v60  ;;  %v4223_v14 = vpop.f32.mrb[167].mxu0  ;;  %v4222_v15 = vadd.f32 %v4221_v16, %v12856_v17  ;;  %v4418_v60 = vld [vmem:[%s14167_s3 + $0x290] sm:$0xff]  ;;  %v4555_v48 = vld [vmem:[%s14167_s3 + $0x6d8] sm:$0xff] }
 0xf1d   :  { %v9818_v26 = vpack.c.bf16 %v4259_v63, %v4257_v37  ;;  %v4224_v47 = vadd.f32 %v4223_v14, %v12859_v12  ;;  %v4426_v62 = vld [vmem:[%s14167_s3 + $0x2d0] sm:$0xff]  ;;  %v4435_v37 = vld [vmem:[%s14167_s3 + $0x318] sm:$0xff] }
 0xf1e   :  { %v4260_v42 = vmax.f32 %v4222_v15, 0.0  ;;  %v4443_v63 = vld [vmem:[%s14167_s3 + $0x358] sm:$0xff]  ;;  %v9912_v16 = vpack.c.bf16 %v4426_v62, %v4418_v60  ;;  %v4434_v14 = vld [vmem:[%s14167_s3 + $0x310] sm:$0xff] }
 0xf1f   :  { %v4227_v0 = vpop.f32.mrb[168].mxu0  ;;  %9819 = vmatprep.subr.bf16.mxu1 %v9818_v26  ;;  %v4261_v34 = vmax.f32 %v4224_v47, 0.0  ;;  %v4442_v26 = vld [vmem:[%s14167_s3 + $0x350] sm:$0xff]  ;;  %v4451_v15 = vld [vmem:[%s14167_s3 + $0x398] sm:$0xff] }
 0xf20   :  { %v4228_v24 = vadd.f32 %v4227_v0, %v12856_v17  ;;  %v4229_v61 = vpop.f32.mrb[169].mxu0  ;;  %9821 = vmatpush1.bf16.msra.mxu1 %v9820_v30  ;;  %v4338_v17 = vld [vmem:[%s14167_s3 + $0x10] sm:$0xff]  ;;  %v9914_v30 = vpack.c.bf16 %v4443_v63, %v4435_v37  ;;  %v4459_v47 = vld [vmem:[%s14167_s3 + $0x3d8] sm:$0xff]  ;;  %v9916_v0 = vpack.c.bf16 %v4442_v26, %v4434_v14 }
 0xf21   :  { %v4230_v25 = vadd.f32 %v4229_v61, %v12859_v12  ;;  %v4264_v12 = vld [vmem:[%s14168_s29] sm:$0xff]  ;;  %v9892_v18 = vpack.c.bf16 %v4346_v20, %v4338_v17  ;;  %v4450_v61 = vld [vmem:[%s14167_s3 + $0x390] sm:$0xff]  ;;  %v4563_v56 = vld [vmem:[%s14167_s3 + $0x718] sm:$0xff] }
 0xf22   :  { %v4262_v28 = vmax.f32 %v4228_v24, 0.0  ;;  %v9918_v24 = vpack.c.bf16 %v4459_v47, %v4451_v15  ;;  %v4482_v20 = vld [vmem:[%s14167_s3 + $0x490] sm:$0xff]  ;;  %v4571_v57 = vld [vmem:[%s14167_s3 + $0x758] sm:$0xff]  ;;  %v4341_v47 = vld [vmem:[%s14167_s3 + $0x28] sm:$0xff] }
 0xf23   :  { %v4263_v5 = vmax.f32 %v4230_v25, 0.0  ;;  %v4458_v25 = vld [vmem:[%s14167_s3 + $0x3d0] sm:$0xff]  ;;  %v4579_v37 = vld [vmem:[%s14167_s3 + $0x798] sm:$0xff] }
 0xf24   :  { %v9824_v43 = vpack.c.bf16 %v4262_v28, %v4260_v42  ;;  %v4467_v42 = vld [vmem:[%s14167_s3 + $0x418] sm:$0xff]  ;;  %v9920_v31 = vpack.c.bf16 %v4458_v25, %v4450_v61  ;;  %v4538_v44 = vld [vmem:[%s14167_s3 + $0x650] sm:$0xff] }
 0xf25   :  { %v9822_v13 = vpack.c.bf16 %v4263_v5, %v4261_v34  ;;  %v4475_v28 = vld [vmem:[%s14167_s3 + $0x458] sm:$0xff]  ;;  %v4466_v34 = vld [vmem:[%s14167_s3 + $0x410] sm:$0xff] }
 0xf26   :  { %v9922_v33 = vpack.c.bf16 %v4475_v28, %v4467_v42  ;;  %v4474_v5 = vld [vmem:[%s14167_s3 + $0x450] sm:$0xff]  ;;  %v4587_v63 = vld [vmem:[%s14167_s3 + $0x7d8] sm:$0xff]  ;;  %v4340_v28 = vld [vmem:[%s14167_s3 + $0x20] sm:$0xff] }
 0xf27   :  { %9823 = vmatprep.subr.bf16.mxu1 %v9822_v13  ;;  %v4491_v13 = vld [vmem:[%s14167_s3 + $0x4d8] sm:$0xff]  ;;  %v4546_v54 = vld [vmem:[%s14167_s3 + $0x690] sm:$0xff] }
 0xf28   :  { %9825 = vmatpush1.bf16.msra.mxu1 %v9824_v43  ;;  %v4483_v43 = vld [vmem:[%s14167_s3 + $0x498] sm:$0xff]  ;;  %v4554_v55 = vld [vmem:[%s14167_s3 + $0x6d0] sm:$0xff] }
 0xf29   :  { %9891 = vmatprep.subr.bf16.mxu1 %v9890_v19  ;;  %v9924_v19 = vpack.c.bf16 %v4474_v5, %v4466_v34  ;;  %v9926_v17 = vpack.c.bf16 %v4491_v13, %v4483_v43  ;;  %v4562_v60 = vld [vmem:[%s14167_s3 + $0x710] sm:$0xff]  ;;  %v4351_v25 = vld [vmem:[%s14167_s3 + $0x78] sm:$0xff]  ;;  %v4357_v5 = vld [vmem:[%s14167_s3 + $0xa8] sm:$0xff] }
 0xf2a   :  { %v4570_v62 = vld [vmem:[%s14167_s3 + $0x750] sm:$0xff]  ;;  %v4365_v43 = vld [vmem:[%s14167_s3 + $0xe8] sm:$0xff]  ;;  %v4359_v13 = vld [vmem:[%s14167_s3 + $0xb8] sm:$0xff] }
 0xf2b   :  { %4330 = vmatmul.mubr.f32.vlgmr.msra.gmra.mrb[138].mxu1 %v4264_v12  ;;  %v4507_v12 = vld [vmem:[%s14167_s3 + $0x558] sm:$0xff]  ;;  %v4578_v14 = vld [vmem:[%s14167_s3 + $0x790] sm:$0xff] }
 0xf2c   :  { %9893 = vmatpush1.bf16.msra.mxu1 %v9892_v18  ;;  %v9928_v18 = vpack.c.bf16 %v4490_v22, %v4482_v20  ;;  %v4586_v26 = vld [vmem:[%s14167_s3 + $0x7d0] sm:$0xff] }
 0xf2d   :  { %9895 = vmatprep.subr.bf16.mxu1 %v9894_v4  ;;  %v9930_v4 = vpack.c.bf16 %v4507_v12, %v4499_v21  ;;  %v9952_v15 = vpack.c.bf16 %v4586_v26, %v4578_v14  ;;  %v4350_v34 = vld [vmem:[%s14167_s3 + $0x70] sm:$0xff]  ;;  %v4356_v21 = vld [vmem:[%s14167_s3 + $0xa0] sm:$0xff]  ;;  %v4415_v14 = vld [vmem:[%s14167_s3 + $0x278] sm:$0xff] }
 0xf2e   :  { %v4364_v12 = vld [vmem:[%s14167_s3 + $0xe0] sm:$0xff] }
 0xf30   :  { %9897 = vmatpush1.bf16.msra.mxu1 %v9896_v11  ;;  %v9932_v11 = vpack.c.bf16 %v4506_v8, %v4498_v7  ;;  %v4358_v7 = vld [vmem:[%s14167_s3 + $0xb0] sm:$0xff] }
 0xf31   :  { %9899 = vmatprep.subr.bf16.mxu1 %v9898_v35  ;;  %v9934_v35 = vpack.c.bf16 %v4523_v10, %v4515_v9  ;;  %v4366_v8 = vld [vmem:[%s14167_s3 + $0xf0] sm:$0xff]  ;;  %v4373_v9 = vld [vmem:[%s14167_s3 + $0x128] sm:$0xff] }
 0xf34   :  { %9901 = vmatpush1.bf16.msra.mxu1 %v9900_v40  ;;  %v9936_v40 = vpack.c.bf16 %v4522_v36, %v4514_v50  ;;  %v4383_v50 = vld [vmem:[%s14167_s3 + $0x178] sm:$0xff]  ;;  %v9960_v36 = vpack.c.bf16 %v4364_v12, %v4356_v21  ;;  %v4422_v21 = vld [vmem:[%s14167_s3 + $0x2b0] sm:$0xff] }
 0xf35   :  { %9903 = vmatprep.subr.bf16.mxu1 %v9902_v52  ;;  %v9938_v52 = vpack.c.bf16 %v4539_v39, %v4531_v38  ;;  %v10024_v38 = vpack.c.bf16 %v4366_v8, %v4358_v7  ;;  %v4372_v39 = vld [vmem:[%s14167_s3 + $0x120] sm:$0xff]  ;;  %v4430_v12 = vld [vmem:[%s14167_s3 + $0x2f0] sm:$0xff]  ;;  %v4439_v7 = vld [vmem:[%s14167_s3 + $0x338] sm:$0xff] }
 0xf36   :  { %v4447_v8 = vld [vmem:[%s14167_s3 + $0x378] sm:$0xff] }
 0xf38   :  { %9905 = vmatpush1.bf16.msra.mxu1 %v9904_v49  ;;  %v9940_v49 = vpack.c.bf16 %v4538_v44, %v4530_v41  ;;  %v4374_v44 = vld [vmem:[%s14167_s3 + $0x130] sm:$0xff] }
 0xf39   :  { %9907 = vmatprep.subr.bf16.mxu1 %v9906_v53  ;;  %v9942_v53 = vpack.c.bf16 %v4555_v48, %v4547_v45  ;;  %v4382_v45 = vld [vmem:[%s14167_s3 + $0x170] sm:$0xff]  ;;  %v4389_v48 = vld [vmem:[%s14167_s3 + $0x1a8] sm:$0xff] }
 0xf3c   :  { %9909 = vmatpush1.bf16.msra.mxu1 %v9908_v58  ;;  %v9944_v58 = vpack.c.bf16 %v4554_v55, %v4546_v54  ;;  %v4399_v54 = vld [vmem:[%s14167_s3 + $0x1f8] sm:$0xff] }
 0xf3d   :  { %9911 = vmatprep.subr.bf16.mxu1 %v9910_v59  ;;  %v9946_v59 = vpack.c.bf16 %v4571_v57, %v4563_v56  ;;  %v10028_v56 = vpack.c.bf16 %v4382_v45, %v4374_v44  ;;  %v4388_v57 = vld [vmem:[%s14167_s3 + $0x1a0] sm:$0xff]  ;;  %v4463_v44 = vld [vmem:[%s14167_s3 + $0x3f8] sm:$0xff] }
 0xf40   :  { %9913 = vmatpush1.bf16.msra.mxu1 %v9912_v16  ;;  %v9948_v16 = vpack.c.bf16 %v4570_v62, %v4562_v60  ;;  %v4390_v62 = vld [vmem:[%s14167_s3 + $0x1b0] sm:$0xff] }
 0xf41   :  { %9915 = vmatprep.subr.bf16.mxu1 %v9914_v30  ;;  %v9950_v30 = vpack.c.bf16 %v4587_v63, %v4579_v37  ;;  %v4398_v37 = vld [vmem:[%s14167_s3 + $0x1f0] sm:$0xff]  ;;  %v4405_v63 = vld [vmem:[%s14167_s3 + $0x228] sm:$0xff] }
 0xf44   :  { %9917 = vmatpush1.bf16.msra.mxu1 %v9916_v0  ;;  %v4349_v0 = vld [vmem:[%s14167_s3 + $0x68] sm:$0xff] }
 0xf45   :  { %9919 = vmatprep.subr.bf16.mxu1 %v9918_v24  ;;  %v4343_v24 = vld [vmem:[%s14167_s3 + $0x38] sm:$0xff]  ;;  %v9954_v61 = vpack.c.bf16 %v4349_v0, %v4341_v47  ;;  %v4404_v47 = vld [vmem:[%s14167_s3 + $0x220] sm:$0xff] }
 0xf46   :  { %v10018_v42 = vpack.c.bf16 %v4351_v25, %v4343_v24  ;;  %v4412_v0 = vld [vmem:[%s14167_s3 + $0x260] sm:$0xff]  ;;  %v4406_v25 = vld [vmem:[%s14167_s3 + $0x230] sm:$0xff] }
 0xf47   :  { %9955 = vmatprep.subr.bf16.mxu0 %v9954_v61 }
 0xf48   :  { %9921 = vmatpush1.bf16.msra.mxu1 %v9920_v31  ;;  %v4348_v31 = vld [vmem:[%s14167_s3 + $0x60] sm:$0xff] }
 0xf49   :  { %9923 = vmatprep.subr.bf16.mxu1 %v9922_v33  ;;  %v4342_v33 = vld [vmem:[%s14167_s3 + $0x30] sm:$0xff]  ;;  %v9956_v20 = vpack.c.bf16 %v4348_v31, %v4340_v28  ;;  %v4421_v28 = vld [vmem:[%s14167_s3 + $0x2a8] sm:$0xff] }
 0xf4a   :  { %v10020_v22 = vpack.c.bf16 %v4350_v34, %v4342_v33  ;;  %v4429_v31 = vld [vmem:[%s14167_s3 + $0x2e8] sm:$0xff]  ;;  %v4423_v33 = vld [vmem:[%s14167_s3 + $0x2b8] sm:$0xff] }
 0xf4b   :  { %v4431_v34 = vld [vmem:[%s14167_s3 + $0x2f8] sm:$0xff] }
 0xf4c   :  { %9925 = vmatpush1.bf16.msra.mxu1 %v9924_v19  ;;  %v4367_v19 = vld [vmem:[%s14167_s3 + $0xf8] sm:$0xff] }
 0xf4d   :  { %9927 = vmatprep.subr.bf16.mxu1 %v9926_v17  ;;  %v10022_v10 = vpack.c.bf16 %v4367_v19, %v4359_v13  ;;  %v4420_v13 = vld [vmem:[%s14167_s3 + $0x2a0] sm:$0xff] }
 0xf4e   :  { %v4428_v19 = vld [vmem:[%s14167_s3 + $0x2e0] sm:$0xff] }
 0xf50   :  { %9929 = vmatpush1.bf16.msra.mxu1 %v9928_v18 }
 0xf51   :  { %9931 = vmatprep.subr.bf16.mxu1 %v9930_v4  ;;  %v9958_v4 = vpack.c.bf16 %v4365_v43, %v4357_v5  ;;  %v9972_v5 = vpack.c.bf16 %v4412_v0, %v4404_v47  ;;  %v4478_v47 = vld [vmem:[%s14167_s3 + $0x470] sm:$0xff]  ;;  %v4485_v0 = vld [vmem:[%s14167_s3 + $0x4a8] sm:$0xff] }
 0xf54   :  { %9933 = vmatpush1.bf16.msra.mxu1 %v9932_v11  ;;  %v4381_v11 = vld [vmem:[%s14167_s3 + $0x168] sm:$0xff] }
 0xf55   :  { %9935 = vmatprep.subr.bf16.mxu1 %v9934_v35  ;;  %v4375_v35 = vld [vmem:[%s14167_s3 + $0x138] sm:$0xff] }
 0xf56   :  { %v10026_v41 = vpack.c.bf16 %v4383_v50, %v4375_v35  ;;  %v4444_v35 = vld [vmem:[%s14167_s3 + $0x360] sm:$0xff] }
 0xf58   :  { %9937 = vmatpush1.bf16.msra.mxu1 %v9936_v40  ;;  %v4380_v40 = vld [vmem:[%s14167_s3 + $0x160] sm:$0xff] }
 0xf59   :  { %9939 = vmatprep.subr.bf16.mxu1 %v9938_v52  ;;  %v9962_v52 = vpack.c.bf16 %v4381_v11, %v4373_v9  ;;  %v9964_v55 = vpack.c.bf16 %v4380_v40, %v4372_v39  ;;  %v9976_v9 = vpack.c.bf16 %v4428_v19, %v4420_v13  ;;  %v4436_v11 = vld [vmem:[%s14167_s3 + $0x320] sm:$0xff]  ;;  %v4446_v39 = vld [vmem:[%s14167_s3 + $0x370] sm:$0xff]  ;;  %v4453_v40 = vld [vmem:[%s14167_s3 + $0x3a8] sm:$0xff] }
 0xf5a   :  { %v9980_v45 = vpack.c.bf16 %v4444_v35, %v4436_v11  ;;  %v4494_v13 = vld [vmem:[%s14167_s3 + $0x4f0] sm:$0xff]  ;;  %v4501_v19 = vld [vmem:[%s14167_s3 + $0x528] sm:$0xff] }
 0xf5b   :  { %v4510_v11 = vld [vmem:[%s14167_s3 + $0x570] sm:$0xff]  ;;  %v4517_v35 = vld [vmem:[%s14167_s3 + $0x5a8] sm:$0xff] }
 0xf5c   :  { %9941 = vmatpush1.bf16.msra.mxu1 %v9940_v49  ;;  %v4397_v49 = vld [vmem:[%s14167_s3 + $0x1e8] sm:$0xff] }
 0xf5d   :  { %9943 = vmatprep.subr.bf16.mxu1 %v9942_v53  ;;  %v4391_v53 = vld [vmem:[%s14167_s3 + $0x1b8] sm:$0xff] }
 0xf5e   :  { %v10030_v60 = vpack.c.bf16 %v4399_v54, %v4391_v53  ;;  %v4460_v53 = vld [vmem:[%s14167_s3 + $0x3e0] sm:$0xff] }
 0xf60   :  { %9945 = vmatpush1.bf16.msra.mxu1 %v9944_v58  ;;  %v4396_v58 = vld [vmem:[%s14167_s3 + $0x1e0] sm:$0xff] }
 0xf61   :  { %9947 = vmatprep.subr.bf16.mxu1 %v9946_v59  ;;  %v9966_v59 = vpack.c.bf16 %v4397_v49, %v4389_v48  ;;  %v9968_v26 = vpack.c.bf16 %v4396_v58, %v4388_v57  ;;  %v4452_v49 = vld [vmem:[%s14167_s3 + $0x3a0] sm:$0xff]  ;;  %v4462_v57 = vld [vmem:[%s14167_s3 + $0x3f0] sm:$0xff]  ;;  %v4469_v58 = vld [vmem:[%s14167_s3 + $0x428] sm:$0xff] }
 0xf64   :  { %9949 = vmatpush1.bf16.msra.mxu1 %v9948_v16  ;;  %v4413_v16 = vld [vmem:[%s14167_s3 + $0x268] sm:$0xff] }
 0xf65   :  { %9951 = vmatprep.subr.bf16.mxu1 %v9950_v30  ;;  %v4407_v30 = vld [vmem:[%s14167_s3 + $0x238] sm:$0xff]  ;;  %v9970_v24 = vpack.c.bf16 %v4413_v16, %v4405_v63  ;;  %v4468_v16 = vld [vmem:[%s14167_s3 + $0x420] sm:$0xff] }
 0xf66   :  { %v10034_v61 = vpack.c.bf16 %v4415_v14, %v4407_v30  ;;  %v4476_v30 = vld [vmem:[%s14167_s3 + $0x460] sm:$0xff] }
 0xf68   :  { %9953 = vmatpush1.bf16.msra.mxu1 %v9952_v15  ;;  %v10032_v15 = vpack.c.bf16 %v4398_v37, %v4390_v62  ;;  %v4479_v62 = vld [vmem:[%s14167_s3 + $0x478] sm:$0xff]  ;;  %v9984_v37 = vpack.c.bf16 %v4460_v53, %v4452_v49  ;;  %v4526_v49 = vld [vmem:[%s14167_s3 + $0x5f0] sm:$0xff]  ;;  %v4533_v53 = vld [vmem:[%s14167_s3 + $0x628] sm:$0xff] }
 0xf69   :  { %10019 = vmatprep.subr.bf16.mxu1 %v10018_v42  ;;  %v4414_v42 = vld [vmem:[%s14167_s3 + $0x270] sm:$0xff] }
 0xf6a   :  { %v10036_v43 = vpack.c.bf16 %v4414_v42, %v4406_v25  ;;  %v4495_v25 = vld [vmem:[%s14167_s3 + $0x4f8] sm:$0xff]  ;;  %v9988_v42 = vpack.c.bf16 %v4476_v30, %v4468_v16  ;;  %v4542_v16 = vld [vmem:[%s14167_s3 + $0x670] sm:$0xff]  ;;  %v4549_v30 = vld [vmem:[%s14167_s3 + $0x6a8] sm:$0xff] }
 0xffe   :  { %v12974_v17 = vpop.f32.mrb[138].mxu1 }
 0xfff   :  { %v4333_v18 = vpop.f32.mrb[139].mxu1 }
0x1000   :  { %4698 = vmatprep.mubr.f32.mxu0 %v4333_v18  ;;  %4769 = vmatprep.mubr.f32.mxu1 %v4333_v18 }
0x1001   :  { %4699 = vmatmul.mubr.f32.vlgmr.msra.gmra.mrb[170].mxu0 %v12974_v17  ;;  %4770 = vmatmul.mubr.f32.vlgmr.msra.gmra.mrb[140].mxu1 %v12974_v17 }
0x1002   :  { %9957 = vmatpush1.bf16.msra.mxu0 %v9956_v20  ;;  %10021 = vmatpush1.bf16.msra.mxu1 %v10020_v22  ;;  %v9974_v20 = vpack.c.bf16 %v4429_v31, %v4421_v28  ;;  %v10038_v22 = vpack.c.bf16 %v4431_v34, %v4423_v33  ;;  %v4484_v31 = vld [vmem:[%s14167_s3 + $0x4a0] sm:$0xff] }
0x1003   :  { %9959 = vmatprep.subr.bf16.mxu0 %v9958_v4  ;;  %4840 = vmatprep.mubr.f32.mxu0 %v4333_v18  ;;  %v4445_v4 = vld [vmem:[%s14167_s3 + $0x368] sm:$0xff]  ;;  %v4492_v33 = vld [vmem:[%s14167_s3 + $0x4e0] sm:$0xff] }
0x1004   :  { %10023 = vmatprep.subr.bf16.mxu1 %v10022_v10  ;;  %4911 = vmatprep.mubr.f32.mxu1 %v4333_v18  ;;  %v4437_v18 = vld [vmem:[%s14167_s3 + $0x328] sm:$0xff]  ;;  %v10040_v10 = vpack.c.bf16 %v4430_v12, %v4422_v21  ;;  %v4511_v21 = vld [vmem:[%s14167_s3 + $0x578] sm:$0xff]  ;;  %v9992_v12 = vpack.c.bf16 %v4492_v33, %v4484_v31  ;;  %v4558_v31 = vld [vmem:[%s14167_s3 + $0x6f0] sm:$0xff] }
0x1005   :  { %v9978_v50 = vpack.c.bf16 %v4445_v4, %v4437_v18  ;;  %v4500_v4 = vld [vmem:[%s14167_s3 + $0x520] sm:$0xff]  ;;  %v4565_v33 = vld [vmem:[%s14167_s3 + $0x728] sm:$0xff] }
0x1006   :  { %9961 = vmatpush1.bf16.msra.mxu0 %v9960_v36  ;;  %10025 = vmatpush1.bf16.msra.mxu1 %v10024_v38  ;;  %v10042_v36 = vpack.c.bf16 %v4447_v8, %v4439_v7  ;;  %v4438_v38 = vld [vmem:[%s14167_s3 + $0x330] sm:$0xff]  ;;  %v4508_v7 = vld [vmem:[%s14167_s3 + $0x560] sm:$0xff] }
0x1007   :  { %9963 = vmatprep.subr.bf16.mxu0 %v9962_v52  ;;  %10027 = vmatprep.subr.bf16.mxu1 %v10026_v41  ;;  %v4461_v52 = vld [vmem:[%s14167_s3 + $0x3e8] sm:$0xff]  ;;  %v4455_v41 = vld [vmem:[%s14167_s3 + $0x3b8] sm:$0xff]  ;;  %v10044_v48 = vpack.c.bf16 %v4446_v39, %v4438_v38  ;;  %v9996_v39 = vpack.c.bf16 %v4508_v7, %v4500_v4  ;;  %v4574_v4 = vld [vmem:[%s14167_s3 + $0x770] sm:$0xff] }
0x1008   :  { %v9982_v54 = vpack.c.bf16 %v4461_v52, %v4453_v40  ;;  %v4527_v38 = vld [vmem:[%s14167_s3 + $0x5f8] sm:$0xff]  ;;  %v4516_v52 = vld [vmem:[%s14167_s3 + $0x5a0] sm:$0xff]  ;;  %v4581_v7 = vld [vmem:[%s14167_s3 + $0x7a8] sm:$0xff] }
0x100a   :  { %9965 = vmatpush1.bf16.msra.mxu0 %v9964_v55  ;;  %10029 = vmatpush1.bf16.msra.mxu1 %v10028_v56  ;;  %v10046_v55 = vpack.c.bf16 %v4463_v44, %v4455_v41  ;;  %v4454_v56 = vld [vmem:[%s14167_s3 + $0x3b0] sm:$0xff]  ;;  %v4524_v41 = vld [vmem:[%s14167_s3 + $0x5e0] sm:$0xff] }
0x100b   :  { %9967 = vmatprep.subr.bf16.mxu0 %v9966_v59  ;;  %10031 = vmatprep.subr.bf16.mxu1 %v10030_v60  ;;  %v4477_v59 = vld [vmem:[%s14167_s3 + $0x468] sm:$0xff]  ;;  %v4471_v60 = vld [vmem:[%s14167_s3 + $0x438] sm:$0xff]  ;;  %v10048_v63 = vpack.c.bf16 %v4462_v57, %v4454_v56  ;;  %v10000_v57 = vpack.c.bf16 %v4524_v41, %v4516_v52  ;;  %v4590_v52 = vld [vmem:[%s14167_s3 + $0x7f0] sm:$0xff] }
0x100c   :  { %v9986_v14 = vpack.c.bf16 %v4477_v59, %v4469_v58  ;;  %v4543_v56 = vld [vmem:[%s14167_s3 + $0x678] sm:$0xff]  ;;  %v4532_v59 = vld [vmem:[%s14167_s3 + $0x620] sm:$0xff] }
0x100d   :  { %v4942_v41 = vld [vmem:[%s14169_s28 + $0x80] sm:$0xff] }
0x100e   :  { %9969 = vmatpush1.bf16.msra.mxu0 %v9968_v26  ;;  %10033 = vmatpush1.bf16.msra.mxu1 %v10032_v15  ;;  %v10050_v26 = vpack.c.bf16 %v4479_v62, %v4471_v60  ;;  %v4470_v15 = vld [vmem:[%s14167_s3 + $0x430] sm:$0xff]  ;;  %v4540_v60 = vld [vmem:[%s14167_s3 + $0x660] sm:$0xff] }
0x100f   :  { %9971 = vmatprep.subr.bf16.mxu0 %v9970_v24  ;;  %10035 = vmatprep.subr.bf16.mxu1 %v10034_v61  ;;  %v4493_v24 = vld [vmem:[%s14167_s3 + $0x4e8] sm:$0xff]  ;;  %v4487_v61 = vld [vmem:[%s14167_s3 + $0x4b8] sm:$0xff]  ;;  %v10052_v28 = vpack.c.bf16 %v4478_v47, %v4470_v15  ;;  %v10004_v47 = vpack.c.bf16 %v4540_v60, %v4532_v59  ;;  %v4944_v60 = vld [vmem:[%s14169_s28 + $0x90] sm:$0xff] }
0x1010   :  { %v9990_v34 = vpack.c.bf16 %v4493_v24, %v4485_v0  ;;  %v4559_v15 = vld [vmem:[%s14167_s3 + $0x6f8] sm:$0xff]  ;;  %v4548_v24 = vld [vmem:[%s14167_s3 + $0x6a0] sm:$0xff]  ;;  %v4959_v59 = vld [vmem:[%s14169_s28 + $0x108] sm:$0xff] }
0x1012   :  { %9973 = vmatpush1.bf16.msra.mxu0 %v9972_v5  ;;  %10037 = vmatpush1.bf16.msra.mxu1 %v10036_v43  ;;  %v10054_v5 = vpack.c.bf16 %v4495_v25, %v4487_v61  ;;  %v4486_v43 = vld [vmem:[%s14167_s3 + $0x4b0] sm:$0xff]  ;;  %v4556_v61 = vld [vmem:[%s14167_s3 + $0x6e0] sm:$0xff] }
0x1013   :  { %9975 = vmatprep.subr.bf16.mxu0 %v9974_v20  ;;  %10039 = vmatprep.subr.bf16.mxu1 %v10038_v22  ;;  %v4509_v20 = vld [vmem:[%s14167_s3 + $0x568] sm:$0xff]  ;;  %v4503_v22 = vld [vmem:[%s14167_s3 + $0x538] sm:$0xff]  ;;  %v10056_v18 = vpack.c.bf16 %v4494_v13, %v4486_v43  ;;  %v10008_v13 = vpack.c.bf16 %v4556_v61, %v4548_v24  ;;  %v4946_v61 = vld [vmem:[%s14169_s28 + $0xa0] sm:$0xff] }
0x1014   :  { %v9994_v8 = vpack.c.bf16 %v4509_v20, %v4501_v19  ;;  %v4575_v43 = vld [vmem:[%s14167_s3 + $0x778] sm:$0xff]  ;;  %v4564_v20 = vld [vmem:[%s14167_s3 + $0x720] sm:$0xff] }
0x1015   :  { %v4961_v24 = vld [vmem:[%s14169_s28 + $0x118] sm:$0xff] }
0x1016   :  { %9977 = vmatpush1.bf16.msra.mxu0 %v9976_v9  ;;  %10041 = vmatpush1.bf16.msra.mxu1 %v10040_v10  ;;  %v10058_v9 = vpack.c.bf16 %v4511_v21, %v4503_v22  ;;  %v4502_v10 = vld [vmem:[%s14167_s3 + $0x530] sm:$0xff]  ;;  %v4572_v22 = vld [vmem:[%s14167_s3 + $0x760] sm:$0xff] }
0x1017   :  { %9979 = vmatprep.subr.bf16.mxu0 %v9978_v50  ;;  %10043 = vmatprep.subr.bf16.mxu1 %v10042_v36  ;;  %v4525_v50 = vld [vmem:[%s14167_s3 + $0x5e8] sm:$0xff]  ;;  %v4519_v36 = vld [vmem:[%s14167_s3 + $0x5b8] sm:$0xff]  ;;  %v10060_v40 = vpack.c.bf16 %v4510_v11, %v4502_v10  ;;  %v10012_v11 = vpack.c.bf16 %v4572_v22, %v4564_v20  ;;  %v4948_v22 = vld [vmem:[%s14169_s28 + $0xb0] sm:$0xff] }
0x1018   :  { %v9998_v44 = vpack.c.bf16 %v4525_v50, %v4517_v35  ;;  %v4591_v10 = vld [vmem:[%s14167_s3 + $0x7f8] sm:$0xff]  ;;  %v4580_v50 = vld [vmem:[%s14167_s3 + $0x7a0] sm:$0xff]  ;;  %v4963_v20 = vld [vmem:[%s14169_s28 + $0x128] sm:$0xff] }
0x101a   :  { %9981 = vmatpush1.bf16.msra.mxu0 %v9980_v45  ;;  %10045 = vmatpush1.bf16.msra.mxu1 %v10044_v48  ;;  %v10062_v45 = vpack.c.bf16 %v4527_v38, %v4519_v36  ;;  %v4518_v48 = vld [vmem:[%s14167_s3 + $0x5b0] sm:$0xff]  ;;  %v4588_v36 = vld [vmem:[%s14167_s3 + $0x7e0] sm:$0xff] }
0x101b   :  { %9983 = vmatprep.subr.bf16.mxu0 %v9982_v54  ;;  %10047 = vmatprep.subr.bf16.mxu1 %v10046_v55  ;;  %v4541_v54 = vld [vmem:[%s14167_s3 + $0x668] sm:$0xff]  ;;  %v4535_v55 = vld [vmem:[%s14167_s3 + $0x638] sm:$0xff]  ;;  %v10064_v58 = vpack.c.bf16 %v4526_v49, %v4518_v48  ;;  %v10016_v49 = vpack.c.bf16 %v4588_v36, %v4580_v50  ;;  %v4950_v50 = vld [vmem:[%s14169_s28 + $0xc0] sm:$0xff] }
0x101c   :  { %v10002_v62 = vpack.c.bf16 %v4541_v54, %v4533_v53  ;;  %v4975_v48 = vld [vmem:[%s14169_s28 + $0x188] sm:$0xff]  ;;  %v4926_v54 = vld [vmem:[%s14169_s28] sm:$0xff] }
0x101d   :  { %v4951_v36 = vld [vmem:[%s14169_s28 + $0xc8] sm:$0xff] }
0x101e   :  { %9985 = vmatpush1.bf16.msra.mxu0 %v9984_v37  ;;  %10049 = vmatpush1.bf16.msra.mxu1 %v10048_v63  ;;  %v10066_v37 = vpack.c.bf16 %v4543_v56, %v4535_v55  ;;  %v4534_v63 = vld [vmem:[%s14167_s3 + $0x630] sm:$0xff]  ;;  %v4927_v55 = vld [vmem:[%s14169_s28 + $0x8] sm:$0xff] }
0x101f   :  { %9987 = vmatprep.subr.bf16.mxu0 %v9986_v14  ;;  %10051 = vmatprep.subr.bf16.mxu1 %v10050_v26  ;;  %v4557_v14 = vld [vmem:[%s14167_s3 + $0x6e8] sm:$0xff]  ;;  %v4551_v26 = vld [vmem:[%s14167_s3 + $0x6b8] sm:$0xff]  ;;  %v10068_v0 = vpack.c.bf16 %v4542_v16, %v4534_v63  ;;  %v10084_v16 = vpack.c.bf16 %v4927_v55, %v4926_v54  ;;  %v4952_v54 = vld [vmem:[%s14169_s28 + $0xd0] sm:$0xff] }
0x1020   :  { %v10006_v25 = vpack.c.bf16 %v4557_v14, %v4549_v30  ;;  %v4977_v63 = vld [vmem:[%s14169_s28 + $0x198] sm:$0xff]  ;;  %v4928_v14 = vld [vmem:[%s14169_s28 + $0x10] sm:$0xff] }
0x1021   :  { %v4953_v55 = vld [vmem:[%s14169_s28 + $0xd8] sm:$0xff] }
0x1022   :  { %9989 = vmatpush1.bf16.msra.mxu0 %v9988_v42  ;;  %10053 = vmatpush1.bf16.msra.mxu1 %v10052_v28  ;;  %v10070_v42 = vpack.c.bf16 %v4559_v15, %v4551_v26  ;;  %v4550_v28 = vld [vmem:[%s14167_s3 + $0x6b0] sm:$0xff]  ;;  %v4929_v26 = vld [vmem:[%s14169_s28 + $0x18] sm:$0xff] }
0x1023   :  { %9991 = vmatprep.subr.bf16.mxu0 %v9990_v34  ;;  %10055 = vmatprep.subr.bf16.mxu1 %v10054_v5  ;;  %v4573_v34 = vld [vmem:[%s14167_s3 + $0x768] sm:$0xff]  ;;  %v4567_v5 = vld [vmem:[%s14167_s3 + $0x738] sm:$0xff]  ;;  %v10072_v19 = vpack.c.bf16 %v4558_v31, %v4550_v28  ;;  %v10088_v31 = vpack.c.bf16 %v4929_v26, %v4928_v14  ;;  %v4954_v14 = vld [vmem:[%s14169_s28 + $0xe0] sm:$0xff] }
0x1024   :  { %v10010_v21 = vpack.c.bf16 %v4573_v34, %v4565_v33  ;;  %v4979_v28 = vld [vmem:[%s14169_s28 + $0x1a8] sm:$0xff]  ;;  %v4930_v34 = vld [vmem:[%s14169_s28 + $0x20] sm:$0xff] }
0x1025   :  { %v4955_v26 = vld [vmem:[%s14169_s28 + $0xe8] sm:$0xff] }
0x1026   :  { %9993 = vmatpush1.bf16.msra.mxu0 %v9992_v12  ;;  %10057 = vmatpush1.bf16.msra.mxu1 %v10056_v18  ;;  %v10074_v12 = vpack.c.bf16 %v4575_v43, %v4567_v5  ;;  %v4566_v18 = vld [vmem:[%s14167_s3 + $0x730] sm:$0xff]  ;;  %v4931_v5 = vld [vmem:[%s14169_s28 + $0x28] sm:$0xff] }
0x1027   :  { %9995 = vmatprep.subr.bf16.mxu0 %v9994_v8  ;;  %10059 = vmatprep.subr.bf16.mxu1 %v10058_v9  ;;  %v4589_v8 = vld [vmem:[%s14167_s3 + $0x7e8] sm:$0xff]  ;;  %v4583_v9 = vld [vmem:[%s14167_s3 + $0x7b8] sm:$0xff]  ;;  %v10076_v35 = vpack.c.bf16 %v4574_v4, %v4566_v18  ;;  %v10092_v18 = vpack.c.bf16 %v4931_v5, %v4930_v34 }
0x1028   :  { %v10014_v38 = vpack.c.bf16 %v4589_v8, %v4581_v7  ;;  %v4932_v7 = vld [vmem:[%s14169_s28 + $0x30] sm:$0xff]  ;;  %v4933_v8 = vld [vmem:[%s14169_s28 + $0x38] sm:$0xff] }
0x102a   :  { %9997 = vmatpush1.bf16.msra.mxu0 %v9996_v39  ;;  %10061 = vmatpush1.bf16.msra.mxu1 %v10060_v40  ;;  %v10078_v39 = vpack.c.bf16 %v4591_v10, %v4583_v9  ;;  %v4582_v40 = vld [vmem:[%s14167_s3 + $0x7b0] sm:$0xff] }
0x102b   :  { %9999 = vmatprep.subr.bf16.mxu0 %v9998_v44  ;;  %10063 = vmatprep.subr.bf16.mxu1 %v10062_v45  ;;  %v4943_v44 = vld [vmem:[%s14169_s28 + $0x88] sm:$0xff]  ;;  %v4974_v45 = vld [vmem:[%s14169_s28 + $0x180] sm:$0xff]  ;;  %v10080_v53 = vpack.c.bf16 %v4590_v52, %v4582_v40  ;;  %v10096_v40 = vpack.c.bf16 %v4933_v8, %v4932_v7 }
0x102c   :  { %v10082_v56 = vpack.c.bf16 %v4943_v44, %v4942_v41  ;;  %v4934_v41 = vld [vmem:[%s14169_s28 + $0x40] sm:$0xff]  ;;  %v4935_v44 = vld [vmem:[%s14169_s28 + $0x48] sm:$0xff] }
0x102e   :  { %10001 = vmatpush1.bf16.msra.mxu0 %v10000_v57  ;;  %10065 = vmatpush1.bf16.msra.mxu1 %v10064_v58  ;;  %v10114_v57 = vpack.c.bf16 %v4975_v48, %v4974_v45  ;;  %v4958_v58 = vld [vmem:[%s14169_s28 + $0x100] sm:$0xff]  ;;  %v10098_v45 = vpack.c.bf16 %v4951_v36, %v4950_v50  ;;  %v5039_v50 = vld [vmem:[%s14169_s28 + $0x388] sm:$0xff] }
0x102f   :  { %10003 = vmatprep.subr.bf16.mxu0 %v10002_v62  ;;  %10067 = vmatprep.subr.bf16.mxu1 %v10066_v37  ;;  %v4945_v62 = vld [vmem:[%s14169_s28 + $0x98] sm:$0xff]  ;;  %v4976_v37 = vld [vmem:[%s14169_s28 + $0x190] sm:$0xff]  ;;  %v10116_v30 = vpack.c.bf16 %v4959_v59, %v4958_v58  ;;  %v10100_v58 = vpack.c.bf16 %v4935_v44, %v4934_v41 }
0x1030   :  { %v10086_v15 = vpack.c.bf16 %v4945_v62, %v4944_v60  ;;  %v4936_v60 = vld [vmem:[%s14169_s28 + $0x50] sm:$0xff]  ;;  %v4937_v62 = vld [vmem:[%s14169_s28 + $0x58] sm:$0xff] }
0x1032   :  { %10005 = vmatpush1.bf16.msra.mxu0 %v10004_v47  ;;  %10069 = vmatpush1.bf16.msra.mxu1 %v10068_v0  ;;  %v10118_v47 = vpack.c.bf16 %v4977_v63, %v4976_v37  ;;  %v4960_v0 = vld [vmem:[%s14169_s28 + $0x110] sm:$0xff]  ;;  %v10102_v37 = vpack.c.bf16 %v4953_v55, %v4952_v54 }
0x1033   :  { %10007 = vmatprep.subr.bf16.mxu0 %v10006_v25  ;;  %10071 = vmatprep.subr.bf16.mxu1 %v10070_v42  ;;  %v4947_v25 = vld [vmem:[%s14169_s28 + $0xa8] sm:$0xff]  ;;  %v4978_v42 = vld [vmem:[%s14169_s28 + $0x1a0] sm:$0xff]  ;;  %v10120_v33 = vpack.c.bf16 %v4961_v24, %v4960_v0  ;;  %v10104_v0 = vpack.c.bf16 %v4937_v62, %v4936_v60 }
0x1034   :  { %v10090_v43 = vpack.c.bf16 %v4947_v25, %v4946_v61  ;;  %v10106_v61 = vpack.c.bf16 %v4955_v26, %v4954_v14 }
0x1036   :  { %10009 = vmatpush1.bf16.msra.mxu0 %v10008_v13  ;;  %10073 = vmatpush1.bf16.msra.mxu1 %v10072_v19  ;;  %v10122_v13 = vpack.c.bf16 %v4979_v28, %v4978_v42  ;;  %v4962_v19 = vld [vmem:[%s14169_s28 + $0x120] sm:$0xff]  ;;  %v4939_v28 = vld [vmem:[%s14169_s28 + $0x68] sm:$0xff] }
0x1037   :  { %10011 = vmatprep.subr.bf16.mxu0 %v10010_v21  ;;  %10075 = vmatprep.subr.bf16.mxu1 %v10074_v12  ;;  %v4980_v21 = vld [vmem:[%s14169_s28 + $0x1b0] sm:$0xff]  ;;  %v4981_v12 = vld [vmem:[%s14169_s28 + $0x1b8] sm:$0xff]  ;;  %v10124_v4 = vpack.c.bf16 %v4963_v20, %v4962_v19  ;;  %v4938_v42 = vld [vmem:[%s14169_s28 + $0x60] sm:$0xff] }
0x1038   :  { %v10126_v10 = vpack.c.bf16 %v4981_v12, %v4980_v21  ;;  %v10108_v34 = vpack.c.bf16 %v4939_v28, %v4938_v42  ;;  %v4988_v19 = vld [vmem:[%s14169_s28 + $0x1f0] sm:$0xff]  ;;  %v4941_v21 = vld [vmem:[%s14169_s28 + $0x78] sm:$0xff] }
0x1039   :  { %v5024_v28 = vld [vmem:[%s14169_s28 + $0x310] sm:$0xff] }
0x103a   :  { %10013 = vmatpush1.bf16.msra.mxu0 %v10012_v11  ;;  %10077 = vmatpush1.bf16.msra.mxu1 %v10076_v35  ;;  %v4964_v11 = vld [vmem:[%s14169_s28 + $0x130] sm:$0xff]  ;;  %v4965_v35 = vld [vmem:[%s14169_s28 + $0x138] sm:$0xff] }
0x103b   :  { %10015 = vmatprep.subr.bf16.mxu0 %v10014_v38  ;;  %10079 = vmatprep.subr.bf16.mxu1 %v10078_v39  ;;  %v4982_v38 = vld [vmem:[%s14169_s28 + $0x1c0] sm:$0xff]  ;;  %v4983_v39 = vld [vmem:[%s14169_s28 + $0x1c8] sm:$0xff]  ;;  %v10128_v52 = vpack.c.bf16 %v4965_v35, %v4964_v11 }
0x103c   :  { %v10130_v48 = vpack.c.bf16 %v4983_v39, %v4982_v38  ;;  %v5038_v11 = vld [vmem:[%s14169_s28 + $0x380] sm:$0xff] }
0x103d   :  { %v10178_v36 = vpack.c.bf16 %v5039_v50, %v5038_v11  ;;  %v13165_v38 = vld [vmem:[%s14170_s1] sm:$0xff]  ;;  %v4997_v50 = vld [vmem:[%s14169_s28 + $0x238] sm:$0xff] }
0x103e   :  { %10017 = vmatpush1.bf16.msra.mxu0 %v10016_v49  ;;  %10081 = vmatpush1.bf16.msra.mxu1 %v10080_v53  ;;  %v4966_v49 = vld [vmem:[%s14169_s28 + $0x140] sm:$0xff]  ;;  %v4967_v53 = vld [vmem:[%s14169_s28 + $0x148] sm:$0xff]  ;;  %v4597_v39 = vrot.slane %v13165_v38, %v11933_v27  ;;  %v4609_v41 = vrot.slane %v13165_v38, %v12556_v6 }
0x103f   :  { %10083 = vmatprep.subr.bf16.mxu0 %v10082_v56  ;;  %10115 = vmatprep.subr.bf16.mxu1 %v10114_v57  ;;  %v4984_v56 = vld [vmem:[%s14169_s28 + $0x1d0] sm:$0xff]  ;;  %v4985_v57 = vld [vmem:[%s14169_s28 + $0x1d8] sm:$0xff]  ;;  %v10132_v59 = vpack.c.bf16 %v4967_v53, %v4966_v49  ;;  %v4991_v49 = vld [vmem:[%s14169_s28 + $0x208] sm:$0xff] }
0x1040   :  { %v10134_v63 = vpack.c.bf16 %v4985_v57, %v4984_v56  ;;  %v5022_v57 = vld [vmem:[%s14169_s28 + $0x300] sm:$0xff] }
0x1041   :  { %4841 = vmatmul.mubr.f32.vlgmr.msra.gmra.mrb[172].mxu0 %v12974_v17  ;;  %4912 = vmatmul.mubr.f32.vlgmr.msra.gmra.mrb[142].mxu1 %v12974_v17  ;;  %v4949_v17 = vld [vmem:[%s14169_s28 + $0xb8] sm:$0xff] }
0x1042   :  { %10085 = vmatpush3.bf16.msra.mxu0 %v10084_v16  ;;  %10117 = vmatpush3.bf16.msra.mxu1 %v10116_v30  ;;  %v10094_v9 = vpack.c.bf16 %v4949_v17, %v4948_v22  ;;  %v4968_v16 = vld [vmem:[%s14169_s28 + $0x150] sm:$0xff]  ;;  %v4969_v30 = vld [vmem:[%s14169_s28 + $0x158] sm:$0xff] }
0x1043   :  { %10087 = vmatprep.subr.bf16.mxu0 %v10086_v15  ;;  %10119 = vmatprep.subr.bf16.mxu1 %v10118_v47  ;;  %v4986_v15 = vld [vmem:[%s14169_s28 + $0x1e0] sm:$0xff]  ;;  %v4987_v47 = vld [vmem:[%s14169_s28 + $0x1e8] sm:$0xff]  ;;  %v10136_v24 = vpack.c.bf16 %v4969_v30, %v4968_v16  ;;  %v4989_v22 = vld [vmem:[%s14169_s28 + $0x1f8] sm:$0xff] }
0x1044   :  { %v10138_v25 = vpack.c.bf16 %v4987_v47, %v4986_v15  ;;  %v4940_v17 = vld [vmem:[%s14169_s28 + $0x70] sm:$0xff]  ;;  %v10142_v12 = vpack.c.bf16 %v4989_v22, %v4988_v19  ;;  %v5041_v16 = vld [vmem:[%s14169_s28 + $0x398] sm:$0xff]  ;;  %v4995_v22 = vld [vmem:[%s14169_s28 + $0x228] sm:$0xff] }
0x1045   :  { %v10112_v7 = vpack.c.bf16 %v4941_v21, %v4940_v17  ;;  %v4992_v47 = vld [vmem:[%s14169_s28 + $0x210] sm:$0xff] }
0x1046   :  { %10089 = vmatpush3.bf16.msra.mxu0 %v10088_v31  ;;  %10121 = vmatpush3.bf16.msra.mxu1 %v10120_v33  ;;  %v4970_v31 = vld [vmem:[%s14169_s28 + $0x160] sm:$0xff]  ;;  %v4971_v33 = vld [vmem:[%s14169_s28 + $0x168] sm:$0xff] }
0x1047   :  { %10091 = vmatprep.subr.bf16.mxu0 %v10090_v43  ;;  %10123 = vmatprep.subr.bf16.mxu1 %v10122_v13  ;;  %v10140_v5 = vpack.c.bf16 %v4971_v33, %v4970_v31  ;;  %v4956_v43 = vld [vmem:[%s14169_s28 + $0xf0] sm:$0xff]  ;;  %v4957_v13 = vld [vmem:[%s14169_s28 + $0xf8] sm:$0xff]  ;;  %v5010_v33 = vld [vmem:[%s14169_s28 + $0x2a0] sm:$0xff] }
0x1048   :  { %v10110_v20 = vpack.c.bf16 %v4957_v13, %v4956_v43  ;;  %v5025_v31 = vld [vmem:[%s14169_s28 + $0x318] sm:$0xff]  ;;  %v5043_v43 = vld [vmem:[%s14169_s28 + $0x3a8] sm:$0xff] }
0x1049   :  { %v10184_v19 = vpack.c.bf16 %v5025_v31, %v5024_v28  ;;  %v5051_v28 = vld [vmem:[%s14169_s28 + $0x3e8] sm:$0xff] }
0x104a   :  { %10093 = vmatpush3.bf16.msra.mxu0 %v10092_v18  ;;  %10125 = vmatpush3.bf16.msra.mxu1 %v10124_v4  ;;  %v4972_v18 = vld [vmem:[%s14169_s28 + $0x170] sm:$0xff]  ;;  %v4973_v4 = vld [vmem:[%s14169_s28 + $0x178] sm:$0xff] }
0x104b   :  { %10095 = vmatprep.subr.bf16.mxu0 %v10094_v9  ;;  %10127 = vmatprep.subr.bf16.mxu1 %v10126_v10  ;;  %v10144_v8 = vpack.c.bf16 %v4973_v4, %v4972_v18  ;;  %v5006_v9 = vld [vmem:[%s14169_s28 + $0x280] sm:$0xff]  ;;  %v5007_v10 = vld [vmem:[%s14169_s28 + $0x288] sm:$0xff]  ;;  %v5012_v4 = vld [vmem:[%s14169_s28 + $0x2b0] sm:$0xff] }
0x104c   :  { %v10146_v35 = vpack.c.bf16 %v5007_v10, %v5006_v9  ;;  %v5027_v18 = vld [vmem:[%s14169_s28 + $0x328] sm:$0xff]  ;;  %v5045_v9 = vld [vmem:[%s14169_s28 + $0x3b8] sm:$0xff] }
0x104e   :  { %10097 = vmatpush3.bf16.msra.mxu0 %v10096_v40  ;;  %10129 = vmatpush3.bf16.msra.mxu1 %v10128_v52  ;;  %v4605_v40 = vrot.slane %v13165_v38, %v12011_v46  ;;  %v4601_v52 = vrot.slane %v13165_v38, %v11936_v29 }
0x104f   :  { %10099 = vmatprep.subr.bf16.mxu0 %v10098_v45  ;;  %10131 = vmatprep.subr.bf16.mxu1 %v10130_v48  ;;  %v4990_v48 = vld [vmem:[%s14169_s28 + $0x200] sm:$0xff] }
0x1050   :  { %v10148_v26 = vpack.c.bf16 %v4991_v49, %v4990_v48  ;;  %v5047_v48 = vld [vmem:[%s14169_s28 + $0x3c8] sm:$0xff] }
0x1052   :  { %10101 = vmatpush3.bf16.msra.mxu0 %v10100_v58  ;;  %10133 = vmatpush3.bf16.msra.mxu1 %v10132_v59  ;;  %v5023_v58 = vld [vmem:[%s14169_s28 + $0x308] sm:$0xff]  ;;  %v5008_v59 = vld [vmem:[%s14169_s28 + $0x290] sm:$0xff] }
0x1053   :  { %10103 = vmatprep.subr.bf16.mxu0 %v10102_v37  ;;  %10135 = vmatprep.subr.bf16.mxu1 %v10134_v63  ;;  %v5009_v37 = vld [vmem:[%s14169_s28 + $0x298] sm:$0xff]  ;;  %v5040_v63 = vld [vmem:[%s14169_s28 + $0x390] sm:$0xff]  ;;  %v10180_v15 = vpack.c.bf16 %v5023_v58, %v5022_v57  ;;  %v5030_v58 = vld [vmem:[%s14169_s28 + $0x340] sm:$0xff] }
0x1054   :  { %v10182_v42 = vpack.c.bf16 %v5041_v16, %v5040_v63  ;;  %v5049_v63 = vld [vmem:[%s14169_s28 + $0x3d8] sm:$0xff] }
0x1056   :  { %10105 = vmatpush3.bf16.msra.mxu0 %v10104_v0  ;;  %10137 = vmatpush3.bf16.msra.mxu1 %v10136_v24  ;;  %v4993_v0 = vld [vmem:[%s14169_s28 + $0x218] sm:$0xff] }
0x1057   :  { %10107 = vmatprep.subr.bf16.mxu0 %v10106_v61  ;;  %10139 = vmatprep.subr.bf16.mxu1 %v10138_v25  ;;  %v10150_v25 = vpack.c.bf16 %v5009_v37, %v5008_v59  ;;  %v10152_v13 = vpack.c.bf16 %v4993_v0, %v4992_v47  ;;  %v5031_v59 = vld [vmem:[%s14169_s28 + $0x348] sm:$0xff]  ;;  %v5048_v37 = vld [vmem:[%s14169_s28 + $0x3d0] sm:$0xff] }
0x1058   :  { %v10198_v47 = vpack.c.bf16 %v5049_v63, %v5048_v37  ;;  %v5032_v0 = vld [vmem:[%s14169_s28 + $0x350] sm:$0xff]  ;;  %v5472_v37 = vld [vmem:[%s14171_s30 + $0x18] sm:$0xff] }
0x105a   :  { %10109 = vmatpush3.bf16.msra.mxu0 %v10108_v34  ;;  %10141 = vmatpush3.bf16.msra.mxu1 %v10140_v5  ;;  %v5011_v34 = vld [vmem:[%s14169_s28 + $0x2a8] sm:$0xff]  ;;  %v5042_v5 = vld [vmem:[%s14169_s28 + $0x3a0] sm:$0xff] }
0x105b   :  { %10111 = vmatprep.subr.bf16.mxu0 %v10110_v20  ;;  %10143 = vmatprep.subr.bf16.mxu1 %v10142_v12  ;;  %v4994_v20 = vld [vmem:[%s14169_s28 + $0x220] sm:$0xff]  ;;  %v10154_v17 = vpack.c.bf16 %v5011_v34, %v5010_v33  ;;  %v10186_v21 = vpack.c.bf16 %v5043_v43, %v5042_v5  ;;  %v5003_v5 = vld [vmem:[%s14169_s28 + $0x268] sm:$0xff] }
0x105c   :  { %v5026_v12 = vld [vmem:[%s14169_s28 + $0x320] sm:$0xff]  ;;  %v10156_v10 = vpack.c.bf16 %v4995_v22, %v4994_v20  ;;  %v5035_v20 = vld [vmem:[%s14169_s28 + $0x368] sm:$0xff]  ;;  %v5020_v22 = vld [vmem:[%s14169_s28 + $0x2f0] sm:$0xff] }
0x105d   :  { %v10188_v11 = vpack.c.bf16 %v5027_v18, %v5026_v12  ;;  %v5002_v34 = vld [vmem:[%s14169_s28 + $0x260] sm:$0xff]  ;;  %v5053_v12 = vld [vmem:[%s14169_s28 + $0x3f8] sm:$0xff] }
0x105e   :  { %10113 = vmatpush3.bf16.msra.mxu0 %v10112_v7  ;;  %10145 = vmatpush3.bf16.msra.mxu1 %v10144_v8  ;;  %v5013_v7 = vld [vmem:[%s14169_s28 + $0x2b8] sm:$0xff]  ;;  %v5044_v8 = vld [vmem:[%s14169_s28 + $0x3b0] sm:$0xff]  ;;  %v10172_v18 = vpack.c.bf16 %v5003_v5, %v5002_v34  ;;  %v5485_v34 = vld [vmem:[%s14171_s30 + $0x80] sm:$0xff] }
0x105f   :  { %10147 = vmatprep.subr.bf16.mxu0 %v10146_v35  ;;  %10179 = vmatprep.subr.bf16.mxu1 %v10178_v36  ;;  %v4996_v35 = vld [vmem:[%s14169_s28 + $0x230] sm:$0xff]  ;;  %v10158_v36 = vpack.c.bf16 %v5013_v7, %v5012_v4  ;;  %v5493_v5 = vld [vmem:[%s14171_s30 + $0xc0] sm:$0xff] }
0x1060   :  { %v10160_v49 = vpack.c.bf16 %v4997_v50, %v4996_v35  ;;  %v5004_v7 = vld [vmem:[%s14169_s28 + $0x270] sm:$0xff]  ;;  %v5037_v35 = vld [vmem:[%s14169_s28 + $0x378] sm:$0xff] }
0x10d4   :  { %v4700_v44 = vpop.f32.mrb[170].mxu0  ;;  %v4771_v45 = vpop.f32.mrb[140].mxu1 }
0x10d5   :  { %v4701_v53 = vadd.f32 %v4700_v44, %v4597_v39  ;;  %v4772_v54 = vadd.f32 %v4771_v45, %v4605_v40  ;;  %v4702_v55 = vpop.f32.mrb[171].mxu0  ;;  %v4773_v56 = vpop.f32.mrb[141].mxu1  ;;  %v10190_v39 = vpack.c.bf16 %v5045_v9, %v5044_v8  ;;  %v5028_v40 = vld [vmem:[%s14169_s28 + $0x330] sm:$0xff]  ;;  %v5015_v44 = vld [vmem:[%s14169_s28 + $0x2c8] sm:$0xff]  ;;  %v5046_v45 = vld [vmem:[%s14169_s28 + $0x3c0] sm:$0xff] }
0x10d6   :  { %v4703_v60 = vadd.f32 %v4702_v55, %v4601_v52  ;;  %v4774_v62 = vadd.f32 %v4773_v56, %v4609_v41  ;;  %v5029_v52 = vld [vmem:[%s14169_s28 + $0x338] sm:$0xff]  ;;  %v5014_v41 = vld [vmem:[%s14169_s28 + $0x2c0] sm:$0xff]  ;;  %v4999_v55 = vld [vmem:[%s14169_s28 + $0x248] sm:$0xff]  ;;  %v10194_v57 = vpack.c.bf16 %v5047_v48, %v5046_v45 }
0x10d7   :  { %v4918_v24 = vmax.f32 %v4701_v53, 0.0  ;;  %v4920_v61 = vmax.f32 %v4772_v54, 0.0  ;;  %v10192_v53 = vpack.c.bf16 %v5029_v52, %v5028_v40  ;;  %v4998_v54 = vld [vmem:[%s14169_s28 + $0x240] sm:$0xff]  ;;  %v10162_v56 = vpack.c.bf16 %v5015_v44, %v5014_v41 }
0x10d8   :  { %v4919_v30 = vmax.f32 %v4703_v60, 0.0  ;;  %v4921_v14 = vmax.f32 %v4774_v62, 0.0  ;;  %v5016_v60 = vld [vmem:[%s14169_s28 + $0x2d0] sm:$0xff]  ;;  %v5017_v62 = vld [vmem:[%s14169_s28 + $0x2d8] sm:$0xff]  ;;  %v10164_v16 = vpack.c.bf16 %v4999_v55, %v4998_v54  ;;  %v4621_v40 = vrot.slane %v13165_v38, %v12630_v23 }
0x10d9   :  { %v4617_v52 = vrot.slane %v13165_v38, %v12633_v2  ;;  %v4625_v41 = vrot.slane %v13165_v38, %v12636_v3 }
0x10da   :  { %5125 = vmatprep.mubr.f32.mxu0 %v4919_v30  ;;  %5195 = vmatprep.mubr.f32.mxu1 %v4921_v14  ;;  %v10196_v30 = vpack.c.bf16 %v5031_v59, %v5030_v58  ;;  %v5000_v14 = vld [vmem:[%s14169_s28 + $0x250] sm:$0xff] }
0x10db   :  { %5126 = vmatmul.mubr.f32.vlgmr.msra.gmra.mrb[174].mxu0 %v4918_v24  ;;  %5196 = vmatmul.mubr.f32.vlgmr.msra.gmra.mrb[144].mxu1 %v4920_v61  ;;  %v5033_v24 = vld [vmem:[%s14169_s28 + $0x358] sm:$0xff]  ;;  %v5018_v61 = vld [vmem:[%s14169_s28 + $0x2e0] sm:$0xff] }
0x10dc   :  { %10149 = vmatpush3.bf16.msra.mxu0 %v10148_v26  ;;  %10181 = vmatpush3.bf16.msra.mxu1 %v10180_v15  ;;  %v5001_v26 = vld [vmem:[%s14169_s28 + $0x258] sm:$0xff]  ;;  %v10166_v15 = vpack.c.bf16 %v5017_v62, %v5016_v60  ;;  %v10200_v33 = vpack.c.bf16 %v5033_v24, %v5032_v0  ;;  %v5478_v62 = vld [vmem:[%s14171_s30 + $0x48] sm:$0xff]  ;;  %v5479_v0 = vld [vmem:[%s14171_s30 + $0x50] sm:$0xff] }
0x10dd   :  { %10151 = vmatprep.subr.bf16.mxu0 %v10150_v25  ;;  %10183 = vmatprep.subr.bf16.mxu1 %v10182_v42  ;;  %v5019_v25 = vld [vmem:[%s14169_s28 + $0x2e8] sm:$0xff]  ;;  %v5050_v42 = vld [vmem:[%s14169_s28 + $0x3e0] sm:$0xff]  ;;  %v10168_v31 = vpack.c.bf16 %v5001_v26, %v5000_v14 }
0x10de   :  { %v10170_v43 = vpack.c.bf16 %v5019_v25, %v5018_v61  ;;  %v5477_v14 = vld [vmem:[%s14171_s30 + $0x40] sm:$0xff]  ;;  %v5486_v24 = vld [vmem:[%s14171_s30 + $0x88] sm:$0xff] }
0x10df   :  { %v5494_v25 = vld [vmem:[%s14171_s30 + $0xc8] sm:$0xff] }
0x10e0   :  { %10153 = vmatpush3.bf16.msra.mxu0 %v10152_v13  ;;  %10185 = vmatpush3.bf16.msra.mxu1 %v10184_v19  ;;  %v10202_v13 = vpack.c.bf16 %v5051_v28, %v5050_v42  ;;  %v5034_v19 = vld [vmem:[%s14169_s28 + $0x360] sm:$0xff]  ;;  %v5488_v42 = vld [vmem:[%s14171_s30 + $0x98] sm:$0xff] }
0x10e1   :  { %10155 = vmatprep.subr.bf16.mxu0 %v10154_v17  ;;  %10187 = vmatprep.subr.bf16.mxu1 %v10186_v21  ;;  %v5021_v17 = vld [vmem:[%s14169_s28 + $0x2f8] sm:$0xff]  ;;  %v5052_v21 = vld [vmem:[%s14169_s28 + $0x3f0] sm:$0xff]  ;;  %v10204_v4 = vpack.c.bf16 %v5035_v20, %v5034_v19  ;;  %v5502_v20 = vld [vmem:[%s14171_s30 + $0x108] sm:$0xff] }
0x10e2   :  { %v10174_v8 = vpack.c.bf16 %v5021_v17, %v5020_v22  ;;  %v10206_v9 = vpack.c.bf16 %v5053_v12, %v5052_v21  ;;  %v5496_v28 = vld [vmem:[%s14171_s30 + $0xd8] sm:$0xff]  ;;  %v5495_v19 = vld [vmem:[%s14171_s30 + $0xd0] sm:$0xff]  ;;  %v5510_v22 = vld [vmem:[%s14171_s30 + $0x148] sm:$0xff] }
0x10e3   :  { %v10218_v21 = vpack.c.bf16 %v5510_v22, %v5502_v20  ;;  %v5504_v12 = vld [vmem:[%s14171_s30 + $0x118] sm:$0xff]  ;;  %v5565_v22 = vld [vmem:[%s14171_s30 + $0x300] sm:$0xff] }
0x10e4   :  { %10157 = vmatpush3.bf16.msra.mxu0 %v10156_v10  ;;  %10189 = vmatpush3.bf16.msra.mxu1 %v10188_v11  ;;  %v5005_v10 = vld [vmem:[%s14169_s28 + $0x278] sm:$0xff]  ;;  %v5036_v11 = vld [vmem:[%s14169_s28 + $0x370] sm:$0xff] }
0x10e5   :  { %10159 = vmatprep.subr.bf16.mxu0 %v10158_v36  ;;  %10191 = vmatprep.subr.bf16.mxu1 %v10190_v39  ;;  %v10176_v50 = vpack.c.bf16 %v5005_v10, %v5004_v7  ;;  %v10208_v36 = vpack.c.bf16 %v5037_v35, %v5036_v11  ;;  %v4613_v39 = vrot.slane %v13165_v38, %v12627_v32  ;;  %v5470_v38 = vld [vmem:[%s14171_s30 + $0x8] sm:$0xff]  ;;  %v5511_v10 = vld [vmem:[%s14171_s30 + $0x150] sm:$0xff] }
0x10e6   :  { %v10210_v63 = vpack.c.bf16 %v5478_v62, %v5470_v38  ;;  %v5518_v35 = vld [vmem:[%s14171_s30 + $0x188] sm:$0xff]  ;;  %v5541_v38 = vld [vmem:[%s14171_s30 + $0x240] sm:$0xff]  ;;  %v5535_v62 = vld [vmem:[%s14171_s30 + $0x210] sm:$0xff] }
0x10e8   :  { %10161 = vmatpush3.bf16.msra.mxu0 %v10160_v49  ;;  %10193 = vmatpush3.bf16.msra.mxu1 %v10192_v53 }
0x10e9   :  { %10163 = vmatprep.subr.bf16.mxu0 %v10162_v56  ;;  %10195 = vmatprep.subr.bf16.mxu1 %v10194_v57 }
0x10ec   :  { %10165 = vmatpush3.bf16.msra.mxu0 %v10164_v16  ;;  %10197 = vmatpush3.bf16.msra.mxu1 %v10196_v30  ;;  %v5480_v16 = vld [vmem:[%s14171_s30 + $0x58] sm:$0xff]  ;;  %v5469_v30 = vld [vmem:[%s14171_s30] sm:$0xff] }
0x10ed   :  { %10167 = vmatprep.subr.bf16.mxu0 %v10166_v15  ;;  %10199 = vmatprep.subr.bf16.mxu1 %v10198_v47  ;;  %v10242_v26 = vpack.c.bf16 %v5480_v16, %v5472_v37  ;;  %v10212_v15 = vpack.c.bf16 %v5477_v14, %v5469_v30  ;;  %v5471_v47 = vld [vmem:[%s14171_s30 + $0x10] sm:$0xff]  ;;  %v5550_v16 = vld [vmem:[%s14171_s30 + $0x288] sm:$0xff]  ;;  %v5552_v14 = vld [vmem:[%s14171_s30 + $0x298] sm:$0xff] }
0x10ee   :  { %v10244_v61 = vpack.c.bf16 %v5479_v0, %v5471_v47  ;;  %v5558_v30 = vld [vmem:[%s14171_s30 + $0x2c8] sm:$0xff] }
0x10ef   :  { %v10230_v0 = vpack.c.bf16 %v5558_v30, %v5550_v16 }
0x10f0   :  { %10169 = vmatpush3.bf16.msra.mxu0 %v10168_v31  ;;  %10201 = vmatpush3.bf16.msra.mxu1 %v10200_v33  ;;  %v10214_v31 = vpack.c.bf16 %v5494_v25, %v5486_v24  ;;  %v10246_v33 = vpack.c.bf16 %v5496_v28, %v5488_v42  ;;  %v5549_v24 = vld [vmem:[%s14171_s30 + $0x280] sm:$0xff]  ;;  %v5551_v25 = vld [vmem:[%s14171_s30 + $0x290] sm:$0xff] }
0x10f1   :  { %10171 = vmatprep.subr.bf16.mxu0 %v10170_v43  ;;  %10203 = vmatprep.subr.bf16.mxu1 %v10202_v13  ;;  %v5487_v43 = vld [vmem:[%s14171_s30 + $0x90] sm:$0xff]  ;;  %v10216_v13 = vpack.c.bf16 %v5493_v5, %v5485_v34  ;;  %v5568_v34 = vld [vmem:[%s14171_s30 + $0x318] sm:$0xff] }
0x10f2   :  { %v10248_v17 = vpack.c.bf16 %v5495_v19, %v5487_v43  ;;  %v5559_v28 = vld [vmem:[%s14171_s30 + $0x2d0] sm:$0xff]  ;;  %v5576_v5 = vld [vmem:[%s14171_s30 + $0x358] sm:$0xff] }
0x10f3   :  { %v10266_v20 = vpack.c.bf16 %v5576_v5, %v5568_v34 }
0x10f4   :  { %10173 = vmatpush3.bf16.msra.mxu0 %v10172_v18  ;;  %10205 = vmatpush3.bf16.msra.mxu1 %v10204_v4  ;;  %v5512_v18 = vld [vmem:[%s14171_s30 + $0x158] sm:$0xff]  ;;  %v5501_v4 = vld [vmem:[%s14171_s30 + $0x100] sm:$0xff] }
0x10f5   :  { %10175 = vmatprep.subr.bf16.mxu0 %v10174_v8  ;;  %10207 = vmatprep.subr.bf16.mxu1 %v10206_v9  ;;  %v10250_v7 = vpack.c.bf16 %v5512_v18, %v5504_v12  ;;  %v5509_v8 = vld [vmem:[%s14171_s30 + $0x140] sm:$0xff]  ;;  %v5503_v9 = vld [vmem:[%s14171_s30 + $0x110] sm:$0xff] }
0x10f6   :  { %v10220_v11 = vpack.c.bf16 %v5509_v8, %v5501_v4  ;;  %v5575_v18 = vld [vmem:[%s14171_s30 + $0x350] sm:$0xff]  ;;  %v5590_v8 = vld [vmem:[%s14171_s30 + $0x3c8] sm:$0xff] }
0x10f8   :  { %10177 = vmatpush3.bf16.msra.mxu0 %v10176_v50  ;;  %10209 = vmatpush3.bf16.msra.mxu1 %v10208_v36  ;;  %v5526_v50 = vld [vmem:[%s14171_s30 + $0x1c8] sm:$0xff]  ;;  %v5520_v36 = vld [vmem:[%s14171_s30 + $0x198] sm:$0xff] }
0x10f9   :  { %10211 = vmatprep.subr.bf16.mxu0 %v10210_v63  ;;  %10243 = vmatprep.subr.bf16.mxu1 %v10242_v26  ;;  %v5543_v63 = vld [vmem:[%s14171_s30 + $0x250] sm:$0xff]  ;;  %v5560_v26 = vld [vmem:[%s14171_s30 + $0x2d8] sm:$0xff] }
0x10fa   :  { %v10260_v47 = vpack.c.bf16 %v5543_v63, %v5535_v62  ;;  %v10262_v42 = vpack.c.bf16 %v5560_v26, %v5552_v14  ;;  %v5473_v26 = vld [vmem:[%s14171_s30 + $0x20] sm:$0xff] }
0x1114   :  { %v4842_v44 = vpop.f32.mrb[172].mxu0  ;;  %v4913_v45 = vpop.f32.mrb[142].mxu1 }
0x1115   :  { %v4843_v48 = vadd.f32 %v4842_v44, %v4613_v39  ;;  %v4914_v49 = vadd.f32 %v4913_v45, %v4621_v40  ;;  %v4844_v53 = vpop.f32.mrb[173].mxu0  ;;  %v4915_v54 = vpop.f32.mrb[143].mxu1  ;;  %v10252_v39 = vpack.c.bf16 %v5511_v10, %v5503_v9  ;;  %v10222_v40 = vpack.c.bf16 %v5526_v50, %v5518_v35  ;;  %v5525_v44 = vld [vmem:[%s14171_s30 + $0x1c0] sm:$0xff]  ;;  %v5584_v9 = vld [vmem:[%s14171_s30 + $0x398] sm:$0xff] }
0x1116   :  { %v4845_v55 = vadd.f32 %v4844_v53, %v4617_v52  ;;  %v4916_v56 = vadd.f32 %v4915_v54, %v4625_v41  ;;  %v5528_v52 = vld [vmem:[%s14171_s30 + $0x1d8] sm:$0xff]  ;;  %v5517_v41 = vld [vmem:[%s14171_s30 + $0x180] sm:$0xff]  ;;  %v5534_v53 = vld [vmem:[%s14171_s30 + $0x208] sm:$0xff] }
0x1117   :  { %v4922_v59 = vmax.f32 %v4843_v48, 0.0  ;;  %v4924_v60 = vmax.f32 %v4914_v49, 0.0  ;;  %v10254_v45 = vpack.c.bf16 %v5528_v52, %v5520_v36  ;;  %v5519_v48 = vld [vmem:[%s14171_s30 + $0x190] sm:$0xff]  ;;  %v5542_v54 = vld [vmem:[%s14171_s30 + $0x248] sm:$0xff]  ;;  %v5581_v35 = vld [vmem:[%s14171_s30 + $0x380] sm:$0xff] }
0x1118   :  { %v4923_v57 = vmax.f32 %v4845_v55, 0.0  ;;  %v4925_v58 = vmax.f32 %v4916_v56, 0.0  ;;  %v5527_v49 = vld [vmem:[%s14171_s30 + $0x1d0] sm:$0xff]  ;;  %v5536_v55 = vld [vmem:[%s14171_s30 + $0x218] sm:$0xff]  ;;  %v5589_v50 = vld [vmem:[%s14171_s30 + $0x3c0] sm:$0xff] }
0x1119   :  { %v5544_v56 = vld [vmem:[%s14171_s30 + $0x258] sm:$0xff]  ;;  %v5591_v52 = vld [vmem:[%s14171_s30 + $0x3d0] sm:$0xff] }
0x111a   :  { %5265 = vmatprep.mubr.f32.mxu0 %v4923_v57  ;;  %5335 = vmatprep.mubr.f32.mxu1 %v4925_v58  ;;  %v10224_v57 = vpack.c.bf16 %v5525_v44, %v5517_v41  ;;  %v10256_v58 = vpack.c.bf16 %v5527_v49, %v5519_v48  ;;  %v10258_v37 = vpack.c.bf16 %v5544_v56, %v5536_v55  ;;  %v5474_v44 = vld [vmem:[%s14171_s30 + $0x28] sm:$0xff]  ;;  %v5476_v48 = vld [vmem:[%s14171_s30 + $0x38] sm:$0xff] }
0x111b   :  { %5266 = vmatmul.mubr.f32.vlgmr.msra.gmra.mrb[176].mxu0 %v4922_v59  ;;  %5336 = vmatmul.mubr.f32.vlgmr.msra.gmra.mrb[146].mxu1 %v4924_v60  ;;  %v10226_v59 = vpack.c.bf16 %v5542_v54, %v5534_v53  ;;  %v5533_v60 = vld [vmem:[%s14171_s30 + $0x200] sm:$0xff]  ;;  %v5484_v53 = vld [vmem:[%s14171_s30 + $0x78] sm:$0xff] }
0x111c   :  { %5661 = vmatprep.mubr.f32.mxu0 %v11531_v1  ;;  %5732 = vmatprep.mubr.f32.mxu1 %v11531_v1  ;;  %v10306_v54 = vpack.c.bf16 %v5484_v53, %v5476_v48  ;;  %v5529_v53 = vld [vmem:[%s14171_s30 + $0x1e0] sm:$0xff] }
0x111d   :  { %10213 = vmatpush1.bf16.msra.mxu0 %v10212_v15  ;;  %10245 = vmatpush1.bf16.msra.mxu1 %v10244_v61  ;;  %v10228_v15 = vpack.c.bf16 %v5541_v38, %v5533_v60  ;;  %v5557_v61 = vld [vmem:[%s14171_s30 + $0x2c0] sm:$0xff] }
0x111e   :  { %10215 = vmatprep.subr.bf16.mxu0 %v10214_v31  ;;  %10247 = vmatprep.subr.bf16.mxu1 %v10246_v33  ;;  %v5566_v31 = vld [vmem:[%s14171_s30 + $0x308] sm:$0xff]  ;;  %v10232_v43 = vpack.c.bf16 %v5557_v61, %v5549_v24  ;;  %v5475_v24 = vld [vmem:[%s14171_s30 + $0x30] sm:$0xff] }
0x111f   :  { %v5574_v33 = vld [vmem:[%s14171_s30 + $0x348] sm:$0xff]  ;;  %v5483_v61 = vld [vmem:[%s14171_s30 + $0x70] sm:$0xff] }
0x1120   :  { %v10234_v19 = vpack.c.bf16 %v5574_v33, %v5566_v31  ;;  %v5500_v31 = vld [vmem:[%s14171_s30 + $0xf8] sm:$0xff]  ;;  %v10308_v5 = vpack.c.bf16 %v5483_v61, %v5475_v24 }
0x1121   :  { %10217 = vmatpush1.bf16.msra.mxu0 %v10216_v13  ;;  %10249 = vmatpush1.bf16.msra.mxu1 %v10248_v17  ;;  %v10264_v13 = vpack.c.bf16 %v5559_v28, %v5551_v25  ;;  %v5573_v17 = vld [vmem:[%s14171_s30 + $0x340] sm:$0xff]  ;;  %v5490_v25 = vld [vmem:[%s14171_s30 + $0xa8] sm:$0xff]  ;;  %v5492_v28 = vld [vmem:[%s14171_s30 + $0xb8] sm:$0xff] }
0x1122   :  { %10219 = vmatprep.subr.bf16.mxu0 %v10218_v21  ;;  %10251 = vmatprep.subr.bf16.mxu1 %v10250_v7  ;;  %v5567_v21 = vld [vmem:[%s14171_s30 + $0x310] sm:$0xff]  ;;  %v10236_v12 = vpack.c.bf16 %v5573_v17, %v5565_v22  ;;  %v5582_v7 = vld [vmem:[%s14171_s30 + $0x388] sm:$0xff]  ;;  %v10310_v22 = vpack.c.bf16 %v5500_v31, %v5492_v28  ;;  %v5556_v24 = vld [vmem:[%s14171_s30 + $0x2b8] sm:$0xff] }
0x1123   :  { %v10268_v4 = vpack.c.bf16 %v5575_v18, %v5567_v21  ;;  %v10238_v10 = vpack.c.bf16 %v5590_v8, %v5582_v7  ;;  %v5491_v17 = vld [vmem:[%s14171_s30 + $0xb0] sm:$0xff]  ;;  %v5514_v18 = vld [vmem:[%s14171_s30 + $0x168] sm:$0xff]  ;;  %v5516_v7 = vld [vmem:[%s14171_s30 + $0x178] sm:$0xff] }
0x1124   :  { %v5499_v21 = vld [vmem:[%s14171_s30 + $0xf0] sm:$0xff]  ;;  %v5564_v61 = vld [vmem:[%s14171_s30 + $0x2f8] sm:$0xff]  ;;  %v5553_v28 = vld [vmem:[%s14171_s30 + $0x2a0] sm:$0xff] }
0x1125   :  { %10221 = vmatpush1.bf16.msra.mxu0 %v10220_v11  ;;  %10253 = vmatpush1.bf16.msra.mxu1 %v10252_v39  ;;  %v5592_v11 = vld [vmem:[%s14171_s30 + $0x3d8] sm:$0xff]  ;;  %v10240_v39 = vpack.c.bf16 %v5589_v50, %v5581_v35  ;;  %v5561_v31 = vld [vmem:[%s14171_s30 + $0x2e0] sm:$0xff] }
0x1126   :  { %10223 = vmatprep.subr.bf16.mxu0 %v10222_v40  ;;  %10255 = vmatprep.subr.bf16.mxu1 %v10254_v45  ;;  %v10270_v36 = vpack.c.bf16 %v5592_v11, %v5584_v9  ;;  %v5583_v40 = vld [vmem:[%s14171_s30 + $0x390] sm:$0xff]  ;;  %v5482_v45 = vld [vmem:[%s14171_s30 + $0x68] sm:$0xff]  ;;  %v10312_v9 = vpack.c.bf16 %v5499_v21, %v5491_v17  ;;  %v5513_v11 = vld [vmem:[%s14171_s30 + $0x160] sm:$0xff]  ;;  %v10296_v21 = vpack.c.bf16 %v5561_v31, %v5553_v28 }
0x1127   :  { %v10272_v41 = vpack.c.bf16 %v5591_v52, %v5583_v40  ;;  %v10274_v49 = vpack.c.bf16 %v5482_v45, %v5474_v44  ;;  %v5522_v40 = vld [vmem:[%s14171_s30 + $0x1a8] sm:$0xff]  ;;  %v5532_v44 = vld [vmem:[%s14171_s30 + $0x1f8] sm:$0xff]  ;;  %v5367_v28 = vld [vmem:[%s14172_s12 + $0xd0] sm:$0xff] }
0x1128   :  { %v5530_v52 = vld [vmem:[%s14171_s30 + $0x1e8] sm:$0xff]  ;;  %v5580_v17 = vld [vmem:[%s14171_s30 + $0x378] sm:$0xff] }
0x1129   :  { %10225 = vmatpush1.bf16.msra.mxu0 %v10224_v57  ;;  %10257 = vmatpush1.bf16.msra.mxu1 %v10256_v58  ;;  %v7590_v57 = vld [vmem:[#allocation19] ss:$0 sm:$0xff] }
0x112a   :  { %10227 = vmatprep.subr.bf16.mxu0 %v10226_v59  ;;  %10259 = vmatprep.subr.bf16.mxu1 %v10258_v37  ;;  %v5374_v31 = vld [vmem:[%s14172_s12 + $0x108] sm:$0xff] }
0x112d   :  { %10229 = vmatpush1.bf16.msra.mxu0 %v10228_v15  ;;  %10261 = vmatpush1.bf16.msra.mxu1 %v10260_v47  ;;  %v5481_v15 = vld [vmem:[%s14171_s30 + $0x60] sm:$0xff] }
0x112e   :  { %10231 = vmatprep.subr.bf16.mxu0 %v10230_v0  ;;  %10263 = vmatprep.subr.bf16.mxu1 %v10262_v42  ;;  %v5498_v42 = vld [vmem:[%s14171_s30 + $0xe8] sm:$0xff]  ;;  %v10276_v34 = vpack.c.bf16 %v5481_v15, %v5473_v26  ;;  %v5539_v26 = vld [vmem:[%s14171_s30 + $0x230] sm:$0xff] }
0x112f   :  { %v5547_v15 = vld [vmem:[%s14171_s30 + $0x270] sm:$0xff] }
0x1131   :  { %10233 = vmatpush1.bf16.msra.mxu0 %v10232_v43  ;;  %10265 = vmatpush1.bf16.msra.mxu1 %v10264_v13  ;;  %v5489_v43 = vld [vmem:[%s14171_s30 + $0xa0] sm:$0xff] }
0x1132   :  { %10235 = vmatprep.subr.bf16.mxu0 %v10234_v19  ;;  %10267 = vmatprep.subr.bf16.mxu1 %v10266_v20  ;;  %v5497_v13 = vld [vmem:[%s14171_s30 + $0xe0] sm:$0xff]  ;;  %v10278_v20 = vpack.c.bf16 %v5498_v42, %v5490_v25  ;;  %v10324_v42 = vpack.c.bf16 %v5547_v15, %v5539_v26  ;;  %v5368_v26 = vld [vmem:[%s14172_s12 + $0xd8] sm:$0xff] }
0x1133   :  { %v10280_v8 = vpack.c.bf16 %v5497_v13, %v5489_v43  ;;  %v5563_v43 = vld [vmem:[%s14171_s30 + $0x2f0] sm:$0xff]  ;;  %v5570_v13 = vld [vmem:[%s14171_s30 + $0x328] sm:$0xff] }
0x1135   :  { %10237 = vmatpush1.bf16.msra.mxu0 %v10236_v12  ;;  %10269 = vmatpush1.bf16.msra.mxu1 %v10268_v4  ;;  %v5506_v12 = vld [vmem:[%s14171_s30 + $0x128] sm:$0xff]  ;;  %v5508_v4 = vld [vmem:[%s14171_s30 + $0x138] sm:$0xff] }
0x1136   :  { %10239 = vmatprep.subr.bf16.mxu0 %v10238_v10  ;;  %10271 = vmatprep.subr.bf16.mxu1 %v10270_v36  ;;  %v5505_v10 = vld [vmem:[%s14171_s30 + $0x120] sm:$0xff]  ;;  %v10282_v35 = vpack.c.bf16 %v5514_v18, %v5506_v12  ;;  %v10314_v50 = vpack.c.bf16 %v5516_v7, %v5508_v4  ;;  %v5507_v36 = vld [vmem:[%s14171_s30 + $0x130] sm:$0xff] }
0x1137   :  { %v10284_v45 = vpack.c.bf16 %v5513_v11, %v5505_v10  ;;  %v5569_v18 = vld [vmem:[%s14171_s30 + $0x320] sm:$0xff]  ;;  %v5579_v10 = vld [vmem:[%s14171_s30 + $0x370] sm:$0xff]  ;;  %v5586_v11 = vld [vmem:[%s14171_s30 + $0x3a8] sm:$0xff] }
0x1138   :  { %v5577_v4 = vld [vmem:[%s14171_s30 + $0x360] sm:$0xff] }
0x1139   :  { %10241 = vmatpush1.bf16.msra.mxu0 %v10240_v39  ;;  %10273 = vmatpush1.bf16.msra.mxu1 %v10272_v41  ;;  %v5515_v39 = vld [vmem:[%s14171_s30 + $0x170] sm:$0xff]  ;;  %v5524_v41 = vld [vmem:[%s14171_s30 + $0x1b8] sm:$0xff] }
0x113a   :  { %10275 = vmatprep.subr.bf16.mxu0 %v10274_v49  ;;  %10307 = vmatprep.subr.bf16.mxu1 %v10306_v54  ;;  %v10316_v48 = vpack.c.bf16 %v5515_v39, %v5507_v36  ;;  %v5521_v49 = vld [vmem:[%s14171_s30 + $0x1a0] sm:$0xff]  ;;  %v10286_v54 = vpack.c.bf16 %v5530_v52, %v5522_v40  ;;  %v5596_v36 = vld [vmem:[%s14171_s30 + $0x3f8] sm:$0xff]  ;;  %v10300_v39 = vpack.c.bf16 %v5577_v4, %v5569_v18  ;;  %v5383_v18 = vld [vmem:[%s14172_s12 + $0x150] sm:$0xff] }
0x113b   :  { %v5585_v52 = vld [vmem:[%s14171_s30 + $0x3a0] sm:$0xff]  ;;  %v5390_v4 = vld [vmem:[%s14172_s12 + $0x188] sm:$0xff] }
0x11ae   :  { %v8117_v55 = vpop.f32.mrb[174].mxu0  ;;  %v8152_v56 = vpop.f32.mrb[144].mxu1 }
0x11af   :  { %v8118_v58 = vpop.f32.mrb[175].mxu0  ;;  %v8153_v59 = vpop.f32.mrb[145].mxu1 }
0x11b0   :  { %v8119_v60 = vadd.f32 %v8118_v58, %v8117_v55  ;;  %v8154_v38 = vadd.f32 %v8153_v59, %v8152_v56  ;;  %v10318_v55 = vpack.c.bf16 %v5532_v44, %v5524_v41  ;;  %v5523_v56 = vld [vmem:[%s14171_s30 + $0x1b0] sm:$0xff]  ;;  %v5538_v58 = vld [vmem:[%s14171_s30 + $0x228] sm:$0xff]  ;;  %v5593_v41 = vld [vmem:[%s14171_s30 + $0x3e0] sm:$0xff] }
0x11b1   :  { %v5546_v59 = vld [vmem:[%s14171_s30 + $0x268] sm:$0xff] }
0x11b2   :  { %v5128_v62 = vadd.f32 %v8119_v60, %v7590_v57  ;;  %v5531_v57 = vld [vmem:[%s14171_s30 + $0x1f0] sm:$0xff]  ;;  %v5540_v60 = vld [vmem:[%s14171_s30 + $0x238] sm:$0xff] }
0x11b4   :  { %v5198_v37 = vadd.f32 %v8154_v38, %v5128_v62  ;;  %v5548_v38 = vld [vmem:[%s14171_s30 + $0x278] sm:$0xff]  ;;  %v10288_v62 = vpack.c.bf16 %v5529_v53, %v5521_v49  ;;  %v5595_v49 = vld [vmem:[%s14171_s30 + $0x3f0] sm:$0xff]  ;;  %v5342_v53 = vld [vmem:[%s14172_s12 + $0x8] sm:$0xff] }
0x11ee   :  { %v8187_v63 = vpop.f32.mrb[176].mxu0  ;;  %v8222_v16 = vpop.f32.mrb[146].mxu1 }
0x11ef   :  { %v8188_v30 = vpop.f32.mrb[177].mxu0  ;;  %v8223_v14 = vpop.f32.mrb[147].mxu1 }
0x11f0   :  { %v8189_v47 = vadd.f32 %v8188_v30, %v8187_v63  ;;  %v8224_v0 = vadd.f32 %v8223_v14, %v8222_v16  ;;  %v5537_v63 = vld [vmem:[%s14171_s30 + $0x220] sm:$0xff]  ;;  %v10290_v30 = vpack.c.bf16 %v5546_v59, %v5538_v58  ;;  %v10322_v14 = vpack.c.bf16 %v5548_v38, %v5540_v60 }
0x11f1   :  { %v5545_v16 = vld [vmem:[%s14171_s30 + $0x260] sm:$0xff] }
0x11f2   :  { %v5268_v33 = vadd.f32 %v8189_v47, %v5198_v37  ;;  %v10320_v37 = vpack.c.bf16 %v5531_v57, %v5523_v56  ;;  %v5554_v47 = vld [vmem:[%s14171_s30 + $0x2a8] sm:$0xff]  ;;  %v10292_v25 = vpack.c.bf16 %v5545_v16, %v5537_v63  ;;  %v5352_v56 = vld [vmem:[%s14172_s12 + $0x58] sm:$0xff]  ;;  %v10304_v57 = vpack.c.bf16 %v5593_v41, %v5585_v52  ;;  %v5341_v59 = vld [vmem:[%s14172_s12] sm:$0xff] }
0x11f3   :  { %v5349_v60 = vld [vmem:[%s14172_s12 + $0x40] sm:$0xff]  ;;  %v5351_v63 = vld [vmem:[%s14172_s12 + $0x50] sm:$0xff]  ;;  %v5358_v16 = vld [vmem:[%s14172_s12 + $0x88] sm:$0xff] }
0x11f4   :  { %v13323_v19 = vadd.f32 %v8224_v0, %v5268_v33  ;;  %v5562_v0 = vld [vmem:[%s14171_s30 + $0x2e8] sm:$0xff]  ;;  %v10340_v15 = vpack.c.bf16 %v5349_v60, %v5341_v59 }
0x11f5   :  { %v10294_v33 = vpack.c.bf16 %v5562_v0, %v5554_v47  ;;  %v5357_v0 = vld [vmem:[%s14172_s12 + $0x80] sm:$0xff]  ;;  %v5406_v52 = vld [vmem:[%s14172_s12 + $0x208] sm:$0xff] }
0x11f6   :  { %5662 = vmatmul.mubr.f32.vlgmr.msra.gmra.mrb[178].mxu0 %v13323_v19  ;;  %5733 = vmatmul.mubr.f32.vlgmr.msra.gmra.mrb[148].mxu1 %v13323_v19  ;;  %v5414_v41 = vld [vmem:[%s14172_s12 + $0x248] sm:$0xff] }
0x11f7   :  { %10277 = vmatpush1.bf16.msra.mxu0 %v10276_v34  ;;  %10309 = vmatpush1.bf16.msra.mxu1 %v10308_v5  ;;  %v10326_v34 = vpack.c.bf16 %v5564_v61, %v5556_v24  ;;  %v5555_v5 = vld [vmem:[%s14171_s30 + $0x2b0] sm:$0xff]  ;;  %v5365_v24 = vld [vmem:[%s14172_s12 + $0xc0] sm:$0xff]  ;;  %v5422_v59 = vld [vmem:[%s14172_s12 + $0x288] sm:$0xff] }
0x11f8   :  { %10279 = vmatprep.subr.bf16.mxu0 %v10278_v20  ;;  %10311 = vmatprep.subr.bf16.mxu1 %v10310_v22  ;;  %v5578_v20 = vld [vmem:[%s14171_s30 + $0x368] sm:$0xff]  ;;  %v5572_v22 = vld [vmem:[%s14171_s30 + $0x338] sm:$0xff]  ;;  %v10328_v12 = vpack.c.bf16 %v5563_v43, %v5555_v5  ;;  %v10344_v43 = vpack.c.bf16 %v5365_v24, %v5357_v0 }
0x11f9   :  { %5803 = vmatprep.mubr.f32.mxu0 %v11531_v1  ;;  %5874 = vmatprep.mubr.f32.mxu1 %v11531_v1  ;;  %v10298_v7 = vpack.c.bf16 %v5578_v20, %v5570_v13  ;;  %v5384_v5 = vld [vmem:[%s14172_s12 + $0x158] sm:$0xff]  ;;  %v5373_v20 = vld [vmem:[%s14172_s12 + $0x100] sm:$0xff]  ;;  %v5430_v60 = vld [vmem:[%s14172_s12 + $0x2c8] sm:$0xff] }
0x11fa   :  { %v5438_v0 = vld [vmem:[%s14172_s12 + $0x308] sm:$0xff] }
0x11fb   :  { %10281 = vmatpush1.bf16.msra.mxu0 %v10280_v8  ;;  %10313 = vmatpush1.bf16.msra.mxu1 %v10312_v9  ;;  %v10330_v8 = vpack.c.bf16 %v5580_v17, %v5572_v22  ;;  %v5571_v9 = vld [vmem:[%s14171_s30 + $0x330] sm:$0xff]  ;;  %v5381_v22 = vld [vmem:[%s14172_s12 + $0x140] sm:$0xff]  ;;  %v5446_v24 = vld [vmem:[%s14172_s12 + $0x348] sm:$0xff] }
0x11fc   :  { %10283 = vmatprep.subr.bf16.mxu0 %v10282_v35  ;;  %10315 = vmatprep.subr.bf16.mxu1 %v10314_v50  ;;  %v5594_v35 = vld [vmem:[%s14171_s30 + $0x3e8] sm:$0xff]  ;;  %v5588_v50 = vld [vmem:[%s14171_s30 + $0x3b8] sm:$0xff]  ;;  %v10332_v40 = vpack.c.bf16 %v5579_v10, %v5571_v9  ;;  %v10348_v9 = vpack.c.bf16 %v5381_v22, %v5373_v20 }
0x11fd   :  { %v10302_v44 = vpack.c.bf16 %v5594_v35, %v5586_v11  ;;  %v5389_v11 = vld [vmem:[%s14172_s12 + $0x180] sm:$0xff]  ;;  %v5454_v20 = vld [vmem:[%s14172_s12 + $0x388] sm:$0xff] }
0x11fe   :  { %v5397_v35 = vld [vmem:[%s14172_s12 + $0x1c0] sm:$0xff]  ;;  %v5462_v22 = vld [vmem:[%s14172_s12 + $0x3c8] sm:$0xff] }
0x11ff   :  { %10285 = vmatpush1.bf16.msra.mxu0 %v10284_v45  ;;  %10317 = vmatpush1.bf16.msra.mxu1 %v10316_v48  ;;  %v10334_v45 = vpack.c.bf16 %v5596_v36, %v5588_v50  ;;  %v5587_v48 = vld [vmem:[%s14171_s30 + $0x3b0] sm:$0xff] }
0x1200   :  { %10287 = vmatprep.subr.bf16.mxu0 %v10286_v54  ;;  %10319 = vmatprep.subr.bf16.mxu1 %v10318_v55  ;;  %v5350_v54 = vld [vmem:[%s14172_s12 + $0x48] sm:$0xff]  ;;  %v5344_v55 = vld [vmem:[%s14172_s12 + $0x18] sm:$0xff]  ;;  %v10336_v58 = vpack.c.bf16 %v5595_v49, %v5587_v48  ;;  %v10352_v48 = vpack.c.bf16 %v5397_v35, %v5389_v11 }
0x1201   :  { %v10338_v38 = vpack.c.bf16 %v5350_v54, %v5342_v53  ;;  %v5405_v53 = vld [vmem:[%s14172_s12 + $0x200] sm:$0xff]  ;;  %v5346_v11 = vld [vmem:[%s14172_s12 + $0x28] sm:$0xff] }
0x1202   :  { %v5413_v54 = vld [vmem:[%s14172_s12 + $0x240] sm:$0xff]  ;;  %v5354_v35 = vld [vmem:[%s14172_s12 + $0x68] sm:$0xff] }
0x1203   :  { %10289 = vmatpush1.bf16.msra.mxu0 %v10288_v62  ;;  %10321 = vmatpush1.bf16.msra.mxu1 %v10320_v37  ;;  %v10370_v62 = vpack.c.bf16 %v5352_v56, %v5344_v55  ;;  %v5343_v37 = vld [vmem:[%s14172_s12 + $0x10] sm:$0xff]  ;;  %v10354_v55 = vpack.c.bf16 %v5414_v41, %v5406_v52  ;;  %v5345_v52 = vld [vmem:[%s14172_s12 + $0x20] sm:$0xff] }
0x1204   :  { %10291 = vmatprep.subr.bf16.mxu0 %v10290_v30  ;;  %10323 = vmatprep.subr.bf16.mxu1 %v10322_v14  ;;  %v5366_v30 = vld [vmem:[%s14172_s12 + $0xc8] sm:$0xff]  ;;  %v5360_v14 = vld [vmem:[%s14172_s12 + $0x98] sm:$0xff]  ;;  %v10372_v47 = vpack.c.bf16 %v5351_v63, %v5343_v37  ;;  %v10356_v37 = vpack.c.bf16 %v5413_v54, %v5405_v53  ;;  %v5353_v41 = vld [vmem:[%s14172_s12 + $0x60] sm:$0xff] }
0x1205   :  { %v10342_v61 = vpack.c.bf16 %v5366_v30, %v5358_v16  ;;  %v5421_v16 = vld [vmem:[%s14172_s12 + $0x280] sm:$0xff]  ;;  %v5362_v53 = vld [vmem:[%s14172_s12 + $0xa8] sm:$0xff] }
0x1206   :  { %v5429_v30 = vld [vmem:[%s14172_s12 + $0x2c0] sm:$0xff]  ;;  %v5370_v54 = vld [vmem:[%s14172_s12 + $0xe8] sm:$0xff] }
0x1207   :  { %10293 = vmatpush1.bf16.msra.mxu0 %v10292_v25  ;;  %10325 = vmatpush1.bf16.msra.mxu1 %v10324_v42  ;;  %v10374_v25 = vpack.c.bf16 %v5368_v26, %v5360_v14  ;;  %v5359_v42 = vld [vmem:[%s14172_s12 + $0x90] sm:$0xff]  ;;  %v10358_v14 = vpack.c.bf16 %v5430_v60, %v5422_v59  ;;  %v5361_v59 = vld [vmem:[%s14172_s12 + $0xa0] sm:$0xff] }
0x1208   :  { %10295 = vmatprep.subr.bf16.mxu0 %v10294_v33  ;;  %10327 = vmatprep.subr.bf16.mxu1 %v10326_v34  ;;  %v5382_v33 = vld [vmem:[%s14172_s12 + $0x148] sm:$0xff]  ;;  %v5376_v34 = vld [vmem:[%s14172_s12 + $0x118] sm:$0xff]  ;;  %v10376_v13 = vpack.c.bf16 %v5367_v28, %v5359_v42  ;;  %v10360_v42 = vpack.c.bf16 %v5429_v30, %v5421_v16  ;;  %v5369_v60 = vld [vmem:[%s14172_s12 + $0xe0] sm:$0xff] }
0x1209   :  { %v10346_v17 = vpack.c.bf16 %v5382_v33, %v5374_v31  ;;  %v5437_v31 = vld [vmem:[%s14172_s12 + $0x300] sm:$0xff]  ;;  %v5378_v16 = vld [vmem:[%s14172_s12 + $0x128] sm:$0xff] }
0x120a   :  { %v5445_v33 = vld [vmem:[%s14172_s12 + $0x340] sm:$0xff]  ;;  %v5386_v30 = vld [vmem:[%s14172_s12 + $0x168] sm:$0xff] }
0x120b   :  { %10297 = vmatpush1.bf16.msra.mxu0 %v10296_v21  ;;  %10329 = vmatpush1.bf16.msra.mxu1 %v10328_v12  ;;  %v10378_v21 = vpack.c.bf16 %v5384_v5, %v5376_v34  ;;  %v5375_v12 = vld [vmem:[%s14172_s12 + $0x110] sm:$0xff]  ;;  %v10362_v34 = vpack.c.bf16 %v5446_v24, %v5438_v0  ;;  %v5377_v0 = vld [vmem:[%s14172_s12 + $0x120] sm:$0xff] }
0x120c   :  { %10299 = vmatprep.subr.bf16.mxu0 %v10298_v7  ;;  %10331 = vmatprep.subr.bf16.mxu1 %v10330_v8  ;;  %v5398_v7 = vld [vmem:[%s14172_s12 + $0x1c8] sm:$0xff]  ;;  %v5400_v8 = vld [vmem:[%s14172_s12 + $0x1d8] sm:$0xff]  ;;  %v10380_v10 = vpack.c.bf16 %v5383_v18, %v5375_v12  ;;  %v10364_v12 = vpack.c.bf16 %v5445_v33, %v5437_v31  ;;  %v5385_v24 = vld [vmem:[%s14172_s12 + $0x160] sm:$0xff] }
0x120d   :  { %v10350_v50 = vpack.c.bf16 %v5398_v7, %v5390_v4  ;;  %v5453_v4 = vld [vmem:[%s14172_s12 + $0x380] sm:$0xff]  ;;  %v5394_v31 = vld [vmem:[%s14172_s12 + $0x1a8] sm:$0xff] }
0x120e   :  { %v5461_v7 = vld [vmem:[%s14172_s12 + $0x3c0] sm:$0xff]  ;;  %v5402_v33 = vld [vmem:[%s14172_s12 + $0x1e8] sm:$0xff] }
0x120f   :  { %10301 = vmatpush1.bf16.msra.mxu0 %v10300_v39  ;;  %10333 = vmatpush1.bf16.msra.mxu1 %v10332_v40  ;;  %v5391_v39 = vld [vmem:[%s14172_s12 + $0x190] sm:$0xff] }
0x1210   :  { %10303 = vmatprep.subr.bf16.mxu0 %v10302_v44  ;;  %10335 = vmatprep.subr.bf16.mxu1 %v10334_v45  ;;  %v5399_v40 = vld [vmem:[%s14172_s12 + $0x1d0] sm:$0xff]  ;;  %v5408_v44 = vld [vmem:[%s14172_s12 + $0x218] sm:$0xff] }
0x1211   :  { %v5416_v45 = vld [vmem:[%s14172_s12 + $0x258] sm:$0xff]  ;;  %v10384_v49 = vpack.c.bf16 %v5399_v40, %v5391_v39  ;;  %v10368_v39 = vpack.c.bf16 %v5461_v7, %v5453_v4  ;;  %v5410_v4 = vld [vmem:[%s14172_s12 + $0x228] sm:$0xff] }
0x1212   :  { %v10386_v56 = vpack.c.bf16 %v5416_v45, %v5408_v44  ;;  %v10402_v44 = vpack.c.bf16 %v5354_v35, %v5346_v11  ;;  %v5412_v7 = vld [vmem:[%s14172_s12 + $0x238] sm:$0xff]  ;;  %v5417_v11 = vld [vmem:[%s14172_s12 + $0x260] sm:$0xff] }
0x1213   :  { %10305 = vmatpush1.bf16.msra.mxu0 %v10304_v57  ;;  %10337 = vmatpush1.bf16.msra.mxu1 %v10336_v58  ;;  %v5407_v57 = vld [vmem:[%s14172_s12 + $0x210] sm:$0xff] }
0x1214   :  { %10339 = vmatprep.subr.bf16.mxu0 %v10338_v38  ;;  %10371 = vmatprep.subr.bf16.mxu1 %v10370_v62  ;;  %v5415_v58 = vld [vmem:[%s14172_s12 + $0x250] sm:$0xff]  ;;  %v5424_v38 = vld [vmem:[%s14172_s12 + $0x298] sm:$0xff] }
0x1215   :  { %v5432_v62 = vld [vmem:[%s14172_s12 + $0x2d8] sm:$0xff]  ;;  %v10388_v63 = vpack.c.bf16 %v5415_v58, %v5407_v57  ;;  %v10404_v57 = vpack.c.bf16 %v5353_v41, %v5345_v52  ;;  %v5434_v52 = vld [vmem:[%s14172_s12 + $0x2e8] sm:$0xff] }
0x1216   :  { %5804 = vmatmul.mubr.f32.vlgmr.msra.gmra.mrb[180].mxu0 %v13323_v19  ;;  %5875 = vmatmul.mubr.f32.vlgmr.msra.gmra.mrb[150].mxu1 %v13323_v19  ;;  %v5392_v19 = vld [vmem:[%s14172_s12 + $0x198] sm:$0xff]  ;;  %v10390_v26 = vpack.c.bf16 %v5432_v62, %v5424_v38  ;;  %v10406_v38 = vpack.c.bf16 %v5370_v54, %v5362_v53  ;;  %v5433_v53 = vld [vmem:[%s14172_s12 + $0x2e0] sm:$0xff] }
0x1217   :  { %10341 = vmatpush1.bf16.msra.mxu0 %v10340_v15  ;;  %10373 = vmatpush1.bf16.msra.mxu1 %v10372_v47  ;;  %v10382_v36 = vpack.c.bf16 %v5400_v8, %v5392_v19  ;;  %v5423_v15 = vld [vmem:[%s14172_s12 + $0x290] sm:$0xff]  ;;  %v10366_v19 = vpack.c.bf16 %v5462_v22, %v5454_v20  ;;  %v5393_v20 = vld [vmem:[%s14172_s12 + $0x1a0] sm:$0xff]  ;;  %v5428_v41 = vld [vmem:[%s14172_s12 + $0x2b8] sm:$0xff] }
0x1218   :  { %10343 = vmatprep.subr.bf16.mxu0 %v10342_v61  ;;  %10375 = vmatprep.subr.bf16.mxu1 %v10374_v25  ;;  %v5431_v47 = vld [vmem:[%s14172_s12 + $0x2d0] sm:$0xff]  ;;  %v5440_v61 = vld [vmem:[%s14172_s12 + $0x318] sm:$0xff]  ;;  %v5401_v22 = vld [vmem:[%s14172_s12 + $0x1e0] sm:$0xff] }
0x1219   :  { %5945 = vmatprep.mubr.f32.mxu0 %v11531_v1  ;;  %6016 = vmatprep.mubr.f32.mxu1 %v11531_v1  ;;  %v5448_v25 = vld [vmem:[%s14172_s12 + $0x358] sm:$0xff]  ;;  %v10392_v28 = vpack.c.bf16 %v5431_v47, %v5423_v15  ;;  %v10408_v15 = vpack.c.bf16 %v5369_v60, %v5361_v59  ;;  %v5450_v59 = vld [vmem:[%s14172_s12 + $0x368] sm:$0xff] }
0x121a   :  { %v10394_v5 = vpack.c.bf16 %v5448_v25, %v5440_v61  ;;  %v10410_v61 = vpack.c.bf16 %v5386_v30, %v5378_v16  ;;  %v5444_v60 = vld [vmem:[%s14172_s12 + $0x338] sm:$0xff]  ;;  %v5449_v16 = vld [vmem:[%s14172_s12 + $0x360] sm:$0xff] }
0x121b   :  { %10345 = vmatpush1.bf16.msra.mxu0 %v10344_v43  ;;  %10377 = vmatpush1.bf16.msra.mxu1 %v10376_v13  ;;  %v5439_v43 = vld [vmem:[%s14172_s12 + $0x310] sm:$0xff] }
0x121c   :  { %10347 = vmatprep.subr.bf16.mxu0 %v10346_v17  ;;  %10379 = vmatprep.subr.bf16.mxu1 %v10378_v21  ;;  %v5447_v13 = vld [vmem:[%s14172_s12 + $0x350] sm:$0xff]  ;;  %v5456_v17 = vld [vmem:[%s14172_s12 + $0x398] sm:$0xff] }
0x121d   :  { %v5464_v21 = vld [vmem:[%s14172_s12 + $0x3d8] sm:$0xff]  ;;  %v10396_v18 = vpack.c.bf16 %v5447_v13, %v5439_v43  ;;  %v10412_v43 = vpack.c.bf16 %v5385_v24, %v5377_v0  ;;  %v5466_v0 = vld [vmem:[%s14172_s12 + $0x3e8] sm:$0xff] }
0x121e   :  { %v10398_v8 = vpack.c.bf16 %v5464_v21, %v5456_v17  ;;  %v10414_v17 = vpack.c.bf16 %v5402_v33, %v5394_v31  ;;  %v5460_v24 = vld [vmem:[%s14172_s12 + $0x3b8] sm:$0xff]  ;;  %v5465_v31 = vld [vmem:[%s14172_s12 + $0x3e0] sm:$0xff] }
0x121f   :  { %10349 = vmatpush1.bf16.msra.mxu0 %v10348_v9  ;;  %10381 = vmatpush1.bf16.msra.mxu1 %v10380_v10  ;;  %v5455_v9 = vld [vmem:[%s14172_s12 + $0x390] sm:$0xff] }
0x1220   :  { %10351 = vmatprep.subr.bf16.mxu0 %v10350_v50  ;;  %10383 = vmatprep.subr.bf16.mxu1 %v10382_v36  ;;  %v5463_v10 = vld [vmem:[%s14172_s12 + $0x3d0] sm:$0xff]  ;;  %v5348_v50 = vld [vmem:[%s14172_s12 + $0x38] sm:$0xff] }
0x1221   :  { %v5356_v36 = vld [vmem:[%s14172_s12 + $0x78] sm:$0xff]  ;;  %v10400_v40 = vpack.c.bf16 %v5463_v10, %v5455_v9  ;;  %v5409_v10 = vld [vmem:[%s14172_s12 + $0x220] sm:$0xff] }
0x1222   :  { %v10434_v45 = vpack.c.bf16 %v5356_v36, %v5348_v50  ;;  %v5411_v36 = vld [vmem:[%s14172_s12 + $0x230] sm:$0xff] }
0x1223   :  { %10353 = vmatpush1.bf16.msra.mxu0 %v10352_v48  ;;  %10385 = vmatpush1.bf16.msra.mxu1 %v10384_v49  ;;  %v5347_v48 = vld [vmem:[%s14172_s12 + $0x30] sm:$0xff] }
0x1224   :  { %10355 = vmatprep.subr.bf16.mxu0 %v10354_v55  ;;  %10387 = vmatprep.subr.bf16.mxu1 %v10386_v56  ;;  %v5355_v49 = vld [vmem:[%s14172_s12 + $0x70] sm:$0xff]  ;;  %v5364_v55 = vld [vmem:[%s14172_s12 + $0xb8] sm:$0xff] }
0x1225   :  { %v5372_v56 = vld [vmem:[%s14172_s12 + $0xf8] sm:$0xff]  ;;  %v10436_v58 = vpack.c.bf16 %v5355_v49, %v5347_v48  ;;  %v5425_v49 = vld [vmem:[%s14172_s12 + $0x2a0] sm:$0xff] }
0x1226   :  { %v10438_v62 = vpack.c.bf16 %v5372_v56, %v5364_v55  ;;  %v5427_v56 = vld [vmem:[%s14172_s12 + $0x2b0] sm:$0xff] }
0x1227   :  { %10357 = vmatpush1.bf16.msra.mxu0 %v10356_v37  ;;  %10389 = vmatpush1.bf16.msra.mxu1 %v10388_v63  ;;  %v5363_v37 = vld [vmem:[%s14172_s12 + $0xb0] sm:$0xff] }
0x1228   :  { %10359 = vmatprep.subr.bf16.mxu0 %v10358_v14  ;;  %10391 = vmatprep.subr.bf16.mxu1 %v10390_v26  ;;  %v5371_v63 = vld [vmem:[%s14172_s12 + $0xf0] sm:$0xff]  ;;  %v5380_v14 = vld [vmem:[%s14172_s12 + $0x138] sm:$0xff] }
0x1229   :  { %v5388_v26 = vld [vmem:[%s14172_s12 + $0x178] sm:$0xff]  ;;  %v10440_v47 = vpack.c.bf16 %v5371_v63, %v5363_v37  ;;  %v5441_v63 = vld [vmem:[%s14172_s12 + $0x320] sm:$0xff] }
0x122a   :  { %v10442_v25 = vpack.c.bf16 %v5388_v26, %v5380_v14  ;;  %v5443_v26 = vld [vmem:[%s14172_s12 + $0x330] sm:$0xff] }
0x122b   :  { %10361 = vmatpush1.bf16.msra.mxu0 %v10360_v42  ;;  %10393 = vmatpush1.bf16.msra.mxu1 %v10392_v28  ;;  %v5379_v42 = vld [vmem:[%s14172_s12 + $0x130] sm:$0xff] }
0x122c   :  { %10363 = vmatprep.subr.bf16.mxu0 %v10362_v34  ;;  %10395 = vmatprep.subr.bf16.mxu1 %v10394_v5  ;;  %v5387_v28 = vld [vmem:[%s14172_s12 + $0x170] sm:$0xff]  ;;  %v5396_v34 = vld [vmem:[%s14172_s12 + $0x1b8] sm:$0xff] }
0x122d   :  { %v5404_v5 = vld [vmem:[%s14172_s12 + $0x1f8] sm:$0xff]  ;;  %v10444_v13 = vpack.c.bf16 %v5387_v28, %v5379_v42  ;;  %v5457_v28 = vld [vmem:[%s14172_s12 + $0x3a0] sm:$0xff] }
0x122e   :  { %v10446_v21 = vpack.c.bf16 %v5404_v5, %v5396_v34  ;;  %v5459_v5 = vld [vmem:[%s14172_s12 + $0x3b0] sm:$0xff] }
0x122f   :  { %10365 = vmatpush1.bf16.msra.mxu0 %v10364_v12  ;;  %10397 = vmatpush1.bf16.msra.mxu1 %v10396_v18  ;;  %v5395_v12 = vld [vmem:[%s14172_s12 + $0x1b0] sm:$0xff] }
0x1230   :  { %10367 = vmatprep.subr.bf16.mxu0 %v10366_v19  ;;  %10399 = vmatprep.subr.bf16.mxu1 %v10398_v8  ;;  %v5403_v18 = vld [vmem:[%s14172_s12 + $0x1f0] sm:$0xff]  ;;  %v5420_v19 = vld [vmem:[%s14172_s12 + $0x278] sm:$0xff]  ;;  %v10416_v8 = vpack.c.bf16 %v5401_v22, %v5393_v20  ;;  %v6228_v20 = vld [vmem:[%s14173_s2 + $0x28] sm:$0xff] }
0x1231   :  { %v10448_v9 = vpack.c.bf16 %v5403_v18, %v5395_v12  ;;  %v10450_v50 = vpack.c.bf16 %v5420_v19, %v5412_v7  ;;  %v6226_v22 = vld [vmem:[%s14173_s2 + $0x18] sm:$0xff]  ;;  %v6223_v18 = vld [vmem:[%s14173_s2] sm:$0xff]  ;;  %v6225_v19 = vld [vmem:[%s14173_s2 + $0x10] sm:$0xff] }
0x1233   :  { %10369 = vmatpush1.bf16.msra.mxu0 %v10368_v39  ;;  %10401 = vmatpush1.bf16.msra.mxu1 %v10400_v40  ;;  %v5419_v39 = vld [vmem:[%s14172_s12 + $0x270] sm:$0xff]  ;;  %v5426_v40 = vld [vmem:[%s14172_s12 + $0x2a8] sm:$0xff] }
0x1234   :  { %10403 = vmatprep.subr.bf16.mxu0 %v10402_v44  ;;  %10435 = vmatprep.subr.bf16.mxu1 %v10434_v45  ;;  %v5436_v44 = vld [vmem:[%s14172_s12 + $0x2f8] sm:$0xff]  ;;  %v10420_v45 = vpack.c.bf16 %v5417_v11, %v5409_v10  ;;  %v10452_v48 = vpack.c.bf16 %v5419_v39, %v5411_v36  ;;  %v10422_v54 = vpack.c.bf16 %v5434_v52, %v5426_v40  ;;  %v6236_v10 = vld [vmem:[%s14173_s2 + $0x68] sm:$0xff]  ;;  %v6231_v39 = vld [vmem:[%s14173_s2 + $0x40] sm:$0xff] }
0x1235   :  { %v10454_v55 = vpack.c.bf16 %v5436_v44, %v5428_v41  ;;  %v6234_v11 = vld [vmem:[%s14173_s2 + $0x58] sm:$0xff]  ;;  %v6235_v40 = vld [vmem:[%s14173_s2 + $0x60] sm:$0xff]  ;;  %v6233_v44 = vld [vmem:[%s14173_s2 + $0x50] sm:$0xff] }
0x1236   :  { %5946 = vmatmul.mubr.f32.vlgmr.msra.gmra.mrb[178].mxu0 %v12666_v51  ;;  %6017 = vmatmul.mubr.f32.vlgmr.msra.gmra.mrb[148].mxu1 %v12666_v51 }
0x1237   :  { %10405 = vmatpush1.bf16.msra.mxu0 %v10404_v57  ;;  %10437 = vmatpush1.bf16.msra.mxu1 %v10436_v58  ;;  %v5435_v57 = vld [vmem:[%s14172_s12 + $0x2f0] sm:$0xff]  ;;  %v5442_v58 = vld [vmem:[%s14172_s12 + $0x328] sm:$0xff] }
0x1238   :  { %10407 = vmatprep.subr.bf16.mxu0 %v10406_v38  ;;  %10439 = vmatprep.subr.bf16.mxu1 %v10438_v62  ;;  %v5452_v38 = vld [vmem:[%s14172_s12 + $0x378] sm:$0xff]  ;;  %v10424_v62 = vpack.c.bf16 %v5433_v53, %v5425_v49  ;;  %v10456_v37 = vpack.c.bf16 %v5435_v57, %v5427_v56  ;;  %v10426_v30 = vpack.c.bf16 %v5450_v59, %v5442_v58  ;;  %v6244_v49 = vld [vmem:[%s14173_s2 + $0xa8] sm:$0xff]  ;;  %v6239_v57 = vld [vmem:[%s14173_s2 + $0x80] sm:$0xff] }
0x1239   :  { %6087 = vmatprep.mubr.f32.mxu0 %v11531_v1  ;;  %6158 = vmatprep.mubr.f32.mxu1 %v11531_v1  ;;  %v5418_v1 = vld [vmem:[%s14172_s12 + $0x268] sm:$0xff]  ;;  %v10458_v14 = vpack.c.bf16 %v5452_v38, %v5444_v60  ;;  %v6242_v53 = vld [vmem:[%s14173_s2 + $0x98] sm:$0xff]  ;;  %v6243_v58 = vld [vmem:[%s14173_s2 + $0xa0] sm:$0xff] }
0x123a   :  { %v10418_v35 = vpack.c.bf16 %v5418_v1, %v5410_v4  ;;  %v6227_v4 = vld [vmem:[%s14173_s2 + $0x20] sm:$0xff]  ;;  %v6241_v38 = vld [vmem:[%s14173_s2 + $0x90] sm:$0xff] }
0x123b   :  { %10409 = vmatpush1.bf16.msra.mxu0 %v10408_v15  ;;  %10441 = vmatpush1.bf16.msra.mxu1 %v10440_v47  ;;  %v5451_v15 = vld [vmem:[%s14172_s12 + $0x370] sm:$0xff]  ;;  %v5458_v47 = vld [vmem:[%s14172_s12 + $0x3a8] sm:$0xff] }
0x123c   :  { %10411 = vmatprep.subr.bf16.mxu0 %v10410_v61  ;;  %10443 = vmatprep.subr.bf16.mxu1 %v10442_v25  ;;  %v5468_v61 = vld [vmem:[%s14172_s12 + $0x3f8] sm:$0xff]  ;;  %v10428_v25 = vpack.c.bf16 %v5449_v16, %v5441_v63  ;;  %v10460_v42 = vpack.c.bf16 %v5451_v15, %v5443_v26  ;;  %v10430_v33 = vpack.c.bf16 %v5466_v0, %v5458_v47  ;;  %v6247_v26 = vld [vmem:[%s14173_s2 + $0xc0] sm:$0xff] }
0x123d   :  { %v10462_v34 = vpack.c.bf16 %v5468_v61, %v5460_v24  ;;  %v6250_v63 = vld [vmem:[%s14173_s2 + $0xd8] sm:$0xff]  ;;  %v6251_v15 = vld [vmem:[%s14173_s2 + $0xe0] sm:$0xff]  ;;  %v6249_v24 = vld [vmem:[%s14173_s2 + $0xd0] sm:$0xff] }
0x123e   :  { %v6254_v16 = vld [vmem:[%s14173_s2 + $0xf8] sm:$0xff]  ;;  %v6253_v61 = vld [vmem:[%s14173_s2 + $0xf0] sm:$0xff] }
0x123f   :  { %10413 = vmatpush1.bf16.msra.mxu0 %v10412_v43  ;;  %10445 = vmatpush1.bf16.msra.mxu1 %v10444_v13  ;;  %v5467_v43 = vld [vmem:[%s14172_s12 + $0x3f0] sm:$0xff]  ;;  %v6224_v13 = vld [vmem:[%s14173_s2 + $0x8] sm:$0xff]  ;;  %v10734_v0 = vpack.c.bf16 %v6254_v16, %v6250_v63 }
0x1240   :  { %10415 = vmatprep.subr.bf16.mxu0 %v10414_v17  ;;  %10447 = vmatprep.subr.bf16.mxu1 %v10446_v21  ;;  %v6230_v17 = vld [vmem:[%s14173_s2 + $0x38] sm:$0xff]  ;;  %v10432_v21 = vpack.c.bf16 %v5465_v31, %v5457_v28  ;;  %v10464_v12 = vpack.c.bf16 %v5467_v43, %v5459_v5  ;;  %v10466_v1 = vpack.c.bf16 %v6228_v20, %v6224_v13  ;;  %v6255_v5 = vld [vmem:[%s14173_s2 + $0x100] sm:$0xff]  ;;  %v6281_v63 = vld [vmem:[%s14173_s2 + $0x1d0] sm:$0xff] }
0x1241   :  { %v10722_v7 = vpack.c.bf16 %v6230_v17, %v6226_v22  ;;  %v6258_v28 = vld [vmem:[%s14173_s2 + $0x118] sm:$0xff]  ;;  %v6259_v43 = vld [vmem:[%s14173_s2 + $0x120] sm:$0xff]  ;;  %v6257_v22 = vld [vmem:[%s14173_s2 + $0x110] sm:$0xff] }
0x1242   :  { %v6262_v31 = vld [vmem:[%s14173_s2 + $0x138] sm:$0xff]  ;;  %v6261_v17 = vld [vmem:[%s14173_s2 + $0x130] sm:$0xff] }
0x1243   :  { %10417 = vmatpush1.bf16.msra.mxu0 %v10416_v8  ;;  %10449 = vmatpush1.bf16.msra.mxu1 %v10448_v9  ;;  %v6229_v8 = vld [vmem:[%s14173_s2 + $0x30] sm:$0xff]  ;;  %v6232_v9 = vld [vmem:[%s14173_s2 + $0x48] sm:$0xff]  ;;  %v10738_v20 = vpack.c.bf16 %v6262_v31, %v6258_v28 }
0x1244   :  { %10419 = vmatprep.subr.bf16.mxu0 %v10418_v35  ;;  %10451 = vmatprep.subr.bf16.mxu1 %v10450_v50  ;;  %v6238_v35 = vld [vmem:[%s14173_s2 + $0x78] sm:$0xff]  ;;  %v10468_v50 = vpack.c.bf16 %v6227_v4, %v6223_v18  ;;  %v10724_v36 = vpack.c.bf16 %v6229_v8, %v6225_v19  ;;  %v10470_v52 = vpack.c.bf16 %v6236_v10, %v6232_v9  ;;  %v6263_v19 = vld [vmem:[%s14173_s2 + $0x140] sm:$0xff]  ;;  %v6285_v16 = vld [vmem:[%s14173_s2 + $0x1f0] sm:$0xff] }
0x1245   :  { %v10726_v41 = vpack.c.bf16 %v6238_v35, %v6234_v11  ;;  %v6266_v18 = vld [vmem:[%s14173_s2 + $0x158] sm:$0xff]  ;;  %v6267_v8 = vld [vmem:[%s14173_s2 + $0x160] sm:$0xff]  ;;  %v6265_v11 = vld [vmem:[%s14173_s2 + $0x150] sm:$0xff] }
0x1246   :  { %v6270_v4 = vld [vmem:[%s14173_s2 + $0x178] sm:$0xff]  ;;  %v6269_v35 = vld [vmem:[%s14173_s2 + $0x170] sm:$0xff] }
0x1247   :  { %10421 = vmatpush1.bf16.msra.mxu0 %v10420_v45  ;;  %10453 = vmatpush1.bf16.msra.mxu1 %v10452_v48  ;;  %v6237_v45 = vld [vmem:[%s14173_s2 + $0x70] sm:$0xff]  ;;  %v6240_v48 = vld [vmem:[%s14173_s2 + $0x88] sm:$0xff]  ;;  %v10742_v10 = vpack.c.bf16 %v6270_v4, %v6266_v18 }
0x1248   :  { %10423 = vmatprep.subr.bf16.mxu0 %v10422_v54  ;;  %10455 = vmatprep.subr.bf16.mxu1 %v10454_v55  ;;  %v6246_v54 = vld [vmem:[%s14173_s2 + $0xb8] sm:$0xff]  ;;  %v10472_v55 = vpack.c.bf16 %v6235_v40, %v6231_v39  ;;  %v10728_v56 = vpack.c.bf16 %v6237_v45, %v6233_v44  ;;  %v10474_v59 = vpack.c.bf16 %v6244_v49, %v6240_v48  ;;  %v6271_v44 = vld [vmem:[%s14173_s2 + $0x180] sm:$0xff]  ;;  %v6289_v28 = vld [vmem:[%s14173_s2 + $0x210] sm:$0xff] }
0x1249   :  { %v10730_v60 = vpack.c.bf16 %v6246_v54, %v6242_v53  ;;  %v6274_v39 = vld [vmem:[%s14173_s2 + $0x198] sm:$0xff]  ;;  %v6275_v45 = vld [vmem:[%s14173_s2 + $0x1a0] sm:$0xff]  ;;  %v6273_v53 = vld [vmem:[%s14173_s2 + $0x190] sm:$0xff] }
0x124a   :  { %v6278_v40 = vld [vmem:[%s14173_s2 + $0x1b8] sm:$0xff]  ;;  %v6277_v54 = vld [vmem:[%s14173_s2 + $0x1b0] sm:$0xff] }
0x124b   :  { %10425 = vmatpush1.bf16.msra.mxu0 %v10424_v62  ;;  %10457 = vmatpush1.bf16.msra.mxu1 %v10456_v37  ;;  %v6245_v62 = vld [vmem:[%s14173_s2 + $0xb0] sm:$0xff]  ;;  %v6248_v37 = vld [vmem:[%s14173_s2 + $0xc8] sm:$0xff]  ;;  %v10746_v49 = vpack.c.bf16 %v6278_v40, %v6274_v39 }
0x124c   :  { %10427 = vmatprep.subr.bf16.mxu0 %v10426_v30  ;;  %10459 = vmatprep.subr.bf16.mxu1 %v10458_v14  ;;  %v10476_v30 = vpack.c.bf16 %v6243_v58, %v6239_v57  ;;  %v10732_v14 = vpack.c.bf16 %v6245_v62, %v6241_v38  ;;  %v6282_v57 = vld [vmem:[%s14173_s2 + $0x1d8] sm:$0xff]  ;;  %v6279_v38 = vld [vmem:[%s14173_s2 + $0x1c0] sm:$0xff]  ;;  %v6293_v31 = vld [vmem:[%s14173_s2 + $0x230] sm:$0xff] }
0x124d   :  { %v6286_v58 = vld [vmem:[%s14173_s2 + $0x1f8] sm:$0xff]  ;;  %v6283_v62 = vld [vmem:[%s14173_s2 + $0x1e0] sm:$0xff]  ;;  %v6297_v18 = vld [vmem:[%s14173_s2 + $0x250] sm:$0xff] }
0x124e   :  { %v6301_v4 = vld [vmem:[%s14173_s2 + $0x270] sm:$0xff] }
0x124f   :  { %10429 = vmatpush1.bf16.msra.mxu0 %v10428_v25  ;;  %10461 = vmatpush1.bf16.msra.mxu1 %v10460_v42  ;;  %v6256_v25 = vld [vmem:[%s14173_s2 + $0x108] sm:$0xff]  ;;  %v6305_v39 = vld [vmem:[%s14173_s2 + $0x290] sm:$0xff] }
0x1250   :  { %10431 = vmatprep.subr.bf16.mxu0 %v10430_v33  ;;  %10463 = vmatprep.subr.bf16.mxu1 %v10462_v34  ;;  %v6260_v42 = vld [vmem:[%s14173_s2 + $0x128] sm:$0xff]  ;;  %v10480_v33 = vpack.c.bf16 %v6251_v15, %v6247_v26  ;;  %v10736_v34 = vpack.c.bf16 %v6253_v61, %v6249_v24  ;;  %v6290_v26 = vld [vmem:[%s14173_s2 + $0x218] sm:$0xff]  ;;  %v6287_v24 = vld [vmem:[%s14173_s2 + $0x200] sm:$0xff] }
0x1251   :  { %v10482_v13 = vpack.c.bf16 %v6260_v42, %v6256_v25  ;;  %v6294_v15 = vld [vmem:[%s14173_s2 + $0x238] sm:$0xff]  ;;  %v6291_v61 = vld [vmem:[%s14173_s2 + $0x220] sm:$0xff]  ;;  %v6309_v40 = vld [vmem:[%s14173_s2 + $0x2b0] sm:$0xff] }
0x1252   :  { %v10754_v42 = vpack.c.bf16 %v6294_v15, %v6290_v26  ;;  %v6321_v26 = vld [vmem:[%s14173_s2 + $0x310] sm:$0xff] }
0x1253   :  { %10433 = vmatpush1.bf16.msra.mxu0 %v10432_v21  ;;  %10465 = vmatpush1.bf16.msra.mxu1 %v10464_v12  ;;  %v6264_v21 = vld [vmem:[%s14173_s2 + $0x148] sm:$0xff]  ;;  %v6325_v15 = vld [vmem:[%s14173_s2 + $0x330] sm:$0xff] }
0x1254   :  { %10467 = vmatprep.subr.bf16.mxu0 %v10466_v1  ;;  %10723 = vmatprep.subr.bf16.mxu1 %v10722_v7  ;;  %v6268_v12 = vld [vmem:[%s14173_s2 + $0x168] sm:$0xff]  ;;  %v10484_v1 = vpack.c.bf16 %v6259_v43, %v6255_v5  ;;  %v10740_v7 = vpack.c.bf16 %v6261_v17, %v6257_v22  ;;  %v6298_v5 = vld [vmem:[%s14173_s2 + $0x258] sm:$0xff]  ;;  %v6295_v22 = vld [vmem:[%s14173_s2 + $0x240] sm:$0xff] }
0x1255   :  { %v10486_v9 = vpack.c.bf16 %v6268_v12, %v6264_v21  ;;  %v6302_v43 = vld [vmem:[%s14173_s2 + $0x278] sm:$0xff]  ;;  %v6299_v17 = vld [vmem:[%s14173_s2 + $0x260] sm:$0xff] }
0x1256   :  { %6088 = vmatmul.mubr.f32.vlgmr.msra.gmra.mrb[180].mxu0 %v12666_v51  ;;  %6159 = vmatmul.mubr.f32.vlgmr.msra.gmra.mrb[150].mxu1 %v12666_v51  ;;  %v6252_v51 = vld [vmem:[%s14173_s2 + $0xe8] sm:$0xff]  ;;  %v10758_v12 = vpack.c.bf16 %v6302_v43, %v6298_v5  ;;  %v6329_v5 = vld [vmem:[%s14173_s2 + $0x350] sm:$0xff] }
0x1257   :  { %10469 = vmatpush1.bf16.msra.mxu0 %v10468_v50  ;;  %10725 = vmatpush1.bf16.msra.mxu1 %v10724_v36  ;;  %v10478_v47 = vpack.c.bf16 %v6252_v51, %v6248_v37  ;;  %v6272_v50 = vld [vmem:[%s14173_s2 + $0x188] sm:$0xff]  ;;  %v10750_v51 = vpack.c.bf16 %v6286_v58, %v6282_v57  ;;  %v6313_v57 = vld [vmem:[%s14173_s2 + $0x2d0] sm:$0xff] }
0x1258   :  { %10471 = vmatprep.subr.bf16.mxu0 %v10470_v52  ;;  %10727 = vmatprep.subr.bf16.mxu1 %v10726_v41  ;;  %v6276_v36 = vld [vmem:[%s14173_s2 + $0x1a8] sm:$0xff]  ;;  %v10488_v52 = vpack.c.bf16 %v6267_v8, %v6263_v19  ;;  %v10744_v41 = vpack.c.bf16 %v6269_v35, %v6265_v11  ;;  %v6306_v19 = vld [vmem:[%s14173_s2 + $0x298] sm:$0xff]  ;;  %v6303_v11 = vld [vmem:[%s14173_s2 + $0x280] sm:$0xff] }
0x1259   :  { %v10490_v48 = vpack.c.bf16 %v6276_v36, %v6272_v50  ;;  %v6310_v8 = vld [vmem:[%s14173_s2 + $0x2b8] sm:$0xff]  ;;  %v6307_v35 = vld [vmem:[%s14173_s2 + $0x2a0] sm:$0xff]  ;;  %v6317_v58 = vld [vmem:[%s14173_s2 + $0x2f0] sm:$0xff] }
0x125a   :  { %v10762_v36 = vpack.c.bf16 %v6310_v8, %v6306_v19  ;;  %v6333_v43 = vld [vmem:[%s14173_s2 + $0x370] sm:$0xff] }
0x125b   :  { %10473 = vmatpush1.bf16.msra.mxu0 %v10472_v55  ;;  %10729 = vmatpush1.bf16.msra.mxu1 %v10728_v56  ;;  %v6280_v55 = vld [vmem:[%s14173_s2 + $0x1c8] sm:$0xff]  ;;  %v6337_v19 = vld [vmem:[%s14173_s2 + $0x390] sm:$0xff] }
0x125c   :  { %10475 = vmatprep.subr.bf16.mxu0 %v10474_v59  ;;  %10731 = vmatprep.subr.bf16.mxu1 %v10730_v60  ;;  %v6284_v56 = vld [vmem:[%s14173_s2 + $0x1e8] sm:$0xff]  ;;  %v10492_v59 = vpack.c.bf16 %v6275_v45, %v6271_v44  ;;  %v10748_v60 = vpack.c.bf16 %v6277_v54, %v6273_v53  ;;  %v6314_v44 = vld [vmem:[%s14173_s2 + $0x2d8] sm:$0xff]  ;;  %v6311_v53 = vld [vmem:[%s14173_s2 + $0x2c0] sm:$0xff] }
0x125d   :  { %v10494_v37 = vpack.c.bf16 %v6284_v56, %v6280_v55  ;;  %v6318_v45 = vld [vmem:[%s14173_s2 + $0x2f8] sm:$0xff]  ;;  %v6315_v54 = vld [vmem:[%s14173_s2 + $0x2e0] sm:$0xff]  ;;  %v6341_v8 = vld [vmem:[%s14173_s2 + $0x3b0] sm:$0xff] }
0x125e   :  { %v10766_v56 = vpack.c.bf16 %v6318_v45, %v6314_v44  ;;  %v6345_v44 = vld [vmem:[%s14173_s2 + $0x3d0] sm:$0xff] }
0x125f   :  { %10477 = vmatpush1.bf16.msra.mxu0 %v10476_v30  ;;  %10733 = vmatpush1.bf16.msra.mxu1 %v10732_v14  ;;  %v6288_v30 = vld [vmem:[%s14173_s2 + $0x208] sm:$0xff]  ;;  %v6349_v45 = vld [vmem:[%s14173_s2 + $0x3f0] sm:$0xff] }
0x1260   :  { %10479 = vmatprep.subr.bf16.mxu0 %v10478_v47  ;;  %10735 = vmatprep.subr.bf16.mxu1 %v10734_v0  ;;  %v6292_v14 = vld [vmem:[%s14173_s2 + $0x228] sm:$0xff]  ;;  %v10496_v47 = vpack.c.bf16 %v6283_v62, %v6279_v38  ;;  %v10752_v0 = vpack.c.bf16 %v6285_v16, %v6281_v63  ;;  %v6322_v38 = vld [vmem:[%s14173_s2 + $0x318] sm:$0xff]  ;;  %v6319_v63 = vld [vmem:[%s14173_s2 + $0x300] sm:$0xff] }
0x1261   :  { %v10498_v25 = vpack.c.bf16 %v6292_v14, %v6288_v30  ;;  %v6326_v62 = vld [vmem:[%s14173_s2 + $0x338] sm:$0xff]  ;;  %v6323_v16 = vld [vmem:[%s14173_s2 + $0x320] sm:$0xff] }
0x1262   :  { %v10770_v14 = vpack.c.bf16 %v6326_v62, %v6322_v38 }
0x1263   :  { %10481 = vmatpush1.bf16.msra.mxu0 %v10480_v33  ;;  %10737 = vmatpush1.bf16.msra.mxu1 %v10736_v34  ;;  %v6296_v33 = vld [vmem:[%s14173_s2 + $0x248] sm:$0xff] }
0x1264   :  { %10483 = vmatprep.subr.bf16.mxu0 %v10482_v13  ;;  %10739 = vmatprep.subr.bf16.mxu1 %v10738_v20  ;;  %v6300_v34 = vld [vmem:[%s14173_s2 + $0x268] sm:$0xff]  ;;  %v10500_v13 = vpack.c.bf16 %v6291_v61, %v6287_v24  ;;  %v10756_v20 = vpack.c.bf16 %v6293_v31, %v6289_v28  ;;  %v6330_v24 = vld [vmem:[%s14173_s2 + $0x358] sm:$0xff]  ;;  %v6327_v28 = vld [vmem:[%s14173_s2 + $0x340] sm:$0xff] }
0x1265   :  { %v10502_v21 = vpack.c.bf16 %v6300_v34, %v6296_v33  ;;  %v6334_v61 = vld [vmem:[%s14173_s2 + $0x378] sm:$0xff]  ;;  %v6331_v31 = vld [vmem:[%s14173_s2 + $0x360] sm:$0xff] }
0x1266   :  { %v10774_v34 = vpack.c.bf16 %v6334_v61, %v6330_v24  ;;  %v6357_v24 = vld [vmem:[%s14173_s2 + $0x430] sm:$0xff] }
0x1267   :  { %10485 = vmatpush1.bf16.msra.mxu0 %v10484_v1  ;;  %10741 = vmatpush1.bf16.msra.mxu1 %v10740_v7  ;;  %v6304_v1 = vld [vmem:[%s14173_s2 + $0x288] sm:$0xff] }
0x1268   :  { %10487 = vmatprep.subr.bf16.mxu0 %v10486_v9  ;;  %10743 = vmatprep.subr.bf16.mxu1 %v10742_v10  ;;  %v6308_v7 = vld [vmem:[%s14173_s2 + $0x2a8] sm:$0xff]  ;;  %v10504_v9 = vpack.c.bf16 %v6299_v17, %v6295_v22  ;;  %v10760_v10 = vpack.c.bf16 %v6301_v4, %v6297_v18  ;;  %v6338_v22 = vld [vmem:[%s14173_s2 + $0x398] sm:$0xff]  ;;  %v6335_v18 = vld [vmem:[%s14173_s2 + $0x380] sm:$0xff] }
0x1269   :  { %v10506_v50 = vpack.c.bf16 %v6308_v7, %v6304_v1  ;;  %v6342_v17 = vld [vmem:[%s14173_s2 + $0x3b8] sm:$0xff]  ;;  %v6339_v4 = vld [vmem:[%s14173_s2 + $0x3a0] sm:$0xff] }
0x126a   :  { %v10778_v7 = vpack.c.bf16 %v6342_v17, %v6338_v22  ;;  %v6361_v17 = vld [vmem:[%s14173_s2 + $0x450] sm:$0xff] }
0x126b   :  { %10489 = vmatpush1.bf16.msra.mxu0 %v10488_v52  ;;  %10745 = vmatpush1.bf16.msra.mxu1 %v10744_v41  ;;  %v6312_v52 = vld [vmem:[%s14173_s2 + $0x2c8] sm:$0xff] }
0x126c   :  { %10491 = vmatprep.subr.bf16.mxu0 %v10490_v48  ;;  %10747 = vmatprep.subr.bf16.mxu1 %v10746_v49  ;;  %v6316_v41 = vld [vmem:[%s14173_s2 + $0x2e8] sm:$0xff]  ;;  %v10508_v48 = vpack.c.bf16 %v6307_v35, %v6303_v11  ;;  %v10764_v49 = vpack.c.bf16 %v6309_v40, %v6305_v39  ;;  %v6346_v11 = vld [vmem:[%s14173_s2 + $0x3d8] sm:$0xff]  ;;  %v6343_v39 = vld [vmem:[%s14173_s2 + $0x3c0] sm:$0xff] }
0x126d   :  { %v10510_v55 = vpack.c.bf16 %v6316_v41, %v6312_v52  ;;  %v6350_v35 = vld [vmem:[%s14173_s2 + $0x3f8] sm:$0xff]  ;;  %v6347_v40 = vld [vmem:[%s14173_s2 + $0x3e0] sm:$0xff] }
0x126e   :  { %v10782_v41 = vpack.c.bf16 %v6350_v35, %v6346_v11  ;;  %v6367_v11 = vld [vmem:[%s14173_s2 + $0x480] sm:$0xff] }
0x126f   :  { %10493 = vmatpush1.bf16.msra.mxu0 %v10492_v59  ;;  %10749 = vmatpush1.bf16.msra.mxu1 %v10748_v60  ;;  %v6320_v59 = vld [vmem:[%s14173_s2 + $0x308] sm:$0xff]  ;;  %v6371_v35 = vld [vmem:[%s14173_s2 + $0x4a0] sm:$0xff] }
0x1270   :  { %10495 = vmatprep.subr.bf16.mxu0 %v10494_v37  ;;  %10751 = vmatprep.subr.bf16.mxu1 %v10750_v51  ;;  %v6324_v60 = vld [vmem:[%s14173_s2 + $0x328] sm:$0xff]  ;;  %v10512_v37 = vpack.c.bf16 %v6315_v54, %v6311_v53  ;;  %v10768_v51 = vpack.c.bf16 %v6317_v58, %v6313_v57  ;;  %v6354_v53 = vld [vmem:[%s14173_s2 + $0x418] sm:$0xff] }
0x1271   :  { %v10514_v30 = vpack.c.bf16 %v6324_v60, %v6320_v59  ;;  %v6358_v54 = vld [vmem:[%s14173_s2 + $0x438] sm:$0xff]  ;;  %v13650_v59 = vld [vmem:[%s14174_s8] sm:$0xff] }
0x1272   :  { %v10786_v58 = vpack.c.bf16 %v6358_v54, %v6354_v53  ;;  %v6170_v60 = vrot.slane %v13650_v59, %v11933_v27  ;;  %v6178_v38 = vrot.slane %v13650_v59, %v12011_v46  ;;  %v6174_v62 = vrot.slane %v13650_v59, %v11936_v29  ;;  %v6375_v53 = vld [vmem:[%s14173_s2 + $0x4c0] sm:$0xff] }
0x1273   :  { %10497 = vmatpush1.bf16.msra.mxu0 %v10496_v47  ;;  %10753 = vmatpush1.bf16.msra.mxu1 %v10752_v0  ;;  %v6328_v47 = vld [vmem:[%s14173_s2 + $0x348] sm:$0xff]  ;;  %v6379_v54 = vld [vmem:[%s14173_s2 + $0x4e0] sm:$0xff] }
0x1274   :  { %10499 = vmatprep.subr.bf16.mxu0 %v10498_v25  ;;  %10755 = vmatprep.subr.bf16.mxu1 %v10754_v42  ;;  %v6332_v0 = vld [vmem:[%s14173_s2 + $0x368] sm:$0xff]  ;;  %v10516_v25 = vpack.c.bf16 %v6323_v16, %v6319_v63  ;;  %v10772_v42 = vpack.c.bf16 %v6325_v15, %v6321_v26  ;;  %v6351_v16 = vld [vmem:[%s14173_s2 + $0x400] sm:$0xff] }
0x1275   :  { %v10518_v33 = vpack.c.bf16 %v6332_v0, %v6328_v47  ;;  %v6355_v47 = vld [vmem:[%s14173_s2 + $0x420] sm:$0xff]  ;;  %v6353_v0 = vld [vmem:[%s14173_s2 + $0x410] sm:$0xff] }
0x1277   :  { %10501 = vmatpush1.bf16.msra.mxu0 %v10500_v13  ;;  %10757 = vmatpush1.bf16.msra.mxu1 %v10756_v20  ;;  %v6336_v13 = vld [vmem:[%s14173_s2 + $0x388] sm:$0xff] }
0x1278   :  { %10503 = vmatprep.subr.bf16.mxu0 %v10502_v21  ;;  %10759 = vmatprep.subr.bf16.mxu1 %v10758_v12  ;;  %v6340_v20 = vld [vmem:[%s14173_s2 + $0x3a8] sm:$0xff]  ;;  %v10520_v21 = vpack.c.bf16 %v6331_v31, %v6327_v28  ;;  %v10776_v12 = vpack.c.bf16 %v6333_v43, %v6329_v5  ;;  %v6362_v31 = vld [vmem:[%s14173_s2 + $0x458] sm:$0xff]  ;;  %v10532_v5 = vpack.c.bf16 %v6355_v47, %v6351_v16  ;;  %v6383_v16 = vld [vmem:[%s14173_s2 + $0x500] sm:$0xff] }
0x1279   :  { %v10522_v1 = vpack.c.bf16 %v6340_v20, %v6336_v13  ;;  %v6364_v28 = vld [vmem:[%s14173_s2 + $0x468] sm:$0xff]  ;;  %v10788_v43 = vpack.c.bf16 %v6357_v24, %v6353_v0  ;;  %v6359_v13 = vld [vmem:[%s14173_s2 + $0x440] sm:$0xff]  ;;  %v6385_v47 = vld [vmem:[%s14173_s2 + $0x510] sm:$0xff] }
0x127a   :  { %v6363_v20 = vld [vmem:[%s14173_s2 + $0x460] sm:$0xff]  ;;  %v6389_v0 = vld [vmem:[%s14173_s2 + $0x530] sm:$0xff]  ;;  %v6392_v24 = vld [vmem:[%s14173_s2 + $0x548] sm:$0xff] }
0x127b   :  { %10505 = vmatpush1.bf16.msra.mxu0 %v10504_v9  ;;  %10761 = vmatpush1.bf16.msra.mxu1 %v10760_v10  ;;  %v6344_v9 = vld [vmem:[%s14173_s2 + $0x3c8] sm:$0xff] }
0x127c   :  { %10507 = vmatprep.subr.bf16.mxu0 %v10506_v50  ;;  %10763 = vmatprep.subr.bf16.mxu1 %v10762_v36  ;;  %v6348_v10 = vld [vmem:[%s14173_s2 + $0x3e8] sm:$0xff]  ;;  %v10524_v50 = vpack.c.bf16 %v6339_v4, %v6335_v18  ;;  %v10780_v36 = vpack.c.bf16 %v6341_v8, %v6337_v19  ;;  %v6374_v19 = vld [vmem:[%s14173_s2 + $0x4b8] sm:$0xff] }
0x127d   :  { %v10526_v52 = vpack.c.bf16 %v6348_v10, %v6344_v9  ;;  %v10536_v9 = vpack.c.bf16 %v6363_v20, %v6359_v13  ;;  %v6393_v13 = vld [vmem:[%s14173_s2 + $0x550] sm:$0xff] }
0x127e   :  { %v6397_v20 = vld [vmem:[%s14173_s2 + $0x570] sm:$0xff] }
0x127f   :  { %10509 = vmatpush1.bf16.msra.mxu0 %v10508_v48  ;;  %10765 = vmatpush1.bf16.msra.mxu1 %v10764_v49  ;;  %v6352_v48 = vld [vmem:[%s14173_s2 + $0x408] sm:$0xff] }
0x1280   :  { %10511 = vmatprep.subr.bf16.mxu0 %v10510_v55  ;;  %10767 = vmatprep.subr.bf16.mxu1 %v10766_v56  ;;  %v6356_v49 = vld [vmem:[%s14173_s2 + $0x428] sm:$0xff]  ;;  %v10528_v55 = vpack.c.bf16 %v6347_v40, %v6343_v39  ;;  %v10784_v56 = vpack.c.bf16 %v6349_v45, %v6345_v44  ;;  %v6369_v39 = vld [vmem:[%s14173_s2 + $0x490] sm:$0xff]  ;;  %v6378_v44 = vld [vmem:[%s14173_s2 + $0x4d8] sm:$0xff] }
0x1281   :  { %v10530_v57 = vpack.c.bf16 %v6356_v49, %v6352_v48  ;;  %v6373_v40 = vld [vmem:[%s14173_s2 + $0x4b0] sm:$0xff]  ;;  %v6382_v45 = vld [vmem:[%s14173_s2 + $0x4f8] sm:$0xff]  ;;  %v10540_v48 = vpack.c.bf16 %v6371_v35, %v6367_v11  ;;  %v6408_v11 = vld [vmem:[%s14173_s2 + $0x5c8] sm:$0xff] }
0x1282   :  { %v10796_v49 = vpack.c.bf16 %v6373_v40, %v6369_v39  ;;  %v6412_v35 = vld [vmem:[%s14173_s2 + $0x5e8] sm:$0xff] }
0x1283   :  { %10513 = vmatpush1.bf16.msra.mxu0 %v10512_v37  ;;  %10769 = vmatpush1.bf16.msra.mxu1 %v10768_v51  ;;  %v6182_v37 = vrot.slane %v13650_v59, %v12556_v6 }
0x1284   :  { %10515 = vmatprep.subr.bf16.mxu0 %v10514_v30  ;;  %10771 = vmatprep.subr.bf16.mxu1 %v10770_v14 }
0x1287   :  { %10517 = vmatpush1.bf16.msra.mxu0 %v10516_v25  ;;  %10773 = vmatpush1.bf16.msra.mxu1 %v10772_v42  ;;  %v6360_v25 = vld [vmem:[%s14173_s2 + $0x448] sm:$0xff] }
0x1288   :  { %10519 = vmatprep.subr.bf16.mxu0 %v10518_v33  ;;  %10775 = vmatprep.subr.bf16.mxu1 %v10774_v34  ;;  %v6366_v33 = vld [vmem:[%s14173_s2 + $0x478] sm:$0xff]  ;;  %v10534_v18 = vpack.c.bf16 %v6364_v28, %v6360_v25 }
0x1289   :  { %v10790_v4 = vpack.c.bf16 %v6366_v33, %v6362_v31  ;;  %v6394_v25 = vld [vmem:[%s14173_s2 + $0x558] sm:$0xff]  ;;  %v10804_v31 = vpack.c.bf16 %v6389_v0, %v6385_v47  ;;  %v6391_v33 = vld [vmem:[%s14173_s2 + $0x540] sm:$0xff]  ;;  %v6421_v47 = vld [vmem:[%s14173_s2 + $0x630] sm:$0xff] }
0x128a   :  { %v6424_v0 = vld [vmem:[%s14173_s2 + $0x648] sm:$0xff] }
0x128b   :  { %10521 = vmatpush1.bf16.msra.mxu0 %v10520_v21  ;;  %10777 = vmatpush1.bf16.msra.mxu1 %v10776_v12  ;;  %v6365_v21 = vld [vmem:[%s14173_s2 + $0x470] sm:$0xff]  ;;  %v6368_v12 = vld [vmem:[%s14173_s2 + $0x488] sm:$0xff] }
0x128c   :  { %10523 = vmatprep.subr.bf16.mxu0 %v10522_v1  ;;  %10779 = vmatprep.subr.bf16.mxu1 %v10778_v7  ;;  %v6372_v1 = vld [vmem:[%s14173_s2 + $0x4a8] sm:$0xff]  ;;  %v6370_v7 = vld [vmem:[%s14173_s2 + $0x498] sm:$0xff]  ;;  %v10792_v10 = vpack.c.bf16 %v6365_v21, %v6361_v17 }
0x128d   :  { %v6404_v17 = vld [vmem:[%s14173_s2 + $0x5a8] sm:$0xff]  ;;  %v6402_v21 = vld [vmem:[%s14173_s2 + $0x598] sm:$0xff] }
0x128f   :  { %10525 = vmatpush1.bf16.msra.mxu0 %v10524_v50  ;;  %10781 = vmatpush1.bf16.msra.mxu1 %v10780_v36  ;;  %v10538_v50 = vpack.c.bf16 %v6372_v1, %v6368_v12  ;;  %v10794_v36 = vpack.c.bf16 %v6374_v19, %v6370_v7  ;;  %v6406_v12 = vld [vmem:[%s14173_s2 + $0x5b8] sm:$0xff]  ;;  %v6399_v1 = vld [vmem:[%s14173_s2 + $0x580] sm:$0xff] }
0x1290   :  { %10527 = vmatprep.subr.bf16.mxu0 %v10526_v52  ;;  %10783 = vmatprep.subr.bf16.mxu1 %v10782_v41  ;;  %v6376_v52 = vld [vmem:[%s14173_s2 + $0x4c8] sm:$0xff]  ;;  %v6403_v7 = vld [vmem:[%s14173_s2 + $0x5a0] sm:$0xff] }
0x1291   :  { %v6380_v41 = vld [vmem:[%s14173_s2 + $0x4e8] sm:$0xff]  ;;  %v10556_v39 = vpack.c.bf16 %v6403_v7, %v6399_v1  ;;  %v6431_v7 = vld [vmem:[%s14173_s2 + $0x680] sm:$0xff] }
0x1293   :  { %10529 = vmatpush1.bf16.msra.mxu0 %v10528_v55  ;;  %10785 = vmatpush1.bf16.msra.mxu1 %v10784_v56  ;;  %v10542_v55 = vpack.c.bf16 %v6380_v41, %v6376_v52  ;;  %v10798_v56 = vpack.c.bf16 %v6382_v45, %v6378_v44  ;;  %v6186_v52 = vrot.slane %v13650_v59, %v12627_v32  ;;  %v6407_v41 = vld [vmem:[%s14173_s2 + $0x5c0] sm:$0xff]  ;;  %v6409_v45 = vld [vmem:[%s14173_s2 + $0x5d0] sm:$0xff] }
0x1294   :  { %10531 = vmatprep.subr.bf16.mxu0 %v10530_v57  ;;  %10787 = vmatprep.subr.bf16.mxu1 %v10786_v58  ;;  %v6377_v57 = vld [vmem:[%s14173_s2 + $0x4d0] sm:$0xff]  ;;  %v6411_v44 = vld [vmem:[%s14173_s2 + $0x5e0] sm:$0xff]  ;;  %v6198_v32 = vrot.slane %v13650_v59, %v12636_v3 }
0x1295   :  { %v6381_v58 = vld [vmem:[%s14173_s2 + $0x4f0] sm:$0xff] }
0x1309   :  { %v5947_v51 = vpop.f32.mrb[178].mxu0  ;;  %v6018_v63 = vpop.f32.mrb[148].mxu1 }
0x130a   :  { %v6207_v30 = vadd.f32 %v6170_v60, %v5947_v51  ;;  %v13661_v14 = vadd.f32 %v6178_v38, %v6018_v63  ;;  %v5949_v26 = vpop.f32.mrb[179].mxu0  ;;  %v6020_v15 = vpop.f32.mrb[149].mxu1  ;;  %v6384_v60 = vld [vmem:[%s14173_s2 + $0x508] sm:$0xff]  ;;  %v10544_v51 = vpack.c.bf16 %v6379_v54, %v6375_v53  ;;  %v10800_v63 = vpack.c.bf16 %v6381_v58, %v6377_v57  ;;  %v6413_v54 = vld [vmem:[%s14173_s2 + $0x5f0] sm:$0xff]  ;;  %v6418_v58 = vld [vmem:[%s14173_s2 + $0x618] sm:$0xff] }
0x130b   :  { %v6208_v61 = vadd.f32 %v6174_v62, %v5949_v26  ;;  %v6210_v42 = vadd.f32 %v6182_v37, %v6020_v15  ;;  %v6388_v38 = vld [vmem:[%s14173_s2 + $0x528] sm:$0xff]  ;;  %v6386_v62 = vld [vmem:[%s14173_s2 + $0x518] sm:$0xff]  ;;  %v6190_v57 = vrot.slane %v13650_v59, %v12633_v2  ;;  %v6419_v2 = vld [vmem:[%s14173_s2 + $0x620] sm:$0xff] }
0x130c   :  { %v6215_v22 = vmax.f32 %v6207_v30, 0.0  ;;  %v6390_v37 = vld [vmem:[%s14173_s2 + $0x538] sm:$0xff]  ;;  %v6387_v30 = vld [vmem:[%s14173_s2 + $0x520] sm:$0xff]  ;;  %v10546_v26 = vpack.c.bf16 %v6388_v38, %v6384_v60 }
0x130d   :  { %v6216_v34 = vmax.f32 %v6208_v61, 0.0  ;;  %v6218_v8 = vmax.f32 %v6210_v42, 0.0  ;;  %v10802_v15 = vpack.c.bf16 %v6390_v37, %v6386_v62  ;;  %v6396_v61 = vld [vmem:[%s14173_s2 + $0x568] sm:$0xff]  ;;  %v6398_v42 = vld [vmem:[%s14173_s2 + $0x578] sm:$0xff]  ;;  %v10548_v28 = vpack.c.bf16 %v6387_v30, %v6383_v16 }
0x130e   :  { %v6422_v60 = vld [vmem:[%s14173_s2 + $0x638] sm:$0xff]  ;;  %v10560_v62 = vpack.c.bf16 %v6411_v44, %v6407_v41  ;;  %v10816_v37 = vpack.c.bf16 %v6413_v54, %v6409_v45  ;;  %v6439_v41 = vld [vmem:[%s14173_s2 + $0x6c0] sm:$0xff]  ;;  %v6448_v54 = vld [vmem:[%s14173_s2 + $0x708] sm:$0xff] }
0x130f   :  { %6821 = vmatprep.mubr.f32.mxu0 %v6216_v34  ;;  %7105 = vmatprep.mubr.f32.mxu1 %v6216_v34  ;;  %v6395_v34 = vld [vmem:[%s14173_s2 + $0x560] sm:$0xff] }
0x1310   :  { %6822 = vmatmul.mubr.f32.vlgmr.msra.gmra.mrb[182].mxu0 %v6215_v22  ;;  %7106 = vmatmul.mubr.f32.vlgmr.msra.gmra.mrb[152].mxu1 %v6215_v22  ;;  %v6400_v22 = vld [vmem:[%s14173_s2 + $0x588] sm:$0xff]  ;;  %v6443_v44 = vld [vmem:[%s14173_s2 + $0x6e0] sm:$0xff] }
0x1311   :  { %10533 = vmatpush1.bf16.msra.mxu0 %v10532_v5  ;;  %10789 = vmatpush1.bf16.msra.mxu1 %v10788_v43  ;;  %v10550_v5 = vpack.c.bf16 %v6396_v61, %v6392_v24  ;;  %v10806_v43 = vpack.c.bf16 %v6398_v42, %v6394_v25  ;;  %v10554_v19 = vpack.c.bf16 %v6404_v17, %v6400_v22  ;;  %v6428_v25 = vld [vmem:[%s14173_s2 + $0x668] sm:$0xff]  ;;  %v6426_v42 = vld [vmem:[%s14173_s2 + $0x658] sm:$0xff]  ;;  %v6429_v22 = vld [vmem:[%s14173_s2 + $0x670] sm:$0xff] }
0x1312   :  { %6892 = vmatprep.mubr.f32.mxu0 %v6218_v8  ;;  %7176 = vmatprep.mubr.f32.mxu1 %v6218_v8  ;;  %v10810_v8 = vpack.c.bf16 %v6406_v12, %v6402_v21  ;;  %v6432_v17 = vld [vmem:[%s14173_s2 + $0x688] sm:$0xff]  ;;  %v6434_v12 = vld [vmem:[%s14173_s2 + $0x698] sm:$0xff] }
0x1313   :  { %10535 = vmatprep.subr.bf16.mxu0 %v10534_v18  ;;  %10791 = vmatprep.subr.bf16.mxu1 %v10790_v4  ;;  %v10552_v18 = vpack.c.bf16 %v6395_v34, %v6391_v33  ;;  %v10808_v4 = vpack.c.bf16 %v6397_v20, %v6393_v13  ;;  %v6423_v34 = vld [vmem:[%s14173_s2 + $0x640] sm:$0xff]  ;;  %v6425_v20 = vld [vmem:[%s14173_s2 + $0x650] sm:$0xff]  ;;  %v6436_v21 = vld [vmem:[%s14173_s2 + $0x6a8] sm:$0xff] }
0x1314   :  { %v10824_v1 = vpack.c.bf16 %v6429_v22, %v6425_v20  ;;  %v6463_v22 = vld [vmem:[%s14173_s2 + $0x780] sm:$0xff] }
0x1315   :  { %10537 = vmatpush1.bf16.msra.mxu0 %v10536_v9  ;;  %10793 = vmatpush1.bf16.msra.mxu1 %v10792_v10  ;;  %v6401_v9 = vld [vmem:[%s14173_s2 + $0x590] sm:$0xff] }
0x1316   :  { %10539 = vmatprep.subr.bf16.mxu0 %v10538_v50  ;;  %10795 = vmatprep.subr.bf16.mxu1 %v10794_v36  ;;  %v6405_v10 = vld [vmem:[%s14173_s2 + $0x5b0] sm:$0xff]  ;;  %v6410_v50 = vld [vmem:[%s14173_s2 + $0x5d8] sm:$0xff] }
0x1317   :  { %v6414_v36 = vld [vmem:[%s14173_s2 + $0x5f8] sm:$0xff]  ;;  %v10812_v40 = vpack.c.bf16 %v6405_v10, %v6401_v9  ;;  %v6433_v10 = vld [vmem:[%s14173_s2 + $0x690] sm:$0xff] }
0x1318   :  { %v10814_v53 = vpack.c.bf16 %v6414_v36, %v6410_v50  ;;  %v6444_v50 = vld [vmem:[%s14173_s2 + $0x6e8] sm:$0xff]  ;;  %v6442_v36 = vld [vmem:[%s14173_s2 + $0x6d8] sm:$0xff] }
0x1319   :  { %10541 = vmatpush1.bf16.msra.mxu0 %v10540_v48  ;;  %10797 = vmatpush1.bf16.msra.mxu1 %v10796_v49  ;;  %v6194_v48 = vrot.slane %v13650_v59, %v12630_v23  ;;  %v10558_v49 = vpack.c.bf16 %v6412_v35, %v6408_v11  ;;  %v6437_v11 = vld [vmem:[%s14173_s2 + $0x6b0] sm:$0xff]  ;;  %v6440_v35 = vld [vmem:[%s14173_s2 + $0x6c8] sm:$0xff] }
0x131a   :  { %10543 = vmatprep.subr.bf16.mxu0 %v10542_v55  ;;  %10799 = vmatprep.subr.bf16.mxu1 %v10798_v56  ;;  %v6416_v55 = vld [vmem:[%s14173_s2 + $0x608] sm:$0xff]  ;;  %v10574_v45 = vpack.c.bf16 %v6444_v50, %v6440_v35  ;;  %v6475_v35 = vld [vmem:[%s14173_s2 + $0x7e0] sm:$0xff] }
0x131b   :  { %v6420_v56 = vld [vmem:[%s14173_s2 + $0x628] sm:$0xff] }
0x131d   :  { %10545 = vmatpush1.bf16.msra.mxu0 %v10544_v51  ;;  %10801 = vmatpush1.bf16.msra.mxu1 %v10800_v63  ;;  %v10562_v51 = vpack.c.bf16 %v6420_v56, %v6416_v55  ;;  %v6415_v63 = vld [vmem:[%s14173_s2 + $0x600] sm:$0xff]  ;;  %v6452_v55 = vld [vmem:[%s14173_s2 + $0x728] sm:$0xff]  ;;  %v6450_v56 = vld [vmem:[%s14173_s2 + $0x718] sm:$0xff] }
0x131e   :  { %10547 = vmatprep.subr.bf16.mxu0 %v10546_v26  ;;  %10803 = vmatprep.subr.bf16.mxu1 %v10802_v15  ;;  %v10818_v26 = vpack.c.bf16 %v6422_v60, %v6418_v58  ;;  %v6417_v15 = vld [vmem:[%s14173_s2 + $0x610] sm:$0xff]  ;;  %v6447_v60 = vld [vmem:[%s14173_s2 + $0x700] sm:$0xff] }
0x131f   :  { %v10820_v33 = vpack.c.bf16 %v6421_v47, %v6417_v15  ;;  %v6455_v47 = vld [vmem:[%s14173_s2 + $0x740] sm:$0xff] }
0x1321   :  { %10549 = vmatpush1.bf16.msra.mxu0 %v10548_v28  ;;  %10805 = vmatpush1.bf16.msra.mxu1 %v10804_v31  ;;  %v6430_v28 = vld [vmem:[%s14173_s2 + $0x678] sm:$0xff]  ;;  %v10564_v31 = vpack.c.bf16 %v6419_v2, %v6415_v63  ;;  %v6456_v63 = vld [vmem:[%s14173_s2 + $0x748] sm:$0xff] }
0x1322   :  { %10551 = vmatprep.subr.bf16.mxu0 %v10550_v5  ;;  %10807 = vmatprep.subr.bf16.mxu1 %v10806_v43  ;;  %v6427_v5 = vld [vmem:[%s14173_s2 + $0x660] sm:$0xff]  ;;  %v10566_v43 = vpack.c.bf16 %v6428_v25, %v6424_v0  ;;  %v10822_v13 = vpack.c.bf16 %v6430_v28, %v6426_v42  ;;  %v6460_v2 = vld [vmem:[%s14173_s2 + $0x768] sm:$0xff]  ;;  %v6457_v28 = vld [vmem:[%s14173_s2 + $0x750] sm:$0xff] }
0x1323   :  { %v6459_v0 = vld [vmem:[%s14173_s2 + $0x760] sm:$0xff]  ;;  %v10582_v25 = vpack.c.bf16 %v6460_v2, %v6456_v63 }
0x1324   :  { %v6487_v63 = vld [vmem:[%s14173_s2 + $0x840] sm:$0xff] }
0x1325   :  { %10553 = vmatpush1.bf16.msra.mxu0 %v10552_v18  ;;  %10809 = vmatpush1.bf16.msra.mxu1 %v10808_v4  ;;  %v6438_v18 = vld [vmem:[%s14173_s2 + $0x6b8] sm:$0xff]  ;;  %v10568_v4 = vpack.c.bf16 %v6427_v5, %v6423_v34  ;;  %v6468_v34 = vld [vmem:[%s14173_s2 + $0x7a8] sm:$0xff]  ;;  %v6491_v2 = vld [vmem:[%s14173_s2 + $0x860] sm:$0xff] }
0x1326   :  { %10555 = vmatprep.subr.bf16.mxu0 %v10554_v19  ;;  %10811 = vmatprep.subr.bf16.mxu1 %v10810_v8  ;;  %v6435_v19 = vld [vmem:[%s14173_s2 + $0x6a0] sm:$0xff]  ;;  %v10570_v8 = vpack.c.bf16 %v6436_v21, %v6432_v17  ;;  %v10826_v9 = vpack.c.bf16 %v6438_v18, %v6434_v12  ;;  %v6466_v5 = vld [vmem:[%s14173_s2 + $0x798] sm:$0xff]  ;;  %v6465_v18 = vld [vmem:[%s14173_s2 + $0x790] sm:$0xff] }
0x1327   :  { %v6467_v17 = vld [vmem:[%s14173_s2 + $0x7a0] sm:$0xff] }
0x1329   :  { %10557 = vmatpush1.bf16.msra.mxu0 %v10556_v39  ;;  %10813 = vmatpush1.bf16.msra.mxu1 %v10812_v40  ;;  %v6089_v23 = vpop.f32.mrb[180].mxu0  ;;  %v6160_v38 = vpop.f32.mrb[150].mxu1  ;;  %v6446_v39 = vld [vmem:[%s14173_s2 + $0x6f8] sm:$0xff]  ;;  %v10572_v40 = vpack.c.bf16 %v6435_v19, %v6431_v7  ;;  %v6476_v7 = vld [vmem:[%s14173_s2 + $0x7e8] sm:$0xff] }
0x132a   :  { %v13736_v16 = vadd.f32 %v6186_v52, %v6089_v23  ;;  %v13738_v3 = vadd.f32 %v6194_v48, %v6160_v38  ;;  %v6091_v59 = vpop.f32.mrb[181].mxu0  ;;  %v6162_v30 = vpop.f32.mrb[151].mxu1  ;;  %10559 = vmatprep.subr.bf16.mxu0 %v10558_v49  ;;  %10815 = vmatprep.subr.bf16.mxu1 %v10814_v53  ;;  %v10828_v52 = vpack.c.bf16 %v6437_v11, %v6433_v10  ;;  %v6441_v49 = vld [vmem:[%s14173_s2 + $0x6d0] sm:$0xff]  ;;  %v6451_v23 = vld [vmem:[%s14173_s2 + $0x720] sm:$0xff]  ;;  %v6474_v19 = vld [vmem:[%s14173_s2 + $0x7d8] sm:$0xff] }
0x132b   :  { %v13743_v24 = vadd.f32 %v6190_v57, %v6091_v59  ;;  %v13745_v61 = vadd.f32 %v6198_v32, %v6162_v30  ;;  %v10830_v48 = vpack.c.bf16 %v6446_v39, %v6442_v36  ;;  %v6445_v53 = vld [vmem:[%s14173_s2 + $0x6f0] sm:$0xff]  ;;  %v6454_v57 = vld [vmem:[%s14173_s2 + $0x738] sm:$0xff]  ;;  %v10576_v32 = vpack.c.bf16 %v6443_v44, %v6439_v41  ;;  %v6471_v11 = vld [vmem:[%s14173_s2 + $0x7c0] sm:$0xff] }
0x132c   :  { %v10832_v58 = vpack.c.bf16 %v6445_v53, %v6441_v49  ;;  %v10578_v38 = vpack.c.bf16 %v6452_v55, %v6448_v54  ;;  %v6458_v59 = vld [vmem:[%s14173_s2 + $0x758] sm:$0xff]  ;;  %v6473_v39 = vld [vmem:[%s14173_s2 + $0x7d0] sm:$0xff]  ;;  %v6484_v41 = vld [vmem:[%s14173_s2 + $0x828] sm:$0xff] }
0x132d   :  { %10561 = vmatpush1.bf16.msra.mxu0 %v10560_v62  ;;  %10817 = vmatpush1.bf16.msra.mxu1 %v10816_v37  ;;  %v10834_v62 = vpack.c.bf16 %v6454_v57, %v6450_v56  ;;  %v6449_v37 = vld [vmem:[%s14173_s2 + $0x710] sm:$0xff]  ;;  %v6462_v30 = vld [vmem:[%s14173_s2 + $0x778] sm:$0xff]  ;;  %v6479_v55 = vld [vmem:[%s14173_s2 + $0x800] sm:$0xff] }
0x132e   :  { %10563 = vmatprep.subr.bf16.mxu0 %v10562_v51  ;;  %10819 = vmatprep.subr.bf16.mxu1 %v10818_v26  ;;  %v6453_v51 = vld [vmem:[%s14173_s2 + $0x730] sm:$0xff]  ;;  %v10580_v26 = vpack.c.bf16 %v6451_v23, %v6447_v60  ;;  %v10838_v42 = vpack.c.bf16 %v6462_v30, %v6458_v59  ;;  %v6482_v44 = vld [vmem:[%s14173_s2 + $0x818] sm:$0xff]  ;;  %v6483_v56 = vld [vmem:[%s14173_s2 + $0x820] sm:$0xff]  ;;  %v6220_v30 = vmax.f32 %v13743_v24, 0.0  ;;  %v10600_v24 = vpack.c.bf16 %v6491_v2, %v6487_v63 }
0x132f   :  { %v10836_v15 = vpack.c.bf16 %v6453_v51, %v6449_v37  ;;  %v6481_v57 = vld [vmem:[%s14173_s2 + $0x810] sm:$0xff]  ;;  %v6492_v60 = vld [vmem:[%s14173_s2 + $0x868] sm:$0xff]  ;;  %v6490_v23 = vld [vmem:[%s14173_s2 + $0x858] sm:$0xff]  ;;  %v6217_v37 = vmax.f32 %v13661_v14, 0.0 }
0x1330   :  { %v6489_v59 = vld [vmem:[%s14173_s2 + $0x850] sm:$0xff]  ;;  %v6498_v14 = vld [vmem:[%s14173_s2 + $0x898] sm:$0xff] }
0x1331   :  { %10565 = vmatpush1.bf16.msra.mxu0 %v10564_v31  ;;  %10821 = vmatpush1.bf16.msra.mxu1 %v10820_v33  ;;  %v6461_v31 = vld [vmem:[%s14173_s2 + $0x770] sm:$0xff]  ;;  %v6464_v33 = vld [vmem:[%s14173_s2 + $0x788] sm:$0xff]  ;;  %v6530_v63 = vld [vmem:[%s14173_s2 + $0x998] sm:$0xff] }
0x1332   :  { %10567 = vmatprep.subr.bf16.mxu0 %v10566_v43  ;;  %10823 = vmatprep.subr.bf16.mxu1 %v10822_v13  ;;  %v6470_v43 = vld [vmem:[%s14173_s2 + $0x7b8] sm:$0xff]  ;;  %v10584_v13 = vpack.c.bf16 %v6459_v0, %v6455_v47  ;;  %v10840_v20 = vpack.c.bf16 %v6461_v31, %v6457_v28  ;;  %v10586_v21 = vpack.c.bf16 %v6468_v34, %v6464_v33  ;;  %v6493_v47 = vld [vmem:[%s14173_s2 + $0x870] sm:$0xff]  ;;  %v6496_v0 = vld [vmem:[%s14173_s2 + $0x888] sm:$0xff] }
0x1333   :  { %v10842_v12 = vpack.c.bf16 %v6470_v43, %v6466_v5  ;;  %v10856_v28 = vpack.c.bf16 %v6493_v47, %v6489_v59  ;;  %v6495_v33 = vld [vmem:[%s14173_s2 + $0x880] sm:$0xff]  ;;  %v6497_v5 = vld [vmem:[%s14173_s2 + $0x890] sm:$0xff]  ;;  %v6534_v2 = vld [vmem:[%s14173_s2 + $0x9b8] sm:$0xff] }
0x1334   :  { %v6499_v34 = vld [vmem:[%s14173_s2 + $0x8a0] sm:$0xff] }
0x1335   :  { %10569 = vmatpush1.bf16.msra.mxu0 %v10568_v4  ;;  %10825 = vmatpush1.bf16.msra.mxu1 %v10824_v1  ;;  %v6469_v4 = vld [vmem:[%s14173_s2 + $0x7b0] sm:$0xff]  ;;  %v6472_v1 = vld [vmem:[%s14173_s2 + $0x7c8] sm:$0xff]  ;;  %v6531_v47 = vld [vmem:[%s14173_s2 + $0x9a0] sm:$0xff] }
0x1336   :  { %10571 = vmatprep.subr.bf16.mxu0 %v10570_v8  ;;  %10827 = vmatprep.subr.bf16.mxu1 %v10826_v9  ;;  %v6478_v8 = vld [vmem:[%s14173_s2 + $0x7f8] sm:$0xff]  ;;  %v10588_v9 = vpack.c.bf16 %v6467_v17, %v6463_v22  ;;  %v10844_v10 = vpack.c.bf16 %v6469_v4, %v6465_v18  ;;  %v10590_v50 = vpack.c.bf16 %v6476_v7, %v6472_v1  ;;  %v6508_v22 = vld [vmem:[%s14173_s2 + $0x8e8] sm:$0xff]  ;;  %v6503_v1 = vld [vmem:[%s14173_s2 + $0x8c0] sm:$0xff] }
0x1337   :  { %v10846_v36 = vpack.c.bf16 %v6478_v8, %v6474_v19  ;;  %v6506_v17 = vld [vmem:[%s14173_s2 + $0x8d8] sm:$0xff]  ;;  %v6507_v7 = vld [vmem:[%s14173_s2 + $0x8e0] sm:$0xff]  ;;  %v6505_v19 = vld [vmem:[%s14173_s2 + $0x8d0] sm:$0xff] }
0x1339   :  { %10573 = vmatpush1.bf16.msra.mxu0 %v10572_v40  ;;  %10829 = vmatpush1.bf16.msra.mxu1 %v10828_v52  ;;  %v6477_v40 = vld [vmem:[%s14173_s2 + $0x7f0] sm:$0xff]  ;;  %v6480_v52 = vld [vmem:[%s14173_s2 + $0x808] sm:$0xff] }
0x133a   :  { %10575 = vmatprep.subr.bf16.mxu0 %v10574_v45  ;;  %10831 = vmatprep.subr.bf16.mxu1 %v10830_v48  ;;  %v6486_v45 = vld [vmem:[%s14173_s2 + $0x838] sm:$0xff]  ;;  %v10592_v48 = vpack.c.bf16 %v6475_v35, %v6471_v11  ;;  %v10848_v49 = vpack.c.bf16 %v6477_v40, %v6473_v39  ;;  %v10594_v53 = vpack.c.bf16 %v6484_v41, %v6480_v52  ;;  %v6516_v11 = vld [vmem:[%s14173_s2 + $0x928] sm:$0xff]  ;;  %v6511_v52 = vld [vmem:[%s14173_s2 + $0x900] sm:$0xff] }
0x133b   :  { %v10850_v54 = vpack.c.bf16 %v6486_v45, %v6482_v44  ;;  %v6514_v35 = vld [vmem:[%s14173_s2 + $0x918] sm:$0xff]  ;;  %v6515_v41 = vld [vmem:[%s14173_s2 + $0x920] sm:$0xff]  ;;  %v6513_v44 = vld [vmem:[%s14173_s2 + $0x910] sm:$0xff] }
0x133d   :  { %10577 = vmatpush1.bf16.msra.mxu0 %v10576_v32  ;;  %10833 = vmatpush1.bf16.msra.mxu1 %v10832_v58  ;;  %v6485_v32 = vld [vmem:[%s14173_s2 + $0x830] sm:$0xff]  ;;  %v6488_v58 = vld [vmem:[%s14173_s2 + $0x848] sm:$0xff] }
0x133e   :  { %10579 = vmatprep.subr.bf16.mxu0 %v10578_v38  ;;  %10835 = vmatprep.subr.bf16.mxu1 %v10834_v62  ;;  %v6494_v38 = vld [vmem:[%s14173_s2 + $0x878] sm:$0xff]  ;;  %v10596_v62 = vpack.c.bf16 %v6483_v56, %v6479_v55  ;;  %v10852_v51 = vpack.c.bf16 %v6485_v32, %v6481_v57  ;;  %v10612_v56 = vpack.c.bf16 %v6515_v41, %v6511_v52 }
0x133f   :  { %v6526_v55 = vld [vmem:[%s14173_s2 + $0x978] sm:$0xff] }
0x1341   :  { %10581 = vmatpush1.bf16.msra.mxu0 %v10580_v26  ;;  %10837 = vmatpush1.bf16.msra.mxu1 %v10836_v15  ;;  %v10598_v26 = vpack.c.bf16 %v6492_v60, %v6488_v58  ;;  %v10854_v15 = vpack.c.bf16 %v6494_v38, %v6490_v23  ;;  %v6519_v58 = vld [vmem:[%s14173_s2 + $0x940] sm:$0xff]  ;;  %v6521_v23 = vld [vmem:[%s14173_s2 + $0x950] sm:$0xff] }
0x1342   :  { %10583 = vmatprep.subr.bf16.mxu0 %v10582_v25  ;;  %10839 = vmatprep.subr.bf16.mxu1 %v10838_v42  ;;  %v6500_v25 = vld [vmem:[%s14173_s2 + $0x8a8] sm:$0xff]  ;;  %v6502_v42 = vld [vmem:[%s14173_s2 + $0x8b8] sm:$0xff]  ;;  %v6523_v60 = vld [vmem:[%s14173_s2 + $0x960] sm:$0xff] }
0x1343   :  { %v10602_v31 = vpack.c.bf16 %v6500_v25, %v6496_v0  ;;  %v10858_v43 = vpack.c.bf16 %v6502_v42, %v6498_v14  ;;  %v10616_v59 = vpack.c.bf16 %v6523_v60, %v6519_v58  ;;  %v6529_v0 = vld [vmem:[%s14173_s2 + $0x990] sm:$0xff]  ;;  %v10874_v25 = vpack.c.bf16 %v6534_v2, %v6530_v63  ;;  %v6536_v42 = vld [vmem:[%s14173_s2 + $0x9c8] sm:$0xff] }
0x1344   :  { %v6533_v14 = vld [vmem:[%s14173_s2 + $0x9b0] sm:$0xff]  ;;  %v6568_v2 = vld [vmem:[%s14173_s2 + $0xac8] sm:$0xff] }
0x1345   :  { %10585 = vmatpush1.bf16.msra.mxu0 %v10584_v13  ;;  %10841 = vmatpush1.bf16.msra.mxu1 %v10840_v20  ;;  %v6501_v13 = vld [vmem:[%s14173_s2 + $0x8b0] sm:$0xff]  ;;  %v6504_v20 = vld [vmem:[%s14173_s2 + $0x8c8] sm:$0xff] }
0x1346   :  { %10587 = vmatprep.subr.bf16.mxu0 %v10586_v21  ;;  %10843 = vmatprep.subr.bf16.mxu1 %v10842_v12  ;;  %v6510_v21 = vld [vmem:[%s14173_s2 + $0x8f8] sm:$0xff]  ;;  %v10604_v12 = vpack.c.bf16 %v6499_v34, %v6495_v33  ;;  %v10860_v18 = vpack.c.bf16 %v6501_v13, %v6497_v5  ;;  %v10606_v4 = vpack.c.bf16 %v6508_v22, %v6504_v20  ;;  %v6539_v13 = vld [vmem:[%s14173_s2 + $0x9e0] sm:$0xff]  ;;  %v6537_v20 = vld [vmem:[%s14173_s2 + $0x9d0] sm:$0xff] }
0x1347   :  { %v10862_v8 = vpack.c.bf16 %v6510_v21, %v6506_v17  ;;  %v10876_v34 = vpack.c.bf16 %v6533_v14, %v6529_v0  ;;  %v6541_v17 = vld [vmem:[%s14173_s2 + $0x9f0] sm:$0xff]  ;;  %v6544_v21 = vld [vmem:[%s14173_s2 + $0xa08] sm:$0xff]  ;;  %v6571_v14 = vld [vmem:[%s14173_s2 + $0xae0] sm:$0xff] }
0x1348   :  { %v6565_v63 = vld [vmem:[%s14173_s2 + $0xab0] sm:$0xff] }
0x1349   :  { %10589 = vmatpush1.bf16.msra.mxu0 %v10588_v9  ;;  %10845 = vmatpush1.bf16.msra.mxu1 %v10844_v10  ;;  %v6509_v9 = vld [vmem:[%s14173_s2 + $0x8f0] sm:$0xff]  ;;  %v6512_v10 = vld [vmem:[%s14173_s2 + $0x908] sm:$0xff] }
0x134a   :  { %10591 = vmatprep.subr.bf16.mxu0 %v10590_v50  ;;  %10847 = vmatprep.subr.bf16.mxu1 %v10846_v36  ;;  %v6518_v50 = vld [vmem:[%s14173_s2 + $0x938] sm:$0xff]  ;;  %v10608_v36 = vpack.c.bf16 %v6507_v7, %v6503_v1  ;;  %v10864_v39 = vpack.c.bf16 %v6509_v9, %v6505_v19  ;;  %v10610_v40 = vpack.c.bf16 %v6516_v11, %v6512_v10  ;;  %v6547_v9 = vld [vmem:[%s14173_s2 + $0xa20] sm:$0xff]  ;;  %v6545_v10 = vld [vmem:[%s14173_s2 + $0xa10] sm:$0xff] }
0x134b   :  { %v10866_v45 = vpack.c.bf16 %v6518_v50, %v6514_v35  ;;  %v10880_v7 = vpack.c.bf16 %v6541_v17, %v6537_v20  ;;  %v6549_v35 = vld [vmem:[%s14173_s2 + $0xa30] sm:$0xff]  ;;  %v6552_v50 = vld [vmem:[%s14173_s2 + $0xa48] sm:$0xff]  ;;  %v6579_v17 = vld [vmem:[%s14173_s2 + $0xb20] sm:$0xff] }
0x134c   :  { %v10884_v41 = vpack.c.bf16 %v6549_v35, %v6545_v10  ;;  %v6587_v35 = vld [vmem:[%s14173_s2 + $0xb60] sm:$0xff] }
0x134d   :  { %10593 = vmatpush1.bf16.msra.mxu0 %v10592_v48  ;;  %10849 = vmatpush1.bf16.msra.mxu1 %v10848_v49  ;;  %v6517_v48 = vld [vmem:[%s14173_s2 + $0x930] sm:$0xff]  ;;  %v6520_v49 = vld [vmem:[%s14173_s2 + $0x948] sm:$0xff] }
0x134e   :  { %10595 = vmatprep.subr.bf16.mxu0 %v10594_v53  ;;  %10851 = vmatprep.subr.bf16.mxu1 %v10850_v54  ;;  %v6524_v53 = vld [vmem:[%s14173_s2 + $0x968] sm:$0xff]  ;;  %v6522_v54 = vld [vmem:[%s14173_s2 + $0x958] sm:$0xff]  ;;  %v10868_v57 = vpack.c.bf16 %v6517_v48, %v6513_v44  ;;  %v6555_v48 = vld [vmem:[%s14173_s2 + $0xa60] sm:$0xff] }
0x134f   :  { %v10614_v32 = vpack.c.bf16 %v6524_v53, %v6520_v49  ;;  %v10870_v38 = vpack.c.bf16 %v6526_v55, %v6522_v54  ;;  %v6553_v49 = vld [vmem:[%s14173_s2 + $0xa50] sm:$0xff]  ;;  %v6560_v55 = vld [vmem:[%s14173_s2 + $0xa88] sm:$0xff] }
0x1350   :  { %6893 = vmatmul.mubr.f32.vlgmr.msra.gmra.mrb[182].mxu0 %v6217_v37  ;;  %7177 = vmatmul.mubr.f32.vlgmr.msra.gmra.mrb[152].mxu1 %v6217_v37  ;;  %v6528_v37 = vld [vmem:[%s14173_s2 + $0x988] sm:$0xff]  ;;  %v6557_v54 = vld [vmem:[%s14173_s2 + $0xa70] sm:$0xff] }
0x1351   :  { %10597 = vmatpush1.bf16.msra.mxu0 %v10596_v62  ;;  %6963 = vmatprep.mubr.f32.mxu0 %v6220_v30  ;;  %v6525_v62 = vld [vmem:[%s14173_s2 + $0x970] sm:$0xff]  ;;  %v10888_v60 = vpack.c.bf16 %v6557_v54, %v6553_v49  ;;  %v6595_v54 = vld [vmem:[%s14173_s2 + $0xba0] sm:$0xff] }
0x1352   :  { %10853 = vmatpush1.bf16.msra.mxu1 %v10852_v51  ;;  %7247 = vmatprep.mubr.f32.mxu1 %v6220_v30  ;;  %v6532_v51 = vld [vmem:[%s14173_s2 + $0x9a8] sm:$0xff]  ;;  %v10872_v30 = vpack.c.bf16 %v6525_v62, %v6521_v23  ;;  %v6563_v62 = vld [vmem:[%s14173_s2 + $0xaa0] sm:$0xff] }
0x1353   :  { %10599 = vmatprep.subr.bf16.mxu0 %v10598_v26  ;;  %10855 = vmatprep.subr.bf16.mxu1 %v10854_v15  ;;  %v10618_v26 = vpack.c.bf16 %v6532_v51, %v6528_v37  ;;  %v6527_v15 = vld [vmem:[%s14173_s2 + $0x980] sm:$0xff]  ;;  %v6561_v37 = vld [vmem:[%s14173_s2 + $0xa90] sm:$0xff] }
0x1354   :  { %v10620_v33 = vpack.c.bf16 %v6531_v47, %v6527_v15  ;;  %v10892_v47 = vpack.c.bf16 %v6565_v63, %v6561_v37  ;;  %v6603_v63 = vld [vmem:[%s14173_s2 + $0xbe0] sm:$0xff] }
0x1355   :  { %10601 = vmatpush1.bf16.msra.mxu0 %v10600_v24  ;;  %v6540_v24 = vld [vmem:[%s14173_s2 + $0x9e8] sm:$0xff] }
0x1356   :  { %10857 = vmatpush1.bf16.msra.mxu1 %v10856_v28  ;;  %10603 = vmatprep.subr.bf16.mxu0 %v10602_v31  ;;  %v6538_v28 = vld [vmem:[%s14173_s2 + $0x9d8] sm:$0xff]  ;;  %v10622_v5 = vpack.c.bf16 %v6540_v24, %v6536_v42  ;;  %v6569_v42 = vld [vmem:[%s14173_s2 + $0xad0] sm:$0xff] }
0x1357   :  { %10859 = vmatprep.subr.bf16.mxu1 %v10858_v43  ;;  %v6542_v31 = vld [vmem:[%s14173_s2 + $0x9f8] sm:$0xff]  ;;  %v6535_v43 = vld [vmem:[%s14173_s2 + $0x9c0] sm:$0xff] }
0x1358   :  { %v10878_v22 = vpack.c.bf16 %v6542_v31, %v6538_v28  ;;  %v10624_v1 = vpack.c.bf16 %v6539_v13, %v6535_v43  ;;  %v6573_v28 = vld [vmem:[%s14173_s2 + $0xaf0] sm:$0xff]  ;;  %v6576_v31 = vld [vmem:[%s14173_s2 + $0xb08] sm:$0xff] }
0x1359   :  { %10605 = vmatpush1.bf16.msra.mxu0 %v10604_v12  ;;  %v6548_v12 = vld [vmem:[%s14173_s2 + $0xa28] sm:$0xff]  ;;  %v10896_v13 = vpack.c.bf16 %v6573_v28, %v6569_v42  ;;  %v6611_v28 = vld [vmem:[%s14173_s2 + $0xc20] sm:$0xff] }
0x135a   :  { %10861 = vmatpush1.bf16.msra.mxu1 %v10860_v18  ;;  %10607 = vmatprep.subr.bf16.mxu0 %v10606_v4  ;;  %v6546_v18 = vld [vmem:[%s14173_s2 + $0xa18] sm:$0xff]  ;;  %v10626_v19 = vpack.c.bf16 %v6548_v12, %v6544_v21  ;;  %v6577_v21 = vld [vmem:[%s14173_s2 + $0xb10] sm:$0xff] }
0x135b   :  { %10863 = vmatprep.subr.bf16.mxu1 %v10862_v8  ;;  %v6550_v4 = vld [vmem:[%s14173_s2 + $0xa38] sm:$0xff]  ;;  %v6543_v8 = vld [vmem:[%s14173_s2 + $0xa00] sm:$0xff] }
0x135c   :  { %v10882_v11 = vpack.c.bf16 %v6550_v4, %v6546_v18  ;;  %v10628_v52 = vpack.c.bf16 %v6547_v9, %v6543_v8  ;;  %v6581_v18 = vld [vmem:[%s14173_s2 + $0xb30] sm:$0xff]  ;;  %v6584_v4 = vld [vmem:[%s14173_s2 + $0xb48] sm:$0xff] }
0x135d   :  { %10609 = vmatpush1.bf16.msra.mxu0 %v10608_v36  ;;  %v6556_v36 = vld [vmem:[%s14173_s2 + $0xa68] sm:$0xff]  ;;  %v10900_v9 = vpack.c.bf16 %v6581_v18, %v6577_v21  ;;  %v6619_v18 = vld [vmem:[%s14173_s2 + $0xc60] sm:$0xff] }
0x135e   :  { %10865 = vmatpush1.bf16.msra.mxu1 %v10864_v39  ;;  %10611 = vmatprep.subr.bf16.mxu0 %v10610_v40  ;;  %v6554_v39 = vld [vmem:[%s14173_s2 + $0xa58] sm:$0xff]  ;;  %v10630_v44 = vpack.c.bf16 %v6556_v36, %v6552_v50  ;;  %v6585_v50 = vld [vmem:[%s14173_s2 + $0xb50] sm:$0xff] }
0x135f   :  { %10867 = vmatprep.subr.bf16.mxu1 %v10866_v45  ;;  %v6558_v40 = vld [vmem:[%s14173_s2 + $0xa78] sm:$0xff]  ;;  %v6551_v45 = vld [vmem:[%s14173_s2 + $0xa40] sm:$0xff] }
0x1360   :  { %v10886_v53 = vpack.c.bf16 %v6558_v40, %v6554_v39  ;;  %v10632_v58 = vpack.c.bf16 %v6555_v48, %v6551_v45  ;;  %v6589_v39 = vld [vmem:[%s14173_s2 + $0xb70] sm:$0xff]  ;;  %v6592_v40 = vld [vmem:[%s14173_s2 + $0xb88] sm:$0xff] }
0x1361   :  { %10613 = vmatpush1.bf16.msra.mxu0 %v10612_v56  ;;  %v6564_v56 = vld [vmem:[%s14173_s2 + $0xaa8] sm:$0xff]  ;;  %v10904_v48 = vpack.c.bf16 %v6589_v39, %v6585_v50  ;;  %v6623_v39 = vld [vmem:[%s14173_s2 + $0xc80] sm:$0xff] }
0x1362   :  { %10869 = vmatpush1.bf16.msra.mxu1 %v10868_v57  ;;  %10615 = vmatprep.subr.bf16.mxu0 %v10614_v32  ;;  %v6562_v57 = vld [vmem:[%s14173_s2 + $0xa98] sm:$0xff]  ;;  %v10634_v23 = vpack.c.bf16 %v6564_v56, %v6560_v55  ;;  %v6593_v55 = vld [vmem:[%s14173_s2 + $0xb90] sm:$0xff] }
0x1363   :  { %10871 = vmatprep.subr.bf16.mxu1 %v10870_v38  ;;  %v6566_v32 = vld [vmem:[%s14173_s2 + $0xab8] sm:$0xff]  ;;  %v6559_v38 = vld [vmem:[%s14173_s2 + $0xa80] sm:$0xff] }
0x1364   :  { %v10890_v51 = vpack.c.bf16 %v6566_v32, %v6562_v57  ;;  %v10636_v15 = vpack.c.bf16 %v6563_v62, %v6559_v38  ;;  %v6597_v57 = vld [vmem:[%s14173_s2 + $0xbb0] sm:$0xff]  ;;  %v6600_v32 = vld [vmem:[%s14173_s2 + $0xbc8] sm:$0xff] }
0x1365   :  { %10617 = vmatpush1.bf16.msra.mxu0 %v10616_v59  ;;  %v6572_v59 = vld [vmem:[%s14173_s2 + $0xae8] sm:$0xff]  ;;  %v10908_v62 = vpack.c.bf16 %v6597_v57, %v6593_v55  ;;  %v6635_v57 = vld [vmem:[%s14173_s2 + $0xce0] sm:$0xff] }
0x1366   :  { %10873 = vmatpush1.bf16.msra.mxu1 %v10872_v30  ;;  %10619 = vmatprep.subr.bf16.mxu0 %v10618_v26  ;;  %v6570_v30 = vld [vmem:[%s14173_s2 + $0xad8] sm:$0xff]  ;;  %v10638_v0 = vpack.c.bf16 %v6572_v59, %v6568_v2  ;;  %v6601_v2 = vld [vmem:[%s14173_s2 + $0xbd0] sm:$0xff] }
0x1367   :  { %10875 = vmatprep.subr.bf16.mxu1 %v10874_v25  ;;  %v6574_v26 = vld [vmem:[%s14173_s2 + $0xaf8] sm:$0xff]  ;;  %v6567_v25 = vld [vmem:[%s14173_s2 + $0xac0] sm:$0xff] }
0x1368   :  { %v10894_v24 = vpack.c.bf16 %v6574_v26, %v6570_v30  ;;  %v10640_v43 = vpack.c.bf16 %v6571_v14, %v6567_v25  ;;  %v6605_v30 = vld [vmem:[%s14173_s2 + $0xbf0] sm:$0xff]  ;;  %v6608_v26 = vld [vmem:[%s14173_s2 + $0xc08] sm:$0xff] }
0x1369   :  { %10621 = vmatpush1.bf16.msra.mxu0 %v10620_v33  ;;  %v6580_v33 = vld [vmem:[%s14173_s2 + $0xb28] sm:$0xff]  ;;  %v10912_v14 = vpack.c.bf16 %v6605_v30, %v6601_v2  ;;  %v6643_v30 = vld [vmem:[%s14173_s2 + $0xd20] sm:$0xff] }
0x136a   :  { %10877 = vmatpush1.bf16.msra.mxu1 %v10876_v34  ;;  %10623 = vmatprep.subr.bf16.mxu0 %v10622_v5  ;;  %v6578_v34 = vld [vmem:[%s14173_s2 + $0xb18] sm:$0xff]  ;;  %v10642_v20 = vpack.c.bf16 %v6580_v33, %v6576_v31  ;;  %v6609_v33 = vld [vmem:[%s14173_s2 + $0xc10] sm:$0xff] }
0x136b   :  { %10879 = vmatprep.subr.bf16.mxu1 %v10878_v22  ;;  %v6582_v5 = vld [vmem:[%s14173_s2 + $0xb38] sm:$0xff]  ;;  %v6575_v22 = vld [vmem:[%s14173_s2 + $0xb00] sm:$0xff] }
0x136c   :  { %v10898_v12 = vpack.c.bf16 %v6582_v5, %v6578_v34  ;;  %v10644_v8 = vpack.c.bf16 %v6579_v17, %v6575_v22  ;;  %v6613_v34 = vld [vmem:[%s14173_s2 + $0xc30] sm:$0xff]  ;;  %v6616_v5 = vld [vmem:[%s14173_s2 + $0xc48] sm:$0xff]  ;;  %v6622_v22 = vld [vmem:[%s14173_s2 + $0xc78] sm:$0xff]  ;;  %v6219_v17 = vmax.f32 %v13736_v16, 0.0 }
0x136d   :  { %10625 = vmatpush1.bf16.msra.mxu0 %v10624_v1  ;;  %v6588_v1 = vld [vmem:[%s14173_s2 + $0xb68] sm:$0xff]  ;;  %v10916_v21 = vpack.c.bf16 %v6613_v34, %v6609_v33  ;;  %v6626_v16 = vld [vmem:[%s14173_s2 + $0xc98] sm:$0xff]  ;;  %v6647_v33 = vld [vmem:[%s14173_s2 + $0xd40] sm:$0xff] }
0x136e   :  { %10881 = vmatpush1.bf16.msra.mxu1 %v10880_v7  ;;  %10627 = vmatprep.subr.bf16.mxu0 %v10626_v19  ;;  %v6586_v7 = vld [vmem:[%s14173_s2 + $0xb58] sm:$0xff]  ;;  %v10646_v10 = vpack.c.bf16 %v6588_v1, %v6584_v4  ;;  %v6617_v4 = vld [vmem:[%s14173_s2 + $0xc50] sm:$0xff]  ;;  %v6651_v34 = vld [vmem:[%s14173_s2 + $0xd60] sm:$0xff] }
0x136f   :  { %10883 = vmatprep.subr.bf16.mxu1 %v10882_v11  ;;  %v6590_v19 = vld [vmem:[%s14173_s2 + $0xb78] sm:$0xff]  ;;  %v6583_v11 = vld [vmem:[%s14173_s2 + $0xb40] sm:$0xff] }
0x1370   :  { %v10902_v36 = vpack.c.bf16 %v6590_v19, %v6586_v7  ;;  %v10648_v45 = vpack.c.bf16 %v6587_v35, %v6583_v11  ;;  %v6621_v7 = vld [vmem:[%s14173_s2 + $0xc70] sm:$0xff]  ;;  %v6624_v19 = vld [vmem:[%s14173_s2 + $0xc88] sm:$0xff]  ;;  %v6630_v11 = vld [vmem:[%s14173_s2 + $0xcb8] sm:$0xff] }
0x1371   :  { %10629 = vmatpush1.bf16.msra.mxu0 %v10628_v52  ;;  %v6596_v52 = vld [vmem:[%s14173_s2 + $0xba8] sm:$0xff]  ;;  %v10920_v50 = vpack.c.bf16 %v6621_v7, %v6617_v4  ;;  %v6659_v7 = vld [vmem:[%s14173_s2 + $0xda0] sm:$0xff] }
0x1372   :  { %10885 = vmatpush1.bf16.msra.mxu1 %v10884_v41  ;;  %10631 = vmatprep.subr.bf16.mxu0 %v10630_v44  ;;  %v6594_v41 = vld [vmem:[%s14173_s2 + $0xb98] sm:$0xff]  ;;  %v10650_v49 = vpack.c.bf16 %v6596_v52, %v6592_v40  ;;  %v6627_v40 = vld [vmem:[%s14173_s2 + $0xca0] sm:$0xff]  ;;  %v6625_v52 = vld [vmem:[%s14173_s2 + $0xc90] sm:$0xff] }
0x1373   :  { %10887 = vmatprep.subr.bf16.mxu1 %v10886_v53  ;;  %v6598_v44 = vld [vmem:[%s14173_s2 + $0xbb8] sm:$0xff]  ;;  %v6591_v53 = vld [vmem:[%s14173_s2 + $0xb80] sm:$0xff] }
0x1374   :  { %v10906_v56 = vpack.c.bf16 %v6598_v44, %v6594_v41  ;;  %v10652_v38 = vpack.c.bf16 %v6595_v54, %v6591_v53  ;;  %v6629_v41 = vld [vmem:[%s14173_s2 + $0xcb0] sm:$0xff]  ;;  %v6632_v44 = vld [vmem:[%s14173_s2 + $0xcc8] sm:$0xff]  ;;  %v10668_v53 = vpack.c.bf16 %v6627_v40, %v6623_v39  ;;  %v6663_v40 = vld [vmem:[%s14173_s2 + $0xdc0] sm:$0xff] }
0x1375   :  { %10633 = vmatpush1.bf16.msra.mxu0 %v10632_v58  ;;  %v6604_v58 = vld [vmem:[%s14173_s2 + $0xbe8] sm:$0xff]  ;;  %v10924_v54 = vpack.c.bf16 %v6629_v41, %v6625_v52  ;;  %v6667_v52 = vld [vmem:[%s14173_s2 + $0xde0] sm:$0xff] }
0x1376   :  { %10889 = vmatpush1.bf16.msra.mxu1 %v10888_v60  ;;  %10635 = vmatprep.subr.bf16.mxu0 %v10634_v23  ;;  %v6602_v60 = vld [vmem:[%s14173_s2 + $0xbd8] sm:$0xff]  ;;  %v10654_v37 = vpack.c.bf16 %v6604_v58, %v6600_v32  ;;  %v6633_v32 = vld [vmem:[%s14173_s2 + $0xcd0] sm:$0xff] }
0x1377   :  { %10891 = vmatprep.subr.bf16.mxu1 %v10890_v51  ;;  %v6606_v23 = vld [vmem:[%s14173_s2 + $0xbf8] sm:$0xff]  ;;  %v6599_v51 = vld [vmem:[%s14173_s2 + $0xbc0] sm:$0xff] }
0x1378   :  { %v10910_v59 = vpack.c.bf16 %v6606_v23, %v6602_v60  ;;  %v10656_v25 = vpack.c.bf16 %v6603_v63, %v6599_v51  ;;  %v6637_v60 = vld [vmem:[%s14173_s2 + $0xcf0] sm:$0xff]  ;;  %v6640_v23 = vld [vmem:[%s14173_s2 + $0xd08] sm:$0xff] }
0x1379   :  { %10637 = vmatpush1.bf16.msra.mxu0 %v10636_v15  ;;  %v6612_v15 = vld [vmem:[%s14173_s2 + $0xc28] sm:$0xff]  ;;  %v10928_v63 = vpack.c.bf16 %v6637_v60, %v6633_v32  ;;  %v6675_v32 = vld [vmem:[%s14173_s2 + $0xe20] sm:$0xff] }
0x137a   :  { %10893 = vmatpush1.bf16.msra.mxu1 %v10892_v47  ;;  %10639 = vmatprep.subr.bf16.mxu0 %v10638_v0  ;;  %v6610_v47 = vld [vmem:[%s14173_s2 + $0xc18] sm:$0xff]  ;;  %v10658_v42 = vpack.c.bf16 %v6612_v15, %v6608_v26  ;;  %v6641_v26 = vld [vmem:[%s14173_s2 + $0xd10] sm:$0xff] }
0x137b   :  { %10895 = vmatprep.subr.bf16.mxu1 %v10894_v24  ;;  %v6614_v0 = vld [vmem:[%s14173_s2 + $0xc38] sm:$0xff]  ;;  %v6607_v24 = vld [vmem:[%s14173_s2 + $0xc00] sm:$0xff] }
0x137c   :  { %v10914_v31 = vpack.c.bf16 %v6614_v0, %v6610_v47  ;;  %v6645_v47 = vld [vmem:[%s14173_s2 + $0xd30] sm:$0xff]  ;;  %v6648_v0 = vld [vmem:[%s14173_s2 + $0xd48] sm:$0xff] }
0x137d   :  { %10641 = vmatpush1.bf16.msra.mxu0 %v10640_v43  ;;  %v6620_v43 = vld [vmem:[%s14173_s2 + $0xc68] sm:$0xff] }
0x137e   :  { %10897 = vmatpush1.bf16.msra.mxu1 %v10896_v13  ;;  %10643 = vmatprep.subr.bf16.mxu0 %v10642_v20  ;;  %v10660_v13 = vpack.c.bf16 %v6611_v28, %v6607_v24  ;;  %v6618_v20 = vld [vmem:[%s14173_s2 + $0xc58] sm:$0xff]  ;;  %v10662_v1 = vpack.c.bf16 %v6620_v43, %v6616_v5  ;;  %v10932_v28 = vpack.c.bf16 %v6645_v47, %v6641_v26  ;;  %v6649_v5 = vld [vmem:[%s14173_s2 + $0xd50] sm:$0xff]  ;;  %v6683_v26 = vld [vmem:[%s14173_s2 + $0xe60] sm:$0xff] }
0x137f   :  { %10899 = vmatprep.subr.bf16.mxu1 %v10898_v12  ;;  %v6615_v12 = vld [vmem:[%s14173_s2 + $0xc40] sm:$0xff] }
0x1380   :  { %v10664_v35 = vpack.c.bf16 %v6619_v18, %v6615_v12  ;;  %v10680_v12 = vpack.c.bf16 %v6651_v34, %v6647_v33  ;;  %v6687_v34 = vld [vmem:[%s14173_s2 + $0xe80] sm:$0xff] }
0x1381   :  { %10645 = vmatpush1.bf16.msra.mxu0 %v10644_v8  ;;  %v6628_v8 = vld [vmem:[%s14173_s2 + $0xca8] sm:$0xff] }
0x1382   :  { %10901 = vmatpush1.bf16.msra.mxu1 %v10900_v9  ;;  %10647 = vmatprep.subr.bf16.mxu0 %v10646_v10  ;;  %v6222_v9 = vmax.f32 %v13745_v61, 0.0  ;;  %v10918_v10 = vpack.c.bf16 %v6622_v22, %v6618_v20  ;;  %v10922_v61 = vpack.c.bf16 %v6630_v11, %v6626_v16  ;;  %v6656_v20 = vld [vmem:[%s14173_s2 + $0xd88] sm:$0xff]  ;;  %v6666_v11 = vld [vmem:[%s14173_s2 + $0xdd8] sm:$0xff] }
0x1383   :  { %10903 = vmatprep.subr.bf16.mxu1 %v10902_v36  ;;  %v10666_v36 = vpack.c.bf16 %v6628_v8, %v6624_v19  ;;  %v6660_v22 = vld [vmem:[%s14173_s2 + $0xda8] sm:$0xff]  ;;  %v6657_v19 = vld [vmem:[%s14173_s2 + $0xd90] sm:$0xff] }
0x1384   :  { %v10682_v4 = vpack.c.bf16 %v6660_v22, %v6656_v20  ;;  %v6668_v16 = vld [vmem:[%s14173_s2 + $0xde8] sm:$0xff]  ;;  %v6693_v20 = vld [vmem:[%s14173_s2 + $0xeb0] sm:$0xff] }
0x1385   :  { %10649 = vmatpush1.bf16.msra.mxu0 %v10648_v45  ;;  %v6636_v45 = vld [vmem:[%s14173_s2 + $0xce8] sm:$0xff] }
0x1386   :  { %10905 = vmatpush1.bf16.msra.mxu1 %v10904_v48  ;;  %10651 = vmatprep.subr.bf16.mxu0 %v10650_v49  ;;  %v6634_v48 = vld [vmem:[%s14173_s2 + $0xcd8] sm:$0xff]  ;;  %v10670_v55 = vpack.c.bf16 %v6636_v45, %v6632_v44  ;;  %v6669_v44 = vld [vmem:[%s14173_s2 + $0xdf0] sm:$0xff]  ;;  %v6672_v45 = vld [vmem:[%s14173_s2 + $0xe08] sm:$0xff] }
0x1387   :  { %10907 = vmatprep.subr.bf16.mxu1 %v10906_v56  ;;  %v6638_v49 = vld [vmem:[%s14173_s2 + $0xcf8] sm:$0xff]  ;;  %v6631_v56 = vld [vmem:[%s14173_s2 + $0xcc0] sm:$0xff]  ;;  %v6696_v22 = vld [vmem:[%s14173_s2 + $0xec8] sm:$0xff] }
0x1388   :  { %v10926_v58 = vpack.c.bf16 %v6638_v49, %v6634_v48  ;;  %v10672_v51 = vpack.c.bf16 %v6635_v57, %v6631_v56  ;;  %v6676_v48 = vld [vmem:[%s14173_s2 + $0xe28] sm:$0xff]  ;;  %v6674_v49 = vld [vmem:[%s14173_s2 + $0xe18] sm:$0xff]  ;;  %v6671_v57 = vld [vmem:[%s14173_s2 + $0xe00] sm:$0xff] }
0x1389   :  { %10653 = vmatpush1.bf16.msra.mxu0 %v10652_v38  ;;  %v6644_v38 = vld [vmem:[%s14173_s2 + $0xd28] sm:$0xff]  ;;  %v10690_v56 = vpack.c.bf16 %v6676_v48, %v6672_v45  ;;  %v6709_v45 = vld [vmem:[%s14173_s2 + $0xf30] sm:$0xff] }
0x138a   :  { %10909 = vmatpush1.bf16.msra.mxu1 %v10908_v62  ;;  %10655 = vmatprep.subr.bf16.mxu0 %v10654_v37  ;;  %v6642_v62 = vld [vmem:[%s14173_s2 + $0xd18] sm:$0xff]  ;;  %v10674_v2 = vpack.c.bf16 %v6644_v38, %v6640_v23  ;;  %v6677_v23 = vld [vmem:[%s14173_s2 + $0xe30] sm:$0xff]  ;;  %v6680_v38 = vld [vmem:[%s14173_s2 + $0xe48] sm:$0xff] }
0x138b   :  { %10911 = vmatprep.subr.bf16.mxu1 %v10910_v59  ;;  %v6646_v37 = vld [vmem:[%s14173_s2 + $0xd38] sm:$0xff]  ;;  %v6639_v59 = vld [vmem:[%s14173_s2 + $0xd00] sm:$0xff]  ;;  %v6712_v48 = vld [vmem:[%s14173_s2 + $0xf48] sm:$0xff] }
0x138c   :  { %v10930_v15 = vpack.c.bf16 %v6646_v37, %v6642_v62  ;;  %v10676_v24 = vpack.c.bf16 %v6643_v30, %v6639_v59  ;;  %v6684_v62 = vld [vmem:[%s14173_s2 + $0xe68] sm:$0xff]  ;;  %v6682_v37 = vld [vmem:[%s14173_s2 + $0xe58] sm:$0xff]  ;;  %v6679_v30 = vld [vmem:[%s14173_s2 + $0xe40] sm:$0xff] }
0x138d   :  { %10657 = vmatpush1.bf16.msra.mxu0 %v10656_v25  ;;  %v6652_v25 = vld [vmem:[%s14173_s2 + $0xd68] sm:$0xff]  ;;  %v10694_v59 = vpack.c.bf16 %v6684_v62, %v6680_v38  ;;  %v6717_v38 = vld [vmem:[%s14173_s2 + $0xf70] sm:$0xff] }
0x138e   :  { %10913 = vmatpush1.bf16.msra.mxu1 %v10912_v14  ;;  %10659 = vmatprep.subr.bf16.mxu0 %v10658_v42  ;;  %v6650_v14 = vld [vmem:[%s14173_s2 + $0xd58] sm:$0xff]  ;;  %v6720_v62 = vld [vmem:[%s14173_s2 + $0xf88] sm:$0xff] }
0x138f   :  { %10915 = vmatprep.subr.bf16.mxu1 %v10914_v31  ;;  %v6654_v42 = vld [vmem:[%s14173_s2 + $0xd78] sm:$0xff]  ;;  %v10678_v31 = vpack.c.bf16 %v6652_v25, %v6648_v0  ;;  %v6685_v0 = vld [vmem:[%s14173_s2 + $0xe70] sm:$0xff]  ;;  %v6688_v25 = vld [vmem:[%s14173_s2 + $0xe88] sm:$0xff] }
0x1390   :  { %6964 = vmatmul.mubr.f32.vlgmr.msra.gmra.mrb[182].mxu0 %v6219_v17  ;;  %v10934_v43 = vpack.c.bf16 %v6654_v42, %v6650_v14  ;;  %v6692_v14 = vld [vmem:[%s14173_s2 + $0xea8] sm:$0xff]  ;;  %v6690_v42 = vld [vmem:[%s14173_s2 + $0xe98] sm:$0xff] }
0x1391   :  { %7248 = vmatmul.mubr.f32.vlgmr.msra.gmra.mrb[152].mxu1 %v6219_v17  ;;  %10661 = vmatpush1.bf16.msra.mxu0 %v10660_v13  ;;  %v6653_v13 = vld [vmem:[%s14173_s2 + $0xd70] sm:$0xff]  ;;  %v6658_v17 = vld [vmem:[%s14173_s2 + $0xd98] sm:$0xff]  ;;  %v10698_v33 = vpack.c.bf16 %v6692_v14, %v6688_v25  ;;  %v6728_v14 = vld [vmem:[%s14173_s2 + $0xfc8] sm:$0xff] }
0x1392   :  { %7034 = vmatprep.mubr.f32.mxu0 %v6222_v9  ;;  %10917 = vmatpush1.bf16.msra.mxu1 %v10916_v21  ;;  %v6662_v21 = vld [vmem:[%s14173_s2 + $0xdb8] sm:$0xff]  ;;  %v10936_v18 = vpack.c.bf16 %v6653_v13, %v6649_v5  ;;  %v6691_v5 = vld [vmem:[%s14173_s2 + $0xea0] sm:$0xff]  ;;  %v6725_v25 = vld [vmem:[%s14173_s2 + $0xfb0] sm:$0xff] }
0x1393   :  { %7318 = vmatprep.mubr.f32.mxu1 %v6222_v9  ;;  %10663 = vmatprep.subr.bf16.mxu0 %v10662_v1  ;;  %v6655_v1 = vld [vmem:[%s14173_s2 + $0xd80] sm:$0xff]  ;;  %v10938_v8 = vpack.c.bf16 %v6662_v21, %v6658_v17  ;;  %v6661_v9 = vld [vmem:[%s14173_s2 + $0xdb0] sm:$0xff]  ;;  %v6700_v17 = vld [vmem:[%s14173_s2 + $0xee8] sm:$0xff] }
0x1394   :  { %10919 = vmatprep.subr.bf16.mxu1 %v10918_v10  ;;  %v6664_v10 = vld [vmem:[%s14173_s2 + $0xdc8] sm:$0xff]  ;;  %v6698_v21 = vld [vmem:[%s14173_s2 + $0xed8] sm:$0xff] }
0x1395   :  { %10665 = vmatpush1.bf16.msra.mxu0 %v10664_v35  ;;  %v6670_v35 = vld [vmem:[%s14173_s2 + $0xdf8] sm:$0xff]  ;;  %v10686_v39 = vpack.c.bf16 %v6668_v16, %v6664_v10  ;;  %v6701_v10 = vld [vmem:[%s14173_s2 + $0xef0] sm:$0xff]  ;;  %v6704_v16 = vld [vmem:[%s14173_s2 + $0xf08] sm:$0xff] }
0x1396   :  { %10921 = vmatpush1.bf16.msra.mxu1 %v10920_v50  ;;  %10667 = vmatprep.subr.bf16.mxu0 %v10666_v36  ;;  %v10684_v50 = vpack.c.bf16 %v6659_v7, %v6655_v1  ;;  %v10940_v36 = vpack.c.bf16 %v6661_v9, %v6657_v19  ;;  %v10942_v41 = vpack.c.bf16 %v6670_v35, %v6666_v11  ;;  %v6695_v7 = vld [vmem:[%s14173_s2 + $0xec0] sm:$0xff]  ;;  %v6708_v11 = vld [vmem:[%s14173_s2 + $0xf28] sm:$0xff]  ;;  %v6706_v35 = vld [vmem:[%s14173_s2 + $0xf18] sm:$0xff] }
0x1397   :  { %10923 = vmatprep.subr.bf16.mxu1 %v10922_v61  ;;  %v6665_v61 = vld [vmem:[%s14173_s2 + $0xdd0] sm:$0xff]  ;;  %v10702_v1 = vpack.c.bf16 %v6700_v17, %v6696_v22  ;;  %v6699_v19 = vld [vmem:[%s14173_s2 + $0xee0] sm:$0xff] }
0x1398   :  { %v6733_v22 = vld [vmem:[%s14173_s2 + $0xff0] sm:$0xff]  ;;  %v7345_v17 = vld [vmem:[%s11697_s13 + $0x80] sm:$0xff] }
0x1399   :  { %10669 = vmatpush1.bf16.msra.mxu0 %v10668_v53  ;;  %v6678_v53 = vld [vmem:[%s14173_s2 + $0xe38] sm:$0xff] }
0x139a   :  { %10925 = vmatpush1.bf16.msra.mxu1 %v10924_v54  ;;  %10671 = vmatprep.subr.bf16.mxu0 %v10670_v55  ;;  %v10688_v54 = vpack.c.bf16 %v6667_v52, %v6663_v40  ;;  %v10944_v55 = vpack.c.bf16 %v6669_v44, %v6665_v61  ;;  %v10946_v60 = vpack.c.bf16 %v6678_v53, %v6674_v49  ;;  %v6703_v52 = vld [vmem:[%s14173_s2 + $0xf00] sm:$0xff]  ;;  %v6716_v49 = vld [vmem:[%s14173_s2 + $0xf68] sm:$0xff]  ;;  %v6714_v53 = vld [vmem:[%s14173_s2 + $0xf58] sm:$0xff] }
0x139b   :  { %10927 = vmatprep.subr.bf16.mxu1 %v10926_v58  ;;  %v6673_v58 = vld [vmem:[%s14173_s2 + $0xe10] sm:$0xff]  ;;  %v10706_v40 = vpack.c.bf16 %v6708_v11, %v6704_v16  ;;  %v6707_v61 = vld [vmem:[%s14173_s2 + $0xf20] sm:$0xff]  ;;  %v7362_v16 = vld [vmem:[%s11697_s13 + $0x108] sm:$0xff] }
0x139c   :  { %v7347_v11 = vld [vmem:[%s11697_s13 + $0x90] sm:$0xff] }
0x139d   :  { %10673 = vmatpush1.bf16.msra.mxu0 %v10672_v51  ;;  %v6686_v51 = vld [vmem:[%s14173_s2 + $0xe78] sm:$0xff] }
0x139e   :  { %10929 = vmatpush1.bf16.msra.mxu1 %v10928_v63  ;;  %10675 = vmatprep.subr.bf16.mxu0 %v10674_v2  ;;  %v10692_v63 = vpack.c.bf16 %v6675_v32, %v6671_v57  ;;  %v10948_v2 = vpack.c.bf16 %v6677_v23, %v6673_v58  ;;  %v10950_v47 = vpack.c.bf16 %v6686_v51, %v6682_v37  ;;  %v6711_v32 = vld [vmem:[%s14173_s2 + $0xf40] sm:$0xff]  ;;  %v6724_v37 = vld [vmem:[%s14173_s2 + $0xfa8] sm:$0xff]  ;;  %v6722_v51 = vld [vmem:[%s14173_s2 + $0xf98] sm:$0xff] }
0x139f   :  { %10931 = vmatprep.subr.bf16.mxu1 %v10930_v15  ;;  %v6681_v15 = vld [vmem:[%s14173_s2 + $0xe50] sm:$0xff]  ;;  %v10710_v57 = vpack.c.bf16 %v6716_v49, %v6712_v48  ;;  %v6715_v58 = vld [vmem:[%s14173_s2 + $0xf60] sm:$0xff]  ;;  %v7364_v49 = vld [vmem:[%s11697_s13 + $0x118] sm:$0xff] }
0x13a1   :  { %10677 = vmatpush1.bf16.msra.mxu0 %v10676_v24  ;;  %v6694_v24 = vld [vmem:[%s14173_s2 + $0xeb8] sm:$0xff] }
0x13a2   :  { %10933 = vmatpush1.bf16.msra.mxu1 %v10932_v28  ;;  %10679 = vmatprep.subr.bf16.mxu0 %v10678_v31  ;;  %v10696_v28 = vpack.c.bf16 %v6683_v26, %v6679_v30  ;;  %v10952_v31 = vpack.c.bf16 %v6685_v0, %v6681_v15  ;;  %v10954_v13 = vpack.c.bf16 %v6694_v24, %v6690_v42  ;;  %v6719_v26 = vld [vmem:[%s14173_s2 + $0xf80] sm:$0xff]  ;;  %v6732_v42 = vld [vmem:[%s14173_s2 + $0xfe8] sm:$0xff]  ;;  %v6730_v24 = vld [vmem:[%s14173_s2 + $0xfd8] sm:$0xff] }
0x13a3   :  { %10935 = vmatprep.subr.bf16.mxu1 %v10934_v43  ;;  %v6689_v43 = vld [vmem:[%s14173_s2 + $0xe90] sm:$0xff]  ;;  %v10714_v30 = vpack.c.bf16 %v6724_v37, %v6720_v62  ;;  %v6723_v15 = vld [vmem:[%s14173_s2 + $0xfa0] sm:$0xff]  ;;  %v7366_v62 = vld [vmem:[%s11697_s13 + $0x128] sm:$0xff] }
0x13a4   :  { %v7351_v37 = vld [vmem:[%s11697_s13 + $0xb0] sm:$0xff] }
0x13a5   :  { %10681 = vmatpush1.bf16.msra.mxu0 %v10680_v12  ;;  %v6702_v12 = vld [vmem:[%s14173_s2 + $0xef8] sm:$0xff] }
0x13a6   :  { %10937 = vmatpush1.bf16.msra.mxu1 %v10936_v18  ;;  %10683 = vmatprep.subr.bf16.mxu0 %v10682_v4  ;;  %v10700_v18 = vpack.c.bf16 %v6691_v5, %v6687_v34  ;;  %v10956_v4 = vpack.c.bf16 %v6693_v20, %v6689_v43  ;;  %v10958_v9 = vpack.c.bf16 %v6702_v12, %v6698_v21  ;;  %v6727_v5 = vld [vmem:[%s14173_s2 + $0xfc0] sm:$0xff]  ;;  %v7346_v21 = vld [vmem:[%s11697_s13 + $0x88] sm:$0xff] }
0x13a7   :  { %10939 = vmatprep.subr.bf16.mxu1 %v10938_v8  ;;  %v6697_v8 = vld [vmem:[%s14173_s2 + $0xed0] sm:$0xff]  ;;  %v10718_v34 = vpack.c.bf16 %v6732_v42, %v6728_v14  ;;  %v6731_v43 = vld [vmem:[%s14173_s2 + $0xfe0] sm:$0xff]  ;;  %v7368_v14 = vld [vmem:[%s11697_s13 + $0x138] sm:$0xff] }
0x13a8   :  { %v7377_v12 = vld [vmem:[%s11697_s13 + $0x180] sm:$0xff] }
0x13a9   :  { %10685 = vmatpush1.bf16.msra.mxu0 %v10684_v50  ;;  %v6710_v50 = vld [vmem:[%s14173_s2 + $0xf38] sm:$0xff]  ;;  %v7353_v42 = vld [vmem:[%s11697_s13 + $0xc0] sm:$0xff] }
0x13aa   :  { %10941 = vmatpush1.bf16.msra.mxu1 %v10940_v36  ;;  %10687 = vmatprep.subr.bf16.mxu0 %v10686_v39  ;;  %v10704_v36 = vpack.c.bf16 %v6699_v19, %v6695_v7  ;;  %v10960_v39 = vpack.c.bf16 %v6701_v10, %v6697_v8  ;;  %v10962_v44 = vpack.c.bf16 %v6710_v50, %v6706_v35  ;;  %v7329_v19 = vld [vmem:[%s11697_s13] sm:$0xff]  ;;  %v7330_v8 = vld [vmem:[%s11697_s13 + $0x8] sm:$0xff]  ;;  %v7348_v35 = vld [vmem:[%s11697_s13 + $0x98] sm:$0xff] }
0x13ab   :  { %10943 = vmatprep.subr.bf16.mxu1 %v10942_v41  ;;  %v6705_v41 = vld [vmem:[%s14173_s2 + $0xf10] sm:$0xff]  ;;  %v10978_v7 = vpack.c.bf16 %v7346_v21, %v7345_v17  ;;  %v7370_v17 = vld [vmem:[%s11697_s13 + $0x148] sm:$0xff] }
0x13ac   :  { %v7379_v50 = vld [vmem:[%s11697_s13 + $0x190] sm:$0xff] }
0x13ad   :  { %10689 = vmatpush1.bf16.msra.mxu0 %v10688_v54  ;;  %v6718_v54 = vld [vmem:[%s14173_s2 + $0xf78] sm:$0xff]  ;;  %v7355_v21 = vld [vmem:[%s11697_s13 + $0xd0] sm:$0xff] }
0x13ae   :  { %10945 = vmatpush1.bf16.msra.mxu1 %v10944_v55  ;;  %10691 = vmatprep.subr.bf16.mxu0 %v10690_v56  ;;  %v10708_v55 = vpack.c.bf16 %v6707_v61, %v6703_v52  ;;  %v10964_v56 = vpack.c.bf16 %v6709_v45, %v6705_v41  ;;  %v10966_v23 = vpack.c.bf16 %v6718_v54, %v6714_v53  ;;  %v7331_v41 = vld [vmem:[%s11697_s13 + $0x10] sm:$0xff]  ;;  %v7349_v53 = vld [vmem:[%s11697_s13 + $0xa0] sm:$0xff]  ;;  %v7350_v54 = vld [vmem:[%s11697_s13 + $0xa8] sm:$0xff] }
0x13af   :  { %10947 = vmatprep.subr.bf16.mxu1 %v10946_v60  ;;  %v6713_v60 = vld [vmem:[%s14173_s2 + $0xf50] sm:$0xff]  ;;  %v10982_v61 = vpack.c.bf16 %v7348_v35, %v7347_v11  ;;  %v7372_v11 = vld [vmem:[%s11697_s13 + $0x158] sm:$0xff]  ;;  %v7357_v35 = vld [vmem:[%s11697_s13 + $0xe0] sm:$0xff] }
0x13b0   :  { %v7363_v45 = vld [vmem:[%s11697_s13 + $0x110] sm:$0xff] }
0x13b1   :  { %10693 = vmatpush1.bf16.msra.mxu0 %v10692_v63  ;;  %v6726_v63 = vld [vmem:[%s14173_s2 + $0xfb8] sm:$0xff] }
0x13b2   :  { %10949 = vmatpush1.bf16.msra.mxu1 %v10948_v2  ;;  %10695 = vmatprep.subr.bf16.mxu0 %v10694_v59  ;;  %v10712_v2 = vpack.c.bf16 %v6715_v58, %v6711_v32  ;;  %v10968_v59 = vpack.c.bf16 %v6717_v38, %v6713_v60  ;;  %v10970_v0 = vpack.c.bf16 %v6726_v63, %v6722_v51  ;;  %v7333_v58 = vld [vmem:[%s11697_s13 + $0x20] sm:$0xff]  ;;  %v7334_v60 = vld [vmem:[%s11697_s13 + $0x28] sm:$0xff]  ;;  %v7352_v51 = vld [vmem:[%s11697_s13 + $0xb8] sm:$0xff] }
0x13b3   :  { %10951 = vmatprep.subr.bf16.mxu1 %v10950_v47  ;;  %v6721_v47 = vld [vmem:[%s14173_s2 + $0xf90] sm:$0xff]  ;;  %v10986_v32 = vpack.c.bf16 %v7350_v54, %v7349_v53  ;;  %v7374_v53 = vld [vmem:[%s11697_s13 + $0x168] sm:$0xff] }
0x13b4   :  { %v7383_v63 = vld [vmem:[%s11697_s13 + $0x1b0] sm:$0xff] }
0x13b5   :  { %10697 = vmatpush1.bf16.msra.mxu0 %v10696_v28  ;;  %v6734_v28 = vld [vmem:[%s14173_s2 + $0xff8] sm:$0xff] }
0x13b6   :  { %10953 = vmatpush1.bf16.msra.mxu1 %v10952_v31  ;;  %10699 = vmatprep.subr.bf16.mxu0 %v10698_v33  ;;  %v10716_v31 = vpack.c.bf16 %v6723_v15, %v6719_v26  ;;  %v10972_v33 = vpack.c.bf16 %v6725_v25, %v6721_v47  ;;  %v10974_v20 = vpack.c.bf16 %v6734_v28, %v6730_v24  ;;  %v7335_v15 = vld [vmem:[%s11697_s13 + $0x30] sm:$0xff]  ;;  %v7336_v47 = vld [vmem:[%s11697_s13 + $0x38] sm:$0xff]  ;;  %v7354_v24 = vld [vmem:[%s11697_s13 + $0xc8] sm:$0xff] }
0x13b7   :  { %10955 = vmatprep.subr.bf16.mxu1 %v10954_v13  ;;  %v6729_v13 = vld [vmem:[%s14173_s2 + $0xfd0] sm:$0xff]  ;;  %v10990_v26 = vpack.c.bf16 %v7352_v51, %v7351_v37  ;;  %v7385_v28 = vld [vmem:[%s11697_s13 + $0x1c0] sm:$0xff]  ;;  %v7376_v37 = vld [vmem:[%s11697_s13 + $0x178] sm:$0xff] }
0x13b9   :  { %10701 = vmatpush1.bf16.msra.mxu0 %v10700_v18  ;;  %v7378_v18 = vld [vmem:[%s11697_s13 + $0x188] sm:$0xff] }
0x13ba   :  { %10957 = vmatpush1.bf16.msra.mxu1 %v10956_v4  ;;  %10703 = vmatprep.subr.bf16.mxu0 %v10702_v1  ;;  %v10720_v4 = vpack.c.bf16 %v6731_v43, %v6727_v5  ;;  %v10976_v1 = vpack.c.bf16 %v6733_v22, %v6729_v13  ;;  %v11010_v10 = vpack.c.bf16 %v7378_v18, %v7377_v12  ;;  %v7337_v43 = vld [vmem:[%s11697_s13 + $0x40] sm:$0xff]  ;;  %v7338_v13 = vld [vmem:[%s11697_s13 + $0x48] sm:$0xff]  ;;  %v7356_v12 = vld [vmem:[%s11697_s13 + $0xd8] sm:$0xff] }
0x13bb   :  { %10959 = vmatprep.subr.bf16.mxu1 %v10958_v9  ;;  %v7361_v9 = vld [vmem:[%s11697_s13 + $0x100] sm:$0xff]  ;;  %v10994_v5 = vpack.c.bf16 %v7354_v24, %v7353_v42  ;;  %v7387_v18 = vld [vmem:[%s11697_s13 + $0x1d0] sm:$0xff] }
0x13bc   :  { %v11012_v52 = vpack.c.bf16 %v7362_v16, %v7361_v9  ;;  %v7340_v9 = vld [vmem:[%s11697_s13 + $0x58] sm:$0xff] }
0x13bd   :  { %10705 = vmatpush1.bf16.msra.mxu0 %v10704_v36  ;;  %v7380_v36 = vld [vmem:[%s11697_s13 + $0x198] sm:$0xff] }
0x13be   :  { %10961 = vmatpush1.bf16.msra.mxu1 %v10960_v39  ;;  %10707 = vmatprep.subr.bf16.mxu0 %v10706_v40  ;;  %v10980_v39 = vpack.c.bf16 %v7330_v8, %v7329_v19  ;;  %v6221_v40 = vmax.f32 %v13738_v3, 0.0  ;;  %v11014_v48 = vpack.c.bf16 %v7380_v36, %v7379_v50  ;;  %v7382_v3 = vld [vmem:[%s11697_s13 + $0x1a8] sm:$0xff]  ;;  %v10998_v19 = vpack.c.bf16 %v7356_v12, %v7355_v21  ;;  %v7339_v8 = vld [vmem:[%s11697_s13 + $0x50] sm:$0xff]  ;;  %v7389_v36 = vld [vmem:[%s11697_s13 + $0x1e0] sm:$0xff] }
0x13bf   :  { %10963 = vmatprep.subr.bf16.mxu1 %v10962_v44  ;;  %v7332_v44 = vld [vmem:[%s11697_s13 + $0x18] sm:$0xff]  ;;  %v7358_v50 = vld [vmem:[%s11697_s13 + $0xe8] sm:$0xff] }
0x13c1   :  { %10709 = vmatpush1.bf16.msra.mxu0 %v10708_v55  ;;  %v7381_v55 = vld [vmem:[%s11697_s13 + $0x1a0] sm:$0xff] }
0x13c2   :  { %10965 = vmatpush1.bf16.msra.mxu1 %v10964_v56  ;;  %10711 = vmatprep.subr.bf16.mxu0 %v10710_v57  ;;  %v10984_v56 = vpack.c.bf16 %v7332_v44, %v7331_v41  ;;  %v11016_v57 = vpack.c.bf16 %v7364_v49, %v7363_v45  ;;  %v11018_v38 = vpack.c.bf16 %v7382_v3, %v7381_v55  ;;  %v7341_v44 = vld [vmem:[%s11697_s13 + $0x60] sm:$0xff]  ;;  %v7342_v45 = vld [vmem:[%s11697_s13 + $0x68] sm:$0xff]  ;;  %v7359_v55 = vld [vmem:[%s11697_s13 + $0xf0] sm:$0xff] }
0x13c3   :  { %10967 = vmatprep.subr.bf16.mxu1 %v10966_v23  ;;  %v7365_v23 = vld [vmem:[%s11697_s13 + $0x120] sm:$0xff]  ;;  %v11004_v49 = vpack.c.bf16 %v7342_v45, %v7341_v44  ;;  %v7360_v3 = vld [vmem:[%s11697_s13 + $0xf8] sm:$0xff] }
0x13c5   :  { %10713 = vmatpush1.bf16.msra.mxu0 %v10712_v2  ;;  %v7384_v2 = vld [vmem:[%s11697_s13 + $0x1b8] sm:$0xff] }
0x13c6   :  { %10969 = vmatpush1.bf16.msra.mxu1 %v10968_v59  ;;  %10715 = vmatprep.subr.bf16.mxu0 %v10714_v30  ;;  %v10988_v59 = vpack.c.bf16 %v7334_v60, %v7333_v58  ;;  %v11020_v30 = vpack.c.bf16 %v7366_v62, %v7365_v23  ;;  %v11022_v25 = vpack.c.bf16 %v7384_v2, %v7383_v63  ;;  %v7343_v58 = vld [vmem:[%s11697_s13 + $0x70] sm:$0xff]  ;;  %v7344_v60 = vld [vmem:[%s11697_s13 + $0x78] sm:$0xff] }
0x13c7   :  { %10971 = vmatprep.subr.bf16.mxu1 %v10970_v0  ;;  %v7367_v0 = vld [vmem:[%s11697_s13 + $0x130] sm:$0xff] }
0x13c8   :  { %v7375_v62 = vld [vmem:[%s11697_s13 + $0x170] sm:$0xff] }
0x13c9   :  { %10717 = vmatpush1.bf16.msra.mxu0 %v10716_v31  ;;  %v7386_v31 = vld [vmem:[%s11697_s13 + $0x1c8] sm:$0xff]  ;;  %v11040_v51 = vpack.c.bf16 %v7376_v37, %v7375_v62  ;;  %v6735_v63 = vld [vmem:[#allocation21] sm:$0xf] }
0x13ca   :  { %10973 = vmatpush1.bf16.msra.mxu1 %v10972_v33  ;;  %10719 = vmatprep.subr.bf16.mxu0 %v10718_v34  ;;  %v10992_v33 = vpack.c.bf16 %v7336_v47, %v7335_v15  ;;  %v11024_v34 = vpack.c.bf16 %v7368_v14, %v7367_v0  ;;  %v11026_v22 = vpack.c.bf16 %v7386_v31, %v7385_v28 }
0x13cb   :  { %10975 = vmatprep.subr.bf16.mxu1 %v10974_v20  ;;  %v7369_v20 = vld [vmem:[%s11697_s13 + $0x140] sm:$0xff]  ;;  %v6740_v2 = vrot.slane %v6735_v63, %v11933_v27 }
0x13cd   :  { %10721 = vmatpush1.bf16.msra.mxu0 %v10720_v4  ;;  %v7388_v4 = vld [vmem:[%s11697_s13 + $0x1d8] sm:$0xff] }
0x13ce   :  { %10977 = vmatpush1.bf16.msra.mxu1 %v10976_v1  ;;  %10979 = vmatprep.subr.bf16.mxu0 %v10978_v7  ;;  %v10996_v1 = vpack.c.bf16 %v7338_v13, %v7337_v43  ;;  %v11028_v7 = vpack.c.bf16 %v7370_v17, %v7369_v20  ;;  %v11030_v16 = vpack.c.bf16 %v7388_v4, %v7387_v18 }
0x13cf   :  { %11011 = vmatprep.subr.bf16.mxu1 %v11010_v10  ;;  %v7371_v10 = vld [vmem:[%s11697_s13 + $0x150] sm:$0xff] }
0x13d0   :  { %7035 = vmatmul.mubr.f32.vlgmr.msra.gmra.mrb[182].mxu0 %v6221_v40 }
0x13d1   :  { %7319 = vmatmul.mubr.f32.vlgmr.msra.gmra.mrb[152].mxu1 %v6221_v40  ;;  %10981 = vmatpush3.bf16.msra.mxu0 %v10980_v39  ;;  %v7390_v39 = vld [vmem:[%s11697_s13 + $0x1e8] sm:$0xff]  ;;  %v11000_v40 = vpack.c.bf16 %v7340_v9, %v7339_v8 }
0x13d2   :  { %11013 = vmatpush3.bf16.msra.mxu1 %v11012_v52  ;;  %10983 = vmatprep.subr.bf16.mxu0 %v10982_v61  ;;  %v11032_v52 = vpack.c.bf16 %v7372_v11, %v7371_v10  ;;  %v11002_v61 = vpack.c.bf16 %v7358_v50, %v7357_v35  ;;  %v11034_v41 = vpack.c.bf16 %v7390_v39, %v7389_v36 }
0x13d3   :  { %11015 = vmatprep.subr.bf16.mxu1 %v11014_v48  ;;  %v7373_v48 = vld [vmem:[%s11697_s13 + $0x160] sm:$0xff] }
0x13d4   :  { %v11036_v54 = vpack.c.bf16 %v7374_v53, %v7373_v48 }
0x13d5   :  { %10985 = vmatpush3.bf16.msra.mxu0 %v10984_v56  ;;  %v7391_v56 = vld [vmem:[%s11697_s13 + $0x1f0] sm:$0xff] }
0x13d6   :  { %11017 = vmatpush3.bf16.msra.mxu1 %v11016_v57  ;;  %10987 = vmatprep.subr.bf16.mxu0 %v10986_v32  ;;  %v11006_v57 = vpack.c.bf16 %v7360_v3, %v7359_v55  ;;  %v7392_v32 = vld [vmem:[%s11697_s13 + $0x1f8] sm:$0xff] }
0x13d7   :  { %11019 = vmatprep.subr.bf16.mxu1 %v11018_v38  ;;  %v11038_v23 = vpack.c.bf16 %v7392_v32, %v7391_v56  ;;  %v11008_v38 = vpack.c.bf16 %v7344_v60, %v7343_v58 }
0x13d9   :  { %10989 = vmatpush3.bf16.msra.mxu0 %v10988_v59  ;;  %v6748_v59 = vrot.slane %v6735_v63, %v12011_v46  ;;  %v7591_v46 = vld [vmem:[#allocation22] ss:$0 sm:$0xff] }
0x13da   :  { %11021 = vmatpush3.bf16.msra.mxu1 %v11020_v30  ;;  %10991 = vmatprep.subr.bf16.mxu0 %v10990_v26  ;;  %v6744_v30 = vrot.slane %v6735_v63, %v11936_v29  ;;  %v6752_v26 = vrot.slane %v6735_v63, %v12556_v6 }
0x13db   :  { %11023 = vmatprep.subr.bf16.mxu1 %v11022_v25 }
0x13dd   :  { %10993 = vmatpush3.bf16.msra.mxu0 %v10992_v33 }
0x13de   :  { %11025 = vmatpush3.bf16.msra.mxu1 %v11024_v34  ;;  %10995 = vmatprep.subr.bf16.mxu0 %v10994_v5 }
0x13df   :  { %11027 = vmatprep.subr.bf16.mxu1 %v11026_v22 }
0x13e1   :  { %10997 = vmatpush3.bf16.msra.mxu0 %v10996_v1 }
0x13e2   :  { %11029 = vmatpush3.bf16.msra.mxu1 %v11028_v7  ;;  %10999 = vmatprep.subr.bf16.mxu0 %v10998_v19 }
0x13e3   :  { %11031 = vmatprep.subr.bf16.mxu1 %v11030_v16 }
0x13e5   :  { %11001 = vmatpush3.bf16.msra.mxu0 %v11000_v40 }
0x13e6   :  { %11033 = vmatpush3.bf16.msra.mxu1 %v11032_v52  ;;  %11003 = vmatprep.subr.bf16.mxu0 %v11002_v61 }
0x13e7   :  { %11035 = vmatprep.subr.bf16.mxu1 %v11034_v41 }
0x13e9   :  { %11005 = vmatpush3.bf16.msra.mxu0 %v11004_v49 }
0x13ea   :  { %11037 = vmatpush3.bf16.msra.mxu1 %v11036_v54  ;;  %11007 = vmatprep.subr.bf16.mxu0 %v11006_v57 }
0x13eb   :  { %11039 = vmatprep.subr.bf16.mxu1 %v11038_v23 }
0x13ed   :  { %11009 = vmatpush3.bf16.msra.mxu0 %v11008_v38 }
0x13ee   :  { %11041 = vmatpush3.bf16.msra.mxu1 %v11040_v51 }
0x14a3   :  { %v7036_v15 = vpop.f32.mrb[182].mxu0 }
0x14a4   :  { %v11050_v47 = vadd.f32 %v7036_v15, %v6740_v2  ;;  %v7320_v0 = vpop.f32.mrb[152].mxu1  ;;  %v7038_v25 = vpop.f32.mrb[183].mxu0 }
0x14a5   :  { %v11052_v14 = vadd.f32 %v7320_v0, %v6748_v59  ;;  %v11051_v42 = vadd.f32 %v7038_v25, %v6744_v30  ;;  %v7322_v24 = vpop.f32.mrb[153].mxu1 }
0x14a6   :  { %v11053_v28 = vadd.f32 %v7322_v24, %v6752_v26  ;;  %v7325_v33 = vmax.f32 %v11050_v47, 0.0 }
0x14a7   :  { %v7326_v31 = vmax.f32 %v11051_v42, 0.0  ;;  %v7327_v5 = vmax.f32 %v11052_v14, 0.0 }
0x14a8   :  { %v7328_v34 = vmax.f32 %v11053_v28, 0.0 }
0x14a9   :  { %7464 = vmatprep.mubr.f32.mxu0 %v7326_v31 }
0x14aa   :  { %7534 = vmatprep.mubr.f32.mxu1 %v7328_v34  ;;  %7465 = vmatmul.mubr.f32.vlgmr.msra.gmra.mrb[184].mxu0 %v7325_v33 }
0x14ab   :  { %7535 = vmatmul.mubr.f32.vlgmr.msra.gmra.mrb[154].mxu1 %v7327_v5 }
0x157d   :  { %v8257_v27 = vpop.f32.mrb[184].mxu0 }
0x157e   :  { %v8292_v29 = vpop.f32.mrb[154].mxu1  ;;  %v8258_v6 = vpop.f32.mrb[185].mxu0 }
0x157f   :  { %v8259_v43 = vadd.f32 %v8258_v6, %v8257_v27  ;;  %v8293_v13 = vpop.f32.mrb[155].mxu1 }
0x1580   :  { %v8294_v20 = vadd.f32 %v8293_v13, %v8292_v29 }
0x1581   :  { %v7467_v22 = vadd.f32 %v8259_v43, %v7591_v46 }
0x1583   :  { %v7537_v17 = vadd.f32 %v8294_v20, %v7467_v22 }
0x1585   :  { %7540 = vst [vmem:[%s11707_s5] sm:$0xff] %v7537_v17 }
0x1586   :  { %7545 = vsyncpa [#allocation3], 1 }
0x1587   :  { %7546 = vsyncpa [#allocation5], 1 }
0x1588   :  { %7547 = vsyncpa [#allocation8], 1 }
0x1589   :  { %7548 = vsyncpa [#allocation11], 1 }
0x158a   :  { %7549 = vsyncpa [#allocation14], 1 }
0x158b   :  { %7550 = vsyncpa [#allocation17], 1 }
0x158c   :  { %7551 = vsyncpa [#allocation20], 1 }
0x158d   :  { %7552 = vsyncpa [#allocation23], 1 }

</bundles_post_ra>
